<compile_context>
chip_gen: v7x
topology: tpu7x:2x2x1
jax: 0.10.0
libtpu: 0.0.40
codegen_flags: <defaults>
</compile_context>

<pallas_src>
import functools
import numpy as np

import jax
import jax.numpy as jnp
from jax import lax
from jax.experimental import pallas as pl
from jax.experimental.pallas import tpu as pltpu

NEG_SLOPE = 0.2     # LeakyReLU(0.2)
BN_EPS = 1e-5       # nn.BatchNorm2d default eps


# ------------------------------ helpers ------------------------------------

def _lrelu(x):
    return jnp.where(x >= 0, x, NEG_SLOPE * x)


def _bn_scale_shift(y, gamma, beta):
    """Training-mode BatchNorm folded to one FMA (single stats pass, biased var)."""
    m = y.shape[0]
    s1 = jnp.sum(y, axis=0, keepdims=True)
    s2 = jnp.sum(y * y, axis=0, keepdims=True)
    mu = s1 / m
    var = s2 / m - mu * mu
    scale = gamma * lax.rsqrt(var + BN_EPS)
    shift = beta - mu * scale
    return y * scale + shift


def _vmem_specs(k):
    return [pl.BlockSpec(memory_space=pltpu.MemorySpace.VMEM) for _ in range(k)]


_COMPILER_PARAMS = pltpu.CompilerParams(vmem_limit_bytes=32 * 1024 * 1024)


# ----------------------------- Pallas kernels ------------------------------

def conv12_kernel(a1_ref, w1_ref, b1_ref, w2_ref, b2_ref, g2_ref, be2_ref,
                  o2_ref, p1_ref):
    """Fused conv1 (no act / no BN) + conv2 (act + BN), both k=4 s=2 p=1.

    a1_ref : (4*N*S2*S2, 16*C0) bf16  im2col of the (channel-padded) input,
             rows ordered (ph, pw, n, i, j): the four parity blocks of conv1's
             output w.r.t. conv2's padded coordinates.
    w1_ref : (16*C0, C1) bf16, b1_ref (1, C1) f32
    w2_ref : (16, C1, C2) bf16 (index kh*4+kw), b2/g2/be2 (1, C2) f32
    o2_ref : (N*S2*S2, C2) bf16  conv2 output, rows (n, oh, ow); LeakyReLU is
             already applied (it is conv3's input activation).
    p1_ref : (4*N, G, G, C1) f32 scratch, G = S2 + 1: conv1 output (+bias,
             +LeakyReLU) in a zero-padded parity grid, so conv2's stride-2
             windows become 16 contiguous slices.
    """
    c1 = w1_ref.shape[1]
    c2 = w2_ref.shape[2]
    g = p1_ref.shape[1]
    s2 = g - 1
    n = p1_ref.shape[0] // 4
    m2 = n * s2 * s2

    # conv1 + bias, then LeakyReLU once on the compact output (conv2's input).
    o1 = jnp.dot(a1_ref[...], w1_ref[...], preferred_element_type=jnp.float32)
    o1 = _lrelu(o1 + b1_ref[...])

    # Scatter the four parity blocks into the zero-padded parity grid.
    p1_ref[...] = jnp.zeros(p1_ref.shape, p1_ref.dtype)
    for ph in range(2):
        r0 = 1 if ph == 0 else 0
        for pw in range(2):
            c0 = 1 if pw == 0 else 0
            b = ph * 2 + pw
            blk = o1[b * m2:(b + 1) * m2, :].reshape(n, s2, s2, c1)
            p1_ref[b * n:(b + 1) * n, r0:r0 + s2, c0:c0 + s2, :] = blk

    # conv2: sum over the 16 kernel offsets of (contiguous slice) @ W2[kh,kw].
    acc = jnp.zeros((m2, c2), jnp.float32)
    for kh in range(4):
        for kw in range(4):
            b = (kh % 2) * 2 + (kw % 2)
            xsl = p1_ref[b * n:(b + 1) * n,
                         kh // 2:kh // 2 + s2,
                         kw // 2:kw // 2 + s2, :]
            xsl = xsl.reshape(m2, c1).astype(jnp.bfloat16)
            acc = acc + jnp.dot(xsl, w2_ref[kh * 4 + kw],
                                preferred_element_type=jnp.float32)

    y = _bn_scale_shift(acc + b2_ref[...], g2_ref[...], be2_ref[...])
    o2_ref[...] = _lrelu(y).astype(jnp.bfloat16)   # epilogue act for conv3


def conv345_kernel(a3_ref, w3_ref, b3_ref, g3_ref, be3_ref,
                   w4_ref, b4_ref, g4_ref, be4_ref,
                   w5_ref, b5_ref,
                   o_ref, p3_ref, p4_ref, x4_ref, x5_ref):
    """Fused conv3 (s=2) + conv4 (s=1) + conv5 (s=1); intermediates in VMEM.

    a3_ref : (N*4*4, 16*C2) bf16  im2col of conv2's output (built in wrapper)
    w3_ref : (16*C2, C3) bf16; w4_ref (16, C3, C4) bf16; w5_ref (16, C4, C5p) bf16
    o_ref  : (N*2*2, C5p) f32  conv5 output; C5p padded to 128 (lane-dense store)
    p3_ref : (N, 6, 6, C3) bf16 scratch  (conv3 output, zero-padded by 1)
    p4_ref : (N, 5, 5, C4) bf16 scratch  (conv4 output, zero-padded by 1)
    x4_ref : (N*3*3, C3) bf16 scratch    (conv4 window staging, one (kh,kw) slab)
    x5_ref : (N*2*2, C4) bf16 scratch    (conv5 window staging)
    """
    c4 = w4_ref.shape[2]
    c5 = w5_ref.shape[2]
    n = p3_ref.shape[0]

    # ---- conv3: matmul + bias + BN + LeakyReLU (epilogue act for conv4) ----
    y3 = jnp.dot(a3_ref[...], w3_ref[...], preferred_element_type=jnp.float32)
    y3 = _lrelu(_bn_scale_shift(y3 + b3_ref[...], g3_ref[...], be3_ref[...]))

    # zero-padded 4x4 -> 6x6 spatial scratch (bf16 at the store)
    p3_ref[...] = jnp.zeros(p3_ref.shape, p3_ref.dtype)
    for i in range(n):
        for oh in range(4):
            r = i * 16 + oh * 4
            p3_ref[i, 1 + oh, 1:5, :] = y3[r:r + 4, :].astype(jnp.bfloat16)

    # ---- conv4: 16 contiguous-window matmuls + bias + BN + LeakyReLU ----
    acc4 = jnp.zeros((n * 9, c4), jnp.float32)
    for kh in range(4):
        for kw in range(4):
            for i in range(n):
                for oh in range(3):
                    x4_ref[i * 9 + oh * 3:i * 9 + oh * 3 + 3, :] = \
                        p3_ref[i, kh + oh, kw:kw + 3, :]
            acc4 = acc4 + jnp.dot(x4_ref[...], w4_ref[kh * 4 + kw],
                                  preferred_element_type=jnp.float32)
    y4 = _lrelu(_bn_scale_shift(acc4 + b4_ref[...], g4_ref[...], be4_ref[...]))

    # zero-padded 3x3 -> 5x5 spatial scratch
    p4_ref[...] = jnp.zeros(p4_ref.shape, p4_ref.dtype)
    for i in range(n):
        for oh in range(3):
            r = i * 9 + oh * 3
            p4_ref[i, 1 + oh, 1:4, :] = y4[r:r + 3, :].astype(jnp.bfloat16)

    # ---- conv5: 16 contiguous-window matmuls + bias (no BN / no activation) ----
    acc5 = jnp.zeros((n * 4, c5), jnp.float32)
    for kh in range(4):
        for kw in range(4):
            for i in range(n):
                for oh in range(2):
                    x5_ref[i * 4 + oh * 2:i * 4 + oh * 2 + 2, :] = \
                        p4_ref[i, kh + oh, kw:kw + 2, :]
            acc5 = acc5 + jnp.dot(x5_ref[...], w5_ref[kh * 4 + kw],
                                  preferred_element_type=jnp.float32)
    o_ref[...] = acc5 + b5_ref[...]


# ------------------------------ pallas_call wrappers ------------------------

def call_conv12(a1, w1, b1, w2, b2, g2, be2, *, n, s2):
    c1 = w1.shape[1]
    c2 = w2.shape[2]
    g = s2 + 1
    return pl.pallas_call(
        conv12_kernel,
        out_shape=jax.ShapeDtypeStruct((n * s2 * s2, c2), jnp.bfloat16),
        in_specs=_vmem_specs(7),
        out_specs=pl.BlockSpec(memory_space=pltpu.MemorySpace.VMEM),
        scratch_shapes=[pltpu.VMEM((4 * n, g, g, c1), jnp.float32)],
        compiler_params=_COMPILER_PARAMS,
    )(a1, w1, b1, w2, b2, g2, be2)


def call_conv345(a3, w3, b3, g3, be3, w4, b4, g4, be4, w5, b5, *, n):
    c3 = w3.shape[1]
    c4 = w4.shape[2]
    c5 = w5.shape[2]
    return pl.pallas_call(
        conv345_kernel,
        out_shape=jax.ShapeDtypeStruct((n * 4, c5), jnp.float32),
        in_specs=_vmem_specs(11),
        out_specs=pl.BlockSpec(memory_space=pltpu.MemorySpace.VMEM),
        scratch_shapes=[pltpu.VMEM((n, 6, 6, c3), jnp.bfloat16),
                        pltpu.VMEM((n, 5, 5, c4), jnp.bfloat16),
                        pltpu.VMEM((n * 9, c3), jnp.bfloat16),
                        pltpu.VMEM((n * 4, c4), jnp.bfloat16)],
        compiler_params=_COMPILER_PARAMS,
    )(a3, w3, b3, g3, be3, w4, b4, g4, be4, w5, b5)


# ------------------------------ JAX glue ------------------------------------

def im2col_nhwc(x, k=4, s=2, p=1):
    """NHWC -> (N*OH*OW, k*k*C) patch matrix, columns in (kh, kw, c) order."""
    n, h, w, c = x.shape
    oh = (h + 2 * p - k) // s + 1
    ow = (w + 2 * p - k) // s + 1
    xp = jnp.pad(x, ((0, 0), (p, p), (p, p), (0, 0)))
    cols = []
    for kh in range(k):
        for kw in range(k):
            cols.append(xp[:, kh:kh + s * oh:s, kw:kw + s * ow:s, :])
    a = jnp.concatenate(cols, axis=-1)            # (N, OH, OW, k*k*C)
    return a.reshape(n * oh * ow, k * k * c), (n, oh, ow)


def parity_row_perm(n, oh, ow):
    """Row permutation (n,oh,ow)-standard -> (ph, pw, n, i, j) parity order."""
    rows = []
    for ph in range(2):
        r0 = 1 if ph == 0 else 0
        for pw in range(2):
            c0 = 1 if pw == 0 else 0
            for b in range(n):
                for i in range(oh // 2):
                    h = 2 * (i + r0) + ph - 1
                    for j in range(ow // 2):
                        w = 2 * (j + c0) + pw - 1
                        rows.append(b * oh * ow + h * ow + w)
    return np.asarray(rows, np.int32)


def init_params(key, in_nc=3, num_filter=8, out_nc=1):
    """Deterministic synthetic parameters (same shapes as the PyTorch module)."""
    def nrm(k, shape, std=0.02):
        return std * jax.random.normal(k, shape, jnp.float32)

    nf = num_filter
    layers = [
        ('conv1', in_nc,  nf,     2, False, False),
        ('conv2', nf,     nf * 2, 2, True,  True),
        ('conv3', nf * 2, nf * 4, 2, True,  True),
        ('conv4', nf * 4, nf * 8, 1, True,  True),
        ('conv5', nf * 8, out_nc, 1, True,  False),
    ]
    keys = jax.random.split(key, 4 * len(layers))
    params, ki = {}, 0
    for name, cin, cout, stride, act, bn in layers:
        params[name] = dict(
            w=nrm(keys[ki], (cout, cin, 4, 4)),                # PyTorch OIHW
            b=nrm(keys[ki + 1], (cout,)),
            gamma=1.0 + 0.1 * jax.random.normal(keys[ki + 2], (cout,), jnp.float32),
            beta=0.1 * jax.random.normal(keys[ki + 3], (cout,), jnp.float32),
            stride=stride, act=act, bn=bn)
        ki += 4
    return params


def prep_kernel_params(params, in_nc, num_filter, out_nc):
    """PyTorch-layout params -> bf16 matmul weights in the kernel's layouts."""
    nf = num_filter
    cin0 = -(-in_nc // 8) * 8          # pad conv1 input channels to multiple of 8
    c5p = 128                          # lane-dense final store
    kp = {}

    def khwcio(w):                     # OIHW -> (kh, kw, ci, co)
        return jnp.transpose(w, (2, 3, 1, 0))

    w1 = jnp.pad(params['conv1']['w'], ((0, 0), (0, cin0 - in_nc), (0, 0), (0, 0)))
    kp['w1'] = khwcio(w1).reshape(16 * cin0, nf).astype(jnp.bfloat16)
    kp['b1'] = params['conv1']['b'].reshape(1, -1)

    for idx, name in ((2, 'conv2'), (4, 'conv4')):
        w = params[name]['w']
        cout, cin = w.shape[0], w.shape[1]
        kp[f'w{idx}'] = khwcio(w).reshape(16, cin, cout).astype(jnp.bfloat16)
        kp[f'b{idx}'] = params[name]['b'].reshape(1, -1)
        kp[f'g{idx}'] = params[name]['gamma'].reshape(1, -1)
        kp[f'be{idx}'] = params[name]['beta'].reshape(1, -1)

    w3 = params['conv3']['w']
    kp['w3'] = khwcio(w3).reshape(16 * w3.shape[1], w3.shape[0]).astype(jnp.bfloat16)
    kp['b3'] = params['conv3']['b'].reshape(1, -1)
    kp['g3'] = params['conv3']['gamma'].reshape(1, -1)
    kp['be3'] = params['conv3']['beta'].reshape(1, -1)

    w5 = khwcio(params['conv5']['w']).reshape(16, nf * 8, out_nc)
    kp['w5'] = jnp.pad(w5, ((0, 0), (0, 0), (0, c5p - out_nc))).astype(jnp.bfloat16)
    kp['b5'] = jnp.pad(params['conv5']['b'], (0, c5p - out_nc)).reshape(1, c5p)
    return kp


@functools.partial(jax.jit, static_argnames=('out_nc',))
def discriminator_forward(kp, x_nchw, *, out_nc):
    """Pallas implementation of Discriminator.forward(x)."""
    n, c, h, w = x_nchw.shape
    # Kernel B is specialized to the 32 -> 16 -> 8 -> 4 -> 3 -> 2 spatial path.
    assert h == 32 and w == 32, "kernels are specialized to 32x32 inputs"
    # TODO(synk): generalize the tail kernel's spatial unrolling to other sizes.

    x = jnp.transpose(x_nchw, (0, 2, 3, 1)).astype(jnp.float32)   # NCHW -> NHWC
    cin0 = kp['w1'].shape[0] // 16
    if cin0 > c:
        x = jnp.pad(x, ((0, 0), (0, 0), (0, 0), (0, cin0 - c)))   # zero channels

    # conv1 im2col (the only HBM-resident activation that gets im2col'ed is the
    # network input itself), rows re-ordered into parity-grid order for conv2.
    a1, (_, oh1, ow1) = im2col_nhwc(x, 4, 2, 1)
    a1 = a1[parity_row_perm(n, oh1, ow1)].astype(jnp.bfloat16)
    s2 = oh1 // 2

    o2 = call_conv12(a1, kp['w1'], kp['b1'], kp['w2'], kp['b2'], kp['g2'],
                     kp['be2'], n=n, s2=s2)               # (N*8*8, C2) bf16

    # tiny bf16 im2col of conv2's output; conv3..conv5 fused in one kernel.
    a3, _ = im2col_nhwc(o2.reshape(n, s2, s2, -1), 4, 2, 1)

    out = call_conv345(a3, kp['w3'], kp['b3'], kp['g3'], kp['be3'],
                       kp['w4'], kp['b4'], kp['g4'], kp['be4'],
                       kp['w5'], kp['b5'], n=n)           # (N*4, 128) f32

    y = out[:, :out_nc].reshape(n, 2, 2, out_nc)
    return jnp.transpose(y, (0, 3, 1, 2))                 # (N, out_nc, 2, 2)


# Pure-JAX reference mirroring PyTorch semantics (training-mode BN with affine).
def reference_forward(params, x_nchw, bf16_inputs=False):
    def maybe_bf16(t):
        return t.astype(jnp.bfloat16).astype(jnp.float32) if bf16_inputs else t

    x = x_nchw.astype(jnp.float32)
    for name in ('conv1', 'conv2', 'conv3', 'conv4', 'conv5'):
        p = params[name]
        h = _lrelu(x) if p['act'] else x
        y = lax.conv_general_dilated(
            maybe_bf16(h), maybe_bf16(p['w']),
            (p['stride'], p['stride']), [(1, 1), (1, 1)],
            dimension_numbers=('NCHW', 'OIHW', 'NCHW'),
            preferred_element_type=jnp.float32)
        y = y + p['b'].reshape(1, -1, 1, 1)
        if p['bn']:
            mu = jnp.mean(y, axis=(0, 2, 3), keepdims=True)
            var = jnp.mean((y - mu) ** 2, axis=(0, 2, 3), keepdims=True)
            y = (y - mu) * lax.rsqrt(var + BN_EPS) * p['gamma'].reshape(1, -1, 1, 1) \
                + p['beta'].reshape(1, -1, 1, 1)
        x = y
    return x


if __name__ == "__main__":
    in_nc, num_filter, out_nc, batch = 3, 8, 1, 2
    key = jax.random.PRNGKey(0)
    pkey, xkey = jax.random.split(key)

    params = init_params(pkey, in_nc=in_nc, num_filter=num_filter, out_nc=out_nc)
    kparams = prep_kernel_params(params, in_nc=in_nc, num_filter=num_filter,
                                 out_nc=out_nc)

    # 32x32 input: spatial path 32 -> 16 -> 8 -> 4 -> 3 -> 2 (smaller inputs
    # would make conv5's output size non-positive in the original module).
    x = jax.random.normal(xkey, (batch, in_nc, 32, 32), jnp.float32)

    out = discriminator_forward(kparams, x, out_nc=out_nc)
    out = jax.block_until_ready(out)
    assert out.shape == (batch, out_nc, 2, 2), out.shape

    # Tight check vs a reference that rounds the MXU inputs to bf16 at exactly
    # the same points the kernels do (f32 accumulation + f32 BN stats).
    ref_bf16 = reference_forward(params, x, bf16_inputs=True)
    np.testing.assert_allclose(np.asarray(out), np.asarray(ref_bf16),
                               rtol=2e-3, atol=2e-3)

    # Looser sanity check vs the pure-f32 PyTorch-semantics reference: the only
    # deviation is bf16 rounding of activations/weights on the MXU path.
    ref_f32 = reference_forward(params, x, bf16_inputs=False)
    np.testing.assert_allclose(np.asarray(out), np.asarray(ref_f32),
                               rtol=5e-2, atol=5e-2)

    print("KERNEL_OK")
</pallas_src>

<mosaic_0001>
module attributes {stable_mosaic.version = 11 : i64} {
  func.func @conv12_kernel(%arg0: memref<512x128xbf16, #tpu.memory_space<vmem>>, %arg1: memref<128x8xbf16, #tpu.memory_space<vmem>>, %arg2: memref<1x8xf32, #tpu.memory_space<vmem>>, %arg3: memref<16x8x16xbf16, #tpu.memory_space<vmem>>, %arg4: memref<1x16xf32, #tpu.memory_space<vmem>>, %arg5: memref<1x16xf32, #tpu.memory_space<vmem>>, %arg6: memref<1x16xf32, #tpu.memory_space<vmem>>, %arg7: memref<128x16xbf16, #tpu.memory_space<vmem>>, %arg8: memref<8x9x9x8xf32, #tpu.memory_space<vmem>>) attributes {dimension_semantics = [], scalar_prefetch = 0 : i64, scratch_operands = 1 : i64, tpu.core_type = #tpu.core_type<tc>} {
    %c0 = arith.constant 0 : index
    %c0_0 = arith.constant 0 : index
    %0 = vector.load %arg0[%c0, %c0_0] : memref<512x128xbf16, #tpu.memory_space<vmem>>, vector<512x128xbf16>
    %c0_1 = arith.constant 0 : index
    %c0_2 = arith.constant 0 : index
    %1 = vector.load %arg1[%c0_1, %c0_2] : memref<128x8xbf16, #tpu.memory_space<vmem>>, vector<128x8xbf16>
    %cst = arith.constant dense<0.000000e+00> : vector<512x8xf32>
    %2 = tpu.matmul %0, %1, %cst {dimension_numbers = #tpu.dot_dimension_numbers<[1], [0], [0], [1], [0, 0, 1, 1], [], []>} : vector<512x128xbf16>, vector<128x8xbf16>, vector<512x8xf32> -> vector<512x8xf32>
    %c0_3 = arith.constant 0 : index
    %c0_4 = arith.constant 0 : index
    %3 = vector.load %arg2[%c0_3, %c0_4] : memref<1x8xf32, #tpu.memory_space<vmem>>, vector<1x8xf32>
    %4 = vector.broadcast %3 : vector<1x8xf32> to vector<512x8xf32>
    %5 = arith.addf %2, %4 : vector<512x8xf32>
    %cst_5 = arith.constant 0.000000e+00 : f32
    %6 = vector.broadcast %cst_5 : f32 to vector<512x8xf32>
    %7 = arith.cmpf oge, %5, %6 : vector<512x8xf32>
    %cst_6 = arith.constant 2.000000e-01 : f32
    %8 = vector.broadcast %cst_6 : f32 to vector<512x8xf32>
    %9 = arith.mulf %8, %5 : vector<512x8xf32>
    %10 = arith.select %7, %5, %9 : vector<512x8xi1>, vector<512x8xf32>
    %cst_7 = arith.constant 0.000000e+00 : f32
    %11 = vector.broadcast %cst_7 : f32 to vector<8x9x9x8xf32>
    %c0_8 = arith.constant 0 : index
    %c0_9 = arith.constant 0 : index
    %c0_10 = arith.constant 0 : index
    %c0_11 = arith.constant 0 : index
    %12 = vector.load %arg8[%c0_8, %c0_9, %c0_10, %c0_11] : memref<8x9x9x8xf32, #tpu.memory_space<vmem>>, vector<8x9x9x8xf32>
    tpu.vector_store %arg8[%c0_8, %c0_9, %c0_10, %c0_11], %11 {strides = array<i32>} : memref<8x9x9x8xf32, #tpu.memory_space<vmem>>, vector<8x9x9x8xf32>,
    %13 = vector.extract_strided_slice %10 {offsets = [0, 0], sizes = [128, 8], strides = [1, 1]} : vector<512x8xf32> to vector<128x8xf32>
    %14 = vector.shape_cast %13 : vector<128x8xf32> to vector<2x8x8x8xf32>
    %c0_12 = arith.constant 0 : index
    %c1 = arith.constant 1 : index
    %c1_13 = arith.constant 1 : index
    %c0_14 = arith.constant 0 : index
    %15 = vector.load %arg8[%c0_12, %c1, %c1_13, %c0_14] : memref<8x9x9x8xf32, #tpu.memory_space<vmem>>, vector<2x8x8x8xf32>
    tpu.vector_store %arg8[%c0_12, %c1, %c1_13, %c0_14], %14 {strides = array<i32>} : memref<8x9x9x8xf32, #tpu.memory_space<vmem>>, vector<2x8x8x8xf32>,
    %16 = vector.extract_strided_slice %10 {offsets = [128, 0], sizes = [128, 8], strides = [1, 1]} : vector<512x8xf32> to vector<128x8xf32>
    %17 = vector.shape_cast %16 : vector<128x8xf32> to vector<2x8x8x8xf32>
    %c2 = arith.constant 2 : index
    %c1_15 = arith.constant 1 : index
    %c0_16 = arith.constant 0 : index
    %c0_17 = arith.constant 0 : index
    %18 = vector.load %arg8[%c2, %c1_15, %c0_16, %c0_17] : memref<8x9x9x8xf32, #tpu.memory_space<vmem>>, vector<2x8x8x8xf32>
    tpu.vector_store %arg8[%c2, %c1_15, %c0_16, %c0_17], %17 {strides = array<i32>} : memref<8x9x9x8xf32, #tpu.memory_space<vmem>>, vector<2x8x8x8xf32>,
    %19 = vector.extract_strided_slice %10 {offsets = [256, 0], sizes = [128, 8], strides = [1, 1]} : vector<512x8xf32> to vector<128x8xf32>
    %20 = vector.shape_cast %19 : vector<128x8xf32> to vector<2x8x8x8xf32>
    %c4 = arith.constant 4 : index
    %c0_18 = arith.constant 0 : index
    %c1_19 = arith.constant 1 : index
    %c0_20 = arith.constant 0 : index
    %21 = vector.load %arg8[%c4, %c0_18, %c1_19, %c0_20] : memref<8x9x9x8xf32, #tpu.memory_space<vmem>>, vector<2x8x8x8xf32>
    tpu.vector_store %arg8[%c4, %c0_18, %c1_19, %c0_20], %20 {strides = array<i32>} : memref<8x9x9x8xf32, #tpu.memory_space<vmem>>, vector<2x8x8x8xf32>,
    %22 = vector.extract_strided_slice %10 {offsets = [384, 0], sizes = [128, 8], strides = [1, 1]} : vector<512x8xf32> to vector<128x8xf32>
    %23 = vector.shape_cast %22 : vector<128x8xf32> to vector<2x8x8x8xf32>
    %c6 = arith.constant 6 : index
    %c0_21 = arith.constant 0 : index
    %c0_22 = arith.constant 0 : index
    %c0_23 = arith.constant 0 : index
    %24 = vector.load %arg8[%c6, %c0_21, %c0_22, %c0_23] : memref<8x9x9x8xf32, #tpu.memory_space<vmem>>, vector<2x8x8x8xf32>
    tpu.vector_store %arg8[%c6, %c0_21, %c0_22, %c0_23], %23 {strides = array<i32>} : memref<8x9x9x8xf32, #tpu.memory_space<vmem>>, vector<2x8x8x8xf32>,
    %cst_24 = arith.constant 0.000000e+00 : f32
    %25 = vector.broadcast %cst_24 : f32 to vector<128x16xf32>
    %c0_25 = arith.constant 0 : index
    %c0_26 = arith.constant 0 : index
    %c0_27 = arith.constant 0 : index
    %c0_28 = arith.constant 0 : index
    %26 = vector.load %arg8[%c0_25, %c0_26, %c0_27, %c0_28] : memref<8x9x9x8xf32, #tpu.memory_space<vmem>>, vector<2x8x8x8xf32>
    %27 = vector.shape_cast %26 : vector<2x8x8x8xf32> to vector<128x8xf32>
    %28 = arith.truncf %27 : vector<128x8xf32> to vector<128x8xbf16>
    %c0_29 = arith.constant 0 : index
    %c0_30 = arith.constant 0 : index
    %c0_31 = arith.constant 0 : index
    %29 = vector.load %arg3[%c0_29, %c0_30, %c0_31] : memref<16x8x16xbf16, #tpu.memory_space<vmem>>, vector<1x8x16xbf16>
    %30 = vector.shape_cast %29 : vector<1x8x16xbf16> to vector<8x16xbf16>
    %cst_32 = arith.constant dense<0.000000e+00> : vector<128x16xf32>
    %31 = tpu.matmul %28, %30, %cst_32 {dimension_numbers = #tpu.dot_dimension_numbers<[1], [0], [0], [1], [0, 0, 1, 1], [], []>} : vector<128x8xbf16>, vector<8x16xbf16>, vector<128x16xf32> -> vector<128x16xf32>
    %32 = arith.addf %25, %31 : vector<128x16xf32>
    %c2_33 = arith.constant 2 : index
    %c0_34 = arith.constant 0 : index
    %c0_35 = arith.constant 0 : index
    %c0_36 = arith.constant 0 : index
    %33 = vector.load %arg8[%c2_33, %c0_34, %c0_35, %c0_36] : memref<8x9x9x8xf32, #tpu.memory_space<vmem>>, vector<2x8x8x8xf32>
    %34 = vector.shape_cast %33 : vector<2x8x8x8xf32> to vector<128x8xf32>
    %35 = arith.truncf %34 : vector<128x8xf32> to vector<128x8xbf16>
    %c1_37 = arith.constant 1 : index
    %c0_38 = arith.constant 0 : index
    %c0_39 = arith.constant 0 : index
    %36 = vector.load %arg3[%c1_37, %c0_38, %c0_39] : memref<16x8x16xbf16, #tpu.memory_space<vmem>>, vector<1x8x16xbf16>
    %37 = vector.shape_cast %36 : vector<1x8x16xbf16> to vector<8x16xbf16>
    %cst_40 = arith.constant dense<0.000000e+00> : vector<128x16xf32>
    %38 = tpu.matmul %35, %37, %cst_40 {dimension_numbers = #tpu.dot_dimension_numbers<[1], [0], [0], [1], [0, 0, 1, 1], [], []>} : vector<128x8xbf16>, vector<8x16xbf16>, vector<128x16xf32> -> vector<128x16xf32>
    %39 = arith.addf %32, %38 : vector<128x16xf32>
    %c0_41 = arith.constant 0 : index
    %c0_42 = arith.constant 0 : index
    %c1_43 = arith.constant 1 : index
    %c0_44 = arith.constant 0 : index
    %40 = vector.load %arg8[%c0_41, %c0_42, %c1_43, %c0_44] : memref<8x9x9x8xf32, #tpu.memory_space<vmem>>, vector<2x8x8x8xf32>
    %41 = vector.shape_cast %40 : vector<2x8x8x8xf32> to vector<128x8xf32>
    %42 = arith.truncf %41 : vector<128x8xf32> to vector<128x8xbf16>
    %c2_45 = arith.constant 2 : index
    %c0_46 = arith.constant 0 : index
    %c0_47 = arith.constant 0 : index
    %43 = vector.load %arg3[%c2_45, %c0_46, %c0_47] : memref<16x8x16xbf16, #tpu.memory_space<vmem>>, vector<1x8x16xbf16>
    %44 = vector.shape_cast %43 : vector<1x8x16xbf16> to vector<8x16xbf16>
    %cst_48 = arith.constant dense<0.000000e+00> : vector<128x16xf32>
    %45 = tpu.matmul %42, %44, %cst_48 {dimension_numbers = #tpu.dot_dimension_numbers<[1], [0], [0], [1], [0, 0, 1, 1], [], []>} : vector<128x8xbf16>, vector<8x16xbf16>, vector<128x16xf32> -> vector<128x16xf32>
    %46 = arith.addf %39, %45 : vector<128x16xf32>
    %c2_49 = arith.constant 2 : index
    %c0_50 = arith.constant 0 : index
    %c1_51 = arith.constant 1 : index
    %c0_52 = arith.constant 0 : index
    %47 = vector.load %arg8[%c2_49, %c0_50, %c1_51, %c0_52] : memref<8x9x9x8xf32, #tpu.memory_space<vmem>>, vector<2x8x8x8xf32>
    %48 = vector.shape_cast %47 : vector<2x8x8x8xf32> to vector<128x8xf32>
    %49 = arith.truncf %48 : vector<128x8xf32> to vector<128x8xbf16>
    %c3 = arith.constant 3 : index
    %c0_53 = arith.constant 0 : index
    %c0_54 = arith.constant 0 : index
    %50 = vector.load %arg3[%c3, %c0_53, %c0_54] : memref<16x8x16xbf16, #tpu.memory_space<vmem>>, vector<1x8x16xbf16>
    %51 = vector.shape_cast %50 : vector<1x8x16xbf16> to vector<8x16xbf16>
    %cst_55 = arith.constant dense<0.000000e+00> : vector<128x16xf32>
    %52 = tpu.matmul %49, %51, %cst_55 {dimension_numbers = #tpu.dot_dimension_numbers<[1], [0], [0], [1], [0, 0, 1, 1], [], []>} : vector<128x8xbf16>, vector<8x16xbf16>, vector<128x16xf32> -> vector<128x16xf32>
    %53 = arith.addf %46, %52 : vector<128x16xf32>
    %c4_56 = arith.constant 4 : index
    %c0_57 = arith.constant 0 : index
    %c0_58 = arith.constant 0 : index
    %c0_59 = arith.constant 0 : index
    %54 = vector.load %arg8[%c4_56, %c0_57, %c0_58, %c0_59] : memref<8x9x9x8xf32, #tpu.memory_space<vmem>>, vector<2x8x8x8xf32>
    %55 = vector.shape_cast %54 : vector<2x8x8x8xf32> to vector<128x8xf32>
    %56 = arith.truncf %55 : vector<128x8xf32> to vector<128x8xbf16>
    %c4_60 = arith.constant 4 : index
    %c0_61 = arith.constant 0 : index
    %c0_62 = arith.constant 0 : index
    %57 = vector.load %arg3[%c4_60, %c0_61, %c0_62] : memref<16x8x16xbf16, #tpu.memory_space<vmem>>, vector<1x8x16xbf16>
    %58 = vector.shape_cast %57 : vector<1x8x16xbf16> to vector<8x16xbf16>
    %cst_63 = arith.constant dense<0.000000e+00> : vector<128x16xf32>
    %59 = tpu.matmul %56, %58, %cst_63 {dimension_numbers = #tpu.dot_dimension_numbers<[1], [0], [0], [1], [0, 0, 1, 1], [], []>} : vector<128x8xbf16>, vector<8x16xbf16>, vector<128x16xf32> -> vector<128x16xf32>
    %60 = arith.addf %53, %59 : vector<128x16xf32>
    %c6_64 = arith.constant 6 : index
    %c0_65 = arith.constant 0 : index
    %c0_66 = arith.constant 0 : index
    %c0_67 = arith.constant 0 : index
    %61 = vector.load %arg8[%c6_64, %c0_65, %c0_66, %c0_67] : memref<8x9x9x8xf32, #tpu.memory_space<vmem>>, vector<2x8x8x8xf32>
    %62 = vector.shape_cast %61 : vector<2x8x8x8xf32> to vector<128x8xf32>
    %63 = arith.truncf %62 : vector<128x8xf32> to vector<128x8xbf16>
    %c5 = arith.constant 5 : index
    %c0_68 = arith.constant 0 : index
    %c0_69 = arith.constant 0 : index
    %64 = vector.load %arg3[%c5, %c0_68, %c0_69] : memref<16x8x16xbf16, #tpu.memory_space<vmem>>, vector<1x8x16xbf16>
    %65 = vector.shape_cast %64 : vector<1x8x16xbf16> to vector<8x16xbf16>
    %cst_70 = arith.constant dense<0.000000e+00> : vector<128x16xf32>
    %66 = tpu.matmul %63, %65, %cst_70 {dimension_numbers = #tpu.dot_dimension_numbers<[1], [0], [0], [1], [0, 0, 1, 1], [], []>} : vector<128x8xbf16>, vector<8x16xbf16>, vector<128x16xf32> -> vector<128x16xf32>
    %67 = arith.addf %60, %66 : vector<128x16xf32>
    %c4_71 = arith.constant 4 : index
    %c0_72 = arith.constant 0 : index
    %c1_73 = arith.constant 1 : index
    %c0_74 = arith.constant 0 : index
    %68 = vector.load %arg8[%c4_71, %c0_72, %c1_73, %c0_74] : memref<8x9x9x8xf32, #tpu.memory_space<vmem>>, vector<2x8x8x8xf32>
    %69 = vector.shape_cast %68 : vector<2x8x8x8xf32> to vector<128x8xf32>
    %70 = arith.truncf %69 : vector<128x8xf32> to vector<128x8xbf16>
    %c6_75 = arith.constant 6 : index
    %c0_76 = arith.constant 0 : index
    %c0_77 = arith.constant 0 : index
    %71 = vector.load %arg3[%c6_75, %c0_76, %c0_77] : memref<16x8x16xbf16, #tpu.memory_space<vmem>>, vector<1x8x16xbf16>
    %72 = vector.shape_cast %71 : vector<1x8x16xbf16> to vector<8x16xbf16>
    %cst_78 = arith.constant dense<0.000000e+00> : vector<128x16xf32>
    %73 = tpu.matmul %70, %72, %cst_78 {dimension_numbers = #tpu.dot_dimension_numbers<[1], [0], [0], [1], [0, 0, 1, 1], [], []>} : vector<128x8xbf16>, vector<8x16xbf16>, vector<128x16xf32> -> vector<128x16xf32>
    %74 = arith.addf %67, %73 : vector<128x16xf32>
    %c6_79 = arith.constant 6 : index
    %c0_80 = arith.constant 0 : index
    %c1_81 = arith.constant 1 : index
    %c0_82 = arith.constant 0 : index
    %75 = vector.load %arg8[%c6_79, %c0_80, %c1_81, %c0_82] : memref<8x9x9x8xf32, #tpu.memory_space<vmem>>, vector<2x8x8x8xf32>
    %76 = vector.shape_cast %75 : vector<2x8x8x8xf32> to vector<128x8xf32>
    %77 = arith.truncf %76 : vector<128x8xf32> to vector<128x8xbf16>
    %c7 = arith.constant 7 : index
    %c0_83 = arith.constant 0 : index
    %c0_84 = arith.constant 0 : index
    %78 = vector.load %arg3[%c7, %c0_83, %c0_84] : memref<16x8x16xbf16, #tpu.memory_space<vmem>>, vector<1x8x16xbf16>
    %79 = vector.shape_cast %78 : vector<1x8x16xbf16> to vector<8x16xbf16>
    %cst_85 = arith.constant dense<0.000000e+00> : vector<128x16xf32>
    %80 = tpu.matmul %77, %79, %cst_85 {dimension_numbers = #tpu.dot_dimension_numbers<[1], [0], [0], [1], [0, 0, 1, 1], [], []>} : vector<128x8xbf16>, vector<8x16xbf16>, vector<128x16xf32> -> vector<128x16xf32>
    %81 = arith.addf %74, %80 : vector<128x16xf32>
    %c0_86 = arith.constant 0 : index
    %c1_87 = arith.constant 1 : index
    %c0_88 = arith.constant 0 : index
    %c0_89 = arith.constant 0 : index
    %82 = vector.load %arg8[%c0_86, %c1_87, %c0_88, %c0_89] : memref<8x9x9x8xf32, #tpu.memory_space<vmem>>, vector<2x8x8x8xf32>
    %83 = vector.shape_cast %82 : vector<2x8x8x8xf32> to vector<128x8xf32>
    %84 = arith.truncf %83 : vector<128x8xf32> to vector<128x8xbf16>
    %c8 = arith.constant 8 : index
    %c0_90 = arith.constant 0 : index
    %c0_91 = arith.constant 0 : index
    %85 = vector.load %arg3[%c8, %c0_90, %c0_91] : memref<16x8x16xbf16, #tpu.memory_space<vmem>>, vector<1x8x16xbf16>
    %86 = vector.shape_cast %85 : vector<1x8x16xbf16> to vector<8x16xbf16>
    %cst_92 = arith.constant dense<0.000000e+00> : vector<128x16xf32>
    %87 = tpu.matmul %84, %86, %cst_92 {dimension_numbers = #tpu.dot_dimension_numbers<[1], [0], [0], [1], [0, 0, 1, 1], [], []>} : vector<128x8xbf16>, vector<8x16xbf16>, vector<128x16xf32> -> vector<128x16xf32>
    %88 = arith.addf %81, %87 : vector<128x16xf32>
    %c2_93 = arith.constant 2 : index
    %c1_94 = arith.constant 1 : index
    %c0_95 = arith.constant 0 : index
    %c0_96 = arith.constant 0 : index
    %89 = vector.load %arg8[%c2_93, %c1_94, %c0_95, %c0_96] : memref<8x9x9x8xf32, #tpu.memory_space<vmem>>, vector<2x8x8x8xf32>
    %90 = vector.shape_cast %89 : vector<2x8x8x8xf32> to vector<128x8xf32>
    %91 = arith.truncf %90 : vector<128x8xf32> to vector<128x8xbf16>
    %c9 = arith.constant 9 : index
    %c0_97 = arith.constant 0 : index
    %c0_98 = arith.constant 0 : index
    %92 = vector.load %arg3[%c9, %c0_97, %c0_98] : memref<16x8x16xbf16, #tpu.memory_space<vmem>>, vector<1x8x16xbf16>
    %93 = vector.shape_cast %92 : vector<1x8x16xbf16> to vector<8x16xbf16>
    %cst_99 = arith.constant dense<0.000000e+00> : vector<128x16xf32>
    %94 = tpu.matmul %91, %93, %cst_99 {dimension_numbers = #tpu.dot_dimension_numbers<[1], [0], [0], [1], [0, 0, 1, 1], [], []>} : vector<128x8xbf16>, vector<8x16xbf16>, vector<128x16xf32> -> vector<128x16xf32>
    %95 = arith.addf %88, %94 : vector<128x16xf32>
    %c0_100 = arith.constant 0 : index
    %c1_101 = arith.constant 1 : index
    %c1_102 = arith.constant 1 : index
    %c0_103 = arith.constant 0 : index
    %96 = vector.load %arg8[%c0_100, %c1_101, %c1_102, %c0_103] : memref<8x9x9x8xf32, #tpu.memory_space<vmem>>, vector<2x8x8x8xf32>
    %97 = vector.shape_cast %96 : vector<2x8x8x8xf32> to vector<128x8xf32>
    %98 = arith.truncf %97 : vector<128x8xf32> to vector<128x8xbf16>
    %c10 = arith.constant 10 : index
    %c0_104 = arith.constant 0 : index
    %c0_105 = arith.constant 0 : index
    %99 = vector.load %arg3[%c10, %c0_104, %c0_105] : memref<16x8x16xbf16, #tpu.memory_space<vmem>>, vector<1x8x16xbf16>
    %100 = vector.shape_cast %99 : vector<1x8x16xbf16> to vector<8x16xbf16>
    %cst_106 = arith.constant dense<0.000000e+00> : vector<128x16xf32>
    %101 = tpu.matmul %98, %100, %cst_106 {dimension_numbers = #tpu.dot_dimension_numbers<[1], [0], [0], [1], [0, 0, 1, 1], [], []>} : vector<128x8xbf16>, vector<8x16xbf16>, vector<128x16xf32> -> vector<128x16xf32>
    %102 = arith.addf %95, %101 : vector<128x16xf32>
    %c2_107 = arith.constant 2 : index
    %c1_108 = arith.constant 1 : index
    %c1_109 = arith.constant 1 : index
    %c0_110 = arith.constant 0 : index
    %103 = vector.load %arg8[%c2_107, %c1_108, %c1_109, %c0_110] : memref<8x9x9x8xf32, #tpu.memory_space<vmem>>, vector<2x8x8x8xf32>
    %104 = vector.shape_cast %103 : vector<2x8x8x8xf32> to vector<128x8xf32>
    %105 = arith.truncf %104 : vector<128x8xf32> to vector<128x8xbf16>
    %c11 = arith.constant 11 : index
    %c0_111 = arith.constant 0 : index
    %c0_112 = arith.constant 0 : index
    %106 = vector.load %arg3[%c11, %c0_111, %c0_112] : memref<16x8x16xbf16, #tpu.memory_space<vmem>>, vector<1x8x16xbf16>
    %107 = vector.shape_cast %106 : vector<1x8x16xbf16> to vector<8x16xbf16>
    %cst_113 = arith.constant dense<0.000000e+00> : vector<128x16xf32>
    %108 = tpu.matmul %105, %107, %cst_113 {dimension_numbers = #tpu.dot_dimension_numbers<[1], [0], [0], [1], [0, 0, 1, 1], [], []>} : vector<128x8xbf16>, vector<8x16xbf16>, vector<128x16xf32> -> vector<128x16xf32>
    %109 = arith.addf %102, %108 : vector<128x16xf32>
    %c4_114 = arith.constant 4 : index
    %c1_115 = arith.constant 1 : index
    %c0_116 = arith.constant 0 : index
    %c0_117 = arith.constant 0 : index
    %110 = vector.load %arg8[%c4_114, %c1_115, %c0_116, %c0_117] : memref<8x9x9x8xf32, #tpu.memory_space<vmem>>, vector<2x8x8x8xf32>
    %111 = vector.shape_cast %110 : vector<2x8x8x8xf32> to vector<128x8xf32>
    %112 = arith.truncf %111 : vector<128x8xf32> to vector<128x8xbf16>
    %c12 = arith.constant 12 : index
    %c0_118 = arith.constant 0 : index
    %c0_119 = arith.constant 0 : index
    %113 = vector.load %arg3[%c12, %c0_118, %c0_119] : memref<16x8x16xbf16, #tpu.memory_space<vmem>>, vector<1x8x16xbf16>
    %114 = vector.shape_cast %113 : vector<1x8x16xbf16> to vector<8x16xbf16>
    %cst_120 = arith.constant dense<0.000000e+00> : vector<128x16xf32>
    %115 = tpu.matmul %112, %114, %cst_120 {dimension_numbers = #tpu.dot_dimension_numbers<[1], [0], [0], [1], [0, 0, 1, 1], [], []>} : vector<128x8xbf16>, vector<8x16xbf16>, vector<128x16xf32> -> vector<128x16xf32>
    %116 = arith.addf %109, %115 : vector<128x16xf32>
    %c6_121 = arith.constant 6 : index
    %c1_122 = arith.constant 1 : index
    %c0_123 = arith.constant 0 : index
    %c0_124 = arith.constant 0 : index
    %117 = vector.load %arg8[%c6_121, %c1_122, %c0_123, %c0_124] : memref<8x9x9x8xf32, #tpu.memory_space<vmem>>, vector<2x8x8x8xf32>
    %118 = vector.shape_cast %117 : vector<2x8x8x8xf32> to vector<128x8xf32>
    %119 = arith.truncf %118 : vector<128x8xf32> to vector<128x8xbf16>
    %c13 = arith.constant 13 : index
    %c0_125 = arith.constant 0 : index
    %c0_126 = arith.constant 0 : index
    %120 = vector.load %arg3[%c13, %c0_125, %c0_126] : memref<16x8x16xbf16, #tpu.memory_space<vmem>>, vector<1x8x16xbf16>
    %121 = vector.shape_cast %120 : vector<1x8x16xbf16> to vector<8x16xbf16>
    %cst_127 = arith.constant dense<0.000000e+00> : vector<128x16xf32>
    %122 = tpu.matmul %119, %121, %cst_127 {dimension_numbers = #tpu.dot_dimension_numbers<[1], [0], [0], [1], [0, 0, 1, 1], [], []>} : vector<128x8xbf16>, vector<8x16xbf16>, vector<128x16xf32> -> vector<128x16xf32>
    %123 = arith.addf %116, %122 : vector<128x16xf32>
    %c4_128 = arith.constant 4 : index
    %c1_129 = arith.constant 1 : index
    %c1_130 = arith.constant 1 : index
    %c0_131 = arith.constant 0 : index
    %124 = vector.load %arg8[%c4_128, %c1_129, %c1_130, %c0_131] : memref<8x9x9x8xf32, #tpu.memory_space<vmem>>, vector<2x8x8x8xf32>
    %125 = vector.shape_cast %124 : vector<2x8x8x8xf32> to vector<128x8xf32>
    %126 = arith.truncf %125 : vector<128x8xf32> to vector<128x8xbf16>
    %c14 = arith.constant 14 : index
    %c0_132 = arith.constant 0 : index
    %c0_133 = arith.constant 0 : index
    %127 = vector.load %arg3[%c14, %c0_132, %c0_133] : memref<16x8x16xbf16, #tpu.memory_space<vmem>>, vector<1x8x16xbf16>
    %128 = vector.shape_cast %127 : vector<1x8x16xbf16> to vector<8x16xbf16>
    %cst_134 = arith.constant dense<0.000000e+00> : vector<128x16xf32>
    %129 = tpu.matmul %126, %128, %cst_134 {dimension_numbers = #tpu.dot_dimension_numbers<[1], [0], [0], [1], [0, 0, 1, 1], [], []>} : vector<128x8xbf16>, vector<8x16xbf16>, vector<128x16xf32> -> vector<128x16xf32>
    %130 = arith.addf %123, %129 : vector<128x16xf32>
    %c6_135 = arith.constant 6 : index
    %c1_136 = arith.constant 1 : index
    %c1_137 = arith.constant 1 : index
    %c0_138 = arith.constant 0 : index
    %131 = vector.load %arg8[%c6_135, %c1_136, %c1_137, %c0_138] : memref<8x9x9x8xf32, #tpu.memory_space<vmem>>, vector<2x8x8x8xf32>
    %132 = vector.shape_cast %131 : vector<2x8x8x8xf32> to vector<128x8xf32>
    %133 = arith.truncf %132 : vector<128x8xf32> to vector<128x8xbf16>
    %c15 = arith.constant 15 : index
    %c0_139 = arith.constant 0 : index
    %c0_140 = arith.constant 0 : index
    %134 = vector.load %arg3[%c15, %c0_139, %c0_140] : memref<16x8x16xbf16, #tpu.memory_space<vmem>>, vector<1x8x16xbf16>
    %135 = vector.shape_cast %134 : vector<1x8x16xbf16> to vector<8x16xbf16>
    %cst_141 = arith.constant dense<0.000000e+00> : vector<128x16xf32>
    %136 = tpu.matmul %133, %135, %cst_141 {dimension_numbers = #tpu.dot_dimension_numbers<[1], [0], [0], [1], [0, 0, 1, 1], [], []>} : vector<128x8xbf16>, vector<8x16xbf16>, vector<128x16xf32> -> vector<128x16xf32>
    %137 = arith.addf %130, %136 : vector<128x16xf32>
    %c0_142 = arith.constant 0 : index
    %c0_143 = arith.constant 0 : index
    %138 = vector.load %arg4[%c0_142, %c0_143] : memref<1x16xf32, #tpu.memory_space<vmem>>, vector<1x16xf32>
    %139 = vector.broadcast %138 : vector<1x16xf32> to vector<128x16xf32>
    %140 = arith.addf %137, %139 : vector<128x16xf32>
    %c0_144 = arith.constant 0 : index
    %c0_145 = arith.constant 0 : index
    %141 = vector.load %arg5[%c0_144, %c0_145] : memref<1x16xf32, #tpu.memory_space<vmem>>, vector<1x16xf32>
    %c0_146 = arith.constant 0 : index
    %c0_147 = arith.constant 0 : index
    %142 = vector.load %arg6[%c0_146, %c0_147] : memref<1x16xf32, #tpu.memory_space<vmem>>, vector<1x16xf32>
    %cst_148 = arith.constant dense<0.000000e+00> : vector<16xf32>
    %143 = vector.multi_reduction <add>, %140, %cst_148 [0] : vector<128x16xf32> to vector<16xf32>
    %144 = vector.shape_cast %143 : vector<16xf32> to vector<1x16xf32>
    %145 = arith.mulf %140, %140 : vector<128x16xf32>
    %cst_149 = arith.constant dense<0.000000e+00> : vector<16xf32>
    %146 = vector.multi_reduction <add>, %145, %cst_149 [0] : vector<128x16xf32> to vector<16xf32>
    %147 = vector.shape_cast %146 : vector<16xf32> to vector<1x16xf32>
    %cst_150 = arith.constant 1.280000e+02 : f32
    %148 = vector.broadcast %cst_150 : f32 to vector<1x16xf32>
    %149 = arith.divf %144, %148 : vector<1x16xf32>
    %cst_151 = arith.constant 1.280000e+02 : f32
    %150 = vector.broadcast %cst_151 : f32 to vector<1x16xf32>
    %151 = arith.divf %147, %150 : vector<1x16xf32>
    %152 = arith.mulf %149, %149 : vector<1x16xf32>
    %153 = arith.subf %151, %152 : vector<1x16xf32>
    %cst_152 = arith.constant 9.99999974E-6 : f32
    %154 = vector.broadcast %cst_152 : f32 to vector<1x16xf32>
    %155 = arith.addf %153, %154 : vector<1x16xf32>
    %156 = math.rsqrt %155 : vector<1x16xf32>
    %157 = arith.mulf %141, %156 : vector<1x16xf32>
    %158 = arith.mulf %149, %157 : vector<1x16xf32>
    %159 = arith.subf %142, %158 : vector<1x16xf32>
    %160 = vector.broadcast %157 : vector<1x16xf32> to vector<128x16xf32>
    %161 = arith.mulf %140, %160 : vector<128x16xf32>
    %162 = vector.broadcast %159 : vector<1x16xf32> to vector<128x16xf32>
    %163 = arith.addf %161, %162 : vector<128x16xf32>
    %cst_153 = arith.constant 0.000000e+00 : f32
    %164 = vector.broadcast %cst_153 : f32 to vector<128x16xf32>
    %165 = arith.cmpf oge, %163, %164 : vector<128x16xf32>
    %cst_154 = arith.constant 2.000000e-01 : f32
    %166 = vector.broadcast %cst_154 : f32 to vector<128x16xf32>
    %167 = arith.mulf %166, %163 : vector<128x16xf32>
    %168 = arith.select %165, %163, %167 : vector<128x16xi1>, vector<128x16xf32>
    %169 = arith.truncf %168 : vector<128x16xf32> to vector<128x16xbf16>
    %c0_155 = arith.constant 0 : index
    %c0_156 = arith.constant 0 : index
    %170 = vector.load %arg7[%c0_155, %c0_156] : memref<128x16xbf16, #tpu.memory_space<vmem>>, vector<128x16xbf16>
    tpu.vector_store %arg7[%c0_155, %c0_156], %169 {strides = array<i32>} : memref<128x16xbf16, #tpu.memory_space<vmem>>, vector<128x16xbf16>,
    return
  }
}

module attributes {stable_mosaic.version = 11 : i64} {
  func.func @conv345_kernel(%arg0: memref<32x256xbf16, #tpu.memory_space<vmem>>, %arg1: memref<256x32xbf16, #tpu.memory_space<vmem>>, %arg2: memref<1x32xf32, #tpu.memory_space<vmem>>, %arg3: memref<1x32xf32, #tpu.memory_space<vmem>>, %arg4: memref<1x32xf32, #tpu.memory_space<vmem>>, %arg5: memref<16x32x64xbf16, #tpu.memory_space<vmem>>, %arg6: memref<1x64xf32, #tpu.memory_space<vmem>>, %arg7: memref<1x64xf32, #tpu.memory_space<vmem>>, %arg8: memref<1x64xf32, #tpu.memory_space<vmem>>, %arg9: memref<16x64x128xbf16, #tpu.memory_space<vmem>>, %arg10: memref<1x128xf32, #tpu.memory_space<vmem>>, %arg11: memref<8x128xf32, #tpu.memory_space<vmem>>, %arg12: memref<2x6x6x32xbf16, #tpu.memory_space<vmem>>, %arg13: memref<2x5x5x64xbf16, #tpu.memory_space<vmem>>, %arg14: memref<18x32xbf16, #tpu.memory_space<vmem>>, %arg15: memref<8x64xbf16, #tpu.memory_space<vmem>>) attributes {dimension_semantics = [], scalar_prefetch = 0 : i64, scratch_operands = 4 : i64, tpu.core_type = #tpu.core_type<tc>} {
    %c0 = arith.constant 0 : index
    %c0_0 = arith.constant 0 : index
    %0 = vector.load %arg0[%c0, %c0_0] : memref<32x256xbf16, #tpu.memory_space<vmem>>, vector<32x256xbf16>
    %c0_1 = arith.constant 0 : index
    %c0_2 = arith.constant 0 : index
    %1 = vector.load %arg1[%c0_1, %c0_2] : memref<256x32xbf16, #tpu.memory_space<vmem>>, vector<256x32xbf16>
    %cst = arith.constant dense<0.000000e+00> : vector<32x32xf32>
    %2 = tpu.matmul %0, %1, %cst {dimension_numbers = #tpu.dot_dimension_numbers<[1], [0], [0], [1], [0, 0, 1, 1], [], []>} : vector<32x256xbf16>, vector<256x32xbf16>, vector<32x32xf32> -> vector<32x32xf32>
    %c0_3 = arith.constant 0 : index
    %c0_4 = arith.constant 0 : index
    %3 = vector.load %arg2[%c0_3, %c0_4] : memref<1x32xf32, #tpu.memory_space<vmem>>, vector<1x32xf32>
    %4 = vector.broadcast %3 : vector<1x32xf32> to vector<32x32xf32>
    %5 = arith.addf %2, %4 : vector<32x32xf32>
    %c0_5 = arith.constant 0 : index
    %c0_6 = arith.constant 0 : index
    %6 = vector.load %arg3[%c0_5, %c0_6] : memref<1x32xf32, #tpu.memory_space<vmem>>, vector<1x32xf32>
    %c0_7 = arith.constant 0 : index
    %c0_8 = arith.constant 0 : index
    %7 = vector.load %arg4[%c0_7, %c0_8] : memref<1x32xf32, #tpu.memory_space<vmem>>, vector<1x32xf32>
    %cst_9 = arith.constant dense<0.000000e+00> : vector<32xf32>
    %8 = vector.multi_reduction <add>, %5, %cst_9 [0] : vector<32x32xf32> to vector<32xf32>
    %9 = vector.shape_cast %8 : vector<32xf32> to vector<1x32xf32>
    %10 = arith.mulf %5, %5 : vector<32x32xf32>
    %cst_10 = arith.constant dense<0.000000e+00> : vector<32xf32>
    %11 = vector.multi_reduction <add>, %10, %cst_10 [0] : vector<32x32xf32> to vector<32xf32>
    %12 = vector.shape_cast %11 : vector<32xf32> to vector<1x32xf32>
    %cst_11 = arith.constant 3.200000e+01 : f32
    %13 = vector.broadcast %cst_11 : f32 to vector<1x32xf32>
    %14 = arith.divf %9, %13 : vector<1x32xf32>
    %cst_12 = arith.constant 3.200000e+01 : f32
    %15 = vector.broadcast %cst_12 : f32 to vector<1x32xf32>
    %16 = arith.divf %12, %15 : vector<1x32xf32>
    %17 = arith.mulf %14, %14 : vector<1x32xf32>
    %18 = arith.subf %16, %17 : vector<1x32xf32>
    %cst_13 = arith.constant 9.99999974E-6 : f32
    %19 = vector.broadcast %cst_13 : f32 to vector<1x32xf32>
    %20 = arith.addf %18, %19 : vector<1x32xf32>
    %21 = math.rsqrt %20 : vector<1x32xf32>
    %22 = arith.mulf %6, %21 : vector<1x32xf32>
    %23 = arith.mulf %14, %22 : vector<1x32xf32>
    %24 = arith.subf %7, %23 : vector<1x32xf32>
    %25 = vector.broadcast %22 : vector<1x32xf32> to vector<32x32xf32>
    %26 = arith.mulf %5, %25 : vector<32x32xf32>
    %27 = vector.broadcast %24 : vector<1x32xf32> to vector<32x32xf32>
    %28 = arith.addf %26, %27 : vector<32x32xf32>
    %cst_14 = arith.constant 0.000000e+00 : f32
    %29 = vector.broadcast %cst_14 : f32 to vector<32x32xf32>
    %30 = arith.cmpf oge, %28, %29 : vector<32x32xf32>
    %cst_15 = arith.constant 2.000000e-01 : f32
    %31 = vector.broadcast %cst_15 : f32 to vector<32x32xf32>
    %32 = arith.mulf %31, %28 : vector<32x32xf32>
    %33 = arith.select %30, %28, %32 : vector<32x32xi1>, vector<32x32xf32>
    %cst_16 = arith.constant 0.000000e+00 : bf16
    %34 = vector.broadcast %cst_16 : bf16 to vector<2x6x6x32xbf16>
    %c0_17 = arith.constant 0 : index
    %c0_18 = arith.constant 0 : index
    %c0_19 = arith.constant 0 : index
    %c0_20 = arith.constant 0 : index
    %35 = vector.load %arg12[%c0_17, %c0_18, %c0_19, %c0_20] : memref<2x6x6x32xbf16, #tpu.memory_space<vmem>>, vector<2x6x6x32xbf16>
    tpu.vector_store %arg12[%c0_17, %c0_18, %c0_19, %c0_20], %34 {strides = array<i32>} : memref<2x6x6x32xbf16, #tpu.memory_space<vmem>>, vector<2x6x6x32xbf16>,
    %36 = vector.extract_strided_slice %33 {offsets = [0, 0], sizes = [4, 32], strides = [1, 1]} : vector<32x32xf32> to vector<4x32xf32>
    %37 = arith.truncf %36 : vector<4x32xf32> to vector<4x32xbf16>
    %c0_21 = arith.constant 0 : index
    %c1 = arith.constant 1 : index
    %c1_22 = arith.constant 1 : index
    %c0_23 = arith.constant 0 : index
    %38 = vector.load %arg12[%c0_21, %c1, %c1_22, %c0_23] : memref<2x6x6x32xbf16, #tpu.memory_space<vmem>>, vector<1x1x4x32xbf16>
    %39 = vector.shape_cast %38 : vector<1x1x4x32xbf16> to vector<4x32xbf16>
    %40 = vector.shape_cast %37 : vector<4x32xbf16> to vector<1x1x4x32xbf16>
    tpu.vector_store %arg12[%c0_21, %c1, %c1_22, %c0_23], %40 {strides = array<i32>} : memref<2x6x6x32xbf16, #tpu.memory_space<vmem>>, vector<1x1x4x32xbf16>,
    %41 = vector.extract_strided_slice %33 {offsets = [4, 0], sizes = [4, 32], strides = [1, 1]} : vector<32x32xf32> to vector<4x32xf32>
    %42 = arith.truncf %41 : vector<4x32xf32> to vector<4x32xbf16>
    %c0_24 = arith.constant 0 : index
    %c2 = arith.constant 2 : index
    %c1_25 = arith.constant 1 : index
    %c0_26 = arith.constant 0 : index
    %43 = vector.load %arg12[%c0_24, %c2, %c1_25, %c0_26] : memref<2x6x6x32xbf16, #tpu.memory_space<vmem>>, vector<1x1x4x32xbf16>
    %44 = vector.shape_cast %43 : vector<1x1x4x32xbf16> to vector<4x32xbf16>
    %45 = vector.shape_cast %42 : vector<4x32xbf16> to vector<1x1x4x32xbf16>
    tpu.vector_store %arg12[%c0_24, %c2, %c1_25, %c0_26], %45 {strides = array<i32>} : memref<2x6x6x32xbf16, #tpu.memory_space<vmem>>, vector<1x1x4x32xbf16>,
    %46 = vector.extract_strided_slice %33 {offsets = [8, 0], sizes = [4, 32], strides = [1, 1]} : vector<32x32xf32> to vector<4x32xf32>
    %47 = arith.truncf %46 : vector<4x32xf32> to vector<4x32xbf16>
    %c0_27 = arith.constant 0 : index
    %c3 = arith.constant 3 : index
    %c1_28 = arith.constant 1 : index
    %c0_29 = arith.constant 0 : index
    %48 = vector.load %arg12[%c0_27, %c3, %c1_28, %c0_29] : memref<2x6x6x32xbf16, #tpu.memory_space<vmem>>, vector<1x1x4x32xbf16>
    %49 = vector.shape_cast %48 : vector<1x1x4x32xbf16> to vector<4x32xbf16>
    %50 = vector.shape_cast %47 : vector<4x32xbf16> to vector<1x1x4x32xbf16>
    tpu.vector_store %arg12[%c0_27, %c3, %c1_28, %c0_29], %50 {strides = array<i32>} : memref<2x6x6x32xbf16, #tpu.memory_space<vmem>>, vector<1x1x4x32xbf16>,
    %51 = vector.extract_strided_slice %33 {offsets = [12, 0], sizes = [4, 32], strides = [1, 1]} : vector<32x32xf32> to vector<4x32xf32>
    %52 = arith.truncf %51 : vector<4x32xf32> to vector<4x32xbf16>
    %c0_30 = arith.constant 0 : index
    %c4 = arith.constant 4 : index
    %c1_31 = arith.constant 1 : index
    %c0_32 = arith.constant 0 : index
    %53 = vector.load %arg12[%c0_30, %c4, %c1_31, %c0_32] : memref<2x6x6x32xbf16, #tpu.memory_space<vmem>>, vector<1x1x4x32xbf16>
    %54 = vector.shape_cast %53 : vector<1x1x4x32xbf16> to vector<4x32xbf16>
    %55 = vector.shape_cast %52 : vector<4x32xbf16> to vector<1x1x4x32xbf16>
    tpu.vector_store %arg12[%c0_30, %c4, %c1_31, %c0_32], %55 {strides = array<i32>} : memref<2x6x6x32xbf16, #tpu.memory_space<vmem>>, vector<1x1x4x32xbf16>,
    %56 = vector.extract_strided_slice %33 {offsets = [16, 0], sizes = [4, 32], strides = [1, 1]} : vector<32x32xf32> to vector<4x32xf32>
    %57 = arith.truncf %56 : vector<4x32xf32> to vector<4x32xbf16>
    %c1_33 = arith.constant 1 : index
    %c1_34 = arith.constant 1 : index
    %c1_35 = arith.constant 1 : index
    %c0_36 = arith.constant 0 : index
    %58 = vector.load %arg12[%c1_33, %c1_34, %c1_35, %c0_36] : memref<2x6x6x32xbf16, #tpu.memory_space<vmem>>, vector<1x1x4x32xbf16>
    %59 = vector.shape_cast %58 : vector<1x1x4x32xbf16> to vector<4x32xbf16>
    %60 = vector.shape_cast %57 : vector<4x32xbf16> to vector<1x1x4x32xbf16>
    tpu.vector_store %arg12[%c1_33, %c1_34, %c1_35, %c0_36], %60 {strides = array<i32>} : memref<2x6x6x32xbf16, #tpu.memory_space<vmem>>, vector<1x1x4x32xbf16>,
    %61 = vector.extract_strided_slice %33 {offsets = [20, 0], sizes = [4, 32], strides = [1, 1]} : vector<32x32xf32> to vector<4x32xf32>
    %62 = arith.truncf %61 : vector<4x32xf32> to vector<4x32xbf16>
    %c1_37 = arith.constant 1 : index
    %c2_38 = arith.constant 2 : index
    %c1_39 = arith.constant 1 : index
    %c0_40 = arith.constant 0 : index
    %63 = vector.load %arg12[%c1_37, %c2_38, %c1_39, %c0_40] : memref<2x6x6x32xbf16, #tpu.memory_space<vmem>>, vector<1x1x4x32xbf16>
    %64 = vector.shape_cast %63 : vector<1x1x4x32xbf16> to vector<4x32xbf16>
    %65 = vector.shape_cast %62 : vector<4x32xbf16> to vector<1x1x4x32xbf16>
    tpu.vector_store %arg12[%c1_37, %c2_38, %c1_39, %c0_40], %65 {strides = array<i32>} : memref<2x6x6x32xbf16, #tpu.memory_space<vmem>>, vector<1x1x4x32xbf16>,
    %66 = vector.extract_strided_slice %33 {offsets = [24, 0], sizes = [4, 32], strides = [1, 1]} : vector<32x32xf32> to vector<4x32xf32>
    %67 = arith.truncf %66 : vector<4x32xf32> to vector<4x32xbf16>
    %c1_41 = arith.constant 1 : index
    %c3_42 = arith.constant 3 : index
    %c1_43 = arith.constant 1 : index
    %c0_44 = arith.constant 0 : index
    %68 = vector.load %arg12[%c1_41, %c3_42, %c1_43, %c0_44] : memref<2x6x6x32xbf16, #tpu.memory_space<vmem>>, vector<1x1x4x32xbf16>
    %69 = vector.shape_cast %68 : vector<1x1x4x32xbf16> to vector<4x32xbf16>
    %70 = vector.shape_cast %67 : vector<4x32xbf16> to vector<1x1x4x32xbf16>
    tpu.vector_store %arg12[%c1_41, %c3_42, %c1_43, %c0_44], %70 {strides = array<i32>} : memref<2x6x6x32xbf16, #tpu.memory_space<vmem>>, vector<1x1x4x32xbf16>,
    %71 = vector.extract_strided_slice %33 {offsets = [28, 0], sizes = [4, 32], strides = [1, 1]} : vector<32x32xf32> to vector<4x32xf32>
    %72 = arith.truncf %71 : vector<4x32xf32> to vector<4x32xbf16>
    %c1_45 = arith.constant 1 : index
    %c4_46 = arith.constant 4 : index
    %c1_47 = arith.constant 1 : index
    %c0_48 = arith.constant 0 : index
    %73 = vector.load %arg12[%c1_45, %c4_46, %c1_47, %c0_48] : memref<2x6x6x32xbf16, #tpu.memory_space<vmem>>, vector<1x1x4x32xbf16>
    %74 = vector.shape_cast %73 : vector<1x1x4x32xbf16> to vector<4x32xbf16>
    %75 = vector.shape_cast %72 : vector<4x32xbf16> to vector<1x1x4x32xbf16>
    tpu.vector_store %arg12[%c1_45, %c4_46, %c1_47, %c0_48], %75 {strides = array<i32>} : memref<2x6x6x32xbf16, #tpu.memory_space<vmem>>, vector<1x1x4x32xbf16>,
    %cst_49 = arith.constant 0.000000e+00 : f32
    %76 = vector.broadcast %cst_49 : f32 to vector<18x64xf32>
    %c0_50 = arith.constant 0 : index
    %c0_51 = arith.constant 0 : index
    %c0_52 = arith.constant 0 : index
    %c0_53 = arith.constant 0 : index
    %77 = vector.load %arg12[%c0_50, %c0_51, %c0_52, %c0_53] : memref<2x6x6x32xbf16, #tpu.memory_space<vmem>>, vector<1x1x3x32xbf16>
    %78 = vector.shape_cast %77 : vector<1x1x3x32xbf16> to vector<3x32xbf16>
    %c0_54 = arith.constant 0 : index
    %c0_55 = arith.constant 0 : index
    %79 = vector.load %arg14[%c0_54, %c0_55] : memref<18x32xbf16, #tpu.memory_space<vmem>>, vector<3x32xbf16>
    tpu.vector_store %arg14[%c0_54, %c0_55], %78 {strides = array<i32>} : memref<18x32xbf16, #tpu.memory_space<vmem>>, vector<3x32xbf16>,
    %c0_56 = arith.constant 0 : index
    %c1_57 = arith.constant 1 : index
    %c0_58 = arith.constant 0 : index
    %c0_59 = arith.constant 0 : index
    %80 = vector.load %arg12[%c0_56, %c1_57, %c0_58, %c0_59] : memref<2x6x6x32xbf16, #tpu.memory_space<vmem>>, vector<1x1x3x32xbf16>
    %81 = vector.shape_cast %80 : vector<1x1x3x32xbf16> to vector<3x32xbf16>
    %c3_60 = arith.constant 3 : index
    %c0_61 = arith.constant 0 : index
    %82 = vector.load %arg14[%c3_60, %c0_61] : memref<18x32xbf16, #tpu.memory_space<vmem>>, vector<3x32xbf16>
    tpu.vector_store %arg14[%c3_60, %c0_61], %81 {strides = array<i32>} : memref<18x32xbf16, #tpu.memory_space<vmem>>, vector<3x32xbf16>,
    %c0_62 = arith.constant 0 : index
    %c2_63 = arith.constant 2 : index
    %c0_64 = arith.constant 0 : index
    %c0_65 = arith.constant 0 : index
    %83 = vector.load %arg12[%c0_62, %c2_63, %c0_64, %c0_65] : memref<2x6x6x32xbf16, #tpu.memory_space<vmem>>, vector<1x1x3x32xbf16>
    %84 = vector.shape_cast %83 : vector<1x1x3x32xbf16> to vector<3x32xbf16>
    %c6 = arith.constant 6 : index
    %c0_66 = arith.constant 0 : index
    %85 = vector.load %arg14[%c6, %c0_66] : memref<18x32xbf16, #tpu.memory_space<vmem>>, vector<3x32xbf16>
    tpu.vector_store %arg14[%c6, %c0_66], %84 {strides = array<i32>} : memref<18x32xbf16, #tpu.memory_space<vmem>>, vector<3x32xbf16>,
    %c1_67 = arith.constant 1 : index
    %c0_68 = arith.constant 0 : index
    %c0_69 = arith.constant 0 : index
    %c0_70 = arith.constant 0 : index
    %86 = vector.load %arg12[%c1_67, %c0_68, %c0_69, %c0_70] : memref<2x6x6x32xbf16, #tpu.memory_space<vmem>>, vector<1x1x3x32xbf16>
    %87 = vector.shape_cast %86 : vector<1x1x3x32xbf16> to vector<3x32xbf16>
    %c9 = arith.constant 9 : index
    %c0_71 = arith.constant 0 : index
    %88 = vector.load %arg14[%c9, %c0_71] : memref<18x32xbf16, #tpu.memory_space<vmem>>, vector<3x32xbf16>
    tpu.vector_store %arg14[%c9, %c0_71], %87 {strides = array<i32>} : memref<18x32xbf16, #tpu.memory_space<vmem>>, vector<3x32xbf16>,
    %c1_72 = arith.constant 1 : index
    %c1_73 = arith.constant 1 : index
    %c0_74 = arith.constant 0 : index
    %c0_75 = arith.constant 0 : index
    %89 = vector.load %arg12[%c1_72, %c1_73, %c0_74, %c0_75] : memref<2x6x6x32xbf16, #tpu.memory_space<vmem>>, vector<1x1x3x32xbf16>
    %90 = vector.shape_cast %89 : vector<1x1x3x32xbf16> to vector<3x32xbf16>
    %c12 = arith.constant 12 : index
    %c0_76 = arith.constant 0 : index
    %91 = vector.load %arg14[%c12, %c0_76] : memref<18x32xbf16, #tpu.memory_space<vmem>>, vector<3x32xbf16>
    tpu.vector_store %arg14[%c12, %c0_76], %90 {strides = array<i32>} : memref<18x32xbf16, #tpu.memory_space<vmem>>, vector<3x32xbf16>,
    %c1_77 = arith.constant 1 : index
    %c2_78 = arith.constant 2 : index
    %c0_79 = arith.constant 0 : index
    %c0_80 = arith.constant 0 : index
    %92 = vector.load %arg12[%c1_77, %c2_78, %c0_79, %c0_80] : memref<2x6x6x32xbf16, #tpu.memory_space<vmem>>, vector<1x1x3x32xbf16>
    %93 = vector.shape_cast %92 : vector<1x1x3x32xbf16> to vector<3x32xbf16>
    %c15 = arith.constant 15 : index
    %c0_81 = arith.constant 0 : index
    %94 = vector.load %arg14[%c15, %c0_81] : memref<18x32xbf16, #tpu.memory_space<vmem>>, vector<3x32xbf16>
    tpu.vector_store %arg14[%c15, %c0_81], %93 {strides = array<i32>} : memref<18x32xbf16, #tpu.memory_space<vmem>>, vector<3x32xbf16>,
    %c0_82 = arith.constant 0 : index
    %c0_83 = arith.constant 0 : index
    %95 = vector.load %arg14[%c0_82, %c0_83] : memref<18x32xbf16, #tpu.memory_space<vmem>>, vector<18x32xbf16>
    %c0_84 = arith.constant 0 : index
    %c0_85 = arith.constant 0 : index
    %c0_86 = arith.constant 0 : index
    %96 = vector.load %arg5[%c0_84, %c0_85, %c0_86] : memref<16x32x64xbf16, #tpu.memory_space<vmem>>, vector<1x32x64xbf16>
    %97 = vector.shape_cast %96 : vector<1x32x64xbf16> to vector<32x64xbf16>
    %cst_87 = arith.constant dense<0.000000e+00> : vector<18x64xf32>
    %98 = tpu.matmul %95, %97, %cst_87 {dimension_numbers = #tpu.dot_dimension_numbers<[1], [0], [0], [1], [0, 0, 1, 1], [], []>} : vector<18x32xbf16>, vector<32x64xbf16>, vector<18x64xf32> -> vector<18x64xf32>
    %99 = arith.addf %76, %98 : vector<18x64xf32>
    %c0_88 = arith.constant 0 : index
    %c0_89 = arith.constant 0 : index
    %c1_90 = arith.constant 1 : index
    %c0_91 = arith.constant 0 : index
    %100 = vector.load %arg12[%c0_88, %c0_89, %c1_90, %c0_91] : memref<2x6x6x32xbf16, #tpu.memory_space<vmem>>, vector<1x1x3x32xbf16>
    %101 = vector.shape_cast %100 : vector<1x1x3x32xbf16> to vector<3x32xbf16>
    %c0_92 = arith.constant 0 : index
    %c0_93 = arith.constant 0 : index
    %102 = vector.load %arg14[%c0_92, %c0_93] : memref<18x32xbf16, #tpu.memory_space<vmem>>, vector<3x32xbf16>
    tpu.vector_store %arg14[%c0_92, %c0_93], %101 {strides = array<i32>} : memref<18x32xbf16, #tpu.memory_space<vmem>>, vector<3x32xbf16>,
    %c0_94 = arith.constant 0 : index
    %c1_95 = arith.constant 1 : index
    %c1_96 = arith.constant 1 : index
    %c0_97 = arith.constant 0 : index
    %103 = vector.load %arg12[%c0_94, %c1_95, %c1_96, %c0_97] : memref<2x6x6x32xbf16, #tpu.memory_space<vmem>>, vector<1x1x3x32xbf16>
    %104 = vector.shape_cast %103 : vector<1x1x3x32xbf16> to vector<3x32xbf16>
    %c3_98 = arith.constant 3 : index
    %c0_99 = arith.constant 0 : index
    %105 = vector.load %arg14[%c3_98, %c0_99] : memref<18x32xbf16, #tpu.memory_space<vmem>>, vector<3x32xbf16>
    tpu.vector_store %arg14[%c3_98, %c0_99], %104 {strides = array<i32>} : memref<18x32xbf16, #tpu.memory_space<vmem>>, vector<3x32xbf16>,
    %c0_100 = arith.constant 0 : index
    %c2_101 = arith.constant 2 : index
    %c1_102 = arith.constant 1 : index
    %c0_103 = arith.constant 0 : index
    %106 = vector.load %arg12[%c0_100, %c2_101, %c1_102, %c0_103] : memref<2x6x6x32xbf16, #tpu.memory_space<vmem>>, vector<1x1x3x32xbf16>
    %107 = vector.shape_cast %106 : vector<1x1x3x32xbf16> to vector<3x32xbf16>
    %c6_104 = arith.constant 6 : index
    %c0_105 = arith.constant 0 : index
    %108 = vector.load %arg14[%c6_104, %c0_105] : memref<18x32xbf16, #tpu.memory_space<vmem>>, vector<3x32xbf16>
    tpu.vector_store %arg14[%c6_104, %c0_105], %107 {strides = array<i32>} : memref<18x32xbf16, #tpu.memory_space<vmem>>, vector<3x32xbf16>,
    %c1_106 = arith.constant 1 : index
    %c0_107 = arith.constant 0 : index
    %c1_108 = arith.constant 1 : index
    %c0_109 = arith.constant 0 : index
    %109 = vector.load %arg12[%c1_106, %c0_107, %c1_108, %c0_109] : memref<2x6x6x32xbf16, #tpu.memory_space<vmem>>, vector<1x1x3x32xbf16>
    %110 = vector.shape_cast %109 : vector<1x1x3x32xbf16> to vector<3x32xbf16>
    %c9_110 = arith.constant 9 : index
    %c0_111 = arith.constant 0 : index
    %111 = vector.load %arg14[%c9_110, %c0_111] : memref<18x32xbf16, #tpu.memory_space<vmem>>, vector<3x32xbf16>
    tpu.vector_store %arg14[%c9_110, %c0_111], %110 {strides = array<i32>} : memref<18x32xbf16, #tpu.memory_space<vmem>>, vector<3x32xbf16>,
    %c1_112 = arith.constant 1 : index
    %c1_113 = arith.constant 1 : index
    %c1_114 = arith.constant 1 : index
    %c0_115 = arith.constant 0 : index
    %112 = vector.load %arg12[%c1_112, %c1_113, %c1_114, %c0_115] : memref<2x6x6x32xbf16, #tpu.memory_space<vmem>>, vector<1x1x3x32xbf16>
    %113 = vector.shape_cast %112 : vector<1x1x3x32xbf16> to vector<3x32xbf16>
    %c12_116 = arith.constant 12 : index
    %c0_117 = arith.constant 0 : index
    %114 = vector.load %arg14[%c12_116, %c0_117] : memref<18x32xbf16, #tpu.memory_space<vmem>>, vector<3x32xbf16>
    tpu.vector_store %arg14[%c12_116, %c0_117], %113 {strides = array<i32>} : memref<18x32xbf16, #tpu.memory_space<vmem>>, vector<3x32xbf16>,
    %c1_118 = arith.constant 1 : index
    %c2_119 = arith.constant 2 : index
    %c1_120 = arith.constant 1 : index
    %c0_121 = arith.constant 0 : index
    %115 = vector.load %arg12[%c1_118, %c2_119, %c1_120, %c0_121] : memref<2x6x6x32xbf16, #tpu.memory_space<vmem>>, vector<1x1x3x32xbf16>
    %116 = vector.shape_cast %115 : vector<1x1x3x32xbf16> to vector<3x32xbf16>
    %c15_122 = arith.constant 15 : index
    %c0_123 = arith.constant 0 : index
    %117 = vector.load %arg14[%c15_122, %c0_123] : memref<18x32xbf16, #tpu.memory_space<vmem>>, vector<3x32xbf16>
    tpu.vector_store %arg14[%c15_122, %c0_123], %116 {strides = array<i32>} : memref<18x32xbf16, #tpu.memory_space<vmem>>, vector<3x32xbf16>,
    %c0_124 = arith.constant 0 : index
    %c0_125 = arith.constant 0 : index
    %118 = vector.load %arg14[%c0_124, %c0_125] : memref<18x32xbf16, #tpu.memory_space<vmem>>, vector<18x32xbf16>
    %c1_126 = arith.constant 1 : index
    %c0_127 = arith.constant 0 : index
    %c0_128 = arith.constant 0 : index
    %119 = vector.load %arg5[%c1_126, %c0_127, %c0_128] : memref<16x32x64xbf16, #tpu.memory_space<vmem>>, vector<1x32x64xbf16>
    %120 = vector.shape_cast %119 : vector<1x32x64xbf16> to vector<32x64xbf16>
    %cst_129 = arith.constant dense<0.000000e+00> : vector<18x64xf32>
    %121 = tpu.matmul %118, %120, %cst_129 {dimension_numbers = #tpu.dot_dimension_numbers<[1], [0], [0], [1], [0, 0, 1, 1], [], []>} : vector<18x32xbf16>, vector<32x64xbf16>, vector<18x64xf32> -> vector<18x64xf32>
    %122 = arith.addf %99, %121 : vector<18x64xf32>
    %c0_130 = arith.constant 0 : index
    %c0_131 = arith.constant 0 : index
    %c2_132 = arith.constant 2 : index
    %c0_133 = arith.constant 0 : index
    %123 = vector.load %arg12[%c0_130, %c0_131, %c2_132, %c0_133] : memref<2x6x6x32xbf16, #tpu.memory_space<vmem>>, vector<1x1x3x32xbf16>
    %124 = vector.shape_cast %123 : vector<1x1x3x32xbf16> to vector<3x32xbf16>
    %c0_134 = arith.constant 0 : index
    %c0_135 = arith.constant 0 : index
    %125 = vector.load %arg14[%c0_134, %c0_135] : memref<18x32xbf16, #tpu.memory_space<vmem>>, vector<3x32xbf16>
    tpu.vector_store %arg14[%c0_134, %c0_135], %124 {strides = array<i32>} : memref<18x32xbf16, #tpu.memory_space<vmem>>, vector<3x32xbf16>,
    %c0_136 = arith.constant 0 : index
    %c1_137 = arith.constant 1 : index
    %c2_138 = arith.constant 2 : index
    %c0_139 = arith.constant 0 : index
    %126 = vector.load %arg12[%c0_136, %c1_137, %c2_138, %c0_139] : memref<2x6x6x32xbf16, #tpu.memory_space<vmem>>, vector<1x1x3x32xbf16>
    %127 = vector.shape_cast %126 : vector<1x1x3x32xbf16> to vector<3x32xbf16>
    %c3_140 = arith.constant 3 : index
    %c0_141 = arith.constant 0 : index
    %128 = vector.load %arg14[%c3_140, %c0_141] : memref<18x32xbf16, #tpu.memory_space<vmem>>, vector<3x32xbf16>
    tpu.vector_store %arg14[%c3_140, %c0_141], %127 {strides = array<i32>} : memref<18x32xbf16, #tpu.memory_space<vmem>>, vector<3x32xbf16>,
    %c0_142 = arith.constant 0 : index
    %c2_143 = arith.constant 2 : index
    %c2_144 = arith.constant 2 : index
    %c0_145 = arith.constant 0 : index
    %129 = vector.load %arg12[%c0_142, %c2_143, %c2_144, %c0_145] : memref<2x6x6x32xbf16, #tpu.memory_space<vmem>>, vector<1x1x3x32xbf16>
    %130 = vector.shape_cast %129 : vector<1x1x3x32xbf16> to vector<3x32xbf16>
    %c6_146 = arith.constant 6 : index
    %c0_147 = arith.constant 0 : index
    %131 = vector.load %arg14[%c6_146, %c0_147] : memref<18x32xbf16, #tpu.memory_space<vmem>>, vector<3x32xbf16>
    tpu.vector_store %arg14[%c6_146, %c0_147], %130 {strides = array<i32>} : memref<18x32xbf16, #tpu.memory_space<vmem>>, vector<3x32xbf16>,
    %c1_148 = arith.constant 1 : index
    %c0_149 = arith.constant 0 : index
    %c2_150 = arith.constant 2 : index
    %c0_151 = arith.constant 0 : index
    %132 = vector.load %arg12[%c1_148, %c0_149, %c2_150, %c0_151] : memref<2x6x6x32xbf16, #tpu.memory_space<vmem>>, vector<1x1x3x32xbf16>
    %133 = vector.shape_cast %132 : vector<1x1x3x32xbf16> to vector<3x32xbf16>
    %c9_152 = arith.constant 9 : index
    %c0_153 = arith.constant 0 : index
    %134 = vector.load %arg14[%c9_152, %c0_153] : memref<18x32xbf16, #tpu.memory_space<vmem>>, vector<3x32xbf16>
    tpu.vector_store %arg14[%c9_152, %c0_153], %133 {strides = array<i32>} : memref<18x32xbf16, #tpu.memory_space<vmem>>, vector<3x32xbf16>,
    %c1_154 = arith.constant 1 : index
    %c1_155 = arith.constant 1 : index
    %c2_156 = arith.constant 2 : index
    %c0_157 = arith.constant 0 : index
    %135 = vector.load %arg12[%c1_154, %c1_155, %c2_156, %c0_157] : memref<2x6x6x32xbf16, #tpu.memory_space<vmem>>, vector<1x1x3x32xbf16>
    %136 = vector.shape_cast %135 : vector<1x1x3x32xbf16> to vector<3x32xbf16>
    %c12_158 = arith.constant 12 : index
    %c0_159 = arith.constant 0 : index
    %137 = vector.load %arg14[%c12_158, %c0_159] : memref<18x32xbf16, #tpu.memory_space<vmem>>, vector<3x32xbf16>
    tpu.vector_store %arg14[%c12_158, %c0_159], %136 {strides = array<i32>} : memref<18x32xbf16, #tpu.memory_space<vmem>>, vector<3x32xbf16>,
    %c1_160 = arith.constant 1 : index
    %c2_161 = arith.constant 2 : index
    %c2_162 = arith.constant 2 : index
    %c0_163 = arith.constant 0 : index
    %138 = vector.load %arg12[%c1_160, %c2_161, %c2_162, %c0_163] : memref<2x6x6x32xbf16, #tpu.memory_space<vmem>>, vector<1x1x3x32xbf16>
    %139 = vector.shape_cast %138 : vector<1x1x3x32xbf16> to vector<3x32xbf16>
    %c15_164 = arith.constant 15 : index
    %c0_165 = arith.constant 0 : index
    %140 = vector.load %arg14[%c15_164, %c0_165] : memref<18x32xbf16, #tpu.memory_space<vmem>>, vector<3x32xbf16>
    tpu.vector_store %arg14[%c15_164, %c0_165], %139 {strides = array<i32>} : memref<18x32xbf16, #tpu.memory_space<vmem>>, vector<3x32xbf16>,
    %c0_166 = arith.constant 0 : index
    %c0_167 = arith.constant 0 : index
    %141 = vector.load %arg14[%c0_166, %c0_167] : memref<18x32xbf16, #tpu.memory_space<vmem>>, vector<18x32xbf16>
    %c2_168 = arith.constant 2 : index
    %c0_169 = arith.constant 0 : index
    %c0_170 = arith.constant 0 : index
    %142 = vector.load %arg5[%c2_168, %c0_169, %c0_170] : memref<16x32x64xbf16, #tpu.memory_space<vmem>>, vector<1x32x64xbf16>
    %143 = vector.shape_cast %142 : vector<1x32x64xbf16> to vector<32x64xbf16>
    %cst_171 = arith.constant dense<0.000000e+00> : vector<18x64xf32>
    %144 = tpu.matmul %141, %143, %cst_171 {dimension_numbers = #tpu.dot_dimension_numbers<[1], [0], [0], [1], [0, 0, 1, 1], [], []>} : vector<18x32xbf16>, vector<32x64xbf16>, vector<18x64xf32> -> vector<18x64xf32>
    %145 = arith.addf %122, %144 : vector<18x64xf32>
    %c0_172 = arith.constant 0 : index
    %c0_173 = arith.constant 0 : index
    %c3_174 = arith.constant 3 : index
    %c0_175 = arith.constant 0 : index
    %146 = vector.load %arg12[%c0_172, %c0_173, %c3_174, %c0_175] : memref<2x6x6x32xbf16, #tpu.memory_space<vmem>>, vector<1x1x3x32xbf16>
    %147 = vector.shape_cast %146 : vector<1x1x3x32xbf16> to vector<3x32xbf16>
    %c0_176 = arith.constant 0 : index
    %c0_177 = arith.constant 0 : index
    %148 = vector.load %arg14[%c0_176, %c0_177] : memref<18x32xbf16, #tpu.memory_space<vmem>>, vector<3x32xbf16>
    tpu.vector_store %arg14[%c0_176, %c0_177], %147 {strides = array<i32>} : memref<18x32xbf16, #tpu.memory_space<vmem>>, vector<3x32xbf16>,
    %c0_178 = arith.constant 0 : index
    %c1_179 = arith.constant 1 : index
    %c3_180 = arith.constant 3 : index
    %c0_181 = arith.constant 0 : index
    %149 = vector.load %arg12[%c0_178, %c1_179, %c3_180, %c0_181] : memref<2x6x6x32xbf16, #tpu.memory_space<vmem>>, vector<1x1x3x32xbf16>
    %150 = vector.shape_cast %149 : vector<1x1x3x32xbf16> to vector<3x32xbf16>
    %c3_182 = arith.constant 3 : index
    %c0_183 = arith.constant 0 : index
    %151 = vector.load %arg14[%c3_182, %c0_183] : memref<18x32xbf16, #tpu.memory_space<vmem>>, vector<3x32xbf16>
    tpu.vector_store %arg14[%c3_182, %c0_183], %150 {strides = array<i32>} : memref<18x32xbf16, #tpu.memory_space<vmem>>, vector<3x32xbf16>,
    %c0_184 = arith.constant 0 : index
    %c2_185 = arith.constant 2 : index
    %c3_186 = arith.constant 3 : index
    %c0_187 = arith.constant 0 : index
    %152 = vector.load %arg12[%c0_184, %c2_185, %c3_186, %c0_187] : memref<2x6x6x32xbf16, #tpu.memory_space<vmem>>, vector<1x1x3x32xbf16>
    %153 = vector.shape_cast %152 : vector<1x1x3x32xbf16> to vector<3x32xbf16>
    %c6_188 = arith.constant 6 : index
    %c0_189 = arith.constant 0 : index
    %154 = vector.load %arg14[%c6_188, %c0_189] : memref<18x32xbf16, #tpu.memory_space<vmem>>, vector<3x32xbf16>
    tpu.vector_store %arg14[%c6_188, %c0_189], %153 {strides = array<i32>} : memref<18x32xbf16, #tpu.memory_space<vmem>>, vector<3x32xbf16>,
    %c1_190 = arith.constant 1 : index
    %c0_191 = arith.constant 0 : index
    %c3_192 = arith.constant 3 : index
    %c0_193 = arith.constant 0 : index
    %155 = vector.load %arg12[%c1_190, %c0_191, %c3_192, %c0_193] : memref<2x6x6x32xbf16, #tpu.memory_space<vmem>>, vector<1x1x3x32xbf16>
    %156 = vector.shape_cast %155 : vector<1x1x3x32xbf16> to vector<3x32xbf16>
    %c9_194 = arith.constant 9 : index
    %c0_195 = arith.constant 0 : index
    %157 = vector.load %arg14[%c9_194, %c0_195] : memref<18x32xbf16, #tpu.memory_space<vmem>>, vector<3x32xbf16>
    tpu.vector_store %arg14[%c9_194, %c0_195], %156 {strides = array<i32>} : memref<18x32xbf16, #tpu.memory_space<vmem>>, vector<3x32xbf16>,
    %c1_196 = arith.constant 1 : index
    %c1_197 = arith.constant 1 : index
    %c3_198 = arith.constant 3 : index
    %c0_199 = arith.constant 0 : index
    %158 = vector.load %arg12[%c1_196, %c1_197, %c3_198, %c0_199] : memref<2x6x6x32xbf16, #tpu.memory_space<vmem>>, vector<1x1x3x32xbf16>
    %159 = vector.shape_cast %158 : vector<1x1x3x32xbf16> to vector<3x32xbf16>
    %c12_200 = arith.constant 12 : index
    %c0_201 = arith.constant 0 : index
    %160 = vector.load %arg14[%c12_200, %c0_201] : memref<18x32xbf16, #tpu.memory_space<vmem>>, vector<3x32xbf16>
    tpu.vector_store %arg14[%c12_200, %c0_201], %159 {strides = array<i32>} : memref<18x32xbf16, #tpu.memory_space<vmem>>, vector<3x32xbf16>,
    %c1_202 = arith.constant 1 : index
    %c2_203 = arith.constant 2 : index
    %c3_204 = arith.constant 3 : index
    %c0_205 = arith.constant 0 : index
    %161 = vector.load %arg12[%c1_202, %c2_203, %c3_204, %c0_205] : memref<2x6x6x32xbf16, #tpu.memory_space<vmem>>, vector<1x1x3x32xbf16>
    %162 = vector.shape_cast %161 : vector<1x1x3x32xbf16> to vector<3x32xbf16>
    %c15_206 = arith.constant 15 : index
    %c0_207 = arith.constant 0 : index
    %163 = vector.load %arg14[%c15_206, %c0_207] : memref<18x32xbf16, #tpu.memory_space<vmem>>, vector<3x32xbf16>
    tpu.vector_store %arg14[%c15_206, %c0_207], %162 {strides = array<i32>} : memref<18x32xbf16, #tpu.memory_space<vmem>>, vector<3x32xbf16>,
    %c0_208 = arith.constant 0 : index
    %c0_209 = arith.constant 0 : index
    %164 = vector.load %arg14[%c0_208, %c0_209] : memref<18x32xbf16, #tpu.memory_space<vmem>>, vector<18x32xbf16>
    %c3_210 = arith.constant 3 : index
    %c0_211 = arith.constant 0 : index
    %c0_212 = arith.constant 0 : index
    %165 = vector.load %arg5[%c3_210, %c0_211, %c0_212] : memref<16x32x64xbf16, #tpu.memory_space<vmem>>, vector<1x32x64xbf16>
    %166 = vector.shape_cast %165 : vector<1x32x64xbf16> to vector<32x64xbf16>
    %cst_213 = arith.constant dense<0.000000e+00> : vector<18x64xf32>
    %167 = tpu.matmul %164, %166, %cst_213 {dimension_numbers = #tpu.dot_dimension_numbers<[1], [0], [0], [1], [0, 0, 1, 1], [], []>} : vector<18x32xbf16>, vector<32x64xbf16>, vector<18x64xf32> -> vector<18x64xf32>
    %168 = arith.addf %145, %167 : vector<18x64xf32>
    %c0_214 = arith.constant 0 : index
    %c1_215 = arith.constant 1 : index
    %c0_216 = arith.constant 0 : index
    %c0_217 = arith.constant 0 : index
    %169 = vector.load %arg12[%c0_214, %c1_215, %c0_216, %c0_217] : memref<2x6x6x32xbf16, #tpu.memory_space<vmem>>, vector<1x1x3x32xbf16>
    %170 = vector.shape_cast %169 : vector<1x1x3x32xbf16> to vector<3x32xbf16>
    %c0_218 = arith.constant 0 : index
    %c0_219 = arith.constant 0 : index
    %171 = vector.load %arg14[%c0_218, %c0_219] : memref<18x32xbf16, #tpu.memory_space<vmem>>, vector<3x32xbf16>
    tpu.vector_store %arg14[%c0_218, %c0_219], %170 {strides = array<i32>} : memref<18x32xbf16, #tpu.memory_space<vmem>>, vector<3x32xbf16>,
    %c0_220 = arith.constant 0 : index
    %c2_221 = arith.constant 2 : index
    %c0_222 = arith.constant 0 : index
    %c0_223 = arith.constant 0 : index
    %172 = vector.load %arg12[%c0_220, %c2_221, %c0_222, %c0_223] : memref<2x6x6x32xbf16, #tpu.memory_space<vmem>>, vector<1x1x3x32xbf16>
    %173 = vector.shape_cast %172 : vector<1x1x3x32xbf16> to vector<3x32xbf16>
    %c3_224 = arith.constant 3 : index
    %c0_225 = arith.constant 0 : index
    %174 = vector.load %arg14[%c3_224, %c0_225] : memref<18x32xbf16, #tpu.memory_space<vmem>>, vector<3x32xbf16>
    tpu.vector_store %arg14[%c3_224, %c0_225], %173 {strides = array<i32>} : memref<18x32xbf16, #tpu.memory_space<vmem>>, vector<3x32xbf16>,
    %c0_226 = arith.constant 0 : index
    %c3_227 = arith.constant 3 : index
    %c0_228 = arith.constant 0 : index
    %c0_229 = arith.constant 0 : index
    %175 = vector.load %arg12[%c0_226, %c3_227, %c0_228, %c0_229] : memref<2x6x6x32xbf16, #tpu.memory_space<vmem>>, vector<1x1x3x32xbf16>
    %176 = vector.shape_cast %175 : vector<1x1x3x32xbf16> to vector<3x32xbf16>
    %c6_230 = arith.constant 6 : index
    %c0_231 = arith.constant 0 : index
    %177 = vector.load %arg14[%c6_230, %c0_231] : memref<18x32xbf16, #tpu.memory_space<vmem>>, vector<3x32xbf16>
    tpu.vector_store %arg14[%c6_230, %c0_231], %176 {strides = array<i32>} : memref<18x32xbf16, #tpu.memory_space<vmem>>, vector<3x32xbf16>,
    %c1_232 = arith.constant 1 : index
    %c1_233 = arith.constant 1 : index
    %c0_234 = arith.constant 0 : index
    %c0_235 = arith.constant 0 : index
    %178 = vector.load %arg12[%c1_232, %c1_233, %c0_234, %c0_235] : memref<2x6x6x32xbf16, #tpu.memory_space<vmem>>, vector<1x1x3x32xbf16>
    %179 = vector.shape_cast %178 : vector<1x1x3x32xbf16> to vector<3x32xbf16>
    %c9_236 = arith.constant 9 : index
    %c0_237 = arith.constant 0 : index
    %180 = vector.load %arg14[%c9_236, %c0_237] : memref<18x32xbf16, #tpu.memory_space<vmem>>, vector<3x32xbf16>
    tpu.vector_store %arg14[%c9_236, %c0_237], %179 {strides = array<i32>} : memref<18x32xbf16, #tpu.memory_space<vmem>>, vector<3x32xbf16>,
    %c1_238 = arith.constant 1 : index
    %c2_239 = arith.constant 2 : index
    %c0_240 = arith.constant 0 : index
    %c0_241 = arith.constant 0 : index
    %181 = vector.load %arg12[%c1_238, %c2_239, %c0_240, %c0_241] : memref<2x6x6x32xbf16, #tpu.memory_space<vmem>>, vector<1x1x3x32xbf16>
    %182 = vector.shape_cast %181 : vector<1x1x3x32xbf16> to vector<3x32xbf16>
    %c12_242 = arith.constant 12 : index
    %c0_243 = arith.constant 0 : index
    %183 = vector.load %arg14[%c12_242, %c0_243] : memref<18x32xbf16, #tpu.memory_space<vmem>>, vector<3x32xbf16>
    tpu.vector_store %arg14[%c12_242, %c0_243], %182 {strides = array<i32>} : memref<18x32xbf16, #tpu.memory_space<vmem>>, vector<3x32xbf16>,
    %c1_244 = arith.constant 1 : index
    %c3_245 = arith.constant 3 : index
    %c0_246 = arith.constant 0 : index
    %c0_247 = arith.constant 0 : index
    %184 = vector.load %arg12[%c1_244, %c3_245, %c0_246, %c0_247] : memref<2x6x6x32xbf16, #tpu.memory_space<vmem>>, vector<1x1x3x32xbf16>
    %185 = vector.shape_cast %184 : vector<1x1x3x32xbf16> to vector<3x32xbf16>
    %c15_248 = arith.constant 15 : index
    %c0_249 = arith.constant 0 : index
    %186 = vector.load %arg14[%c15_248, %c0_249] : memref<18x32xbf16, #tpu.memory_space<vmem>>, vector<3x32xbf16>
    tpu.vector_store %arg14[%c15_248, %c0_249], %185 {strides = array<i32>} : memref<18x32xbf16, #tpu.memory_space<vmem>>, vector<3x32xbf16>,
    %c0_250 = arith.constant 0 : index
    %c0_251 = arith.constant 0 : index
    %187 = vector.load %arg14[%c0_250, %c0_251] : memref<18x32xbf16, #tpu.memory_space<vmem>>, vector<18x32xbf16>
    %c4_252 = arith.constant 4 : index
    %c0_253 = arith.constant 0 : index
    %c0_254 = arith.constant 0 : index
    %188 = vector.load %arg5[%c4_252, %c0_253, %c0_254] : memref<16x32x64xbf16, #tpu.memory_space<vmem>>, vector<1x32x64xbf16>
    %189 = vector.shape_cast %188 : vector<1x32x64xbf16> to vector<32x64xbf16>
    %cst_255 = arith.constant dense<0.000000e+00> : vector<18x64xf32>
    %190 = tpu.matmul %187, %189, %cst_255 {dimension_numbers = #tpu.dot_dimension_numbers<[1], [0], [0], [1], [0, 0, 1, 1], [], []>} : vector<18x32xbf16>, vector<32x64xbf16>, vector<18x64xf32> -> vector<18x64xf32>
    %191 = arith.addf %168, %190 : vector<18x64xf32>
    %c0_256 = arith.constant 0 : index
    %c1_257 = arith.constant 1 : index
    %c1_258 = arith.constant 1 : index
    %c0_259 = arith.constant 0 : index
    %192 = vector.load %arg12[%c0_256, %c1_257, %c1_258, %c0_259] : memref<2x6x6x32xbf16, #tpu.memory_space<vmem>>, vector<1x1x3x32xbf16>
    %193 = vector.shape_cast %192 : vector<1x1x3x32xbf16> to vector<3x32xbf16>
    %c0_260 = arith.constant 0 : index
    %c0_261 = arith.constant 0 : index
    %194 = vector.load %arg14[%c0_260, %c0_261] : memref<18x32xbf16, #tpu.memory_space<vmem>>, vector<3x32xbf16>
    tpu.vector_store %arg14[%c0_260, %c0_261], %193 {strides = array<i32>} : memref<18x32xbf16, #tpu.memory_space<vmem>>, vector<3x32xbf16>,
    %c0_262 = arith.constant 0 : index
    %c2_263 = arith.constant 2 : index
    %c1_264 = arith.constant 1 : index
    %c0_265 = arith.constant 0 : index
    %195 = vector.load %arg12[%c0_262, %c2_263, %c1_264, %c0_265] : memref<2x6x6x32xbf16, #tpu.memory_space<vmem>>, vector<1x1x3x32xbf16>
    %196 = vector.shape_cast %195 : vector<1x1x3x32xbf16> to vector<3x32xbf16>
    %c3_266 = arith.constant 3 : index
    %c0_267 = arith.constant 0 : index
    %197 = vector.load %arg14[%c3_266, %c0_267] : memref<18x32xbf16, #tpu.memory_space<vmem>>, vector<3x32xbf16>
    tpu.vector_store %arg14[%c3_266, %c0_267], %196 {strides = array<i32>} : memref<18x32xbf16, #tpu.memory_space<vmem>>, vector<3x32xbf16>,
    %c0_268 = arith.constant 0 : index
    %c3_269 = arith.constant 3 : index
    %c1_270 = arith.constant 1 : index
    %c0_271 = arith.constant 0 : index
    %198 = vector.load %arg12[%c0_268, %c3_269, %c1_270, %c0_271] : memref<2x6x6x32xbf16, #tpu.memory_space<vmem>>, vector<1x1x3x32xbf16>
    %199 = vector.shape_cast %198 : vector<1x1x3x32xbf16> to vector<3x32xbf16>
    %c6_272 = arith.constant 6 : index
    %c0_273 = arith.constant 0 : index
    %200 = vector.load %arg14[%c6_272, %c0_273] : memref<18x32xbf16, #tpu.memory_space<vmem>>, vector<3x32xbf16>
    tpu.vector_store %arg14[%c6_272, %c0_273], %199 {strides = array<i32>} : memref<18x32xbf16, #tpu.memory_space<vmem>>, vector<3x32xbf16>,
    %c1_274 = arith.constant 1 : index
    %c1_275 = arith.constant 1 : index
    %c1_276 = arith.constant 1 : index
    %c0_277 = arith.constant 0 : index
    %201 = vector.load %arg12[%c1_274, %c1_275, %c1_276, %c0_277] : memref<2x6x6x32xbf16, #tpu.memory_space<vmem>>, vector<1x1x3x32xbf16>
    %202 = vector.shape_cast %201 : vector<1x1x3x32xbf16> to vector<3x32xbf16>
    %c9_278 = arith.constant 9 : index
    %c0_279 = arith.constant 0 : index
    %203 = vector.load %arg14[%c9_278, %c0_279] : memref<18x32xbf16, #tpu.memory_space<vmem>>, vector<3x32xbf16>
    tpu.vector_store %arg14[%c9_278, %c0_279], %202 {strides = array<i32>} : memref<18x32xbf16, #tpu.memory_space<vmem>>, vector<3x32xbf16>,
    %c1_280 = arith.constant 1 : index
    %c2_281 = arith.constant 2 : index
    %c1_282 = arith.constant 1 : index
    %c0_283 = arith.constant 0 : index
    %204 = vector.load %arg12[%c1_280, %c2_281, %c1_282, %c0_283] : memref<2x6x6x32xbf16, #tpu.memory_space<vmem>>, vector<1x1x3x32xbf16>
    %205 = vector.shape_cast %204 : vector<1x1x3x32xbf16> to vector<3x32xbf16>
    %c12_284 = arith.constant 12 : index
    %c0_285 = arith.constant 0 : index
    %206 = vector.load %arg14[%c12_284, %c0_285] : memref<18x32xbf16, #tpu.memory_space<vmem>>, vector<3x32xbf16>
    tpu.vector_store %arg14[%c12_284, %c0_285], %205 {strides = array<i32>} : memref<18x32xbf16, #tpu.memory_space<vmem>>, vector<3x32xbf16>,
    %c1_286 = arith.constant 1 : index
    %c3_287 = arith.constant 3 : index
    %c1_288 = arith.constant 1 : index
    %c0_289 = arith.constant 0 : index
    %207 = vector.load %arg12[%c1_286, %c3_287, %c1_288, %c0_289] : memref<2x6x6x32xbf16, #tpu.memory_space<vmem>>, vector<1x1x3x32xbf16>
    %208 = vector.shape_cast %207 : vector<1x1x3x32xbf16> to vector<3x32xbf16>
    %c15_290 = arith.constant 15 : index
    %c0_291 = arith.constant 0 : index
    %209 = vector.load %arg14[%c15_290, %c0_291] : memref<18x32xbf16, #tpu.memory_space<vmem>>, vector<3x32xbf16>
    tpu.vector_store %arg14[%c15_290, %c0_291], %208 {strides = array<i32>} : memref<18x32xbf16, #tpu.memory_space<vmem>>, vector<3x32xbf16>,
    %c0_292 = arith.constant 0 : index
    %c0_293 = arith.constant 0 : index
    %210 = vector.load %arg14[%c0_292, %c0_293] : memref<18x32xbf16, #tpu.memory_space<vmem>>, vector<18x32xbf16>
    %c5 = arith.constant 5 : index
    %c0_294 = arith.constant 0 : index
    %c0_295 = arith.constant 0 : index
    %211 = vector.load %arg5[%c5, %c0_294, %c0_295] : memref<16x32x64xbf16, #tpu.memory_space<vmem>>, vector<1x32x64xbf16>
    %212 = vector.shape_cast %211 : vector<1x32x64xbf16> to vector<32x64xbf16>
    %cst_296 = arith.constant dense<0.000000e+00> : vector<18x64xf32>
    %213 = tpu.matmul %210, %212, %cst_296 {dimension_numbers = #tpu.dot_dimension_numbers<[1], [0], [0], [1], [0, 0, 1, 1], [], []>} : vector<18x32xbf16>, vector<32x64xbf16>, vector<18x64xf32> -> vector<18x64xf32>
    %214 = arith.addf %191, %213 : vector<18x64xf32>
    %c0_297 = arith.constant 0 : index
    %c1_298 = arith.constant 1 : index
    %c2_299 = arith.constant 2 : index
    %c0_300 = arith.constant 0 : index
    %215 = vector.load %arg12[%c0_297, %c1_298, %c2_299, %c0_300] : memref<2x6x6x32xbf16, #tpu.memory_space<vmem>>, vector<1x1x3x32xbf16>
    %216 = vector.shape_cast %215 : vector<1x1x3x32xbf16> to vector<3x32xbf16>
    %c0_301 = arith.constant 0 : index
    %c0_302 = arith.constant 0 : index
    %217 = vector.load %arg14[%c0_301, %c0_302] : memref<18x32xbf16, #tpu.memory_space<vmem>>, vector<3x32xbf16>
    tpu.vector_store %arg14[%c0_301, %c0_302], %216 {strides = array<i32>} : memref<18x32xbf16, #tpu.memory_space<vmem>>, vector<3x32xbf16>,
    %c0_303 = arith.constant 0 : index
    %c2_304 = arith.constant 2 : index
    %c2_305 = arith.constant 2 : index
    %c0_306 = arith.constant 0 : index
    %218 = vector.load %arg12[%c0_303, %c2_304, %c2_305, %c0_306] : memref<2x6x6x32xbf16, #tpu.memory_space<vmem>>, vector<1x1x3x32xbf16>
    %219 = vector.shape_cast %218 : vector<1x1x3x32xbf16> to vector<3x32xbf16>
    %c3_307 = arith.constant 3 : index
    %c0_308 = arith.constant 0 : index
    %220 = vector.load %arg14[%c3_307, %c0_308] : memref<18x32xbf16, #tpu.memory_space<vmem>>, vector<3x32xbf16>
    tpu.vector_store %arg14[%c3_307, %c0_308], %219 {strides = array<i32>} : memref<18x32xbf16, #tpu.memory_space<vmem>>, vector<3x32xbf16>,
    %c0_309 = arith.constant 0 : index
    %c3_310 = arith.constant 3 : index
    %c2_311 = arith.constant 2 : index
    %c0_312 = arith.constant 0 : index
    %221 = vector.load %arg12[%c0_309, %c3_310, %c2_311, %c0_312] : memref<2x6x6x32xbf16, #tpu.memory_space<vmem>>, vector<1x1x3x32xbf16>
    %222 = vector.shape_cast %221 : vector<1x1x3x32xbf16> to vector<3x32xbf16>
    %c6_313 = arith.constant 6 : index
    %c0_314 = arith.constant 0 : index
    %223 = vector.load %arg14[%c6_313, %c0_314] : memref<18x32xbf16, #tpu.memory_space<vmem>>, vector<3x32xbf16>
    tpu.vector_store %arg14[%c6_313, %c0_314], %222 {strides = array<i32>} : memref<18x32xbf16, #tpu.memory_space<vmem>>, vector<3x32xbf16>,
    %c1_315 = arith.constant 1 : index
    %c1_316 = arith.constant 1 : index
    %c2_317 = arith.constant 2 : index
    %c0_318 = arith.constant 0 : index
    %224 = vector.load %arg12[%c1_315, %c1_316, %c2_317, %c0_318] : memref<2x6x6x32xbf16, #tpu.memory_space<vmem>>, vector<1x1x3x32xbf16>
    %225 = vector.shape_cast %224 : vector<1x1x3x32xbf16> to vector<3x32xbf16>
    %c9_319 = arith.constant 9 : index
    %c0_320 = arith.constant 0 : index
    %226 = vector.load %arg14[%c9_319, %c0_320] : memref<18x32xbf16, #tpu.memory_space<vmem>>, vector<3x32xbf16>
    tpu.vector_store %arg14[%c9_319, %c0_320], %225 {strides = array<i32>} : memref<18x32xbf16, #tpu.memory_space<vmem>>, vector<3x32xbf16>,
    %c1_321 = arith.constant 1 : index
    %c2_322 = arith.constant 2 : index
    %c2_323 = arith.constant 2 : index
    %c0_324 = arith.constant 0 : index
    %227 = vector.load %arg12[%c1_321, %c2_322, %c2_323, %c0_324] : memref<2x6x6x32xbf16, #tpu.memory_space<vmem>>, vector<1x1x3x32xbf16>
    %228 = vector.shape_cast %227 : vector<1x1x3x32xbf16> to vector<3x32xbf16>
    %c12_325 = arith.constant 12 : index
    %c0_326 = arith.constant 0 : index
    %229 = vector.load %arg14[%c12_325, %c0_326] : memref<18x32xbf16, #tpu.memory_space<vmem>>, vector<3x32xbf16>
    tpu.vector_store %arg14[%c12_325, %c0_326], %228 {strides = array<i32>} : memref<18x32xbf16, #tpu.memory_space<vmem>>, vector<3x32xbf16>,
    %c1_327 = arith.constant 1 : index
    %c3_328 = arith.constant 3 : index
    %c2_329 = arith.constant 2 : index
    %c0_330 = arith.constant 0 : index
    %230 = vector.load %arg12[%c1_327, %c3_328, %c2_329, %c0_330] : memref<2x6x6x32xbf16, #tpu.memory_space<vmem>>, vector<1x1x3x32xbf16>
    %231 = vector.shape_cast %230 : vector<1x1x3x32xbf16> to vector<3x32xbf16>
    %c15_331 = arith.constant 15 : index
    %c0_332 = arith.constant 0 : index
    %232 = vector.load %arg14[%c15_331, %c0_332] : memref<18x32xbf16, #tpu.memory_space<vmem>>, vector<3x32xbf16>
    tpu.vector_store %arg14[%c15_331, %c0_332], %231 {strides = array<i32>} : memref<18x32xbf16, #tpu.memory_space<vmem>>, vector<3x32xbf16>,
    %c0_333 = arith.constant 0 : index
    %c0_334 = arith.constant 0 : index
    %233 = vector.load %arg14[%c0_333, %c0_334] : memref<18x32xbf16, #tpu.memory_space<vmem>>, vector<18x32xbf16>
    %c6_335 = arith.constant 6 : index
    %c0_336 = arith.constant 0 : index
    %c0_337 = arith.constant 0 : index
    %234 = vector.load %arg5[%c6_335, %c0_336, %c0_337] : memref<16x32x64xbf16, #tpu.memory_space<vmem>>, vector<1x32x64xbf16>
    %235 = vector.shape_cast %234 : vector<1x32x64xbf16> to vector<32x64xbf16>
    %cst_338 = arith.constant dense<0.000000e+00> : vector<18x64xf32>
    %236 = tpu.matmul %233, %235, %cst_338 {dimension_numbers = #tpu.dot_dimension_numbers<[1], [0], [0], [1], [0, 0, 1, 1], [], []>} : vector<18x32xbf16>, vector<32x64xbf16>, vector<18x64xf32> -> vector<18x64xf32>
    %237 = arith.addf %214, %236 : vector<18x64xf32>
    %c0_339 = arith.constant 0 : index
    %c1_340 = arith.constant 1 : index
    %c3_341 = arith.constant 3 : index
    %c0_342 = arith.constant 0 : index
    %238 = vector.load %arg12[%c0_339, %c1_340, %c3_341, %c0_342] : memref<2x6x6x32xbf16, #tpu.memory_space<vmem>>, vector<1x1x3x32xbf16>
    %239 = vector.shape_cast %238 : vector<1x1x3x32xbf16> to vector<3x32xbf16>
    %c0_343 = arith.constant 0 : index
    %c0_344 = arith.constant 0 : index
    %240 = vector.load %arg14[%c0_343, %c0_344] : memref<18x32xbf16, #tpu.memory_space<vmem>>, vector<3x32xbf16>
    tpu.vector_store %arg14[%c0_343, %c0_344], %239 {strides = array<i32>} : memref<18x32xbf16, #tpu.memory_space<vmem>>, vector<3x32xbf16>,
    %c0_345 = arith.constant 0 : index
    %c2_346 = arith.constant 2 : index
    %c3_347 = arith.constant 3 : index
    %c0_348 = arith.constant 0 : index
    %241 = vector.load %arg12[%c0_345, %c2_346, %c3_347, %c0_348] : memref<2x6x6x32xbf16, #tpu.memory_space<vmem>>, vector<1x1x3x32xbf16>
    %242 = vector.shape_cast %241 : vector<1x1x3x32xbf16> to vector<3x32xbf16>
    %c3_349 = arith.constant 3 : index
    %c0_350 = arith.constant 0 : index
    %243 = vector.load %arg14[%c3_349, %c0_350] : memref<18x32xbf16, #tpu.memory_space<vmem>>, vector<3x32xbf16>
    tpu.vector_store %arg14[%c3_349, %c0_350], %242 {strides = array<i32>} : memref<18x32xbf16, #tpu.memory_space<vmem>>, vector<3x32xbf16>,
    %c0_351 = arith.constant 0 : index
    %c3_352 = arith.constant 3 : index
    %c3_353 = arith.constant 3 : index
    %c0_354 = arith.constant 0 : index
    %244 = vector.load %arg12[%c0_351, %c3_352, %c3_353, %c0_354] : memref<2x6x6x32xbf16, #tpu.memory_space<vmem>>, vector<1x1x3x32xbf16>
    %245 = vector.shape_cast %244 : vector<1x1x3x32xbf16> to vector<3x32xbf16>
    %c6_355 = arith.constant 6 : index
    %c0_356 = arith.constant 0 : index
    %246 = vector.load %arg14[%c6_355, %c0_356] : memref<18x32xbf16, #tpu.memory_space<vmem>>, vector<3x32xbf16>
    tpu.vector_store %arg14[%c6_355, %c0_356], %245 {strides = array<i32>} : memref<18x32xbf16, #tpu.memory_space<vmem>>, vector<3x32xbf16>,
    %c1_357 = arith.constant 1 : index
    %c1_358 = arith.constant 1 : index
    %c3_359 = arith.constant 3 : index
    %c0_360 = arith.constant 0 : index
    %247 = vector.load %arg12[%c1_357, %c1_358, %c3_359, %c0_360] : memref<2x6x6x32xbf16, #tpu.memory_space<vmem>>, vector<1x1x3x32xbf16>
    %248 = vector.shape_cast %247 : vector<1x1x3x32xbf16> to vector<3x32xbf16>
    %c9_361 = arith.constant 9 : index
    %c0_362 = arith.constant 0 : index
    %249 = vector.load %arg14[%c9_361, %c0_362] : memref<18x32xbf16, #tpu.memory_space<vmem>>, vector<3x32xbf16>
    tpu.vector_store %arg14[%c9_361, %c0_362], %248 {strides = array<i32>} : memref<18x32xbf16, #tpu.memory_space<vmem>>, vector<3x32xbf16>,
    %c1_363 = arith.constant 1 : index
    %c2_364 = arith.constant 2 : index
    %c3_365 = arith.constant 3 : index
    %c0_366 = arith.constant 0 : index
    %250 = vector.load %arg12[%c1_363, %c2_364, %c3_365, %c0_366] : memref<2x6x6x32xbf16, #tpu.memory_space<vmem>>, vector<1x1x3x32xbf16>
    %251 = vector.shape_cast %250 : vector<1x1x3x32xbf16> to vector<3x32xbf16>
    %c12_367 = arith.constant 12 : index
    %c0_368 = arith.constant 0 : index
    %252 = vector.load %arg14[%c12_367, %c0_368] : memref<18x32xbf16, #tpu.memory_space<vmem>>, vector<3x32xbf16>
    tpu.vector_store %arg14[%c12_367, %c0_368], %251 {strides = array<i32>} : memref<18x32xbf16, #tpu.memory_space<vmem>>, vector<3x32xbf16>,
    %c1_369 = arith.constant 1 : index
    %c3_370 = arith.constant 3 : index
    %c3_371 = arith.constant 3 : index
    %c0_372 = arith.constant 0 : index
    %253 = vector.load %arg12[%c1_369, %c3_370, %c3_371, %c0_372] : memref<2x6x6x32xbf16, #tpu.memory_space<vmem>>, vector<1x1x3x32xbf16>
    %254 = vector.shape_cast %253 : vector<1x1x3x32xbf16> to vector<3x32xbf16>
    %c15_373 = arith.constant 15 : index
    %c0_374 = arith.constant 0 : index
    %255 = vector.load %arg14[%c15_373, %c0_374] : memref<18x32xbf16, #tpu.memory_space<vmem>>, vector<3x32xbf16>
    tpu.vector_store %arg14[%c15_373, %c0_374], %254 {strides = array<i32>} : memref<18x32xbf16, #tpu.memory_space<vmem>>, vector<3x32xbf16>,
    %c0_375 = arith.constant 0 : index
    %c0_376 = arith.constant 0 : index
    %256 = vector.load %arg14[%c0_375, %c0_376] : memref<18x32xbf16, #tpu.memory_space<vmem>>, vector<18x32xbf16>
    %c7 = arith.constant 7 : index
    %c0_377 = arith.constant 0 : index
    %c0_378 = arith.constant 0 : index
    %257 = vector.load %arg5[%c7, %c0_377, %c0_378] : memref<16x32x64xbf16, #tpu.memory_space<vmem>>, vector<1x32x64xbf16>
    %258 = vector.shape_cast %257 : vector<1x32x64xbf16> to vector<32x64xbf16>
    %cst_379 = arith.constant dense<0.000000e+00> : vector<18x64xf32>
    %259 = tpu.matmul %256, %258, %cst_379 {dimension_numbers = #tpu.dot_dimension_numbers<[1], [0], [0], [1], [0, 0, 1, 1], [], []>} : vector<18x32xbf16>, vector<32x64xbf16>, vector<18x64xf32> -> vector<18x64xf32>
    %260 = arith.addf %237, %259 : vector<18x64xf32>
    %c0_380 = arith.constant 0 : index
    %c2_381 = arith.constant 2 : index
    %c0_382 = arith.constant 0 : index
    %c0_383 = arith.constant 0 : index
    %261 = vector.load %arg12[%c0_380, %c2_381, %c0_382, %c0_383] : memref<2x6x6x32xbf16, #tpu.memory_space<vmem>>, vector<1x1x3x32xbf16>
    %262 = vector.shape_cast %261 : vector<1x1x3x32xbf16> to vector<3x32xbf16>
    %c0_384 = arith.constant 0 : index
    %c0_385 = arith.constant 0 : index
    %263 = vector.load %arg14[%c0_384, %c0_385] : memref<18x32xbf16, #tpu.memory_space<vmem>>, vector<3x32xbf16>
    tpu.vector_store %arg14[%c0_384, %c0_385], %262 {strides = array<i32>} : memref<18x32xbf16, #tpu.memory_space<vmem>>, vector<3x32xbf16>,
    %c0_386 = arith.constant 0 : index
    %c3_387 = arith.constant 3 : index
    %c0_388 = arith.constant 0 : index
    %c0_389 = arith.constant 0 : index
    %264 = vector.load %arg12[%c0_386, %c3_387, %c0_388, %c0_389] : memref<2x6x6x32xbf16, #tpu.memory_space<vmem>>, vector<1x1x3x32xbf16>
    %265 = vector.shape_cast %264 : vector<1x1x3x32xbf16> to vector<3x32xbf16>
    %c3_390 = arith.constant 3 : index
    %c0_391 = arith.constant 0 : index
    %266 = vector.load %arg14[%c3_390, %c0_391] : memref<18x32xbf16, #tpu.memory_space<vmem>>, vector<3x32xbf16>
    tpu.vector_store %arg14[%c3_390, %c0_391], %265 {strides = array<i32>} : memref<18x32xbf16, #tpu.memory_space<vmem>>, vector<3x32xbf16>,
    %c0_392 = arith.constant 0 : index
    %c4_393 = arith.constant 4 : index
    %c0_394 = arith.constant 0 : index
    %c0_395 = arith.constant 0 : index
    %267 = vector.load %arg12[%c0_392, %c4_393, %c0_394, %c0_395] : memref<2x6x6x32xbf16, #tpu.memory_space<vmem>>, vector<1x1x3x32xbf16>
    %268 = vector.shape_cast %267 : vector<1x1x3x32xbf16> to vector<3x32xbf16>
    %c6_396 = arith.constant 6 : index
    %c0_397 = arith.constant 0 : index
    %269 = vector.load %arg14[%c6_396, %c0_397] : memref<18x32xbf16, #tpu.memory_space<vmem>>, vector<3x32xbf16>
    tpu.vector_store %arg14[%c6_396, %c0_397], %268 {strides = array<i32>} : memref<18x32xbf16, #tpu.memory_space<vmem>>, vector<3x32xbf16>,
    %c1_398 = arith.constant 1 : index
    %c2_399 = arith.constant 2 : index
    %c0_400 = arith.constant 0 : index
    %c0_401 = arith.constant 0 : index
    %270 = vector.load %arg12[%c1_398, %c2_399, %c0_400, %c0_401] : memref<2x6x6x32xbf16, #tpu.memory_space<vmem>>, vector<1x1x3x32xbf16>
    %271 = vector.shape_cast %270 : vector<1x1x3x32xbf16> to vector<3x32xbf16>
    %c9_402 = arith.constant 9 : index
    %c0_403 = arith.constant 0 : index
    %272 = vector.load %arg14[%c9_402, %c0_403] : memref<18x32xbf16, #tpu.memory_space<vmem>>, vector<3x32xbf16>
    tpu.vector_store %arg14[%c9_402, %c0_403], %271 {strides = array<i32>} : memref<18x32xbf16, #tpu.memory_space<vmem>>, vector<3x32xbf16>,
    %c1_404 = arith.constant 1 : index
    %c3_405 = arith.constant 3 : index
    %c0_406 = arith.constant 0 : index
    %c0_407 = arith.constant 0 : index
    %273 = vector.load %arg12[%c1_404, %c3_405, %c0_406, %c0_407] : memref<2x6x6x32xbf16, #tpu.memory_space<vmem>>, vector<1x1x3x32xbf16>
    %274 = vector.shape_cast %273 : vector<1x1x3x32xbf16> to vector<3x32xbf16>
    %c12_408 = arith.constant 12 : index
    %c0_409 = arith.constant 0 : index
    %275 = vector.load %arg14[%c12_408, %c0_409] : memref<18x32xbf16, #tpu.memory_space<vmem>>, vector<3x32xbf16>
    tpu.vector_store %arg14[%c12_408, %c0_409], %274 {strides = array<i32>} : memref<18x32xbf16, #tpu.memory_space<vmem>>, vector<3x32xbf16>,
    %c1_410 = arith.constant 1 : index
    %c4_411 = arith.constant 4 : index
    %c0_412 = arith.constant 0 : index
    %c0_413 = arith.constant 0 : index
    %276 = vector.load %arg12[%c1_410, %c4_411, %c0_412, %c0_413] : memref<2x6x6x32xbf16, #tpu.memory_space<vmem>>, vector<1x1x3x32xbf16>
    %277 = vector.shape_cast %276 : vector<1x1x3x32xbf16> to vector<3x32xbf16>
    %c15_414 = arith.constant 15 : index
    %c0_415 = arith.constant 0 : index
    %278 = vector.load %arg14[%c15_414, %c0_415] : memref<18x32xbf16, #tpu.memory_space<vmem>>, vector<3x32xbf16>
    tpu.vector_store %arg14[%c15_414, %c0_415], %277 {strides = array<i32>} : memref<18x32xbf16, #tpu.memory_space<vmem>>, vector<3x32xbf16>,
    %c0_416 = arith.constant 0 : index
    %c0_417 = arith.constant 0 : index
    %279 = vector.load %arg14[%c0_416, %c0_417] : memref<18x32xbf16, #tpu.memory_space<vmem>>, vector<18x32xbf16>
    %c8 = arith.constant 8 : index
    %c0_418 = arith.constant 0 : index
    %c0_419 = arith.constant 0 : index
    %280 = vector.load %arg5[%c8, %c0_418, %c0_419] : memref<16x32x64xbf16, #tpu.memory_space<vmem>>, vector<1x32x64xbf16>
    %281 = vector.shape_cast %280 : vector<1x32x64xbf16> to vector<32x64xbf16>
    %cst_420 = arith.constant dense<0.000000e+00> : vector<18x64xf32>
    %282 = tpu.matmul %279, %281, %cst_420 {dimension_numbers = #tpu.dot_dimension_numbers<[1], [0], [0], [1], [0, 0, 1, 1], [], []>} : vector<18x32xbf16>, vector<32x64xbf16>, vector<18x64xf32> -> vector<18x64xf32>
    %283 = arith.addf %260, %282 : vector<18x64xf32>
    %c0_421 = arith.constant 0 : index
    %c2_422 = arith.constant 2 : index
    %c1_423 = arith.constant 1 : index
    %c0_424 = arith.constant 0 : index
    %284 = vector.load %arg12[%c0_421, %c2_422, %c1_423, %c0_424] : memref<2x6x6x32xbf16, #tpu.memory_space<vmem>>, vector<1x1x3x32xbf16>
    %285 = vector.shape_cast %284 : vector<1x1x3x32xbf16> to vector<3x32xbf16>
    %c0_425 = arith.constant 0 : index
    %c0_426 = arith.constant 0 : index
    %286 = vector.load %arg14[%c0_425, %c0_426] : memref<18x32xbf16, #tpu.memory_space<vmem>>, vector<3x32xbf16>
    tpu.vector_store %arg14[%c0_425, %c0_426], %285 {strides = array<i32>} : memref<18x32xbf16, #tpu.memory_space<vmem>>, vector<3x32xbf16>,
    %c0_427 = arith.constant 0 : index
    %c3_428 = arith.constant 3 : index
    %c1_429 = arith.constant 1 : index
    %c0_430 = arith.constant 0 : index
    %287 = vector.load %arg12[%c0_427, %c3_428, %c1_429, %c0_430] : memref<2x6x6x32xbf16, #tpu.memory_space<vmem>>, vector<1x1x3x32xbf16>
    %288 = vector.shape_cast %287 : vector<1x1x3x32xbf16> to vector<3x32xbf16>
    %c3_431 = arith.constant 3 : index
    %c0_432 = arith.constant 0 : index
    %289 = vector.load %arg14[%c3_431, %c0_432] : memref<18x32xbf16, #tpu.memory_space<vmem>>, vector<3x32xbf16>
    tpu.vector_store %arg14[%c3_431, %c0_432], %288 {strides = array<i32>} : memref<18x32xbf16, #tpu.memory_space<vmem>>, vector<3x32xbf16>,
    %c0_433 = arith.constant 0 : index
    %c4_434 = arith.constant 4 : index
    %c1_435 = arith.constant 1 : index
    %c0_436 = arith.constant 0 : index
    %290 = vector.load %arg12[%c0_433, %c4_434, %c1_435, %c0_436] : memref<2x6x6x32xbf16, #tpu.memory_space<vmem>>, vector<1x1x3x32xbf16>
    %291 = vector.shape_cast %290 : vector<1x1x3x32xbf16> to vector<3x32xbf16>
    %c6_437 = arith.constant 6 : index
    %c0_438 = arith.constant 0 : index
    %292 = vector.load %arg14[%c6_437, %c0_438] : memref<18x32xbf16, #tpu.memory_space<vmem>>, vector<3x32xbf16>
    tpu.vector_store %arg14[%c6_437, %c0_438], %291 {strides = array<i32>} : memref<18x32xbf16, #tpu.memory_space<vmem>>, vector<3x32xbf16>,
    %c1_439 = arith.constant 1 : index
    %c2_440 = arith.constant 2 : index
    %c1_441 = arith.constant 1 : index
    %c0_442 = arith.constant 0 : index
    %293 = vector.load %arg12[%c1_439, %c2_440, %c1_441, %c0_442] : memref<2x6x6x32xbf16, #tpu.memory_space<vmem>>, vector<1x1x3x32xbf16>
    %294 = vector.shape_cast %293 : vector<1x1x3x32xbf16> to vector<3x32xbf16>
    %c9_443 = arith.constant 9 : index
    %c0_444 = arith.constant 0 : index
    %295 = vector.load %arg14[%c9_443, %c0_444] : memref<18x32xbf16, #tpu.memory_space<vmem>>, vector<3x32xbf16>
    tpu.vector_store %arg14[%c9_443, %c0_444], %294 {strides = array<i32>} : memref<18x32xbf16, #tpu.memory_space<vmem>>, vector<3x32xbf16>,
    %c1_445 = arith.constant 1 : index
    %c3_446 = arith.constant 3 : index
    %c1_447 = arith.constant 1 : index
    %c0_448 = arith.constant 0 : index
    %296 = vector.load %arg12[%c1_445, %c3_446, %c1_447, %c0_448] : memref<2x6x6x32xbf16, #tpu.memory_space<vmem>>, vector<1x1x3x32xbf16>
    %297 = vector.shape_cast %296 : vector<1x1x3x32xbf16> to vector<3x32xbf16>
    %c12_449 = arith.constant 12 : index
    %c0_450 = arith.constant 0 : index
    %298 = vector.load %arg14[%c12_449, %c0_450] : memref<18x32xbf16, #tpu.memory_space<vmem>>, vector<3x32xbf16>
    tpu.vector_store %arg14[%c12_449, %c0_450], %297 {strides = array<i32>} : memref<18x32xbf16, #tpu.memory_space<vmem>>, vector<3x32xbf16>,
    %c1_451 = arith.constant 1 : index
    %c4_452 = arith.constant 4 : index
    %c1_453 = arith.constant 1 : index
    %c0_454 = arith.constant 0 : index
    %299 = vector.load %arg12[%c1_451, %c4_452, %c1_453, %c0_454] : memref<2x6x6x32xbf16, #tpu.memory_space<vmem>>, vector<1x1x3x32xbf16>
    %300 = vector.shape_cast %299 : vector<1x1x3x32xbf16> to vector<3x32xbf16>
    %c15_455 = arith.constant 15 : index
    %c0_456 = arith.constant 0 : index
    %301 = vector.load %arg14[%c15_455, %c0_456] : memref<18x32xbf16, #tpu.memory_space<vmem>>, vector<3x32xbf16>
    tpu.vector_store %arg14[%c15_455, %c0_456], %300 {strides = array<i32>} : memref<18x32xbf16, #tpu.memory_space<vmem>>, vector<3x32xbf16>,
    %c0_457 = arith.constant 0 : index
    %c0_458 = arith.constant 0 : index
    %302 = vector.load %arg14[%c0_457, %c0_458] : memref<18x32xbf16, #tpu.memory_space<vmem>>, vector<18x32xbf16>
    %c9_459 = arith.constant 9 : index
    %c0_460 = arith.constant 0 : index
    %c0_461 = arith.constant 0 : index
    %303 = vector.load %arg5[%c9_459, %c0_460, %c0_461] : memref<16x32x64xbf16, #tpu.memory_space<vmem>>, vector<1x32x64xbf16>
    %304 = vector.shape_cast %303 : vector<1x32x64xbf16> to vector<32x64xbf16>
    %cst_462 = arith.constant dense<0.000000e+00> : vector<18x64xf32>
    %305 = tpu.matmul %302, %304, %cst_462 {dimension_numbers = #tpu.dot_dimension_numbers<[1], [0], [0], [1], [0, 0, 1, 1], [], []>} : vector<18x32xbf16>, vector<32x64xbf16>, vector<18x64xf32> -> vector<18x64xf32>
    %306 = arith.addf %283, %305 : vector<18x64xf32>
    %c0_463 = arith.constant 0 : index
    %c2_464 = arith.constant 2 : index
    %c2_465 = arith.constant 2 : index
    %c0_466 = arith.constant 0 : index
    %307 = vector.load %arg12[%c0_463, %c2_464, %c2_465, %c0_466] : memref<2x6x6x32xbf16, #tpu.memory_space<vmem>>, vector<1x1x3x32xbf16>
    %308 = vector.shape_cast %307 : vector<1x1x3x32xbf16> to vector<3x32xbf16>
    %c0_467 = arith.constant 0 : index
    %c0_468 = arith.constant 0 : index
    %309 = vector.load %arg14[%c0_467, %c0_468] : memref<18x32xbf16, #tpu.memory_space<vmem>>, vector<3x32xbf16>
    tpu.vector_store %arg14[%c0_467, %c0_468], %308 {strides = array<i32>} : memref<18x32xbf16, #tpu.memory_space<vmem>>, vector<3x32xbf16>,
    %c0_469 = arith.constant 0 : index
    %c3_470 = arith.constant 3 : index
    %c2_471 = arith.constant 2 : index
    %c0_472 = arith.constant 0 : index
    %310 = vector.load %arg12[%c0_469, %c3_470, %c2_471, %c0_472] : memref<2x6x6x32xbf16, #tpu.memory_space<vmem>>, vector<1x1x3x32xbf16>
    %311 = vector.shape_cast %310 : vector<1x1x3x32xbf16> to vector<3x32xbf16>
    %c3_473 = arith.constant 3 : index
    %c0_474 = arith.constant 0 : index
    %312 = vector.load %arg14[%c3_473, %c0_474] : memref<18x32xbf16, #tpu.memory_space<vmem>>, vector<3x32xbf16>
    tpu.vector_store %arg14[%c3_473, %c0_474], %311 {strides = array<i32>} : memref<18x32xbf16, #tpu.memory_space<vmem>>, vector<3x32xbf16>,
    %c0_475 = arith.constant 0 : index
    %c4_476 = arith.constant 4 : index
    %c2_477 = arith.constant 2 : index
    %c0_478 = arith.constant 0 : index
    %313 = vector.load %arg12[%c0_475, %c4_476, %c2_477, %c0_478] : memref<2x6x6x32xbf16, #tpu.memory_space<vmem>>, vector<1x1x3x32xbf16>
    %314 = vector.shape_cast %313 : vector<1x1x3x32xbf16> to vector<3x32xbf16>
    %c6_479 = arith.constant 6 : index
    %c0_480 = arith.constant 0 : index
    %315 = vector.load %arg14[%c6_479, %c0_480] : memref<18x32xbf16, #tpu.memory_space<vmem>>, vector<3x32xbf16>
    tpu.vector_store %arg14[%c6_479, %c0_480], %314 {strides = array<i32>} : memref<18x32xbf16, #tpu.memory_space<vmem>>, vector<3x32xbf16>,
    %c1_481 = arith.constant 1 : index
    %c2_482 = arith.constant 2 : index
    %c2_483 = arith.constant 2 : index
    %c0_484 = arith.constant 0 : index
    %316 = vector.load %arg12[%c1_481, %c2_482, %c2_483, %c0_484] : memref<2x6x6x32xbf16, #tpu.memory_space<vmem>>, vector<1x1x3x32xbf16>
    %317 = vector.shape_cast %316 : vector<1x1x3x32xbf16> to vector<3x32xbf16>
    %c9_485 = arith.constant 9 : index
    %c0_486 = arith.constant 0 : index
    %318 = vector.load %arg14[%c9_485, %c0_486] : memref<18x32xbf16, #tpu.memory_space<vmem>>, vector<3x32xbf16>
    tpu.vector_store %arg14[%c9_485, %c0_486], %317 {strides = array<i32>} : memref<18x32xbf16, #tpu.memory_space<vmem>>, vector<3x32xbf16>,
    %c1_487 = arith.constant 1 : index
    %c3_488 = arith.constant 3 : index
    %c2_489 = arith.constant 2 : index
    %c0_490 = arith.constant 0 : index
    %319 = vector.load %arg12[%c1_487, %c3_488, %c2_489, %c0_490] : memref<2x6x6x32xbf16, #tpu.memory_space<vmem>>, vector<1x1x3x32xbf16>
    %320 = vector.shape_cast %319 : vector<1x1x3x32xbf16> to vector<3x32xbf16>
    %c12_491 = arith.constant 12 : index
    %c0_492 = arith.constant 0 : index
    %321 = vector.load %arg14[%c12_491, %c0_492] : memref<18x32xbf16, #tpu.memory_space<vmem>>, vector<3x32xbf16>
    tpu.vector_store %arg14[%c12_491, %c0_492], %320 {strides = array<i32>} : memref<18x32xbf16, #tpu.memory_space<vmem>>, vector<3x32xbf16>,
    %c1_493 = arith.constant 1 : index
    %c4_494 = arith.constant 4 : index
    %c2_495 = arith.constant 2 : index
    %c0_496 = arith.constant 0 : index
    %322 = vector.load %arg12[%c1_493, %c4_494, %c2_495, %c0_496] : memref<2x6x6x32xbf16, #tpu.memory_space<vmem>>, vector<1x1x3x32xbf16>
    %323 = vector.shape_cast %322 : vector<1x1x3x32xbf16> to vector<3x32xbf16>
    %c15_497 = arith.constant 15 : index
    %c0_498 = arith.constant 0 : index
    %324 = vector.load %arg14[%c15_497, %c0_498] : memref<18x32xbf16, #tpu.memory_space<vmem>>, vector<3x32xbf16>
    tpu.vector_store %arg14[%c15_497, %c0_498], %323 {strides = array<i32>} : memref<18x32xbf16, #tpu.memory_space<vmem>>, vector<3x32xbf16>,
    %c0_499 = arith.constant 0 : index
    %c0_500 = arith.constant 0 : index
    %325 = vector.load %arg14[%c0_499, %c0_500] : memref<18x32xbf16, #tpu.memory_space<vmem>>, vector<18x32xbf16>
    %c10 = arith.constant 10 : index
    %c0_501 = arith.constant 0 : index
    %c0_502 = arith.constant 0 : index
    %326 = vector.load %arg5[%c10, %c0_501, %c0_502] : memref<16x32x64xbf16, #tpu.memory_space<vmem>>, vector<1x32x64xbf16>
    %327 = vector.shape_cast %326 : vector<1x32x64xbf16> to vector<32x64xbf16>
    %cst_503 = arith.constant dense<0.000000e+00> : vector<18x64xf32>
    %328 = tpu.matmul %325, %327, %cst_503 {dimension_numbers = #tpu.dot_dimension_numbers<[1], [0], [0], [1], [0, 0, 1, 1], [], []>} : vector<18x32xbf16>, vector<32x64xbf16>, vector<18x64xf32> -> vector<18x64xf32>
    %329 = arith.addf %306, %328 : vector<18x64xf32>
    %c0_504 = arith.constant 0 : index
    %c2_505 = arith.constant 2 : index
    %c3_506 = arith.constant 3 : index
    %c0_507 = arith.constant 0 : index
    %330 = vector.load %arg12[%c0_504, %c2_505, %c3_506, %c0_507] : memref<2x6x6x32xbf16, #tpu.memory_space<vmem>>, vector<1x1x3x32xbf16>
    %331 = vector.shape_cast %330 : vector<1x1x3x32xbf16> to vector<3x32xbf16>
    %c0_508 = arith.constant 0 : index
    %c0_509 = arith.constant 0 : index
    %332 = vector.load %arg14[%c0_508, %c0_509] : memref<18x32xbf16, #tpu.memory_space<vmem>>, vector<3x32xbf16>
    tpu.vector_store %arg14[%c0_508, %c0_509], %331 {strides = array<i32>} : memref<18x32xbf16, #tpu.memory_space<vmem>>, vector<3x32xbf16>,
    %c0_510 = arith.constant 0 : index
    %c3_511 = arith.constant 3 : index
    %c3_512 = arith.constant 3 : index
    %c0_513 = arith.constant 0 : index
    %333 = vector.load %arg12[%c0_510, %c3_511, %c3_512, %c0_513] : memref<2x6x6x32xbf16, #tpu.memory_space<vmem>>, vector<1x1x3x32xbf16>
    %334 = vector.shape_cast %333 : vector<1x1x3x32xbf16> to vector<3x32xbf16>
    %c3_514 = arith.constant 3 : index
    %c0_515 = arith.constant 0 : index
    %335 = vector.load %arg14[%c3_514, %c0_515] : memref<18x32xbf16, #tpu.memory_space<vmem>>, vector<3x32xbf16>
    tpu.vector_store %arg14[%c3_514, %c0_515], %334 {strides = array<i32>} : memref<18x32xbf16, #tpu.memory_space<vmem>>, vector<3x32xbf16>,
    %c0_516 = arith.constant 0 : index
    %c4_517 = arith.constant 4 : index
    %c3_518 = arith.constant 3 : index
    %c0_519 = arith.constant 0 : index
    %336 = vector.load %arg12[%c0_516, %c4_517, %c3_518, %c0_519] : memref<2x6x6x32xbf16, #tpu.memory_space<vmem>>, vector<1x1x3x32xbf16>
    %337 = vector.shape_cast %336 : vector<1x1x3x32xbf16> to vector<3x32xbf16>
    %c6_520 = arith.constant 6 : index
    %c0_521 = arith.constant 0 : index
    %338 = vector.load %arg14[%c6_520, %c0_521] : memref<18x32xbf16, #tpu.memory_space<vmem>>, vector<3x32xbf16>
    tpu.vector_store %arg14[%c6_520, %c0_521], %337 {strides = array<i32>} : memref<18x32xbf16, #tpu.memory_space<vmem>>, vector<3x32xbf16>,
    %c1_522 = arith.constant 1 : index
    %c2_523 = arith.constant 2 : index
    %c3_524 = arith.constant 3 : index
    %c0_525 = arith.constant 0 : index
    %339 = vector.load %arg12[%c1_522, %c2_523, %c3_524, %c0_525] : memref<2x6x6x32xbf16, #tpu.memory_space<vmem>>, vector<1x1x3x32xbf16>
    %340 = vector.shape_cast %339 : vector<1x1x3x32xbf16> to vector<3x32xbf16>
    %c9_526 = arith.constant 9 : index
    %c0_527 = arith.constant 0 : index
    %341 = vector.load %arg14[%c9_526, %c0_527] : memref<18x32xbf16, #tpu.memory_space<vmem>>, vector<3x32xbf16>
    tpu.vector_store %arg14[%c9_526, %c0_527], %340 {strides = array<i32>} : memref<18x32xbf16, #tpu.memory_space<vmem>>, vector<3x32xbf16>,
    %c1_528 = arith.constant 1 : index
    %c3_529 = arith.constant 3 : index
    %c3_530 = arith.constant 3 : index
    %c0_531 = arith.constant 0 : index
    %342 = vector.load %arg12[%c1_528, %c3_529, %c3_530, %c0_531] : memref<2x6x6x32xbf16, #tpu.memory_space<vmem>>, vector<1x1x3x32xbf16>
    %343 = vector.shape_cast %342 : vector<1x1x3x32xbf16> to vector<3x32xbf16>
    %c12_532 = arith.constant 12 : index
    %c0_533 = arith.constant 0 : index
    %344 = vector.load %arg14[%c12_532, %c0_533] : memref<18x32xbf16, #tpu.memory_space<vmem>>, vector<3x32xbf16>
    tpu.vector_store %arg14[%c12_532, %c0_533], %343 {strides = array<i32>} : memref<18x32xbf16, #tpu.memory_space<vmem>>, vector<3x32xbf16>,
    %c1_534 = arith.constant 1 : index
    %c4_535 = arith.constant 4 : index
    %c3_536 = arith.constant 3 : index
    %c0_537 = arith.constant 0 : index
    %345 = vector.load %arg12[%c1_534, %c4_535, %c3_536, %c0_537] : memref<2x6x6x32xbf16, #tpu.memory_space<vmem>>, vector<1x1x3x32xbf16>
    %346 = vector.shape_cast %345 : vector<1x1x3x32xbf16> to vector<3x32xbf16>
    %c15_538 = arith.constant 15 : index
    %c0_539 = arith.constant 0 : index
    %347 = vector.load %arg14[%c15_538, %c0_539] : memref<18x32xbf16, #tpu.memory_space<vmem>>, vector<3x32xbf16>
    tpu.vector_store %arg14[%c15_538, %c0_539], %346 {strides = array<i32>} : memref<18x32xbf16, #tpu.memory_space<vmem>>, vector<3x32xbf16>,
    %c0_540 = arith.constant 0 : index
    %c0_541 = arith.constant 0 : index
    %348 = vector.load %arg14[%c0_540, %c0_541] : memref<18x32xbf16, #tpu.memory_space<vmem>>, vector<18x32xbf16>
    %c11 = arith.constant 11 : index
    %c0_542 = arith.constant 0 : index
    %c0_543 = arith.constant 0 : index
    %349 = vector.load %arg5[%c11, %c0_542, %c0_543] : memref<16x32x64xbf16, #tpu.memory_space<vmem>>, vector<1x32x64xbf16>
    %350 = vector.shape_cast %349 : vector<1x32x64xbf16> to vector<32x64xbf16>
    %cst_544 = arith.constant dense<0.000000e+00> : vector<18x64xf32>
    %351 = tpu.matmul %348, %350, %cst_544 {dimension_numbers = #tpu.dot_dimension_numbers<[1], [0], [0], [1], [0, 0, 1, 1], [], []>} : vector<18x32xbf16>, vector<32x64xbf16>, vector<18x64xf32> -> vector<18x64xf32>
    %352 = arith.addf %329, %351 : vector<18x64xf32>
    %c0_545 = arith.constant 0 : index
    %c3_546 = arith.constant 3 : index
    %c0_547 = arith.constant 0 : index
    %c0_548 = arith.constant 0 : index
    %353 = vector.load %arg12[%c0_545, %c3_546, %c0_547, %c0_548] : memref<2x6x6x32xbf16, #tpu.memory_space<vmem>>, vector<1x1x3x32xbf16>
    %354 = vector.shape_cast %353 : vector<1x1x3x32xbf16> to vector<3x32xbf16>
    %c0_549 = arith.constant 0 : index
    %c0_550 = arith.constant 0 : index
    %355 = vector.load %arg14[%c0_549, %c0_550] : memref<18x32xbf16, #tpu.memory_space<vmem>>, vector<3x32xbf16>
    tpu.vector_store %arg14[%c0_549, %c0_550], %354 {strides = array<i32>} : memref<18x32xbf16, #tpu.memory_space<vmem>>, vector<3x32xbf16>,
    %c0_551 = arith.constant 0 : index
    %c4_552 = arith.constant 4 : index
    %c0_553 = arith.constant 0 : index
    %c0_554 = arith.constant 0 : index
    %356 = vector.load %arg12[%c0_551, %c4_552, %c0_553, %c0_554] : memref<2x6x6x32xbf16, #tpu.memory_space<vmem>>, vector<1x1x3x32xbf16>
    %357 = vector.shape_cast %356 : vector<1x1x3x32xbf16> to vector<3x32xbf16>
    %c3_555 = arith.constant 3 : index
    %c0_556 = arith.constant 0 : index
    %358 = vector.load %arg14[%c3_555, %c0_556] : memref<18x32xbf16, #tpu.memory_space<vmem>>, vector<3x32xbf16>
    tpu.vector_store %arg14[%c3_555, %c0_556], %357 {strides = array<i32>} : memref<18x32xbf16, #tpu.memory_space<vmem>>, vector<3x32xbf16>,
    %c0_557 = arith.constant 0 : index
    %c5_558 = arith.constant 5 : index
    %c0_559 = arith.constant 0 : index
    %c0_560 = arith.constant 0 : index
    %359 = vector.load %arg12[%c0_557, %c5_558, %c0_559, %c0_560] : memref<2x6x6x32xbf16, #tpu.memory_space<vmem>>, vector<1x1x3x32xbf16>
    %360 = vector.shape_cast %359 : vector<1x1x3x32xbf16> to vector<3x32xbf16>
    %c6_561 = arith.constant 6 : index
    %c0_562 = arith.constant 0 : index
    %361 = vector.load %arg14[%c6_561, %c0_562] : memref<18x32xbf16, #tpu.memory_space<vmem>>, vector<3x32xbf16>
    tpu.vector_store %arg14[%c6_561, %c0_562], %360 {strides = array<i32>} : memref<18x32xbf16, #tpu.memory_space<vmem>>, vector<3x32xbf16>,
    %c1_563 = arith.constant 1 : index
    %c3_564 = arith.constant 3 : index
    %c0_565 = arith.constant 0 : index
    %c0_566 = arith.constant 0 : index
    %362 = vector.load %arg12[%c1_563, %c3_564, %c0_565, %c0_566] : memref<2x6x6x32xbf16, #tpu.memory_space<vmem>>, vector<1x1x3x32xbf16>
    %363 = vector.shape_cast %362 : vector<1x1x3x32xbf16> to vector<3x32xbf16>
    %c9_567 = arith.constant 9 : index
    %c0_568 = arith.constant 0 : index
    %364 = vector.load %arg14[%c9_567, %c0_568] : memref<18x32xbf16, #tpu.memory_space<vmem>>, vector<3x32xbf16>
    tpu.vector_store %arg14[%c9_567, %c0_568], %363 {strides = array<i32>} : memref<18x32xbf16, #tpu.memory_space<vmem>>, vector<3x32xbf16>,
    %c1_569 = arith.constant 1 : index
    %c4_570 = arith.constant 4 : index
    %c0_571 = arith.constant 0 : index
    %c0_572 = arith.constant 0 : index
    %365 = vector.load %arg12[%c1_569, %c4_570, %c0_571, %c0_572] : memref<2x6x6x32xbf16, #tpu.memory_space<vmem>>, vector<1x1x3x32xbf16>
    %366 = vector.shape_cast %365 : vector<1x1x3x32xbf16> to vector<3x32xbf16>
    %c12_573 = arith.constant 12 : index
    %c0_574 = arith.constant 0 : index
    %367 = vector.load %arg14[%c12_573, %c0_574] : memref<18x32xbf16, #tpu.memory_space<vmem>>, vector<3x32xbf16>
    tpu.vector_store %arg14[%c12_573, %c0_574], %366 {strides = array<i32>} : memref<18x32xbf16, #tpu.memory_space<vmem>>, vector<3x32xbf16>,
    %c1_575 = arith.constant 1 : index
    %c5_576 = arith.constant 5 : index
    %c0_577 = arith.constant 0 : index
    %c0_578 = arith.constant 0 : index
    %368 = vector.load %arg12[%c1_575, %c5_576, %c0_577, %c0_578] : memref<2x6x6x32xbf16, #tpu.memory_space<vmem>>, vector<1x1x3x32xbf16>
    %369 = vector.shape_cast %368 : vector<1x1x3x32xbf16> to vector<3x32xbf16>
    %c15_579 = arith.constant 15 : index
    %c0_580 = arith.constant 0 : index
    %370 = vector.load %arg14[%c15_579, %c0_580] : memref<18x32xbf16, #tpu.memory_space<vmem>>, vector<3x32xbf16>
    tpu.vector_store %arg14[%c15_579, %c0_580], %369 {strides = array<i32>} : memref<18x32xbf16, #tpu.memory_space<vmem>>, vector<3x32xbf16>,
    %c0_581 = arith.constant 0 : index
    %c0_582 = arith.constant 0 : index
    %371 = vector.load %arg14[%c0_581, %c0_582] : memref<18x32xbf16, #tpu.memory_space<vmem>>, vector<18x32xbf16>
    %c12_583 = arith.constant 12 : index
    %c0_584 = arith.constant 0 : index
    %c0_585 = arith.constant 0 : index
    %372 = vector.load %arg5[%c12_583, %c0_584, %c0_585] : memref<16x32x64xbf16, #tpu.memory_space<vmem>>, vector<1x32x64xbf16>
    %373 = vector.shape_cast %372 : vector<1x32x64xbf16> to vector<32x64xbf16>
    %cst_586 = arith.constant dense<0.000000e+00> : vector<18x64xf32>
    %374 = tpu.matmul %371, %373, %cst_586 {dimension_numbers = #tpu.dot_dimension_numbers<[1], [0], [0], [1], [0, 0, 1, 1], [], []>} : vector<18x32xbf16>, vector<32x64xbf16>, vector<18x64xf32> -> vector<18x64xf32>
    %375 = arith.addf %352, %374 : vector<18x64xf32>
    %c0_587 = arith.constant 0 : index
    %c3_588 = arith.constant 3 : index
    %c1_589 = arith.constant 1 : index
    %c0_590 = arith.constant 0 : index
    %376 = vector.load %arg12[%c0_587, %c3_588, %c1_589, %c0_590] : memref<2x6x6x32xbf16, #tpu.memory_space<vmem>>, vector<1x1x3x32xbf16>
    %377 = vector.shape_cast %376 : vector<1x1x3x32xbf16> to vector<3x32xbf16>
    %c0_591 = arith.constant 0 : index
    %c0_592 = arith.constant 0 : index
    %378 = vector.load %arg14[%c0_591, %c0_592] : memref<18x32xbf16, #tpu.memory_space<vmem>>, vector<3x32xbf16>
    tpu.vector_store %arg14[%c0_591, %c0_592], %377 {strides = array<i32>} : memref<18x32xbf16, #tpu.memory_space<vmem>>, vector<3x32xbf16>,
    %c0_593 = arith.constant 0 : index
    %c4_594 = arith.constant 4 : index
    %c1_595 = arith.constant 1 : index
    %c0_596 = arith.constant 0 : index
    %379 = vector.load %arg12[%c0_593, %c4_594, %c1_595, %c0_596] : memref<2x6x6x32xbf16, #tpu.memory_space<vmem>>, vector<1x1x3x32xbf16>
    %380 = vector.shape_cast %379 : vector<1x1x3x32xbf16> to vector<3x32xbf16>
    %c3_597 = arith.constant 3 : index
    %c0_598 = arith.constant 0 : index
    %381 = vector.load %arg14[%c3_597, %c0_598] : memref<18x32xbf16, #tpu.memory_space<vmem>>, vector<3x32xbf16>
    tpu.vector_store %arg14[%c3_597, %c0_598], %380 {strides = array<i32>} : memref<18x32xbf16, #tpu.memory_space<vmem>>, vector<3x32xbf16>,
    %c0_599 = arith.constant 0 : index
    %c5_600 = arith.constant 5 : index
    %c1_601 = arith.constant 1 : index
    %c0_602 = arith.constant 0 : index
    %382 = vector.load %arg12[%c0_599, %c5_600, %c1_601, %c0_602] : memref<2x6x6x32xbf16, #tpu.memory_space<vmem>>, vector<1x1x3x32xbf16>
    %383 = vector.shape_cast %382 : vector<1x1x3x32xbf16> to vector<3x32xbf16>
    %c6_603 = arith.constant 6 : index
    %c0_604 = arith.constant 0 : index
    %384 = vector.load %arg14[%c6_603, %c0_604] : memref<18x32xbf16, #tpu.memory_space<vmem>>, vector<3x32xbf16>
    tpu.vector_store %arg14[%c6_603, %c0_604], %383 {strides = array<i32>} : memref<18x32xbf16, #tpu.memory_space<vmem>>, vector<3x32xbf16>,
    %c1_605 = arith.constant 1 : index
    %c3_606 = arith.constant 3 : index
    %c1_607 = arith.constant 1 : index
    %c0_608 = arith.constant 0 : index
    %385 = vector.load %arg12[%c1_605, %c3_606, %c1_607, %c0_608] : memref<2x6x6x32xbf16, #tpu.memory_space<vmem>>, vector<1x1x3x32xbf16>
    %386 = vector.shape_cast %385 : vector<1x1x3x32xbf16> to vector<3x32xbf16>
    %c9_609 = arith.constant 9 : index
    %c0_610 = arith.constant 0 : index
    %387 = vector.load %arg14[%c9_609, %c0_610] : memref<18x32xbf16, #tpu.memory_space<vmem>>, vector<3x32xbf16>
    tpu.vector_store %arg14[%c9_609, %c0_610], %386 {strides = array<i32>} : memref<18x32xbf16, #tpu.memory_space<vmem>>, vector<3x32xbf16>,
    %c1_611 = arith.constant 1 : index
    %c4_612 = arith.constant 4 : index
    %c1_613 = arith.constant 1 : index
    %c0_614 = arith.constant 0 : index
    %388 = vector.load %arg12[%c1_611, %c4_612, %c1_613, %c0_614] : memref<2x6x6x32xbf16, #tpu.memory_space<vmem>>, vector<1x1x3x32xbf16>
    %389 = vector.shape_cast %388 : vector<1x1x3x32xbf16> to vector<3x32xbf16>
    %c12_615 = arith.constant 12 : index
    %c0_616 = arith.constant 0 : index
    %390 = vector.load %arg14[%c12_615, %c0_616] : memref<18x32xbf16, #tpu.memory_space<vmem>>, vector<3x32xbf16>
    tpu.vector_store %arg14[%c12_615, %c0_616], %389 {strides = array<i32>} : memref<18x32xbf16, #tpu.memory_space<vmem>>, vector<3x32xbf16>,
    %c1_617 = arith.constant 1 : index
    %c5_618 = arith.constant 5 : index
    %c1_619 = arith.constant 1 : index
    %c0_620 = arith.constant 0 : index
    %391 = vector.load %arg12[%c1_617, %c5_618, %c1_619, %c0_620] : memref<2x6x6x32xbf16, #tpu.memory_space<vmem>>, vector<1x1x3x32xbf16>
    %392 = vector.shape_cast %391 : vector<1x1x3x32xbf16> to vector<3x32xbf16>
    %c15_621 = arith.constant 15 : index
    %c0_622 = arith.constant 0 : index
    %393 = vector.load %arg14[%c15_621, %c0_622] : memref<18x32xbf16, #tpu.memory_space<vmem>>, vector<3x32xbf16>
    tpu.vector_store %arg14[%c15_621, %c0_622], %392 {strides = array<i32>} : memref<18x32xbf16, #tpu.memory_space<vmem>>, vector<3x32xbf16>,
    %c0_623 = arith.constant 0 : index
    %c0_624 = arith.constant 0 : index
    %394 = vector.load %arg14[%c0_623, %c0_624] : memref<18x32xbf16, #tpu.memory_space<vmem>>, vector<18x32xbf16>
    %c13 = arith.constant 13 : index
    %c0_625 = arith.constant 0 : index
    %c0_626 = arith.constant 0 : index
    %395 = vector.load %arg5[%c13, %c0_625, %c0_626] : memref<16x32x64xbf16, #tpu.memory_space<vmem>>, vector<1x32x64xbf16>
    %396 = vector.shape_cast %395 : vector<1x32x64xbf16> to vector<32x64xbf16>
    %cst_627 = arith.constant dense<0.000000e+00> : vector<18x64xf32>
    %397 = tpu.matmul %394, %396, %cst_627 {dimension_numbers = #tpu.dot_dimension_numbers<[1], [0], [0], [1], [0, 0, 1, 1], [], []>} : vector<18x32xbf16>, vector<32x64xbf16>, vector<18x64xf32> -> vector<18x64xf32>
    %398 = arith.addf %375, %397 : vector<18x64xf32>
    %c0_628 = arith.constant 0 : index
    %c3_629 = arith.constant 3 : index
    %c2_630 = arith.constant 2 : index
    %c0_631 = arith.constant 0 : index
    %399 = vector.load %arg12[%c0_628, %c3_629, %c2_630, %c0_631] : memref<2x6x6x32xbf16, #tpu.memory_space<vmem>>, vector<1x1x3x32xbf16>
    %400 = vector.shape_cast %399 : vector<1x1x3x32xbf16> to vector<3x32xbf16>
    %c0_632 = arith.constant 0 : index
    %c0_633 = arith.constant 0 : index
    %401 = vector.load %arg14[%c0_632, %c0_633] : memref<18x32xbf16, #tpu.memory_space<vmem>>, vector<3x32xbf16>
    tpu.vector_store %arg14[%c0_632, %c0_633], %400 {strides = array<i32>} : memref<18x32xbf16, #tpu.memory_space<vmem>>, vector<3x32xbf16>,
    %c0_634 = arith.constant 0 : index
    %c4_635 = arith.constant 4 : index
    %c2_636 = arith.constant 2 : index
    %c0_637 = arith.constant 0 : index
    %402 = vector.load %arg12[%c0_634, %c4_635, %c2_636, %c0_637] : memref<2x6x6x32xbf16, #tpu.memory_space<vmem>>, vector<1x1x3x32xbf16>
    %403 = vector.shape_cast %402 : vector<1x1x3x32xbf16> to vector<3x32xbf16>
    %c3_638 = arith.constant 3 : index
    %c0_639 = arith.constant 0 : index
    %404 = vector.load %arg14[%c3_638, %c0_639] : memref<18x32xbf16, #tpu.memory_space<vmem>>, vector<3x32xbf16>
    tpu.vector_store %arg14[%c3_638, %c0_639], %403 {strides = array<i32>} : memref<18x32xbf16, #tpu.memory_space<vmem>>, vector<3x32xbf16>,
    %c0_640 = arith.constant 0 : index
    %c5_641 = arith.constant 5 : index
    %c2_642 = arith.constant 2 : index
    %c0_643 = arith.constant 0 : index
    %405 = vector.load %arg12[%c0_640, %c5_641, %c2_642, %c0_643] : memref<2x6x6x32xbf16, #tpu.memory_space<vmem>>, vector<1x1x3x32xbf16>
    %406 = vector.shape_cast %405 : vector<1x1x3x32xbf16> to vector<3x32xbf16>
    %c6_644 = arith.constant 6 : index
    %c0_645 = arith.constant 0 : index
    %407 = vector.load %arg14[%c6_644, %c0_645] : memref<18x32xbf16, #tpu.memory_space<vmem>>, vector<3x32xbf16>
    tpu.vector_store %arg14[%c6_644, %c0_645], %406 {strides = array<i32>} : memref<18x32xbf16, #tpu.memory_space<vmem>>, vector<3x32xbf16>,
    %c1_646 = arith.constant 1 : index
    %c3_647 = arith.constant 3 : index
    %c2_648 = arith.constant 2 : index
    %c0_649 = arith.constant 0 : index
    %408 = vector.load %arg12[%c1_646, %c3_647, %c2_648, %c0_649] : memref<2x6x6x32xbf16, #tpu.memory_space<vmem>>, vector<1x1x3x32xbf16>
    %409 = vector.shape_cast %408 : vector<1x1x3x32xbf16> to vector<3x32xbf16>
    %c9_650 = arith.constant 9 : index
    %c0_651 = arith.constant 0 : index
    %410 = vector.load %arg14[%c9_650, %c0_651] : memref<18x32xbf16, #tpu.memory_space<vmem>>, vector<3x32xbf16>
    tpu.vector_store %arg14[%c9_650, %c0_651], %409 {strides = array<i32>} : memref<18x32xbf16, #tpu.memory_space<vmem>>, vector<3x32xbf16>,
    %c1_652 = arith.constant 1 : index
    %c4_653 = arith.constant 4 : index
    %c2_654 = arith.constant 2 : index
    %c0_655 = arith.constant 0 : index
    %411 = vector.load %arg12[%c1_652, %c4_653, %c2_654, %c0_655] : memref<2x6x6x32xbf16, #tpu.memory_space<vmem>>, vector<1x1x3x32xbf16>
    %412 = vector.shape_cast %411 : vector<1x1x3x32xbf16> to vector<3x32xbf16>
    %c12_656 = arith.constant 12 : index
    %c0_657 = arith.constant 0 : index
    %413 = vector.load %arg14[%c12_656, %c0_657] : memref<18x32xbf16, #tpu.memory_space<vmem>>, vector<3x32xbf16>
    tpu.vector_store %arg14[%c12_656, %c0_657], %412 {strides = array<i32>} : memref<18x32xbf16, #tpu.memory_space<vmem>>, vector<3x32xbf16>,
    %c1_658 = arith.constant 1 : index
    %c5_659 = arith.constant 5 : index
    %c2_660 = arith.constant 2 : index
    %c0_661 = arith.constant 0 : index
    %414 = vector.load %arg12[%c1_658, %c5_659, %c2_660, %c0_661] : memref<2x6x6x32xbf16, #tpu.memory_space<vmem>>, vector<1x1x3x32xbf16>
    %415 = vector.shape_cast %414 : vector<1x1x3x32xbf16> to vector<3x32xbf16>
    %c15_662 = arith.constant 15 : index
    %c0_663 = arith.constant 0 : index
    %416 = vector.load %arg14[%c15_662, %c0_663] : memref<18x32xbf16, #tpu.memory_space<vmem>>, vector<3x32xbf16>
    tpu.vector_store %arg14[%c15_662, %c0_663], %415 {strides = array<i32>} : memref<18x32xbf16, #tpu.memory_space<vmem>>, vector<3x32xbf16>,
    %c0_664 = arith.constant 0 : index
    %c0_665 = arith.constant 0 : index
    %417 = vector.load %arg14[%c0_664, %c0_665] : memref<18x32xbf16, #tpu.memory_space<vmem>>, vector<18x32xbf16>
    %c14 = arith.constant 14 : index
    %c0_666 = arith.constant 0 : index
    %c0_667 = arith.constant 0 : index
    %418 = vector.load %arg5[%c14, %c0_666, %c0_667] : memref<16x32x64xbf16, #tpu.memory_space<vmem>>, vector<1x32x64xbf16>
    %419 = vector.shape_cast %418 : vector<1x32x64xbf16> to vector<32x64xbf16>
    %cst_668 = arith.constant dense<0.000000e+00> : vector<18x64xf32>
    %420 = tpu.matmul %417, %419, %cst_668 {dimension_numbers = #tpu.dot_dimension_numbers<[1], [0], [0], [1], [0, 0, 1, 1], [], []>} : vector<18x32xbf16>, vector<32x64xbf16>, vector<18x64xf32> -> vector<18x64xf32>
    %421 = arith.addf %398, %420 : vector<18x64xf32>
    %c0_669 = arith.constant 0 : index
    %c3_670 = arith.constant 3 : index
    %c3_671 = arith.constant 3 : index
    %c0_672 = arith.constant 0 : index
    %422 = vector.load %arg12[%c0_669, %c3_670, %c3_671, %c0_672] : memref<2x6x6x32xbf16, #tpu.memory_space<vmem>>, vector<1x1x3x32xbf16>
    %423 = vector.shape_cast %422 : vector<1x1x3x32xbf16> to vector<3x32xbf16>
    %c0_673 = arith.constant 0 : index
    %c0_674 = arith.constant 0 : index
    %424 = vector.load %arg14[%c0_673, %c0_674] : memref<18x32xbf16, #tpu.memory_space<vmem>>, vector<3x32xbf16>
    tpu.vector_store %arg14[%c0_673, %c0_674], %423 {strides = array<i32>} : memref<18x32xbf16, #tpu.memory_space<vmem>>, vector<3x32xbf16>,
    %c0_675 = arith.constant 0 : index
    %c4_676 = arith.constant 4 : index
    %c3_677 = arith.constant 3 : index
    %c0_678 = arith.constant 0 : index
    %425 = vector.load %arg12[%c0_675, %c4_676, %c3_677, %c0_678] : memref<2x6x6x32xbf16, #tpu.memory_space<vmem>>, vector<1x1x3x32xbf16>
    %426 = vector.shape_cast %425 : vector<1x1x3x32xbf16> to vector<3x32xbf16>
    %c3_679 = arith.constant 3 : index
    %c0_680 = arith.constant 0 : index
    %427 = vector.load %arg14[%c3_679, %c0_680] : memref<18x32xbf16, #tpu.memory_space<vmem>>, vector<3x32xbf16>
    tpu.vector_store %arg14[%c3_679, %c0_680], %426 {strides = array<i32>} : memref<18x32xbf16, #tpu.memory_space<vmem>>, vector<3x32xbf16>,
    %c0_681 = arith.constant 0 : index
    %c5_682 = arith.constant 5 : index
    %c3_683 = arith.constant 3 : index
    %c0_684 = arith.constant 0 : index
    %428 = vector.load %arg12[%c0_681, %c5_682, %c3_683, %c0_684] : memref<2x6x6x32xbf16, #tpu.memory_space<vmem>>, vector<1x1x3x32xbf16>
    %429 = vector.shape_cast %428 : vector<1x1x3x32xbf16> to vector<3x32xbf16>
    %c6_685 = arith.constant 6 : index
    %c0_686 = arith.constant 0 : index
    %430 = vector.load %arg14[%c6_685, %c0_686] : memref<18x32xbf16, #tpu.memory_space<vmem>>, vector<3x32xbf16>
    tpu.vector_store %arg14[%c6_685, %c0_686], %429 {strides = array<i32>} : memref<18x32xbf16, #tpu.memory_space<vmem>>, vector<3x32xbf16>,
    %c1_687 = arith.constant 1 : index
    %c3_688 = arith.constant 3 : index
    %c3_689 = arith.constant 3 : index
    %c0_690 = arith.constant 0 : index
    %431 = vector.load %arg12[%c1_687, %c3_688, %c3_689, %c0_690] : memref<2x6x6x32xbf16, #tpu.memory_space<vmem>>, vector<1x1x3x32xbf16>
    %432 = vector.shape_cast %431 : vector<1x1x3x32xbf16> to vector<3x32xbf16>
    %c9_691 = arith.constant 9 : index
    %c0_692 = arith.constant 0 : index
    %433 = vector.load %arg14[%c9_691, %c0_692] : memref<18x32xbf16, #tpu.memory_space<vmem>>, vector<3x32xbf16>
    tpu.vector_store %arg14[%c9_691, %c0_692], %432 {strides = array<i32>} : memref<18x32xbf16, #tpu.memory_space<vmem>>, vector<3x32xbf16>,
    %c1_693 = arith.constant 1 : index
    %c4_694 = arith.constant 4 : index
    %c3_695 = arith.constant 3 : index
    %c0_696 = arith.constant 0 : index
    %434 = vector.load %arg12[%c1_693, %c4_694, %c3_695, %c0_696] : memref<2x6x6x32xbf16, #tpu.memory_space<vmem>>, vector<1x1x3x32xbf16>
    %435 = vector.shape_cast %434 : vector<1x1x3x32xbf16> to vector<3x32xbf16>
    %c12_697 = arith.constant 12 : index
    %c0_698 = arith.constant 0 : index
    %436 = vector.load %arg14[%c12_697, %c0_698] : memref<18x32xbf16, #tpu.memory_space<vmem>>, vector<3x32xbf16>
    tpu.vector_store %arg14[%c12_697, %c0_698], %435 {strides = array<i32>} : memref<18x32xbf16, #tpu.memory_space<vmem>>, vector<3x32xbf16>,
    %c1_699 = arith.constant 1 : index
    %c5_700 = arith.constant 5 : index
    %c3_701 = arith.constant 3 : index
    %c0_702 = arith.constant 0 : index
    %437 = vector.load %arg12[%c1_699, %c5_700, %c3_701, %c0_702] : memref<2x6x6x32xbf16, #tpu.memory_space<vmem>>, vector<1x1x3x32xbf16>
    %438 = vector.shape_cast %437 : vector<1x1x3x32xbf16> to vector<3x32xbf16>
    %c15_703 = arith.constant 15 : index
    %c0_704 = arith.constant 0 : index
    %439 = vector.load %arg14[%c15_703, %c0_704] : memref<18x32xbf16, #tpu.memory_space<vmem>>, vector<3x32xbf16>
    tpu.vector_store %arg14[%c15_703, %c0_704], %438 {strides = array<i32>} : memref<18x32xbf16, #tpu.memory_space<vmem>>, vector<3x32xbf16>,
    %c0_705 = arith.constant 0 : index
    %c0_706 = arith.constant 0 : index
    %440 = vector.load %arg14[%c0_705, %c0_706] : memref<18x32xbf16, #tpu.memory_space<vmem>>, vector<18x32xbf16>
    %c15_707 = arith.constant 15 : index
    %c0_708 = arith.constant 0 : index
    %c0_709 = arith.constant 0 : index
    %441 = vector.load %arg5[%c15_707, %c0_708, %c0_709] : memref<16x32x64xbf16, #tpu.memory_space<vmem>>, vector<1x32x64xbf16>
    %442 = vector.shape_cast %441 : vector<1x32x64xbf16> to vector<32x64xbf16>
    %cst_710 = arith.constant dense<0.000000e+00> : vector<18x64xf32>
    %443 = tpu.matmul %440, %442, %cst_710 {dimension_numbers = #tpu.dot_dimension_numbers<[1], [0], [0], [1], [0, 0, 1, 1], [], []>} : vector<18x32xbf16>, vector<32x64xbf16>, vector<18x64xf32> -> vector<18x64xf32>
    %444 = arith.addf %421, %443 : vector<18x64xf32>
    %c0_711 = arith.constant 0 : index
    %c0_712 = arith.constant 0 : index
    %445 = vector.load %arg6[%c0_711, %c0_712] : memref<1x64xf32, #tpu.memory_space<vmem>>, vector<1x64xf32>
    %446 = vector.broadcast %445 : vector<1x64xf32> to vector<18x64xf32>
    %447 = arith.addf %444, %446 : vector<18x64xf32>
    %c0_713 = arith.constant 0 : index
    %c0_714 = arith.constant 0 : index
    %448 = vector.load %arg7[%c0_713, %c0_714] : memref<1x64xf32, #tpu.memory_space<vmem>>, vector<1x64xf32>
    %c0_715 = arith.constant 0 : index
    %c0_716 = arith.constant 0 : index
    %449 = vector.load %arg8[%c0_715, %c0_716] : memref<1x64xf32, #tpu.memory_space<vmem>>, vector<1x64xf32>
    %cst_717 = arith.constant dense<0.000000e+00> : vector<64xf32>
    %450 = vector.multi_reduction <add>, %447, %cst_717 [0] : vector<18x64xf32> to vector<64xf32>
    %451 = vector.shape_cast %450 : vector<64xf32> to vector<1x64xf32>
    %452 = arith.mulf %447, %447 : vector<18x64xf32>
    %cst_718 = arith.constant dense<0.000000e+00> : vector<64xf32>
    %453 = vector.multi_reduction <add>, %452, %cst_718 [0] : vector<18x64xf32> to vector<64xf32>
    %454 = vector.shape_cast %453 : vector<64xf32> to vector<1x64xf32>
    %cst_719 = arith.constant 1.800000e+01 : f32
    %455 = vector.broadcast %cst_719 : f32 to vector<1x64xf32>
    %456 = arith.divf %451, %455 : vector<1x64xf32>
    %cst_720 = arith.constant 1.800000e+01 : f32
    %457 = vector.broadcast %cst_720 : f32 to vector<1x64xf32>
    %458 = arith.divf %454, %457 : vector<1x64xf32>
    %459 = arith.mulf %456, %456 : vector<1x64xf32>
    %460 = arith.subf %458, %459 : vector<1x64xf32>
    %cst_721 = arith.constant 9.99999974E-6 : f32
    %461 = vector.broadcast %cst_721 : f32 to vector<1x64xf32>
    %462 = arith.addf %460, %461 : vector<1x64xf32>
    %463 = math.rsqrt %462 : vector<1x64xf32>
    %464 = arith.mulf %448, %463 : vector<1x64xf32>
    %465 = arith.mulf %456, %464 : vector<1x64xf32>
    %466 = arith.subf %449, %465 : vector<1x64xf32>
    %467 = vector.broadcast %464 : vector<1x64xf32> to vector<18x64xf32>
    %468 = arith.mulf %447, %467 : vector<18x64xf32>
    %469 = vector.broadcast %466 : vector<1x64xf32> to vector<18x64xf32>
    %470 = arith.addf %468, %469 : vector<18x64xf32>
    %cst_722 = arith.constant 0.000000e+00 : f32
    %471 = vector.broadcast %cst_722 : f32 to vector<18x64xf32>
    %472 = arith.cmpf oge, %470, %471 : vector<18x64xf32>
    %cst_723 = arith.constant 2.000000e-01 : f32
    %473 = vector.broadcast %cst_723 : f32 to vector<18x64xf32>
    %474 = arith.mulf %473, %470 : vector<18x64xf32>
    %475 = arith.select %472, %470, %474 : vector<18x64xi1>, vector<18x64xf32>
    %cst_724 = arith.constant 0.000000e+00 : bf16
    %476 = vector.broadcast %cst_724 : bf16 to vector<2x5x5x64xbf16>
    %c0_725 = arith.constant 0 : index
    %c0_726 = arith.constant 0 : index
    %c0_727 = arith.constant 0 : index
    %c0_728 = arith.constant 0 : index
    %477 = vector.load %arg13[%c0_725, %c0_726, %c0_727, %c0_728] : memref<2x5x5x64xbf16, #tpu.memory_space<vmem>>, vector<2x5x5x64xbf16>
    tpu.vector_store %arg13[%c0_725, %c0_726, %c0_727, %c0_728], %476 {strides = array<i32>} : memref<2x5x5x64xbf16, #tpu.memory_space<vmem>>, vector<2x5x5x64xbf16>,
    %478 = vector.extract_strided_slice %475 {offsets = [0, 0], sizes = [3, 64], strides = [1, 1]} : vector<18x64xf32> to vector<3x64xf32>
    %479 = arith.truncf %478 : vector<3x64xf32> to vector<3x64xbf16>
    %c0_729 = arith.constant 0 : index
    %c1_730 = arith.constant 1 : index
    %c1_731 = arith.constant 1 : index
    %c0_732 = arith.constant 0 : index
    %480 = vector.load %arg13[%c0_729, %c1_730, %c1_731, %c0_732] : memref<2x5x5x64xbf16, #tpu.memory_space<vmem>>, vector<1x1x3x64xbf16>
    %481 = vector.shape_cast %480 : vector<1x1x3x64xbf16> to vector<3x64xbf16>
    %482 = vector.shape_cast %479 : vector<3x64xbf16> to vector<1x1x3x64xbf16>
    tpu.vector_store %arg13[%c0_729, %c1_730, %c1_731, %c0_732], %482 {strides = array<i32>} : memref<2x5x5x64xbf16, #tpu.memory_space<vmem>>, vector<1x1x3x64xbf16>,
    %483 = vector.extract_strided_slice %475 {offsets = [3, 0], sizes = [3, 64], strides = [1, 1]} : vector<18x64xf32> to vector<3x64xf32>
    %484 = arith.truncf %483 : vector<3x64xf32> to vector<3x64xbf16>
    %c0_733 = arith.constant 0 : index
    %c2_734 = arith.constant 2 : index
    %c1_735 = arith.constant 1 : index
    %c0_736 = arith.constant 0 : index
    %485 = vector.load %arg13[%c0_733, %c2_734, %c1_735, %c0_736] : memref<2x5x5x64xbf16, #tpu.memory_space<vmem>>, vector<1x1x3x64xbf16>
    %486 = vector.shape_cast %485 : vector<1x1x3x64xbf16> to vector<3x64xbf16>
    %487 = vector.shape_cast %484 : vector<3x64xbf16> to vector<1x1x3x64xbf16>
    tpu.vector_store %arg13[%c0_733, %c2_734, %c1_735, %c0_736], %487 {strides = array<i32>} : memref<2x5x5x64xbf16, #tpu.memory_space<vmem>>, vector<1x1x3x64xbf16>,
    %488 = vector.extract_strided_slice %475 {offsets = [6, 0], sizes = [3, 64], strides = [1, 1]} : vector<18x64xf32> to vector<3x64xf32>
    %489 = arith.truncf %488 : vector<3x64xf32> to vector<3x64xbf16>
    %c0_737 = arith.constant 0 : index
    %c3_738 = arith.constant 3 : index
    %c1_739 = arith.constant 1 : index
    %c0_740 = arith.constant 0 : index
    %490 = vector.load %arg13[%c0_737, %c3_738, %c1_739, %c0_740] : memref<2x5x5x64xbf16, #tpu.memory_space<vmem>>, vector<1x1x3x64xbf16>
    %491 = vector.shape_cast %490 : vector<1x1x3x64xbf16> to vector<3x64xbf16>
    %492 = vector.shape_cast %489 : vector<3x64xbf16> to vector<1x1x3x64xbf16>
    tpu.vector_store %arg13[%c0_737, %c3_738, %c1_739, %c0_740], %492 {strides = array<i32>} : memref<2x5x5x64xbf16, #tpu.memory_space<vmem>>, vector<1x1x3x64xbf16>,
    %493 = vector.extract_strided_slice %475 {offsets = [9, 0], sizes = [3, 64], strides = [1, 1]} : vector<18x64xf32> to vector<3x64xf32>
    %494 = arith.truncf %493 : vector<3x64xf32> to vector<3x64xbf16>
    %c1_741 = arith.constant 1 : index
    %c1_742 = arith.constant 1 : index
    %c1_743 = arith.constant 1 : index
    %c0_744 = arith.constant 0 : index
    %495 = vector.load %arg13[%c1_741, %c1_742, %c1_743, %c0_744] : memref<2x5x5x64xbf16, #tpu.memory_space<vmem>>, vector<1x1x3x64xbf16>
    %496 = vector.shape_cast %495 : vector<1x1x3x64xbf16> to vector<3x64xbf16>
    %497 = vector.shape_cast %494 : vector<3x64xbf16> to vector<1x1x3x64xbf16>
    tpu.vector_store %arg13[%c1_741, %c1_742, %c1_743, %c0_744], %497 {strides = array<i32>} : memref<2x5x5x64xbf16, #tpu.memory_space<vmem>>, vector<1x1x3x64xbf16>,
    %498 = vector.extract_strided_slice %475 {offsets = [12, 0], sizes = [3, 64], strides = [1, 1]} : vector<18x64xf32> to vector<3x64xf32>
    %499 = arith.truncf %498 : vector<3x64xf32> to vector<3x64xbf16>
    %c1_745 = arith.constant 1 : index
    %c2_746 = arith.constant 2 : index
    %c1_747 = arith.constant 1 : index
    %c0_748 = arith.constant 0 : index
    %500 = vector.load %arg13[%c1_745, %c2_746, %c1_747, %c0_748] : memref<2x5x5x64xbf16, #tpu.memory_space<vmem>>, vector<1x1x3x64xbf16>
    %501 = vector.shape_cast %500 : vector<1x1x3x64xbf16> to vector<3x64xbf16>
    %502 = vector.shape_cast %499 : vector<3x64xbf16> to vector<1x1x3x64xbf16>
    tpu.vector_store %arg13[%c1_745, %c2_746, %c1_747, %c0_748], %502 {strides = array<i32>} : memref<2x5x5x64xbf16, #tpu.memory_space<vmem>>, vector<1x1x3x64xbf16>,
    %503 = vector.extract_strided_slice %475 {offsets = [15, 0], sizes = [3, 64], strides = [1, 1]} : vector<18x64xf32> to vector<3x64xf32>
    %504 = arith.truncf %503 : vector<3x64xf32> to vector<3x64xbf16>
    %c1_749 = arith.constant 1 : index
    %c3_750 = arith.constant 3 : index
    %c1_751 = arith.constant 1 : index
    %c0_752 = arith.constant 0 : index
    %505 = vector.load %arg13[%c1_749, %c3_750, %c1_751, %c0_752] : memref<2x5x5x64xbf16, #tpu.memory_space<vmem>>, vector<1x1x3x64xbf16>
    %506 = vector.shape_cast %505 : vector<1x1x3x64xbf16> to vector<3x64xbf16>
    %507 = vector.shape_cast %504 : vector<3x64xbf16> to vector<1x1x3x64xbf16>
    tpu.vector_store %arg13[%c1_749, %c3_750, %c1_751, %c0_752], %507 {strides = array<i32>} : memref<2x5x5x64xbf16, #tpu.memory_space<vmem>>, vector<1x1x3x64xbf16>,
    %cst_753 = arith.constant 0.000000e+00 : f32
    %508 = vector.broadcast %cst_753 : f32 to vector<8x128xf32>
    %c0_754 = arith.constant 0 : index
    %c0_755 = arith.constant 0 : index
    %c0_756 = arith.constant 0 : index
    %c0_757 = arith.constant 0 : index
    %509 = vector.load %arg13[%c0_754, %c0_755, %c0_756, %c0_757] : memref<2x5x5x64xbf16, #tpu.memory_space<vmem>>, vector<1x1x2x64xbf16>
    %510 = vector.shape_cast %509 : vector<1x1x2x64xbf16> to vector<2x64xbf16>
    %c0_758 = arith.constant 0 : index
    %c0_759 = arith.constant 0 : index
    %511 = vector.load %arg15[%c0_758, %c0_759] : memref<8x64xbf16, #tpu.memory_space<vmem>>, vector<2x64xbf16>
    tpu.vector_store %arg15[%c0_758, %c0_759], %510 {strides = array<i32>} : memref<8x64xbf16, #tpu.memory_space<vmem>>, vector<2x64xbf16>,
    %c0_760 = arith.constant 0 : index
    %c1_761 = arith.constant 1 : index
    %c0_762 = arith.constant 0 : index
    %c0_763 = arith.constant 0 : index
    %512 = vector.load %arg13[%c0_760, %c1_761, %c0_762, %c0_763] : memref<2x5x5x64xbf16, #tpu.memory_space<vmem>>, vector<1x1x2x64xbf16>
    %513 = vector.shape_cast %512 : vector<1x1x2x64xbf16> to vector<2x64xbf16>
    %c2_764 = arith.constant 2 : index
    %c0_765 = arith.constant 0 : index
    %514 = vector.load %arg15[%c2_764, %c0_765] : memref<8x64xbf16, #tpu.memory_space<vmem>>, vector<2x64xbf16>
    tpu.vector_store %arg15[%c2_764, %c0_765], %513 {strides = array<i32>} : memref<8x64xbf16, #tpu.memory_space<vmem>>, vector<2x64xbf16>,
    %c1_766 = arith.constant 1 : index
    %c0_767 = arith.constant 0 : index
    %c0_768 = arith.constant 0 : index
    %c0_769 = arith.constant 0 : index
    %515 = vector.load %arg13[%c1_766, %c0_767, %c0_768, %c0_769] : memref<2x5x5x64xbf16, #tpu.memory_space<vmem>>, vector<1x1x2x64xbf16>
    %516 = vector.shape_cast %515 : vector<1x1x2x64xbf16> to vector<2x64xbf16>
    %c4_770 = arith.constant 4 : index
    %c0_771 = arith.constant 0 : index
    %517 = vector.load %arg15[%c4_770, %c0_771] : memref<8x64xbf16, #tpu.memory_space<vmem>>, vector<2x64xbf16>
    tpu.vector_store %arg15[%c4_770, %c0_771], %516 {strides = array<i32>} : memref<8x64xbf16, #tpu.memory_space<vmem>>, vector<2x64xbf16>,
    %c1_772 = arith.constant 1 : index
    %c1_773 = arith.constant 1 : index
    %c0_774 = arith.constant 0 : index
    %c0_775 = arith.constant 0 : index
    %518 = vector.load %arg13[%c1_772, %c1_773, %c0_774, %c0_775] : memref<2x5x5x64xbf16, #tpu.memory_space<vmem>>, vector<1x1x2x64xbf16>
    %519 = vector.shape_cast %518 : vector<1x1x2x64xbf16> to vector<2x64xbf16>
    %c6_776 = arith.constant 6 : index
    %c0_777 = arith.constant 0 : index
    %520 = vector.load %arg15[%c6_776, %c0_777] : memref<8x64xbf16, #tpu.memory_space<vmem>>, vector<2x64xbf16>
    tpu.vector_store %arg15[%c6_776, %c0_777], %519 {strides = array<i32>} : memref<8x64xbf16, #tpu.memory_space<vmem>>, vector<2x64xbf16>,
    %c0_778 = arith.constant 0 : index
    %c0_779 = arith.constant 0 : index
    %521 = vector.load %arg15[%c0_778, %c0_779] : memref<8x64xbf16, #tpu.memory_space<vmem>>, vector<8x64xbf16>
    %c0_780 = arith.constant 0 : index
    %c0_781 = arith.constant 0 : index
    %c0_782 = arith.constant 0 : index
    %522 = vector.load %arg9[%c0_780, %c0_781, %c0_782] : memref<16x64x128xbf16, #tpu.memory_space<vmem>>, vector<1x64x128xbf16>
    %523 = vector.shape_cast %522 : vector<1x64x128xbf16> to vector<64x128xbf16>
    %cst_783 = arith.constant dense<0.000000e+00> : vector<8x128xf32>
    %524 = tpu.matmul %521, %523, %cst_783 {dimension_numbers = #tpu.dot_dimension_numbers<[1], [0], [0], [1], [0, 0, 1, 1], [], []>} : vector<8x64xbf16>, vector<64x128xbf16>, vector<8x128xf32> -> vector<8x128xf32>
    %525 = arith.addf %508, %524 : vector<8x128xf32>
    %c0_784 = arith.constant 0 : index
    %c0_785 = arith.constant 0 : index
    %c1_786 = arith.constant 1 : index
    %c0_787 = arith.constant 0 : index
    %526 = vector.load %arg13[%c0_784, %c0_785, %c1_786, %c0_787] : memref<2x5x5x64xbf16, #tpu.memory_space<vmem>>, vector<1x1x2x64xbf16>
    %527 = vector.shape_cast %526 : vector<1x1x2x64xbf16> to vector<2x64xbf16>
    %c0_788 = arith.constant 0 : index
    %c0_789 = arith.constant 0 : index
    %528 = vector.load %arg15[%c0_788, %c0_789] : memref<8x64xbf16, #tpu.memory_space<vmem>>, vector<2x64xbf16>
    tpu.vector_store %arg15[%c0_788, %c0_789], %527 {strides = array<i32>} : memref<8x64xbf16, #tpu.memory_space<vmem>>, vector<2x64xbf16>,
    %c0_790 = arith.constant 0 : index
    %c1_791 = arith.constant 1 : index
    %c1_792 = arith.constant 1 : index
    %c0_793 = arith.constant 0 : index
    %529 = vector.load %arg13[%c0_790, %c1_791, %c1_792, %c0_793] : memref<2x5x5x64xbf16, #tpu.memory_space<vmem>>, vector<1x1x2x64xbf16>
    %530 = vector.shape_cast %529 : vector<1x1x2x64xbf16> to vector<2x64xbf16>
    %c2_794 = arith.constant 2 : index
    %c0_795 = arith.constant 0 : index
    %531 = vector.load %arg15[%c2_794, %c0_795] : memref<8x64xbf16, #tpu.memory_space<vmem>>, vector<2x64xbf16>
    tpu.vector_store %arg15[%c2_794, %c0_795], %530 {strides = array<i32>} : memref<8x64xbf16, #tpu.memory_space<vmem>>, vector<2x64xbf16>,
    %c1_796 = arith.constant 1 : index
    %c0_797 = arith.constant 0 : index
    %c1_798 = arith.constant 1 : index
    %c0_799 = arith.constant 0 : index
    %532 = vector.load %arg13[%c1_796, %c0_797, %c1_798, %c0_799] : memref<2x5x5x64xbf16, #tpu.memory_space<vmem>>, vector<1x1x2x64xbf16>
    %533 = vector.shape_cast %532 : vector<1x1x2x64xbf16> to vector<2x64xbf16>
    %c4_800 = arith.constant 4 : index
    %c0_801 = arith.constant 0 : index
    %534 = vector.load %arg15[%c4_800, %c0_801] : memref<8x64xbf16, #tpu.memory_space<vmem>>, vector<2x64xbf16>
    tpu.vector_store %arg15[%c4_800, %c0_801], %533 {strides = array<i32>} : memref<8x64xbf16, #tpu.memory_space<vmem>>, vector<2x64xbf16>,
    %c1_802 = arith.constant 1 : index
    %c1_803 = arith.constant 1 : index
    %c1_804 = arith.constant 1 : index
    %c0_805 = arith.constant 0 : index
    %535 = vector.load %arg13[%c1_802, %c1_803, %c1_804, %c0_805] : memref<2x5x5x64xbf16, #tpu.memory_space<vmem>>, vector<1x1x2x64xbf16>
    %536 = vector.shape_cast %535 : vector<1x1x2x64xbf16> to vector<2x64xbf16>
    %c6_806 = arith.constant 6 : index
    %c0_807 = arith.constant 0 : index
    %537 = vector.load %arg15[%c6_806, %c0_807] : memref<8x64xbf16, #tpu.memory_space<vmem>>, vector<2x64xbf16>
    tpu.vector_store %arg15[%c6_806, %c0_807], %536 {strides = array<i32>} : memref<8x64xbf16, #tpu.memory_space<vmem>>, vector<2x64xbf16>,
    %c0_808 = arith.constant 0 : index
    %c0_809 = arith.constant 0 : index
    %538 = vector.load %arg15[%c0_808, %c0_809] : memref<8x64xbf16, #tpu.memory_space<vmem>>, vector<8x64xbf16>
    %c1_810 = arith.constant 1 : index
    %c0_811 = arith.constant 0 : index
    %c0_812 = arith.constant 0 : index
    %539 = vector.load %arg9[%c1_810, %c0_811, %c0_812] : memref<16x64x128xbf16, #tpu.memory_space<vmem>>, vector<1x64x128xbf16>
    %540 = vector.shape_cast %539 : vector<1x64x128xbf16> to vector<64x128xbf16>
    %cst_813 = arith.constant dense<0.000000e+00> : vector<8x128xf32>
    %541 = tpu.matmul %538, %540, %cst_813 {dimension_numbers = #tpu.dot_dimension_numbers<[1], [0], [0], [1], [0, 0, 1, 1], [], []>} : vector<8x64xbf16>, vector<64x128xbf16>, vector<8x128xf32> -> vector<8x128xf32>
    %542 = arith.addf %525, %541 : vector<8x128xf32>
    %c0_814 = arith.constant 0 : index
    %c0_815 = arith.constant 0 : index
    %c2_816 = arith.constant 2 : index
    %c0_817 = arith.constant 0 : index
    %543 = vector.load %arg13[%c0_814, %c0_815, %c2_816, %c0_817] : memref<2x5x5x64xbf16, #tpu.memory_space<vmem>>, vector<1x1x2x64xbf16>
    %544 = vector.shape_cast %543 : vector<1x1x2x64xbf16> to vector<2x64xbf16>
    %c0_818 = arith.constant 0 : index
    %c0_819 = arith.constant 0 : index
    %545 = vector.load %arg15[%c0_818, %c0_819] : memref<8x64xbf16, #tpu.memory_space<vmem>>, vector<2x64xbf16>
    tpu.vector_store %arg15[%c0_818, %c0_819], %544 {strides = array<i32>} : memref<8x64xbf16, #tpu.memory_space<vmem>>, vector<2x64xbf16>,
    %c0_820 = arith.constant 0 : index
    %c1_821 = arith.constant 1 : index
    %c2_822 = arith.constant 2 : index
    %c0_823 = arith.constant 0 : index
    %546 = vector.load %arg13[%c0_820, %c1_821, %c2_822, %c0_823] : memref<2x5x5x64xbf16, #tpu.memory_space<vmem>>, vector<1x1x2x64xbf16>
    %547 = vector.shape_cast %546 : vector<1x1x2x64xbf16> to vector<2x64xbf16>
    %c2_824 = arith.constant 2 : index
    %c0_825 = arith.constant 0 : index
    %548 = vector.load %arg15[%c2_824, %c0_825] : memref<8x64xbf16, #tpu.memory_space<vmem>>, vector<2x64xbf16>
    tpu.vector_store %arg15[%c2_824, %c0_825], %547 {strides = array<i32>} : memref<8x64xbf16, #tpu.memory_space<vmem>>, vector<2x64xbf16>,
    %c1_826 = arith.constant 1 : index
    %c0_827 = arith.constant 0 : index
    %c2_828 = arith.constant 2 : index
    %c0_829 = arith.constant 0 : index
    %549 = vector.load %arg13[%c1_826, %c0_827, %c2_828, %c0_829] : memref<2x5x5x64xbf16, #tpu.memory_space<vmem>>, vector<1x1x2x64xbf16>
    %550 = vector.shape_cast %549 : vector<1x1x2x64xbf16> to vector<2x64xbf16>
    %c4_830 = arith.constant 4 : index
    %c0_831 = arith.constant 0 : index
    %551 = vector.load %arg15[%c4_830, %c0_831] : memref<8x64xbf16, #tpu.memory_space<vmem>>, vector<2x64xbf16>
    tpu.vector_store %arg15[%c4_830, %c0_831], %550 {strides = array<i32>} : memref<8x64xbf16, #tpu.memory_space<vmem>>, vector<2x64xbf16>,
    %c1_832 = arith.constant 1 : index
    %c1_833 = arith.constant 1 : index
    %c2_834 = arith.constant 2 : index
    %c0_835 = arith.constant 0 : index
    %552 = vector.load %arg13[%c1_832, %c1_833, %c2_834, %c0_835] : memref<2x5x5x64xbf16, #tpu.memory_space<vmem>>, vector<1x1x2x64xbf16>
    %553 = vector.shape_cast %552 : vector<1x1x2x64xbf16> to vector<2x64xbf16>
    %c6_836 = arith.constant 6 : index
    %c0_837 = arith.constant 0 : index
    %554 = vector.load %arg15[%c6_836, %c0_837] : memref<8x64xbf16, #tpu.memory_space<vmem>>, vector<2x64xbf16>
    tpu.vector_store %arg15[%c6_836, %c0_837], %553 {strides = array<i32>} : memref<8x64xbf16, #tpu.memory_space<vmem>>, vector<2x64xbf16>,
    %c0_838 = arith.constant 0 : index
    %c0_839 = arith.constant 0 : index
    %555 = vector.load %arg15[%c0_838, %c0_839] : memref<8x64xbf16, #tpu.memory_space<vmem>>, vector<8x64xbf16>
    %c2_840 = arith.constant 2 : index
    %c0_841 = arith.constant 0 : index
    %c0_842 = arith.constant 0 : index
    %556 = vector.load %arg9[%c2_840, %c0_841, %c0_842] : memref<16x64x128xbf16, #tpu.memory_space<vmem>>, vector<1x64x128xbf16>
    %557 = vector.shape_cast %556 : vector<1x64x128xbf16> to vector<64x128xbf16>
    %cst_843 = arith.constant dense<0.000000e+00> : vector<8x128xf32>
    %558 = tpu.matmul %555, %557, %cst_843 {dimension_numbers = #tpu.dot_dimension_numbers<[1], [0], [0], [1], [0, 0, 1, 1], [], []>} : vector<8x64xbf16>, vector<64x128xbf16>, vector<8x128xf32> -> vector<8x128xf32>
    %559 = arith.addf %542, %558 : vector<8x128xf32>
    %c0_844 = arith.constant 0 : index
    %c0_845 = arith.constant 0 : index
    %c3_846 = arith.constant 3 : index
    %c0_847 = arith.constant 0 : index
    %560 = vector.load %arg13[%c0_844, %c0_845, %c3_846, %c0_847] : memref<2x5x5x64xbf16, #tpu.memory_space<vmem>>, vector<1x1x2x64xbf16>
    %561 = vector.shape_cast %560 : vector<1x1x2x64xbf16> to vector<2x64xbf16>
    %c0_848 = arith.constant 0 : index
    %c0_849 = arith.constant 0 : index
    %562 = vector.load %arg15[%c0_848, %c0_849] : memref<8x64xbf16, #tpu.memory_space<vmem>>, vector<2x64xbf16>
    tpu.vector_store %arg15[%c0_848, %c0_849], %561 {strides = array<i32>} : memref<8x64xbf16, #tpu.memory_space<vmem>>, vector<2x64xbf16>,
    %c0_850 = arith.constant 0 : index
    %c1_851 = arith.constant 1 : index
    %c3_852 = arith.constant 3 : index
    %c0_853 = arith.constant 0 : index
    %563 = vector.load %arg13[%c0_850, %c1_851, %c3_852, %c0_853] : memref<2x5x5x64xbf16, #tpu.memory_space<vmem>>, vector<1x1x2x64xbf16>
    %564 = vector.shape_cast %563 : vector<1x1x2x64xbf16> to vector<2x64xbf16>
    %c2_854 = arith.constant 2 : index
    %c0_855 = arith.constant 0 : index
    %565 = vector.load %arg15[%c2_854, %c0_855] : memref<8x64xbf16, #tpu.memory_space<vmem>>, vector<2x64xbf16>
    tpu.vector_store %arg15[%c2_854, %c0_855], %564 {strides = array<i32>} : memref<8x64xbf16, #tpu.memory_space<vmem>>, vector<2x64xbf16>,
    %c1_856 = arith.constant 1 : index
    %c0_857 = arith.constant 0 : index
    %c3_858 = arith.constant 3 : index
    %c0_859 = arith.constant 0 : index
    %566 = vector.load %arg13[%c1_856, %c0_857, %c3_858, %c0_859] : memref<2x5x5x64xbf16, #tpu.memory_space<vmem>>, vector<1x1x2x64xbf16>
    %567 = vector.shape_cast %566 : vector<1x1x2x64xbf16> to vector<2x64xbf16>
    %c4_860 = arith.constant 4 : index
    %c0_861 = arith.constant 0 : index
    %568 = vector.load %arg15[%c4_860, %c0_861] : memref<8x64xbf16, #tpu.memory_space<vmem>>, vector<2x64xbf16>
    tpu.vector_store %arg15[%c4_860, %c0_861], %567 {strides = array<i32>} : memref<8x64xbf16, #tpu.memory_space<vmem>>, vector<2x64xbf16>,
    %c1_862 = arith.constant 1 : index
    %c1_863 = arith.constant 1 : index
    %c3_864 = arith.constant 3 : index
    %c0_865 = arith.constant 0 : index
    %569 = vector.load %arg13[%c1_862, %c1_863, %c3_864, %c0_865] : memref<2x5x5x64xbf16, #tpu.memory_space<vmem>>, vector<1x1x2x64xbf16>
    %570 = vector.shape_cast %569 : vector<1x1x2x64xbf16> to vector<2x64xbf16>
    %c6_866 = arith.constant 6 : index
    %c0_867 = arith.constant 0 : index
    %571 = vector.load %arg15[%c6_866, %c0_867] : memref<8x64xbf16, #tpu.memory_space<vmem>>, vector<2x64xbf16>
    tpu.vector_store %arg15[%c6_866, %c0_867], %570 {strides = array<i32>} : memref<8x64xbf16, #tpu.memory_space<vmem>>, vector<2x64xbf16>,
    %c0_868 = arith.constant 0 : index
    %c0_869 = arith.constant 0 : index
    %572 = vector.load %arg15[%c0_868, %c0_869] : memref<8x64xbf16, #tpu.memory_space<vmem>>, vector<8x64xbf16>
    %c3_870 = arith.constant 3 : index
    %c0_871 = arith.constant 0 : index
    %c0_872 = arith.constant 0 : index
    %573 = vector.load %arg9[%c3_870, %c0_871, %c0_872] : memref<16x64x128xbf16, #tpu.memory_space<vmem>>, vector<1x64x128xbf16>
    %574 = vector.shape_cast %573 : vector<1x64x128xbf16> to vector<64x128xbf16>
    %cst_873 = arith.constant dense<0.000000e+00> : vector<8x128xf32>
    %575 = tpu.matmul %572, %574, %cst_873 {dimension_numbers = #tpu.dot_dimension_numbers<[1], [0], [0], [1], [0, 0, 1, 1], [], []>} : vector<8x64xbf16>, vector<64x128xbf16>, vector<8x128xf32> -> vector<8x128xf32>
    %576 = arith.addf %559, %575 : vector<8x128xf32>
    %c0_874 = arith.constant 0 : index
    %c1_875 = arith.constant 1 : index
    %c0_876 = arith.constant 0 : index
    %c0_877 = arith.constant 0 : index
    %577 = vector.load %arg13[%c0_874, %c1_875, %c0_876, %c0_877] : memref<2x5x5x64xbf16, #tpu.memory_space<vmem>>, vector<1x1x2x64xbf16>
    %578 = vector.shape_cast %577 : vector<1x1x2x64xbf16> to vector<2x64xbf16>
    %c0_878 = arith.constant 0 : index
    %c0_879 = arith.constant 0 : index
    %579 = vector.load %arg15[%c0_878, %c0_879] : memref<8x64xbf16, #tpu.memory_space<vmem>>, vector<2x64xbf16>
    tpu.vector_store %arg15[%c0_878, %c0_879], %578 {strides = array<i32>} : memref<8x64xbf16, #tpu.memory_space<vmem>>, vector<2x64xbf16>,
    %c0_880 = arith.constant 0 : index
    %c2_881 = arith.constant 2 : index
    %c0_882 = arith.constant 0 : index
    %c0_883 = arith.constant 0 : index
    %580 = vector.load %arg13[%c0_880, %c2_881, %c0_882, %c0_883] : memref<2x5x5x64xbf16, #tpu.memory_space<vmem>>, vector<1x1x2x64xbf16>
    %581 = vector.shape_cast %580 : vector<1x1x2x64xbf16> to vector<2x64xbf16>
    %c2_884 = arith.constant 2 : index
    %c0_885 = arith.constant 0 : index
    %582 = vector.load %arg15[%c2_884, %c0_885] : memref<8x64xbf16, #tpu.memory_space<vmem>>, vector<2x64xbf16>
    tpu.vector_store %arg15[%c2_884, %c0_885], %581 {strides = array<i32>} : memref<8x64xbf16, #tpu.memory_space<vmem>>, vector<2x64xbf16>,
    %c1_886 = arith.constant 1 : index
    %c1_887 = arith.constant 1 : index
    %c0_888 = arith.constant 0 : index
    %c0_889 = arith.constant 0 : index
    %583 = vector.load %arg13[%c1_886, %c1_887, %c0_888, %c0_889] : memref<2x5x5x64xbf16, #tpu.memory_space<vmem>>, vector<1x1x2x64xbf16>
    %584 = vector.shape_cast %583 : vector<1x1x2x64xbf16> to vector<2x64xbf16>
    %c4_890 = arith.constant 4 : index
    %c0_891 = arith.constant 0 : index
    %585 = vector.load %arg15[%c4_890, %c0_891] : memref<8x64xbf16, #tpu.memory_space<vmem>>, vector<2x64xbf16>
    tpu.vector_store %arg15[%c4_890, %c0_891], %584 {strides = array<i32>} : memref<8x64xbf16, #tpu.memory_space<vmem>>, vector<2x64xbf16>,
    %c1_892 = arith.constant 1 : index
    %c2_893 = arith.constant 2 : index
    %c0_894 = arith.constant 0 : index
    %c0_895 = arith.constant 0 : index
    %586 = vector.load %arg13[%c1_892, %c2_893, %c0_894, %c0_895] : memref<2x5x5x64xbf16, #tpu.memory_space<vmem>>, vector<1x1x2x64xbf16>
    %587 = vector.shape_cast %586 : vector<1x1x2x64xbf16> to vector<2x64xbf16>
    %c6_896 = arith.constant 6 : index
    %c0_897 = arith.constant 0 : index
    %588 = vector.load %arg15[%c6_896, %c0_897] : memref<8x64xbf16, #tpu.memory_space<vmem>>, vector<2x64xbf16>
    tpu.vector_store %arg15[%c6_896, %c0_897], %587 {strides = array<i32>} : memref<8x64xbf16, #tpu.memory_space<vmem>>, vector<2x64xbf16>,
    %c0_898 = arith.constant 0 : index
    %c0_899 = arith.constant 0 : index
    %589 = vector.load %arg15[%c0_898, %c0_899] : memref<8x64xbf16, #tpu.memory_space<vmem>>, vector<8x64xbf16>
    %c4_900 = arith.constant 4 : index
    %c0_901 = arith.constant 0 : index
    %c0_902 = arith.constant 0 : index
    %590 = vector.load %arg9[%c4_900, %c0_901, %c0_902] : memref<16x64x128xbf16, #tpu.memory_space<vmem>>, vector<1x64x128xbf16>
    %591 = vector.shape_cast %590 : vector<1x64x128xbf16> to vector<64x128xbf16>
    %cst_903 = arith.constant dense<0.000000e+00> : vector<8x128xf32>
    %592 = tpu.matmul %589, %591, %cst_903 {dimension_numbers = #tpu.dot_dimension_numbers<[1], [0], [0], [1], [0, 0, 1, 1], [], []>} : vector<8x64xbf16>, vector<64x128xbf16>, vector<8x128xf32> -> vector<8x128xf32>
    %593 = arith.addf %576, %592 : vector<8x128xf32>
    %c0_904 = arith.constant 0 : index
    %c1_905 = arith.constant 1 : index
    %c1_906 = arith.constant 1 : index
    %c0_907 = arith.constant 0 : index
    %594 = vector.load %arg13[%c0_904, %c1_905, %c1_906, %c0_907] : memref<2x5x5x64xbf16, #tpu.memory_space<vmem>>, vector<1x1x2x64xbf16>
    %595 = vector.shape_cast %594 : vector<1x1x2x64xbf16> to vector<2x64xbf16>
    %c0_908 = arith.constant 0 : index
    %c0_909 = arith.constant 0 : index
    %596 = vector.load %arg15[%c0_908, %c0_909] : memref<8x64xbf16, #tpu.memory_space<vmem>>, vector<2x64xbf16>
    tpu.vector_store %arg15[%c0_908, %c0_909], %595 {strides = array<i32>} : memref<8x64xbf16, #tpu.memory_space<vmem>>, vector<2x64xbf16>,
    %c0_910 = arith.constant 0 : index
    %c2_911 = arith.constant 2 : index
    %c1_912 = arith.constant 1 : index
    %c0_913 = arith.constant 0 : index
    %597 = vector.load %arg13[%c0_910, %c2_911, %c1_912, %c0_913] : memref<2x5x5x64xbf16, #tpu.memory_space<vmem>>, vector<1x1x2x64xbf16>
    %598 = vector.shape_cast %597 : vector<1x1x2x64xbf16> to vector<2x64xbf16>
    %c2_914 = arith.constant 2 : index
    %c0_915 = arith.constant 0 : index
    %599 = vector.load %arg15[%c2_914, %c0_915] : memref<8x64xbf16, #tpu.memory_space<vmem>>, vector<2x64xbf16>
    tpu.vector_store %arg15[%c2_914, %c0_915], %598 {strides = array<i32>} : memref<8x64xbf16, #tpu.memory_space<vmem>>, vector<2x64xbf16>,
    %c1_916 = arith.constant 1 : index
    %c1_917 = arith.constant 1 : index
    %c1_918 = arith.constant 1 : index
    %c0_919 = arith.constant 0 : index
    %600 = vector.load %arg13[%c1_916, %c1_917, %c1_918, %c0_919] : memref<2x5x5x64xbf16, #tpu.memory_space<vmem>>, vector<1x1x2x64xbf16>
    %601 = vector.shape_cast %600 : vector<1x1x2x64xbf16> to vector<2x64xbf16>
    %c4_920 = arith.constant 4 : index
    %c0_921 = arith.constant 0 : index
    %602 = vector.load %arg15[%c4_920, %c0_921] : memref<8x64xbf16, #tpu.memory_space<vmem>>, vector<2x64xbf16>
    tpu.vector_store %arg15[%c4_920, %c0_921], %601 {strides = array<i32>} : memref<8x64xbf16, #tpu.memory_space<vmem>>, vector<2x64xbf16>,
    %c1_922 = arith.constant 1 : index
    %c2_923 = arith.constant 2 : index
    %c1_924 = arith.constant 1 : index
    %c0_925 = arith.constant 0 : index
    %603 = vector.load %arg13[%c1_922, %c2_923, %c1_924, %c0_925] : memref<2x5x5x64xbf16, #tpu.memory_space<vmem>>, vector<1x1x2x64xbf16>
    %604 = vector.shape_cast %603 : vector<1x1x2x64xbf16> to vector<2x64xbf16>
    %c6_926 = arith.constant 6 : index
    %c0_927 = arith.constant 0 : index
    %605 = vector.load %arg15[%c6_926, %c0_927] : memref<8x64xbf16, #tpu.memory_space<vmem>>, vector<2x64xbf16>
    tpu.vector_store %arg15[%c6_926, %c0_927], %604 {strides = array<i32>} : memref<8x64xbf16, #tpu.memory_space<vmem>>, vector<2x64xbf16>,
    %c0_928 = arith.constant 0 : index
    %c0_929 = arith.constant 0 : index
    %606 = vector.load %arg15[%c0_928, %c0_929] : memref<8x64xbf16, #tpu.memory_space<vmem>>, vector<8x64xbf16>
    %c5_930 = arith.constant 5 : index
    %c0_931 = arith.constant 0 : index
    %c0_932 = arith.constant 0 : index
    %607 = vector.load %arg9[%c5_930, %c0_931, %c0_932] : memref<16x64x128xbf16, #tpu.memory_space<vmem>>, vector<1x64x128xbf16>
    %608 = vector.shape_cast %607 : vector<1x64x128xbf16> to vector<64x128xbf16>
    %cst_933 = arith.constant dense<0.000000e+00> : vector<8x128xf32>
    %609 = tpu.matmul %606, %608, %cst_933 {dimension_numbers = #tpu.dot_dimension_numbers<[1], [0], [0], [1], [0, 0, 1, 1], [], []>} : vector<8x64xbf16>, vector<64x128xbf16>, vector<8x128xf32> -> vector<8x128xf32>
    %610 = arith.addf %593, %609 : vector<8x128xf32>
    %c0_934 = arith.constant 0 : index
    %c1_935 = arith.constant 1 : index
    %c2_936 = arith.constant 2 : index
    %c0_937 = arith.constant 0 : index
    %611 = vector.load %arg13[%c0_934, %c1_935, %c2_936, %c0_937] : memref<2x5x5x64xbf16, #tpu.memory_space<vmem>>, vector<1x1x2x64xbf16>
    %612 = vector.shape_cast %611 : vector<1x1x2x64xbf16> to vector<2x64xbf16>
    %c0_938 = arith.constant 0 : index
    %c0_939 = arith.constant 0 : index
    %613 = vector.load %arg15[%c0_938, %c0_939] : memref<8x64xbf16, #tpu.memory_space<vmem>>, vector<2x64xbf16>
    tpu.vector_store %arg15[%c0_938, %c0_939], %612 {strides = array<i32>} : memref<8x64xbf16, #tpu.memory_space<vmem>>, vector<2x64xbf16>,
    %c0_940 = arith.constant 0 : index
    %c2_941 = arith.constant 2 : index
    %c2_942 = arith.constant 2 : index
    %c0_943 = arith.constant 0 : index
    %614 = vector.load %arg13[%c0_940, %c2_941, %c2_942, %c0_943] : memref<2x5x5x64xbf16, #tpu.memory_space<vmem>>, vector<1x1x2x64xbf16>
    %615 = vector.shape_cast %614 : vector<1x1x2x64xbf16> to vector<2x64xbf16>
    %c2_944 = arith.constant 2 : index
    %c0_945 = arith.constant 0 : index
    %616 = vector.load %arg15[%c2_944, %c0_945] : memref<8x64xbf16, #tpu.memory_space<vmem>>, vector<2x64xbf16>
    tpu.vector_store %arg15[%c2_944, %c0_945], %615 {strides = array<i32>} : memref<8x64xbf16, #tpu.memory_space<vmem>>, vector<2x64xbf16>,
    %c1_946 = arith.constant 1 : index
    %c1_947 = arith.constant 1 : index
    %c2_948 = arith.constant 2 : index
    %c0_949 = arith.constant 0 : index
    %617 = vector.load %arg13[%c1_946, %c1_947, %c2_948, %c0_949] : memref<2x5x5x64xbf16, #tpu.memory_space<vmem>>, vector<1x1x2x64xbf16>
    %618 = vector.shape_cast %617 : vector<1x1x2x64xbf16> to vector<2x64xbf16>
    %c4_950 = arith.constant 4 : index
    %c0_951 = arith.constant 0 : index
    %619 = vector.load %arg15[%c4_950, %c0_951] : memref<8x64xbf16, #tpu.memory_space<vmem>>, vector<2x64xbf16>
    tpu.vector_store %arg15[%c4_950, %c0_951], %618 {strides = array<i32>} : memref<8x64xbf16, #tpu.memory_space<vmem>>, vector<2x64xbf16>,
    %c1_952 = arith.constant 1 : index
    %c2_953 = arith.constant 2 : index
    %c2_954 = arith.constant 2 : index
    %c0_955 = arith.constant 0 : index
    %620 = vector.load %arg13[%c1_952, %c2_953, %c2_954, %c0_955] : memref<2x5x5x64xbf16, #tpu.memory_space<vmem>>, vector<1x1x2x64xbf16>
    %621 = vector.shape_cast %620 : vector<1x1x2x64xbf16> to vector<2x64xbf16>
    %c6_956 = arith.constant 6 : index
    %c0_957 = arith.constant 0 : index
    %622 = vector.load %arg15[%c6_956, %c0_957] : memref<8x64xbf16, #tpu.memory_space<vmem>>, vector<2x64xbf16>
    tpu.vector_store %arg15[%c6_956, %c0_957], %621 {strides = array<i32>} : memref<8x64xbf16, #tpu.memory_space<vmem>>, vector<2x64xbf16>,
    %c0_958 = arith.constant 0 : index
    %c0_959 = arith.constant 0 : index
    %623 = vector.load %arg15[%c0_958, %c0_959] : memref<8x64xbf16, #tpu.memory_space<vmem>>, vector<8x64xbf16>
    %c6_960 = arith.constant 6 : index
    %c0_961 = arith.constant 0 : index
    %c0_962 = arith.constant 0 : index
    %624 = vector.load %arg9[%c6_960, %c0_961, %c0_962] : memref<16x64x128xbf16, #tpu.memory_space<vmem>>, vector<1x64x128xbf16>
    %625 = vector.shape_cast %624 : vector<1x64x128xbf16> to vector<64x128xbf16>
    %cst_963 = arith.constant dense<0.000000e+00> : vector<8x128xf32>
    %626 = tpu.matmul %623, %625, %cst_963 {dimension_numbers = #tpu.dot_dimension_numbers<[1], [0], [0], [1], [0, 0, 1, 1], [], []>} : vector<8x64xbf16>, vector<64x128xbf16>, vector<8x128xf32> -> vector<8x128xf32>
    %627 = arith.addf %610, %626 : vector<8x128xf32>
    %c0_964 = arith.constant 0 : index
    %c1_965 = arith.constant 1 : index
    %c3_966 = arith.constant 3 : index
    %c0_967 = arith.constant 0 : index
    %628 = vector.load %arg13[%c0_964, %c1_965, %c3_966, %c0_967] : memref<2x5x5x64xbf16, #tpu.memory_space<vmem>>, vector<1x1x2x64xbf16>
    %629 = vector.shape_cast %628 : vector<1x1x2x64xbf16> to vector<2x64xbf16>
    %c0_968 = arith.constant 0 : index
    %c0_969 = arith.constant 0 : index
    %630 = vector.load %arg15[%c0_968, %c0_969] : memref<8x64xbf16, #tpu.memory_space<vmem>>, vector<2x64xbf16>
    tpu.vector_store %arg15[%c0_968, %c0_969], %629 {strides = array<i32>} : memref<8x64xbf16, #tpu.memory_space<vmem>>, vector<2x64xbf16>,
    %c0_970 = arith.constant 0 : index
    %c2_971 = arith.constant 2 : index
    %c3_972 = arith.constant 3 : index
    %c0_973 = arith.constant 0 : index
    %631 = vector.load %arg13[%c0_970, %c2_971, %c3_972, %c0_973] : memref<2x5x5x64xbf16, #tpu.memory_space<vmem>>, vector<1x1x2x64xbf16>
    %632 = vector.shape_cast %631 : vector<1x1x2x64xbf16> to vector<2x64xbf16>
    %c2_974 = arith.constant 2 : index
    %c0_975 = arith.constant 0 : index
    %633 = vector.load %arg15[%c2_974, %c0_975] : memref<8x64xbf16, #tpu.memory_space<vmem>>, vector<2x64xbf16>
    tpu.vector_store %arg15[%c2_974, %c0_975], %632 {strides = array<i32>} : memref<8x64xbf16, #tpu.memory_space<vmem>>, vector<2x64xbf16>,
    %c1_976 = arith.constant 1 : index
    %c1_977 = arith.constant 1 : index
    %c3_978 = arith.constant 3 : index
    %c0_979 = arith.constant 0 : index
    %634 = vector.load %arg13[%c1_976, %c1_977, %c3_978, %c0_979] : memref<2x5x5x64xbf16, #tpu.memory_space<vmem>>, vector<1x1x2x64xbf16>
    %635 = vector.shape_cast %634 : vector<1x1x2x64xbf16> to vector<2x64xbf16>
    %c4_980 = arith.constant 4 : index
    %c0_981 = arith.constant 0 : index
    %636 = vector.load %arg15[%c4_980, %c0_981] : memref<8x64xbf16, #tpu.memory_space<vmem>>, vector<2x64xbf16>
    tpu.vector_store %arg15[%c4_980, %c0_981], %635 {strides = array<i32>} : memref<8x64xbf16, #tpu.memory_space<vmem>>, vector<2x64xbf16>,
    %c1_982 = arith.constant 1 : index
    %c2_983 = arith.constant 2 : index
    %c3_984 = arith.constant 3 : index
    %c0_985 = arith.constant 0 : index
    %637 = vector.load %arg13[%c1_982, %c2_983, %c3_984, %c0_985] : memref<2x5x5x64xbf16, #tpu.memory_space<vmem>>, vector<1x1x2x64xbf16>
    %638 = vector.shape_cast %637 : vector<1x1x2x64xbf16> to vector<2x64xbf16>
    %c6_986 = arith.constant 6 : index
    %c0_987 = arith.constant 0 : index
    %639 = vector.load %arg15[%c6_986, %c0_987] : memref<8x64xbf16, #tpu.memory_space<vmem>>, vector<2x64xbf16>
    tpu.vector_store %arg15[%c6_986, %c0_987], %638 {strides = array<i32>} : memref<8x64xbf16, #tpu.memory_space<vmem>>, vector<2x64xbf16>,
    %c0_988 = arith.constant 0 : index
    %c0_989 = arith.constant 0 : index
    %640 = vector.load %arg15[%c0_988, %c0_989] : memref<8x64xbf16, #tpu.memory_space<vmem>>, vector<8x64xbf16>
    %c7_990 = arith.constant 7 : index
    %c0_991 = arith.constant 0 : index
    %c0_992 = arith.constant 0 : index
    %641 = vector.load %arg9[%c7_990, %c0_991, %c0_992] : memref<16x64x128xbf16, #tpu.memory_space<vmem>>, vector<1x64x128xbf16>
    %642 = vector.shape_cast %641 : vector<1x64x128xbf16> to vector<64x128xbf16>
    %cst_993 = arith.constant dense<0.000000e+00> : vector<8x128xf32>
    %643 = tpu.matmul %640, %642, %cst_993 {dimension_numbers = #tpu.dot_dimension_numbers<[1], [0], [0], [1], [0, 0, 1, 1], [], []>} : vector<8x64xbf16>, vector<64x128xbf16>, vector<8x128xf32> -> vector<8x128xf32>
    %644 = arith.addf %627, %643 : vector<8x128xf32>
    %c0_994 = arith.constant 0 : index
    %c2_995 = arith.constant 2 : index
    %c0_996 = arith.constant 0 : index
    %c0_997 = arith.constant 0 : index
    %645 = vector.load %arg13[%c0_994, %c2_995, %c0_996, %c0_997] : memref<2x5x5x64xbf16, #tpu.memory_space<vmem>>, vector<1x1x2x64xbf16>
    %646 = vector.shape_cast %645 : vector<1x1x2x64xbf16> to vector<2x64xbf16>
    %c0_998 = arith.constant 0 : index
    %c0_999 = arith.constant 0 : index
    %647 = vector.load %arg15[%c0_998, %c0_999] : memref<8x64xbf16, #tpu.memory_space<vmem>>, vector<2x64xbf16>
    tpu.vector_store %arg15[%c0_998, %c0_999], %646 {strides = array<i32>} : memref<8x64xbf16, #tpu.memory_space<vmem>>, vector<2x64xbf16>,
    %c0_1000 = arith.constant 0 : index
    %c3_1001 = arith.constant 3 : index
    %c0_1002 = arith.constant 0 : index
    %c0_1003 = arith.constant 0 : index
    %648 = vector.load %arg13[%c0_1000, %c3_1001, %c0_1002, %c0_1003] : memref<2x5x5x64xbf16, #tpu.memory_space<vmem>>, vector<1x1x2x64xbf16>
    %649 = vector.shape_cast %648 : vector<1x1x2x64xbf16> to vector<2x64xbf16>
    %c2_1004 = arith.constant 2 : index
    %c0_1005 = arith.constant 0 : index
    %650 = vector.load %arg15[%c2_1004, %c0_1005] : memref<8x64xbf16, #tpu.memory_space<vmem>>, vector<2x64xbf16>
    tpu.vector_store %arg15[%c2_1004, %c0_1005], %649 {strides = array<i32>} : memref<8x64xbf16, #tpu.memory_space<vmem>>, vector<2x64xbf16>,
    %c1_1006 = arith.constant 1 : index
    %c2_1007 = arith.constant 2 : index
    %c0_1008 = arith.constant 0 : index
    %c0_1009 = arith.constant 0 : index
    %651 = vector.load %arg13[%c1_1006, %c2_1007, %c0_1008, %c0_1009] : memref<2x5x5x64xbf16, #tpu.memory_space<vmem>>, vector<1x1x2x64xbf16>
    %652 = vector.shape_cast %651 : vector<1x1x2x64xbf16> to vector<2x64xbf16>
    %c4_1010 = arith.constant 4 : index
    %c0_1011 = arith.constant 0 : index
    %653 = vector.load %arg15[%c4_1010, %c0_1011] : memref<8x64xbf16, #tpu.memory_space<vmem>>, vector<2x64xbf16>
    tpu.vector_store %arg15[%c4_1010, %c0_1011], %652 {strides = array<i32>} : memref<8x64xbf16, #tpu.memory_space<vmem>>, vector<2x64xbf16>,
    %c1_1012 = arith.constant 1 : index
    %c3_1013 = arith.constant 3 : index
    %c0_1014 = arith.constant 0 : index
    %c0_1015 = arith.constant 0 : index
    %654 = vector.load %arg13[%c1_1012, %c3_1013, %c0_1014, %c0_1015] : memref<2x5x5x64xbf16, #tpu.memory_space<vmem>>, vector<1x1x2x64xbf16>
    %655 = vector.shape_cast %654 : vector<1x1x2x64xbf16> to vector<2x64xbf16>
    %c6_1016 = arith.constant 6 : index
    %c0_1017 = arith.constant 0 : index
    %656 = vector.load %arg15[%c6_1016, %c0_1017] : memref<8x64xbf16, #tpu.memory_space<vmem>>, vector<2x64xbf16>
    tpu.vector_store %arg15[%c6_1016, %c0_1017], %655 {strides = array<i32>} : memref<8x64xbf16, #tpu.memory_space<vmem>>, vector<2x64xbf16>,
    %c0_1018 = arith.constant 0 : index
    %c0_1019 = arith.constant 0 : index
    %657 = vector.load %arg15[%c0_1018, %c0_1019] : memref<8x64xbf16, #tpu.memory_space<vmem>>, vector<8x64xbf16>
    %c8_1020 = arith.constant 8 : index
    %c0_1021 = arith.constant 0 : index
    %c0_1022 = arith.constant 0 : index
    %658 = vector.load %arg9[%c8_1020, %c0_1021, %c0_1022] : memref<16x64x128xbf16, #tpu.memory_space<vmem>>, vector<1x64x128xbf16>
    %659 = vector.shape_cast %658 : vector<1x64x128xbf16> to vector<64x128xbf16>
    %cst_1023 = arith.constant dense<0.000000e+00> : vector<8x128xf32>
    %660 = tpu.matmul %657, %659, %cst_1023 {dimension_numbers = #tpu.dot_dimension_numbers<[1], [0], [0], [1], [0, 0, 1, 1], [], []>} : vector<8x64xbf16>, vector<64x128xbf16>, vector<8x128xf32> -> vector<8x128xf32>
    %661 = arith.addf %644, %660 : vector<8x128xf32>
    %c0_1024 = arith.constant 0 : index
    %c2_1025 = arith.constant 2 : index
    %c1_1026 = arith.constant 1 : index
    %c0_1027 = arith.constant 0 : index
    %662 = vector.load %arg13[%c0_1024, %c2_1025, %c1_1026, %c0_1027] : memref<2x5x5x64xbf16, #tpu.memory_space<vmem>>, vector<1x1x2x64xbf16>
    %663 = vector.shape_cast %662 : vector<1x1x2x64xbf16> to vector<2x64xbf16>
    %c0_1028 = arith.constant 0 : index
    %c0_1029 = arith.constant 0 : index
    %664 = vector.load %arg15[%c0_1028, %c0_1029] : memref<8x64xbf16, #tpu.memory_space<vmem>>, vector<2x64xbf16>
    tpu.vector_store %arg15[%c0_1028, %c0_1029], %663 {strides = array<i32>} : memref<8x64xbf16, #tpu.memory_space<vmem>>, vector<2x64xbf16>,
    %c0_1030 = arith.constant 0 : index
    %c3_1031 = arith.constant 3 : index
    %c1_1032 = arith.constant 1 : index
    %c0_1033 = arith.constant 0 : index
    %665 = vector.load %arg13[%c0_1030, %c3_1031, %c1_1032, %c0_1033] : memref<2x5x5x64xbf16, #tpu.memory_space<vmem>>, vector<1x1x2x64xbf16>
    %666 = vector.shape_cast %665 : vector<1x1x2x64xbf16> to vector<2x64xbf16>
    %c2_1034 = arith.constant 2 : index
    %c0_1035 = arith.constant 0 : index
    %667 = vector.load %arg15[%c2_1034, %c0_1035] : memref<8x64xbf16, #tpu.memory_space<vmem>>, vector<2x64xbf16>
    tpu.vector_store %arg15[%c2_1034, %c0_1035], %666 {strides = array<i32>} : memref<8x64xbf16, #tpu.memory_space<vmem>>, vector<2x64xbf16>,
    %c1_1036 = arith.constant 1 : index
    %c2_1037 = arith.constant 2 : index
    %c1_1038 = arith.constant 1 : index
    %c0_1039 = arith.constant 0 : index
    %668 = vector.load %arg13[%c1_1036, %c2_1037, %c1_1038, %c0_1039] : memref<2x5x5x64xbf16, #tpu.memory_space<vmem>>, vector<1x1x2x64xbf16>
    %669 = vector.shape_cast %668 : vector<1x1x2x64xbf16> to vector<2x64xbf16>
    %c4_1040 = arith.constant 4 : index
    %c0_1041 = arith.constant 0 : index
    %670 = vector.load %arg15[%c4_1040, %c0_1041] : memref<8x64xbf16, #tpu.memory_space<vmem>>, vector<2x64xbf16>
    tpu.vector_store %arg15[%c4_1040, %c0_1041], %669 {strides = array<i32>} : memref<8x64xbf16, #tpu.memory_space<vmem>>, vector<2x64xbf16>,
    %c1_1042 = arith.constant 1 : index
    %c3_1043 = arith.constant 3 : index
    %c1_1044 = arith.constant 1 : index
    %c0_1045 = arith.constant 0 : index
    %671 = vector.load %arg13[%c1_1042, %c3_1043, %c1_1044, %c0_1045] : memref<2x5x5x64xbf16, #tpu.memory_space<vmem>>, vector<1x1x2x64xbf16>
    %672 = vector.shape_cast %671 : vector<1x1x2x64xbf16> to vector<2x64xbf16>
    %c6_1046 = arith.constant 6 : index
    %c0_1047 = arith.constant 0 : index
    %673 = vector.load %arg15[%c6_1046, %c0_1047] : memref<8x64xbf16, #tpu.memory_space<vmem>>, vector<2x64xbf16>
    tpu.vector_store %arg15[%c6_1046, %c0_1047], %672 {strides = array<i32>} : memref<8x64xbf16, #tpu.memory_space<vmem>>, vector<2x64xbf16>,
    %c0_1048 = arith.constant 0 : index
    %c0_1049 = arith.constant 0 : index
    %674 = vector.load %arg15[%c0_1048, %c0_1049] : memref<8x64xbf16, #tpu.memory_space<vmem>>, vector<8x64xbf16>
    %c9_1050 = arith.constant 9 : index
    %c0_1051 = arith.constant 0 : index
    %c0_1052 = arith.constant 0 : index
    %675 = vector.load %arg9[%c9_1050, %c0_1051, %c0_1052] : memref<16x64x128xbf16, #tpu.memory_space<vmem>>, vector<1x64x128xbf16>
    %676 = vector.shape_cast %675 : vector<1x64x128xbf16> to vector<64x128xbf16>
    %cst_1053 = arith.constant dense<0.000000e+00> : vector<8x128xf32>
    %677 = tpu.matmul %674, %676, %cst_1053 {dimension_numbers = #tpu.dot_dimension_numbers<[1], [0], [0], [1], [0, 0, 1, 1], [], []>} : vector<8x64xbf16>, vector<64x128xbf16>, vector<8x128xf32> -> vector<8x128xf32>
    %678 = arith.addf %661, %677 : vector<8x128xf32>
    %c0_1054 = arith.constant 0 : index
    %c2_1055 = arith.constant 2 : index
    %c2_1056 = arith.constant 2 : index
    %c0_1057 = arith.constant 0 : index
    %679 = vector.load %arg13[%c0_1054, %c2_1055, %c2_1056, %c0_1057] : memref<2x5x5x64xbf16, #tpu.memory_space<vmem>>, vector<1x1x2x64xbf16>
    %680 = vector.shape_cast %679 : vector<1x1x2x64xbf16> to vector<2x64xbf16>
    %c0_1058 = arith.constant 0 : index
    %c0_1059 = arith.constant 0 : index
    %681 = vector.load %arg15[%c0_1058, %c0_1059] : memref<8x64xbf16, #tpu.memory_space<vmem>>, vector<2x64xbf16>
    tpu.vector_store %arg15[%c0_1058, %c0_1059], %680 {strides = array<i32>} : memref<8x64xbf16, #tpu.memory_space<vmem>>, vector<2x64xbf16>,
    %c0_1060 = arith.constant 0 : index
    %c3_1061 = arith.constant 3 : index
    %c2_1062 = arith.constant 2 : index
    %c0_1063 = arith.constant 0 : index
    %682 = vector.load %arg13[%c0_1060, %c3_1061, %c2_1062, %c0_1063] : memref<2x5x5x64xbf16, #tpu.memory_space<vmem>>, vector<1x1x2x64xbf16>
    %683 = vector.shape_cast %682 : vector<1x1x2x64xbf16> to vector<2x64xbf16>
    %c2_1064 = arith.constant 2 : index
    %c0_1065 = arith.constant 0 : index
    %684 = vector.load %arg15[%c2_1064, %c0_1065] : memref<8x64xbf16, #tpu.memory_space<vmem>>, vector<2x64xbf16>
    tpu.vector_store %arg15[%c2_1064, %c0_1065], %683 {strides = array<i32>} : memref<8x64xbf16, #tpu.memory_space<vmem>>, vector<2x64xbf16>,
    %c1_1066 = arith.constant 1 : index
    %c2_1067 = arith.constant 2 : index
    %c2_1068 = arith.constant 2 : index
    %c0_1069 = arith.constant 0 : index
    %685 = vector.load %arg13[%c1_1066, %c2_1067, %c2_1068, %c0_1069] : memref<2x5x5x64xbf16, #tpu.memory_space<vmem>>, vector<1x1x2x64xbf16>
    %686 = vector.shape_cast %685 : vector<1x1x2x64xbf16> to vector<2x64xbf16>
    %c4_1070 = arith.constant 4 : index
    %c0_1071 = arith.constant 0 : index
    %687 = vector.load %arg15[%c4_1070, %c0_1071] : memref<8x64xbf16, #tpu.memory_space<vmem>>, vector<2x64xbf16>
    tpu.vector_store %arg15[%c4_1070, %c0_1071], %686 {strides = array<i32>} : memref<8x64xbf16, #tpu.memory_space<vmem>>, vector<2x64xbf16>,
    %c1_1072 = arith.constant 1 : index
    %c3_1073 = arith.constant 3 : index
    %c2_1074 = arith.constant 2 : index
    %c0_1075 = arith.constant 0 : index
    %688 = vector.load %arg13[%c1_1072, %c3_1073, %c2_1074, %c0_1075] : memref<2x5x5x64xbf16, #tpu.memory_space<vmem>>, vector<1x1x2x64xbf16>
    %689 = vector.shape_cast %688 : vector<1x1x2x64xbf16> to vector<2x64xbf16>
    %c6_1076 = arith.constant 6 : index
    %c0_1077 = arith.constant 0 : index
    %690 = vector.load %arg15[%c6_1076, %c0_1077] : memref<8x64xbf16, #tpu.memory_space<vmem>>, vector<2x64xbf16>
    tpu.vector_store %arg15[%c6_1076, %c0_1077], %689 {strides = array<i32>} : memref<8x64xbf16, #tpu.memory_space<vmem>>, vector<2x64xbf16>,
    %c0_1078 = arith.constant 0 : index
    %c0_1079 = arith.constant 0 : index
    %691 = vector.load %arg15[%c0_1078, %c0_1079] : memref<8x64xbf16, #tpu.memory_space<vmem>>, vector<8x64xbf16>
    %c10_1080 = arith.constant 10 : index
    %c0_1081 = arith.constant 0 : index
    %c0_1082 = arith.constant 0 : index
    %692 = vector.load %arg9[%c10_1080, %c0_1081, %c0_1082] : memref<16x64x128xbf16, #tpu.memory_space<vmem>>, vector<1x64x128xbf16>
    %693 = vector.shape_cast %692 : vector<1x64x128xbf16> to vector<64x128xbf16>
    %cst_1083 = arith.constant dense<0.000000e+00> : vector<8x128xf32>
    %694 = tpu.matmul %691, %693, %cst_1083 {dimension_numbers = #tpu.dot_dimension_numbers<[1], [0], [0], [1], [0, 0, 1, 1], [], []>} : vector<8x64xbf16>, vector<64x128xbf16>, vector<8x128xf32> -> vector<8x128xf32>
    %695 = arith.addf %678, %694 : vector<8x128xf32>
    %c0_1084 = arith.constant 0 : index
    %c2_1085 = arith.constant 2 : index
    %c3_1086 = arith.constant 3 : index
    %c0_1087 = arith.constant 0 : index
    %696 = vector.load %arg13[%c0_1084, %c2_1085, %c3_1086, %c0_1087] : memref<2x5x5x64xbf16, #tpu.memory_space<vmem>>, vector<1x1x2x64xbf16>
    %697 = vector.shape_cast %696 : vector<1x1x2x64xbf16> to vector<2x64xbf16>
    %c0_1088 = arith.constant 0 : index
    %c0_1089 = arith.constant 0 : index
    %698 = vector.load %arg15[%c0_1088, %c0_1089] : memref<8x64xbf16, #tpu.memory_space<vmem>>, vector<2x64xbf16>
    tpu.vector_store %arg15[%c0_1088, %c0_1089], %697 {strides = array<i32>} : memref<8x64xbf16, #tpu.memory_space<vmem>>, vector<2x64xbf16>,
    %c0_1090 = arith.constant 0 : index
    %c3_1091 = arith.constant 3 : index
    %c3_1092 = arith.constant 3 : index
    %c0_1093 = arith.constant 0 : index
    %699 = vector.load %arg13[%c0_1090, %c3_1091, %c3_1092, %c0_1093] : memref<2x5x5x64xbf16, #tpu.memory_space<vmem>>, vector<1x1x2x64xbf16>
    %700 = vector.shape_cast %699 : vector<1x1x2x64xbf16> to vector<2x64xbf16>
    %c2_1094 = arith.constant 2 : index
    %c0_1095 = arith.constant 0 : index
    %701 = vector.load %arg15[%c2_1094, %c0_1095] : memref<8x64xbf16, #tpu.memory_space<vmem>>, vector<2x64xbf16>
    tpu.vector_store %arg15[%c2_1094, %c0_1095], %700 {strides = array<i32>} : memref<8x64xbf16, #tpu.memory_space<vmem>>, vector<2x64xbf16>,
    %c1_1096 = arith.constant 1 : index
    %c2_1097 = arith.constant 2 : index
    %c3_1098 = arith.constant 3 : index
    %c0_1099 = arith.constant 0 : index
    %702 = vector.load %arg13[%c1_1096, %c2_1097, %c3_1098, %c0_1099] : memref<2x5x5x64xbf16, #tpu.memory_space<vmem>>, vector<1x1x2x64xbf16>
    %703 = vector.shape_cast %702 : vector<1x1x2x64xbf16> to vector<2x64xbf16>
    %c4_1100 = arith.constant 4 : index
    %c0_1101 = arith.constant 0 : index
    %704 = vector.load %arg15[%c4_1100, %c0_1101] : memref<8x64xbf16, #tpu.memory_space<vmem>>, vector<2x64xbf16>
    tpu.vector_store %arg15[%c4_1100, %c0_1101], %703 {strides = array<i32>} : memref<8x64xbf16, #tpu.memory_space<vmem>>, vector<2x64xbf16>,
    %c1_1102 = arith.constant 1 : index
    %c3_1103 = arith.constant 3 : index
    %c3_1104 = arith.constant 3 : index
    %c0_1105 = arith.constant 0 : index
    %705 = vector.load %arg13[%c1_1102, %c3_1103, %c3_1104, %c0_1105] : memref<2x5x5x64xbf16, #tpu.memory_space<vmem>>, vector<1x1x2x64xbf16>
    %706 = vector.shape_cast %705 : vector<1x1x2x64xbf16> to vector<2x64xbf16>
    %c6_1106 = arith.constant 6 : index
    %c0_1107 = arith.constant 0 : index
    %707 = vector.load %arg15[%c6_1106, %c0_1107] : memref<8x64xbf16, #tpu.memory_space<vmem>>, vector<2x64xbf16>
    tpu.vector_store %arg15[%c6_1106, %c0_1107], %706 {strides = array<i32>} : memref<8x64xbf16, #tpu.memory_space<vmem>>, vector<2x64xbf16>,
    %c0_1108 = arith.constant 0 : index
    %c0_1109 = arith.constant 0 : index
    %708 = vector.load %arg15[%c0_1108, %c0_1109] : memref<8x64xbf16, #tpu.memory_space<vmem>>, vector<8x64xbf16>
    %c11_1110 = arith.constant 11 : index
    %c0_1111 = arith.constant 0 : index
    %c0_1112 = arith.constant 0 : index
    %709 = vector.load %arg9[%c11_1110, %c0_1111, %c0_1112] : memref<16x64x128xbf16, #tpu.memory_space<vmem>>, vector<1x64x128xbf16>
    %710 = vector.shape_cast %709 : vector<1x64x128xbf16> to vector<64x128xbf16>
    %cst_1113 = arith.constant dense<0.000000e+00> : vector<8x128xf32>
    %711 = tpu.matmul %708, %710, %cst_1113 {dimension_numbers = #tpu.dot_dimension_numbers<[1], [0], [0], [1], [0, 0, 1, 1], [], []>} : vector<8x64xbf16>, vector<64x128xbf16>, vector<8x128xf32> -> vector<8x128xf32>
    %712 = arith.addf %695, %711 : vector<8x128xf32>
    %c0_1114 = arith.constant 0 : index
    %c3_1115 = arith.constant 3 : index
    %c0_1116 = arith.constant 0 : index
    %c0_1117 = arith.constant 0 : index
    %713 = vector.load %arg13[%c0_1114, %c3_1115, %c0_1116, %c0_1117] : memref<2x5x5x64xbf16, #tpu.memory_space<vmem>>, vector<1x1x2x64xbf16>
    %714 = vector.shape_cast %713 : vector<1x1x2x64xbf16> to vector<2x64xbf16>
    %c0_1118 = arith.constant 0 : index
    %c0_1119 = arith.constant 0 : index
    %715 = vector.load %arg15[%c0_1118, %c0_1119] : memref<8x64xbf16, #tpu.memory_space<vmem>>, vector<2x64xbf16>
    tpu.vector_store %arg15[%c0_1118, %c0_1119], %714 {strides = array<i32>} : memref<8x64xbf16, #tpu.memory_space<vmem>>, vector<2x64xbf16>,
    %c0_1120 = arith.constant 0 : index
    %c4_1121 = arith.constant 4 : index
    %c0_1122 = arith.constant 0 : index
    %c0_1123 = arith.constant 0 : index
    %716 = vector.load %arg13[%c0_1120, %c4_1121, %c0_1122, %c0_1123] : memref<2x5x5x64xbf16, #tpu.memory_space<vmem>>, vector<1x1x2x64xbf16>
    %717 = vector.shape_cast %716 : vector<1x1x2x64xbf16> to vector<2x64xbf16>
    %c2_1124 = arith.constant 2 : index
    %c0_1125 = arith.constant 0 : index
    %718 = vector.load %arg15[%c2_1124, %c0_1125] : memref<8x64xbf16, #tpu.memory_space<vmem>>, vector<2x64xbf16>
    tpu.vector_store %arg15[%c2_1124, %c0_1125], %717 {strides = array<i32>} : memref<8x64xbf16, #tpu.memory_space<vmem>>, vector<2x64xbf16>,
    %c1_1126 = arith.constant 1 : index
    %c3_1127 = arith.constant 3 : index
    %c0_1128 = arith.constant 0 : index
    %c0_1129 = arith.constant 0 : index
    %719 = vector.load %arg13[%c1_1126, %c3_1127, %c0_1128, %c0_1129] : memref<2x5x5x64xbf16, #tpu.memory_space<vmem>>, vector<1x1x2x64xbf16>
    %720 = vector.shape_cast %719 : vector<1x1x2x64xbf16> to vector<2x64xbf16>
    %c4_1130 = arith.constant 4 : index
    %c0_1131 = arith.constant 0 : index
    %721 = vector.load %arg15[%c4_1130, %c0_1131] : memref<8x64xbf16, #tpu.memory_space<vmem>>, vector<2x64xbf16>
    tpu.vector_store %arg15[%c4_1130, %c0_1131], %720 {strides = array<i32>} : memref<8x64xbf16, #tpu.memory_space<vmem>>, vector<2x64xbf16>,
    %c1_1132 = arith.constant 1 : index
    %c4_1133 = arith.constant 4 : index
    %c0_1134 = arith.constant 0 : index
    %c0_1135 = arith.constant 0 : index
    %722 = vector.load %arg13[%c1_1132, %c4_1133, %c0_1134, %c0_1135] : memref<2x5x5x64xbf16, #tpu.memory_space<vmem>>, vector<1x1x2x64xbf16>
    %723 = vector.shape_cast %722 : vector<1x1x2x64xbf16> to vector<2x64xbf16>
    %c6_1136 = arith.constant 6 : index
    %c0_1137 = arith.constant 0 : index
    %724 = vector.load %arg15[%c6_1136, %c0_1137] : memref<8x64xbf16, #tpu.memory_space<vmem>>, vector<2x64xbf16>
    tpu.vector_store %arg15[%c6_1136, %c0_1137], %723 {strides = array<i32>} : memref<8x64xbf16, #tpu.memory_space<vmem>>, vector<2x64xbf16>,
    %c0_1138 = arith.constant 0 : index
    %c0_1139 = arith.constant 0 : index
    %725 = vector.load %arg15[%c0_1138, %c0_1139] : memref<8x64xbf16, #tpu.memory_space<vmem>>, vector<8x64xbf16>
    %c12_1140 = arith.constant 12 : index
    %c0_1141 = arith.constant 0 : index
    %c0_1142 = arith.constant 0 : index
    %726 = vector.load %arg9[%c12_1140, %c0_1141, %c0_1142] : memref<16x64x128xbf16, #tpu.memory_space<vmem>>, vector<1x64x128xbf16>
    %727 = vector.shape_cast %726 : vector<1x64x128xbf16> to vector<64x128xbf16>
    %cst_1143 = arith.constant dense<0.000000e+00> : vector<8x128xf32>
    %728 = tpu.matmul %725, %727, %cst_1143 {dimension_numbers = #tpu.dot_dimension_numbers<[1], [0], [0], [1], [0, 0, 1, 1], [], []>} : vector<8x64xbf16>, vector<64x128xbf16>, vector<8x128xf32> -> vector<8x128xf32>
    %729 = arith.addf %712, %728 : vector<8x128xf32>
    %c0_1144 = arith.constant 0 : index
    %c3_1145 = arith.constant 3 : index
    %c1_1146 = arith.constant 1 : index
    %c0_1147 = arith.constant 0 : index
    %730 = vector.load %arg13[%c0_1144, %c3_1145, %c1_1146, %c0_1147] : memref<2x5x5x64xbf16, #tpu.memory_space<vmem>>, vector<1x1x2x64xbf16>
    %731 = vector.shape_cast %730 : vector<1x1x2x64xbf16> to vector<2x64xbf16>
    %c0_1148 = arith.constant 0 : index
    %c0_1149 = arith.constant 0 : index
    %732 = vector.load %arg15[%c0_1148, %c0_1149] : memref<8x64xbf16, #tpu.memory_space<vmem>>, vector<2x64xbf16>
    tpu.vector_store %arg15[%c0_1148, %c0_1149], %731 {strides = array<i32>} : memref<8x64xbf16, #tpu.memory_space<vmem>>, vector<2x64xbf16>,
    %c0_1150 = arith.constant 0 : index
    %c4_1151 = arith.constant 4 : index
    %c1_1152 = arith.constant 1 : index
    %c0_1153 = arith.constant 0 : index
    %733 = vector.load %arg13[%c0_1150, %c4_1151, %c1_1152, %c0_1153] : memref<2x5x5x64xbf16, #tpu.memory_space<vmem>>, vector<1x1x2x64xbf16>
    %734 = vector.shape_cast %733 : vector<1x1x2x64xbf16> to vector<2x64xbf16>
    %c2_1154 = arith.constant 2 : index
    %c0_1155 = arith.constant 0 : index
    %735 = vector.load %arg15[%c2_1154, %c0_1155] : memref<8x64xbf16, #tpu.memory_space<vmem>>, vector<2x64xbf16>
    tpu.vector_store %arg15[%c2_1154, %c0_1155], %734 {strides = array<i32>} : memref<8x64xbf16, #tpu.memory_space<vmem>>, vector<2x64xbf16>,
    %c1_1156 = arith.constant 1 : index
    %c3_1157 = arith.constant 3 : index
    %c1_1158 = arith.constant 1 : index
    %c0_1159 = arith.constant 0 : index
    %736 = vector.load %arg13[%c1_1156, %c3_1157, %c1_1158, %c0_1159] : memref<2x5x5x64xbf16, #tpu.memory_space<vmem>>, vector<1x1x2x64xbf16>
    %737 = vector.shape_cast %736 : vector<1x1x2x64xbf16> to vector<2x64xbf16>
    %c4_1160 = arith.constant 4 : index
    %c0_1161 = arith.constant 0 : index
    %738 = vector.load %arg15[%c4_1160, %c0_1161] : memref<8x64xbf16, #tpu.memory_space<vmem>>, vector<2x64xbf16>
    tpu.vector_store %arg15[%c4_1160, %c0_1161], %737 {strides = array<i32>} : memref<8x64xbf16, #tpu.memory_space<vmem>>, vector<2x64xbf16>,
    %c1_1162 = arith.constant 1 : index
    %c4_1163 = arith.constant 4 : index
    %c1_1164 = arith.constant 1 : index
    %c0_1165 = arith.constant 0 : index
    %739 = vector.load %arg13[%c1_1162, %c4_1163, %c1_1164, %c0_1165] : memref<2x5x5x64xbf16, #tpu.memory_space<vmem>>, vector<1x1x2x64xbf16>
    %740 = vector.shape_cast %739 : vector<1x1x2x64xbf16> to vector<2x64xbf16>
    %c6_1166 = arith.constant 6 : index
    %c0_1167 = arith.constant 0 : index
    %741 = vector.load %arg15[%c6_1166, %c0_1167] : memref<8x64xbf16, #tpu.memory_space<vmem>>, vector<2x64xbf16>
    tpu.vector_store %arg15[%c6_1166, %c0_1167], %740 {strides = array<i32>} : memref<8x64xbf16, #tpu.memory_space<vmem>>, vector<2x64xbf16>,
    %c0_1168 = arith.constant 0 : index
    %c0_1169 = arith.constant 0 : index
    %742 = vector.load %arg15[%c0_1168, %c0_1169] : memref<8x64xbf16, #tpu.memory_space<vmem>>, vector<8x64xbf16>
    %c13_1170 = arith.constant 13 : index
    %c0_1171 = arith.constant 0 : index
    %c0_1172 = arith.constant 0 : index
    %743 = vector.load %arg9[%c13_1170, %c0_1171, %c0_1172] : memref<16x64x128xbf16, #tpu.memory_space<vmem>>, vector<1x64x128xbf16>
    %744 = vector.shape_cast %743 : vector<1x64x128xbf16> to vector<64x128xbf16>
    %cst_1173 = arith.constant dense<0.000000e+00> : vector<8x128xf32>
    %745 = tpu.matmul %742, %744, %cst_1173 {dimension_numbers = #tpu.dot_dimension_numbers<[1], [0], [0], [1], [0, 0, 1, 1], [], []>} : vector<8x64xbf16>, vector<64x128xbf16>, vector<8x128xf32> -> vector<8x128xf32>
    %746 = arith.addf %729, %745 : vector<8x128xf32>
    %c0_1174 = arith.constant 0 : index
    %c3_1175 = arith.constant 3 : index
    %c2_1176 = arith.constant 2 : index
    %c0_1177 = arith.constant 0 : index
    %747 = vector.load %arg13[%c0_1174, %c3_1175, %c2_1176, %c0_1177] : memref<2x5x5x64xbf16, #tpu.memory_space<vmem>>, vector<1x1x2x64xbf16>
    %748 = vector.shape_cast %747 : vector<1x1x2x64xbf16> to vector<2x64xbf16>
    %c0_1178 = arith.constant 0 : index
    %c0_1179 = arith.constant 0 : index
    %749 = vector.load %arg15[%c0_1178, %c0_1179] : memref<8x64xbf16, #tpu.memory_space<vmem>>, vector<2x64xbf16>
    tpu.vector_store %arg15[%c0_1178, %c0_1179], %748 {strides = array<i32>} : memref<8x64xbf16, #tpu.memory_space<vmem>>, vector<2x64xbf16>,
    %c0_1180 = arith.constant 0 : index
    %c4_1181 = arith.constant 4 : index
    %c2_1182 = arith.constant 2 : index
    %c0_1183 = arith.constant 0 : index
    %750 = vector.load %arg13[%c0_1180, %c4_1181, %c2_1182, %c0_1183] : memref<2x5x5x64xbf16, #tpu.memory_space<vmem>>, vector<1x1x2x64xbf16>
    %751 = vector.shape_cast %750 : vector<1x1x2x64xbf16> to vector<2x64xbf16>
    %c2_1184 = arith.constant 2 : index
    %c0_1185 = arith.constant 0 : index
    %752 = vector.load %arg15[%c2_1184, %c0_1185] : memref<8x64xbf16, #tpu.memory_space<vmem>>, vector<2x64xbf16>
    tpu.vector_store %arg15[%c2_1184, %c0_1185], %751 {strides = array<i32>} : memref<8x64xbf16, #tpu.memory_space<vmem>>, vector<2x64xbf16>,
    %c1_1186 = arith.constant 1 : index
    %c3_1187 = arith.constant 3 : index
    %c2_1188 = arith.constant 2 : index
    %c0_1189 = arith.constant 0 : index
    %753 = vector.load %arg13[%c1_1186, %c3_1187, %c2_1188, %c0_1189] : memref<2x5x5x64xbf16, #tpu.memory_space<vmem>>, vector<1x1x2x64xbf16>
    %754 = vector.shape_cast %753 : vector<1x1x2x64xbf16> to vector<2x64xbf16>
    %c4_1190 = arith.constant 4 : index
    %c0_1191 = arith.constant 0 : index
    %755 = vector.load %arg15[%c4_1190, %c0_1191] : memref<8x64xbf16, #tpu.memory_space<vmem>>, vector<2x64xbf16>
    tpu.vector_store %arg15[%c4_1190, %c0_1191], %754 {strides = array<i32>} : memref<8x64xbf16, #tpu.memory_space<vmem>>, vector<2x64xbf16>,
    %c1_1192 = arith.constant 1 : index
    %c4_1193 = arith.constant 4 : index
    %c2_1194 = arith.constant 2 : index
    %c0_1195 = arith.constant 0 : index
    %756 = vector.load %arg13[%c1_1192, %c4_1193, %c2_1194, %c0_1195] : memref<2x5x5x64xbf16, #tpu.memory_space<vmem>>, vector<1x1x2x64xbf16>
    %757 = vector.shape_cast %756 : vector<1x1x2x64xbf16> to vector<2x64xbf16>
    %c6_1196 = arith.constant 6 : index
    %c0_1197 = arith.constant 0 : index
    %758 = vector.load %arg15[%c6_1196, %c0_1197] : memref<8x64xbf16, #tpu.memory_space<vmem>>, vector<2x64xbf16>
    tpu.vector_store %arg15[%c6_1196, %c0_1197], %757 {strides = array<i32>} : memref<8x64xbf16, #tpu.memory_space<vmem>>, vector<2x64xbf16>,
    %c0_1198 = arith.constant 0 : index
    %c0_1199 = arith.constant 0 : index
    %759 = vector.load %arg15[%c0_1198, %c0_1199] : memref<8x64xbf16, #tpu.memory_space<vmem>>, vector<8x64xbf16>
    %c14_1200 = arith.constant 14 : index
    %c0_1201 = arith.constant 0 : index
    %c0_1202 = arith.constant 0 : index
    %760 = vector.load %arg9[%c14_1200, %c0_1201, %c0_1202] : memref<16x64x128xbf16, #tpu.memory_space<vmem>>, vector<1x64x128xbf16>
    %761 = vector.shape_cast %760 : vector<1x64x128xbf16> to vector<64x128xbf16>
    %cst_1203 = arith.constant dense<0.000000e+00> : vector<8x128xf32>
    %762 = tpu.matmul %759, %761, %cst_1203 {dimension_numbers = #tpu.dot_dimension_numbers<[1], [0], [0], [1], [0, 0, 1, 1], [], []>} : vector<8x64xbf16>, vector<64x128xbf16>, vector<8x128xf32> -> vector<8x128xf32>
    %763 = arith.addf %746, %762 : vector<8x128xf32>
    %c0_1204 = arith.constant 0 : index
    %c3_1205 = arith.constant 3 : index
    %c3_1206 = arith.constant 3 : index
    %c0_1207 = arith.constant 0 : index
    %764 = vector.load %arg13[%c0_1204, %c3_1205, %c3_1206, %c0_1207] : memref<2x5x5x64xbf16, #tpu.memory_space<vmem>>, vector<1x1x2x64xbf16>
    %765 = vector.shape_cast %764 : vector<1x1x2x64xbf16> to vector<2x64xbf16>
    %c0_1208 = arith.constant 0 : index
    %c0_1209 = arith.constant 0 : index
    %766 = vector.load %arg15[%c0_1208, %c0_1209] : memref<8x64xbf16, #tpu.memory_space<vmem>>, vector<2x64xbf16>
    tpu.vector_store %arg15[%c0_1208, %c0_1209], %765 {strides = array<i32>} : memref<8x64xbf16, #tpu.memory_space<vmem>>, vector<2x64xbf16>,
    %c0_1210 = arith.constant 0 : index
    %c4_1211 = arith.constant 4 : index
    %c3_1212 = arith.constant 3 : index
    %c0_1213 = arith.constant 0 : index
    %767 = vector.load %arg13[%c0_1210, %c4_1211, %c3_1212, %c0_1213] : memref<2x5x5x64xbf16, #tpu.memory_space<vmem>>, vector<1x1x2x64xbf16>
    %768 = vector.shape_cast %767 : vector<1x1x2x64xbf16> to vector<2x64xbf16>
    %c2_1214 = arith.constant 2 : index
    %c0_1215 = arith.constant 0 : index
    %769 = vector.load %arg15[%c2_1214, %c0_1215] : memref<8x64xbf16, #tpu.memory_space<vmem>>, vector<2x64xbf16>
    tpu.vector_store %arg15[%c2_1214, %c0_1215], %768 {strides = array<i32>} : memref<8x64xbf16, #tpu.memory_space<vmem>>, vector<2x64xbf16>,
    %c1_1216 = arith.constant 1 : index
    %c3_1217 = arith.constant 3 : index
    %c3_1218 = arith.constant 3 : index
    %c0_1219 = arith.constant 0 : index
    %770 = vector.load %arg13[%c1_1216, %c3_1217, %c3_1218, %c0_1219] : memref<2x5x5x64xbf16, #tpu.memory_space<vmem>>, vector<1x1x2x64xbf16>
    %771 = vector.shape_cast %770 : vector<1x1x2x64xbf16> to vector<2x64xbf16>
    %c4_1220 = arith.constant 4 : index
    %c0_1221 = arith.constant 0 : index
    %772 = vector.load %arg15[%c4_1220, %c0_1221] : memref<8x64xbf16, #tpu.memory_space<vmem>>, vector<2x64xbf16>
    tpu.vector_store %arg15[%c4_1220, %c0_1221], %771 {strides = array<i32>} : memref<8x64xbf16, #tpu.memory_space<vmem>>, vector<2x64xbf16>,
    %c1_1222 = arith.constant 1 : index
    %c4_1223 = arith.constant 4 : index
    %c3_1224 = arith.constant 3 : index
    %c0_1225 = arith.constant 0 : index
    %773 = vector.load %arg13[%c1_1222, %c4_1223, %c3_1224, %c0_1225] : memref<2x5x5x64xbf16, #tpu.memory_space<vmem>>, vector<1x1x2x64xbf16>
    %774 = vector.shape_cast %773 : vector<1x1x2x64xbf16> to vector<2x64xbf16>
    %c6_1226 = arith.constant 6 : index
    %c0_1227 = arith.constant 0 : index
    %775 = vector.load %arg15[%c6_1226, %c0_1227] : memref<8x64xbf16, #tpu.memory_space<vmem>>, vector<2x64xbf16>
    tpu.vector_store %arg15[%c6_1226, %c0_1227], %774 {strides = array<i32>} : memref<8x64xbf16, #tpu.memory_space<vmem>>, vector<2x64xbf16>,
    %c0_1228 = arith.constant 0 : index
    %c0_1229 = arith.constant 0 : index
    %776 = vector.load %arg15[%c0_1228, %c0_1229] : memref<8x64xbf16, #tpu.memory_space<vmem>>, vector<8x64xbf16>
    %c15_1230 = arith.constant 15 : index
    %c0_1231 = arith.constant 0 : index
    %c0_1232 = arith.constant 0 : index
    %777 = vector.load %arg9[%c15_1230, %c0_1231, %c0_1232] : memref<16x64x128xbf16, #tpu.memory_space<vmem>>, vector<1x64x128xbf16>
    %778 = vector.shape_cast %777 : vector<1x64x128xbf16> to vector<64x128xbf16>
    %cst_1233 = arith.constant dense<0.000000e+00> : vector<8x128xf32>
    %779 = tpu.matmul %776, %778, %cst_1233 {dimension_numbers = #tpu.dot_dimension_numbers<[1], [0], [0], [1], [0, 0, 1, 1], [], []>} : vector<8x64xbf16>, vector<64x128xbf16>, vector<8x128xf32> -> vector<8x128xf32>
    %780 = arith.addf %763, %779 : vector<8x128xf32>
    %c0_1234 = arith.constant 0 : index
    %c0_1235 = arith.constant 0 : index
    %781 = vector.load %arg10[%c0_1234, %c0_1235] : memref<1x128xf32, #tpu.memory_space<vmem>>, vector<1x128xf32>
    %782 = vector.broadcast %781 : vector<1x128xf32> to vector<8x128xf32>
    %783 = arith.addf %780, %782 : vector<8x128xf32>
    %c0_1236 = arith.constant 0 : index
    %c0_1237 = arith.constant 0 : index
    %784 = vector.load %arg11[%c0_1236, %c0_1237] : memref<8x128xf32, #tpu.memory_space<vmem>>, vector<8x128xf32>
    tpu.vector_store %arg11[%c0_1236, %c0_1237], %783 {strides = array<i32>} : memref<8x128xf32, #tpu.memory_space<vmem>>, vector<8x128xf32>,
    return
  }
}

</mosaic_0001>

<bundles_post_ra>
// kernel: discriminator_forward.2
= control target key start
LH: loop header
LB: loop body
LE: loop exit
PB: predicated region body
PF: predicated region fallthrough
CT: control target
= control target key end

     0   :  { %vm835_vm0 = vcmask 64512   ;;  %vm837_vm1 = vcmask 57344   ;;  %v5053_v33 = vmov 0.0   ;;  %vm1125_vm2 = vcmask 1043456   ;;  %s6684_s1 = inlined_call_operand.vmem [shape: bf16[128,8], index: 1, kind: input, shape index: {}]   ;;  %s6685_s0 = inlined_call_operand.vmem [shape: bf16[512,128], index: 0, kind: input, shape index: {}]   ;;  %s6686_s3 = inlined_call_operand.vmem [shape: bf16[16,8,16], index: 3, kind: input, shape index: {}]   ;;  %s6687_s2 = inlined_call_operand.vmem [shape: f32[1,8], index: 2, kind: input, shape index: {}]   ;;  %s6688_s4 = inlined_call_operand.vmem [shape: f32[1,16], index: 4, kind: input, shape index: {}]   ;;  %s6689_s5 = inlined_call_operand.vmem [shape: f32[1,16], index: 5, kind: input, shape index: {}]   ;;  %s6690_s6 = inlined_call_operand.vmem [shape: f32[1,16], index: 6, kind: input, shape index: {}]   ;;  %s6691_s7 = inlined_call_operand.vmem [shape: bf16[128,16], index: 7, kind: output, shape index: {}]  }
   0x1   :  { %v5008_v0 = vld [vmem:[%s6684_s1] sm:$0xff]   ;;  %v5009_v1 = vld [vmem:[%s6684_s1 + $0x8] sm:$0xff]   ;;  %v5010_v2 = vld [vmem:[%s6684_s1 + $0x10] sm:$0xff]   ;;  %843 = vst.msk [vmem:[#allocation2 + $0x30] sm:$0xff] %vm835_vm0, %v5053_v33 }
   0x2   :  { %4380 = vmatprep.subr.bf16.mxu0 %v5008_v0  ;;  %v5011_v3 = vld [vmem:[%s6684_s1 + $0x18] sm:$0xff]   ;;  %v5016_v4 = vld [vmem:[%s6685_s0] sm:$0xff]   ;;  %v5013_v6 = vld [vmem:[%s6684_s1 + $0x28] sm:$0xff]   ;;  %844 = vst.msk [vmem:[#allocation2 + $0x38] sm:$0x1] %vm837_vm1, %v5053_v33 }
   0x3   :  { %4381 = vmatpush3.bf16.msra.mxu0 %v5008_v0  ;;  %4396 = vmatprep.mubr.bf16.mxu0 %v5016_v4  ;;  %v5012_v5 = vld [vmem:[%s6684_s1 + $0x20] sm:$0xff]   ;;  %v5014_v7 = vld [vmem:[%s6684_s1 + $0x30] sm:$0xff]   ;;  %v5015_v8 = vld [vmem:[%s6684_s1 + $0x38] sm:$0xff]   ;;  %836 = vst.msk [vmem:[#allocation2] sm:$0xff] %vm835_vm0, %v5053_v33 }
   0x4   :  { %4382 = vmatprep.subr.bf16.mxu0 %v5009_v1  ;;  %v5017_v9 = vld [vmem:[%s6685_s0 + $0x8] sm:$0xff]   ;;  %v5018_v10 = vld [vmem:[%s6685_s0 + $0x10] sm:$0xff]   ;;  %v5019_v11 = vld [vmem:[%s6685_s0 + $0x18] sm:$0xff]   ;;  %838 = vst.msk [vmem:[#allocation2 + $0x8] sm:$0x1] %vm837_vm1, %v5053_v33 }
   0x5   :  { %v5020_v12 = vld [vmem:[%s6685_s0 + $0x20] sm:$0xff]   ;;  %v5021_v13 = vld [vmem:[%s6685_s0 + $0x28] sm:$0xff]   ;;  %v5022_v14 = vld [vmem:[%s6685_s0 + $0x30] sm:$0xff]   ;;  %839 = vst.msk [vmem:[#allocation2 + $0x10] sm:$0xff] %vm835_vm0, %v5053_v33 }
   0x6   :  { %v5023_v15 = vld [vmem:[%s6685_s0 + $0x38] sm:$0xff]   ;;  %v5024_v16 = vld [vmem:[%s6685_s0 + $0x40] sm:$0xff]   ;;  %v5025_v17 = vld [vmem:[%s6685_s0 + $0x48] sm:$0xff]   ;;  %840 = vst.msk [vmem:[#allocation2 + $0x18] sm:$0x1] %vm837_vm1, %v5053_v33 }
   0x7   :  { %4383 = vmatpush3.bf16.msra.mxu0 %v5009_v1  ;;  %v5026_v18 = vld [vmem:[%s6685_s0 + $0x50] sm:$0xff]   ;;  %v5027_v19 = vld [vmem:[%s6685_s0 + $0x58] sm:$0xff]   ;;  %v5028_v20 = vld [vmem:[%s6685_s0 + $0x60] sm:$0xff]   ;;  %841 = vst.msk [vmem:[#allocation2 + $0x20] sm:$0xff] %vm835_vm0, %v5053_v33 }
   0x8   :  { %4384 = vmatprep.subr.bf16.mxu0 %v5010_v2  ;;  %v5029_v21 = vld [vmem:[%s6685_s0 + $0x68] sm:$0xff]   ;;  %v5030_v22 = vld [vmem:[%s6685_s0 + $0x70] sm:$0xff]   ;;  %v5031_v23 = vld [vmem:[%s6685_s0 + $0x78] sm:$0xff]   ;;  %842 = vst.msk [vmem:[#allocation2 + $0x28] sm:$0x1] %vm837_vm1, %v5053_v33 }
   0x9   :  { %v5032_v24 = vld [vmem:[%s6685_s0 + $0x80] sm:$0xff]   ;;  %v5033_v25 = vld [vmem:[%s6685_s0 + $0x88] sm:$0xff]   ;;  %v5034_v26 = vld [vmem:[%s6685_s0 + $0x90] sm:$0xff]   ;;  %845 = vst.msk [vmem:[#allocation2 + $0x40] sm:$0xff] %vm835_vm0, %v5053_v33 }
   0xa   :  { %v5035_v27 = vld [vmem:[%s6685_s0 + $0x98] sm:$0xff]   ;;  %v5036_v28 = vld [vmem:[%s6685_s0 + $0xa0] sm:$0xff]   ;;  %v5037_v29 = vld [vmem:[%s6685_s0 + $0xa8] sm:$0xff]   ;;  %846 = vst.msk [vmem:[#allocation2 + $0x48] sm:$0x1] %vm837_vm1, %v5053_v33 }
   0xb   :  { %4385 = vmatpush3.bf16.msra.mxu0 %v5010_v2  ;;  %v5038_v30 = vld [vmem:[%s6685_s0 + $0xb0] sm:$0xff]   ;;  %v5039_v31 = vld [vmem:[%s6685_s0 + $0xb8] sm:$0xff]   ;;  %v5193_v32 = vld [vmem:[%s6685_s0 + $0xc0] sm:$0xff]   ;;  %847 = vst.msk [vmem:[#allocation2 + $0x50] sm:$0xff] %vm835_vm0, %v5053_v33 }
   0xc   :  { %4386 = vmatprep.subr.bf16.mxu0 %v5011_v3  ;;  %848 = vst.msk [vmem:[#allocation2 + $0x58] sm:$0x1] %vm837_vm1, %v5053_v33  ;;  %850 = vst.msk [vmem:[#allocation2 + $0x68] sm:$0x1] %vm837_vm1, %v5053_v33  ;;  %v5041_v34 = vld [vmem:[%s6685_s0 + $0xc8] sm:$0xff]   ;;  %v5042_v35 = vld [vmem:[%s6685_s0 + $0xd0] sm:$0xff]  }
   0xd   :  { %849 = vst.msk [vmem:[#allocation2 + $0x60] sm:$0xff] %vm835_vm0, %v5053_v33  ;;  %851 = vst.msk [vmem:[#allocation2 + $0x70] sm:$0xff] %vm835_vm0, %v5053_v33  ;;  %v5043_v36 = vld [vmem:[%s6685_s0 + $0xd8] sm:$0xff]   ;;  %v5044_v37 = vld [vmem:[%s6685_s0 + $0xe0] sm:$0xff]  }
   0xe   :  { %852 = vst.msk [vmem:[#allocation2 + $0x78] sm:$0x1] %vm837_vm1, %v5053_v33  ;;  %854 = vst.msk [vmem:[#allocation2 + $0x88] sm:$0x1] %vm837_vm1, %v5053_v33  ;;  %v5045_v38 = vld [vmem:[%s6685_s0 + $0xe8] sm:$0xff]   ;;  %v5046_v39 = vld [vmem:[%s6685_s0 + $0xf0] sm:$0xff]  }
   0xf   :  { %4387 = vmatpush3.bf16.msra.mxu0 %v5011_v3  ;;  %853 = vst.msk [vmem:[#allocation2 + $0x80] sm:$0xff] %vm835_vm0, %v5053_v33  ;;  %855 = vst.msk [vmem:[#allocation2 + $0x90] sm:$0xff] %vm835_vm0, %v5053_v33  ;;  %v5047_v40 = vld [vmem:[%s6685_s0 + $0xf8] sm:$0xff]   ;;  %v4020_v41 = vld [vmem:[%s6686_s3 + $0x4] sm:$0xf] }
  0x10   :  { %4388 = vmatprep.subr.bf16.mxu0 %v5012_v5  ;;  %856 = vst.msk [vmem:[#allocation2 + $0x98] sm:$0x1] %vm837_vm1, %v5053_v33  ;;  %858 = vst.msk [vmem:[#allocation2 + $0xa8] sm:$0x1] %vm837_vm1, %v5053_v33  ;;  %v1127_v42 = vsel %vm1125_vm2, %v4020_v41, 0 }
  0x11   :  { %857 = vst.msk [vmem:[#allocation2 + $0xa0] sm:$0xff] %vm835_vm0, %v5053_v33  ;;  %859 = vst.msk [vmem:[#allocation2 + $0xb0] sm:$0xff] %vm835_vm0, %v5053_v33  ;;  %v5513_v43 = vld [vmem:[%s6686_s3] sm:$0xf]  ;;  %v4064_v45 = vld [vmem:[%s6686_s3 + $0x14] sm:$0xf] }
  0x12   :  { %860 = vst.msk [vmem:[#allocation2 + $0xb8] sm:$0x1] %vm837_vm1, %v5053_v33  ;;  %862 = vst.msk [vmem:[#allocation2 + $0xc8] sm:$0x1] %vm837_vm1, %v5053_v33  ;;  %v5520_v44 = vld [vmem:[%s6687_s2] ss:$0 sm:$0xff]  ;;  %4996 = vmatprep.subr.msk.bf16.mxu1 %vm1125_vm2, %v4064_v45 }
  0x13   :  { %4389 = vmatpush3.bf16.msra.mxu0 %v5012_v5  ;;  %861 = vst.msk [vmem:[#allocation2 + $0xc0] sm:$0xff] %vm835_vm0, %v5053_v33  ;;  %863 = vst.msk [vmem:[#allocation2 + $0xd0] sm:$0xff] %vm835_vm0, %v5053_v33  ;;  %v5527_v47 = vsel %vm1125_vm2, %v4064_v45, 0  ;;  %v4073_v55 = vld [vmem:[%s6686_s3 + $0x18] sm:$0xf] }
  0x14   :  { %4390 = vmatprep.subr.bf16.mxu0 %v5013_v6  ;;  %864 = vst.msk [vmem:[#allocation2 + $0xd8] sm:$0x1] %vm837_vm1, %v5053_v33  ;;  %866 = vst.msk [vmem:[#allocation2 + $0xe8] sm:$0x1] %vm837_vm1, %v5053_v33  ;;  %4749 = vmatpush3.bf16.msra.mxu1 %v5527_v47 }
  0x15   :  { %865 = vst.msk [vmem:[#allocation2 + $0xe0] sm:$0xff] %vm835_vm0, %v5053_v33  ;;  %867 = vst.msk [vmem:[#allocation2 + $0xf0] sm:$0xff] %vm835_vm0, %v5053_v33  ;;  %4997 = vmatprep.subr.msk.bf16.mxu1 %vm1125_vm2, %v4073_v55 }
  0x16   :  { %868 = vst.msk [vmem:[#allocation2 + $0xf8] sm:$0x1] %vm837_vm1, %v5053_v33  ;;  %870 = vst.msk [vmem:[#allocation2 + $0x108] sm:$0x1] %vm837_vm1, %v5053_v33 }
  0x17   :  { %4391 = vmatpush3.bf16.msra.mxu0 %v5013_v6  ;;  %869 = vst.msk [vmem:[#allocation2 + $0x100] sm:$0xff] %vm835_vm0, %v5053_v33  ;;  %871 = vst.msk [vmem:[#allocation2 + $0x110] sm:$0xff] %vm835_vm0, %v5053_v33 }
  0x18   :  { %4392 = vmatprep.subr.bf16.mxu0 %v5014_v7  ;;  %872 = vst.msk [vmem:[#allocation2 + $0x118] sm:$0x1] %vm837_vm1, %v5053_v33  ;;  %874 = vst.msk [vmem:[#allocation2 + $0x128] sm:$0x1] %vm837_vm1, %v5053_v33 }
  0x19   :  { %873 = vst.msk [vmem:[#allocation2 + $0x120] sm:$0xff] %vm835_vm0, %v5053_v33  ;;  %875 = vst.msk [vmem:[#allocation2 + $0x130] sm:$0xff] %vm835_vm0, %v5053_v33 }
  0x1a   :  { %876 = vst.msk [vmem:[#allocation2 + $0x138] sm:$0x1] %vm837_vm1, %v5053_v33  ;;  %878 = vst.msk [vmem:[#allocation2 + $0x148] sm:$0x1] %vm837_vm1, %v5053_v33 }
  0x1b   :  { %4393 = vmatpush3.bf16.msra.mxu0 %v5014_v7  ;;  %877 = vst.msk [vmem:[#allocation2 + $0x140] sm:$0xff] %vm835_vm0, %v5053_v33  ;;  %879 = vst.msk [vmem:[#allocation2 + $0x150] sm:$0xff] %vm835_vm0, %v5053_v33 }
  0x1c   :  { %4394 = vmatprep.subr.bf16.mxu0 %v5015_v8  ;;  %880 = vst.msk [vmem:[#allocation2 + $0x158] sm:$0x1] %vm837_vm1, %v5053_v33  ;;  %882 = vst.msk [vmem:[#allocation2 + $0x168] sm:$0x1] %vm837_vm1, %v5053_v33 }
  0x1d   :  { %881 = vst.msk [vmem:[#allocation2 + $0x160] sm:$0xff] %vm835_vm0, %v5053_v33  ;;  %883 = vst.msk [vmem:[#allocation2 + $0x170] sm:$0xff] %vm835_vm0, %v5053_v33 }
  0x1e   :  { %884 = vst.msk [vmem:[#allocation2 + $0x178] sm:$0x1] %vm837_vm1, %v5053_v33  ;;  %886 = vst.msk [vmem:[#allocation2 + $0x188] sm:$0x1] %vm837_vm1, %v5053_v33 }
  0x1f   :  { %4395 = vmatpush3.bf16.msra.mxu0 %v5015_v8  ;;  %885 = vst.msk [vmem:[#allocation2 + $0x180] sm:$0xff] %vm835_vm0, %v5053_v33  ;;  %887 = vst.msk [vmem:[#allocation2 + $0x190] sm:$0xff] %vm835_vm0, %v5053_v33 }
  0x20   :  { %888 = vst.msk [vmem:[#allocation2 + $0x198] sm:$0x1] %vm837_vm1, %v5053_v33  ;;  %890 = vst.msk [vmem:[#allocation2 + $0x1a8] sm:$0x1] %vm837_vm1, %v5053_v33  ;;  %4990 = vmatprep.subr.msk.bf16.mxu0 %vm1125_vm2, %v4020_v41 }
  0x21   :  { %889 = vst.msk [vmem:[#allocation2 + $0x1a0] sm:$0xff] %vm835_vm0, %v5053_v33  ;;  %891 = vst.msk [vmem:[#allocation2 + $0x1b0] sm:$0xff] %vm835_vm0, %v5053_v33 }
  0x22   :  { %4397 = vmatmul.mubr.bf16.vlgmr.msra.gmra.mrb[0].mxu0 %v5017_v9  ;;  %892 = vst.msk [vmem:[#allocation2 + $0x1b8] sm:$0x1] %vm837_vm1, %v5053_v33  ;;  %894 = vst.msk [vmem:[#allocation2 + $0x1c8] sm:$0x1] %vm837_vm1, %v5053_v33 }
  0x23   :  { %4400 = vmatprep.mubr.bf16.mxu0 %v5018_v10  ;;  %893 = vst.msk [vmem:[#allocation2 + $0x1c0] sm:$0xff] %vm835_vm0, %v5053_v33  ;;  %895 = vst.msk [vmem:[#allocation2 + $0x1d0] sm:$0xff] %vm835_vm0, %v5053_v33  ;;  %4461 = vmatpush3.bf16.msra.mxu0 %v1127_v42 }
  0x24   :  { %896 = vst.msk [vmem:[#allocation2 + $0x1d8] sm:$0x1] %vm837_vm1, %v5053_v33  ;;  %898 = vst.msk [vmem:[#allocation2 + $0x1e8] sm:$0x1] %vm837_vm1, %v5053_v33  ;;  %4991 = vmatprep.subr.msk.bf16.mxu0 %vm1125_vm2, %v5513_v43 }
  0x25   :  { %897 = vst.msk [vmem:[#allocation2 + $0x1e0] sm:$0xff] %vm835_vm0, %v5053_v33  ;;  %899 = vst.msk [vmem:[#allocation2 + $0x1f0] sm:$0xff] %vm835_vm0, %v5053_v33 }
  0x26   :  { %900 = vst.msk [vmem:[#allocation2 + $0x1f8] sm:$0x1] %vm837_vm1, %v5053_v33  ;;  %902 = vst.msk [vmem:[#allocation2 + $0x208] sm:$0x1] %vm837_vm1, %v5053_v33 }
  0x27   :  { %901 = vst.msk [vmem:[#allocation2 + $0x200] sm:$0xff] %vm835_vm0, %v5053_v33  ;;  %903 = vst.msk [vmem:[#allocation2 + $0x210] sm:$0xff] %vm835_vm0, %v5053_v33 }
  0x28   :  { %904 = vst.msk [vmem:[#allocation2 + $0x218] sm:$0x1] %vm837_vm1, %v5053_v33  ;;  %906 = vst.msk [vmem:[#allocation2 + $0x228] sm:$0x1] %vm837_vm1, %v5053_v33 }
  0x29   :  { %905 = vst.msk [vmem:[#allocation2 + $0x220] sm:$0xff] %vm835_vm0, %v5053_v33  ;;  %907 = vst.msk [vmem:[#allocation2 + $0x230] sm:$0xff] %vm835_vm0, %v5053_v33 }
  0x2a   :  { %4401 = vmatmul.mubr.bf16.gmra.mrb[4].mxu0 %v5019_v11  ;;  %908 = vst.msk [vmem:[#allocation2 + $0x238] sm:$0x1] %vm837_vm1, %v5053_v33  ;;  %910 = vst.msk [vmem:[#allocation2 + $0x248] sm:$0x1] %vm837_vm1, %v5053_v33 }
  0x2b   :  { %4404 = vmatprep.mubr.bf16.mxu0 %v5020_v12  ;;  %909 = vst.msk [vmem:[#allocation2 + $0x240] sm:$0xff] %vm835_vm0, %v5053_v33  ;;  %911 = vst.msk [vmem:[#allocation2 + $0x250] sm:$0xff] %vm835_vm0, %v5053_v33 }
  0x2c   :  { %912 = vst.msk [vmem:[#allocation2 + $0x258] sm:$0x1] %vm837_vm1, %v5053_v33  ;;  %914 = vst.msk [vmem:[#allocation2 + $0x268] sm:$0x1] %vm837_vm1, %v5053_v33 }
  0x2d   :  { %913 = vst.msk [vmem:[#allocation2 + $0x260] sm:$0xff] %vm835_vm0, %v5053_v33  ;;  %915 = vst.msk [vmem:[#allocation2 + $0x270] sm:$0xff] %vm835_vm0, %v5053_v33 }
  0x2e   :  { %916 = vst.msk [vmem:[#allocation2 + $0x278] sm:$0x1] %vm837_vm1, %v5053_v33  ;;  %918 = vst.msk [vmem:[#allocation2 + $0x288] sm:$0x1] %vm837_vm1, %v5053_v33 }
  0x2f   :  { %917 = vst.msk [vmem:[#allocation2 + $0x280] sm:$0xff] %vm835_vm0, %v5053_v33  ;;  %919 = vst.msk [vmem:[#allocation2 + $0x290] sm:$0xff] %vm835_vm0, %v5053_v33 }
  0x30   :  { %920 = vst.msk [vmem:[#allocation2 + $0x298] sm:$0x1] %vm837_vm1, %v5053_v33  ;;  %922 = vst.msk [vmem:[#allocation2 + $0x2a8] sm:$0x1] %vm837_vm1, %v5053_v33 }
  0x31   :  { %921 = vst.msk [vmem:[#allocation2 + $0x2a0] sm:$0xff] %vm835_vm0, %v5053_v33  ;;  %923 = vst.msk [vmem:[#allocation2 + $0x2b0] sm:$0xff] %vm835_vm0, %v5053_v33 }
  0x32   :  { %4405 = vmatmul.mubr.bf16.gmra.mrb[8].mxu0 %v5021_v13  ;;  %924 = vst.msk [vmem:[#allocation2 + $0x2b8] sm:$0x1] %vm837_vm1, %v5053_v33  ;;  %926 = vst.msk [vmem:[#allocation2 + $0x2c8] sm:$0x1] %vm837_vm1, %v5053_v33 }
  0x33   :  { %4408 = vmatprep.mubr.bf16.mxu0 %v5022_v14  ;;  %925 = vst.msk [vmem:[#allocation2 + $0x2c0] sm:$0xff] %vm835_vm0, %v5053_v33  ;;  %927 = vst.msk [vmem:[#allocation2 + $0x2d0] sm:$0xff] %vm835_vm0, %v5053_v33 }
  0x34   :  { %928 = vst.msk [vmem:[#allocation2 + $0x2d8] sm:$0x1] %vm837_vm1, %v5053_v33  ;;  %930 = vst.msk [vmem:[#allocation2 + $0x2e8] sm:$0x1] %vm837_vm1, %v5053_v33 }
  0x35   :  { %929 = vst.msk [vmem:[#allocation2 + $0x2e0] sm:$0xff] %vm835_vm0, %v5053_v33  ;;  %931 = vst.msk [vmem:[#allocation2 + $0x2f0] sm:$0xff] %vm835_vm0, %v5053_v33 }
  0x36   :  { %932 = vst.msk [vmem:[#allocation2 + $0x2f8] sm:$0x1] %vm837_vm1, %v5053_v33  ;;  %934 = vst.msk [vmem:[#allocation2 + $0x308] sm:$0x1] %vm837_vm1, %v5053_v33 }
  0x37   :  { %933 = vst.msk [vmem:[#allocation2 + $0x300] sm:$0xff] %vm835_vm0, %v5053_v33  ;;  %935 = vst.msk [vmem:[#allocation2 + $0x310] sm:$0xff] %vm835_vm0, %v5053_v33 }
  0x38   :  { %936 = vst.msk [vmem:[#allocation2 + $0x318] sm:$0x1] %vm837_vm1, %v5053_v33  ;;  %938 = vst.msk [vmem:[#allocation2 + $0x328] sm:$0x1] %vm837_vm1, %v5053_v33 }
  0x39   :  { %937 = vst.msk [vmem:[#allocation2 + $0x320] sm:$0xff] %vm835_vm0, %v5053_v33  ;;  %939 = vst.msk [vmem:[#allocation2 + $0x330] sm:$0xff] %vm835_vm0, %v5053_v33 }
  0x3a   :  { %4409 = vmatmul.mubr.bf16.gmra.mrb[12].mxu0 %v5023_v15  ;;  %940 = vst.msk [vmem:[#allocation2 + $0x338] sm:$0x1] %vm837_vm1, %v5053_v33  ;;  %942 = vst.msk [vmem:[#allocation2 + $0x348] sm:$0x1] %vm837_vm1, %v5053_v33 }
  0x3b   :  { %4412 = vmatprep.mubr.bf16.mxu0 %v5024_v16  ;;  %941 = vst.msk [vmem:[#allocation2 + $0x340] sm:$0xff] %vm835_vm0, %v5053_v33  ;;  %943 = vst.msk [vmem:[#allocation2 + $0x350] sm:$0xff] %vm835_vm0, %v5053_v33 }
  0x3c   :  { %944 = vst.msk [vmem:[#allocation2 + $0x358] sm:$0x1] %vm837_vm1, %v5053_v33  ;;  %946 = vst.msk [vmem:[#allocation2 + $0x368] sm:$0x1] %vm837_vm1, %v5053_v33 }
  0x3d   :  { %945 = vst.msk [vmem:[#allocation2 + $0x360] sm:$0xff] %vm835_vm0, %v5053_v33  ;;  %947 = vst.msk [vmem:[#allocation2 + $0x370] sm:$0xff] %vm835_vm0, %v5053_v33 }
  0x3e   :  { %948 = vst.msk [vmem:[#allocation2 + $0x378] sm:$0x1] %vm837_vm1, %v5053_v33  ;;  %950 = vst.msk [vmem:[#allocation2 + $0x388] sm:$0x1] %vm837_vm1, %v5053_v33 }
  0x3f   :  { %949 = vst.msk [vmem:[#allocation2 + $0x380] sm:$0xff] %vm835_vm0, %v5053_v33  ;;  %951 = vst.msk [vmem:[#allocation2 + $0x390] sm:$0xff] %vm835_vm0, %v5053_v33 }
  0x40   :  { %952 = vst.msk [vmem:[#allocation2 + $0x398] sm:$0x1] %vm837_vm1, %v5053_v33  ;;  %954 = vst.msk [vmem:[#allocation2 + $0x3a8] sm:$0x1] %vm837_vm1, %v5053_v33 }
  0x41   :  { %953 = vst.msk [vmem:[#allocation2 + $0x3a0] sm:$0xff] %vm835_vm0, %v5053_v33  ;;  %955 = vst.msk [vmem:[#allocation2 + $0x3b0] sm:$0xff] %vm835_vm0, %v5053_v33 }
  0x42   :  { %4413 = vmatmul.mubr.bf16.gmra.mrb[16].mxu0 %v5025_v17  ;;  %956 = vst.msk [vmem:[#allocation2 + $0x3b8] sm:$0x1] %vm837_vm1, %v5053_v33  ;;  %958 = vst.msk [vmem:[#allocation2 + $0x3c8] sm:$0x1] %vm837_vm1, %v5053_v33 }
  0x43   :  { %4416 = vmatprep.mubr.bf16.mxu0 %v5026_v18  ;;  %957 = vst.msk [vmem:[#allocation2 + $0x3c0] sm:$0xff] %vm835_vm0, %v5053_v33  ;;  %959 = vst.msk [vmem:[#allocation2 + $0x3d0] sm:$0xff] %vm835_vm0, %v5053_v33 }
  0x44   :  { %960 = vst.msk [vmem:[#allocation2 + $0x3d8] sm:$0x1] %vm837_vm1, %v5053_v33  ;;  %962 = vst.msk [vmem:[#allocation2 + $0x3e8] sm:$0x1] %vm837_vm1, %v5053_v33 }
  0x45   :  { %961 = vst.msk [vmem:[#allocation2 + $0x3e0] sm:$0xff] %vm835_vm0, %v5053_v33  ;;  %963 = vst.msk [vmem:[#allocation2 + $0x3f0] sm:$0xff] %vm835_vm0, %v5053_v33 }
  0x46   :  { %964 = vst.msk [vmem:[#allocation2 + $0x3f8] sm:$0x1] %vm837_vm1, %v5053_v33  ;;  %966 = vst.msk [vmem:[#allocation2 + $0x408] sm:$0x1] %vm837_vm1, %v5053_v33 }
  0x47   :  { %965 = vst.msk [vmem:[#allocation2 + $0x400] sm:$0xff] %vm835_vm0, %v5053_v33  ;;  %967 = vst.msk [vmem:[#allocation2 + $0x410] sm:$0xff] %vm835_vm0, %v5053_v33 }
  0x48   :  { %968 = vst.msk [vmem:[#allocation2 + $0x418] sm:$0x1] %vm837_vm1, %v5053_v33  ;;  %970 = vst.msk [vmem:[#allocation2 + $0x428] sm:$0x1] %vm837_vm1, %v5053_v33 }
  0x49   :  { %969 = vst.msk [vmem:[#allocation2 + $0x420] sm:$0xff] %vm835_vm0, %v5053_v33  ;;  %971 = vst.msk [vmem:[#allocation2 + $0x430] sm:$0xff] %vm835_vm0, %v5053_v33 }
  0x4a   :  { %4417 = vmatmul.mubr.bf16.gmra.mrb[20].mxu0 %v5027_v19  ;;  %972 = vst.msk [vmem:[#allocation2 + $0x438] sm:$0x1] %vm837_vm1, %v5053_v33  ;;  %974 = vst.msk [vmem:[#allocation2 + $0x448] sm:$0x1] %vm837_vm1, %v5053_v33 }
  0x4b   :  { %4420 = vmatprep.mubr.bf16.mxu0 %v5028_v20  ;;  %973 = vst.msk [vmem:[#allocation2 + $0x440] sm:$0xff] %vm835_vm0, %v5053_v33  ;;  %975 = vst.msk [vmem:[#allocation2 + $0x450] sm:$0xff] %vm835_vm0, %v5053_v33 }
  0x4c   :  { %976 = vst.msk [vmem:[#allocation2 + $0x458] sm:$0x1] %vm837_vm1, %v5053_v33  ;;  %978 = vst.msk [vmem:[#allocation2 + $0x468] sm:$0x1] %vm837_vm1, %v5053_v33 }
  0x4d   :  { %977 = vst.msk [vmem:[#allocation2 + $0x460] sm:$0xff] %vm835_vm0, %v5053_v33  ;;  %979 = vst.msk [vmem:[#allocation2 + $0x470] sm:$0xff] %vm835_vm0, %v5053_v33 }
  0x4e   :  { %980 = vst.msk [vmem:[#allocation2 + $0x478] sm:$0x1] %vm837_vm1, %v5053_v33 }
  0x52   :  { %4421 = vmatmul.mubr.bf16.gmra.mrb[24].mxu0 %v5029_v21 }
  0x53   :  { %4424 = vmatprep.mubr.bf16.mxu0 %v5030_v22 }
  0x5a   :  { %4425 = vmatmul.mubr.bf16.gmra.mrb[28].mxu0 %v5031_v23 }
  0x5b   :  { %4428 = vmatprep.mubr.bf16.mxu0 %v5032_v24 }
  0x62   :  { %4429 = vmatmul.mubr.bf16.gmra.mrb[32].mxu0 %v5033_v25 }
  0x63   :  { %4432 = vmatprep.mubr.bf16.mxu0 %v5034_v26 }
  0x6a   :  { %4433 = vmatmul.mubr.bf16.gmra.mrb[36].mxu0 %v5035_v27 }
  0x6b   :  { %4436 = vmatprep.mubr.bf16.mxu0 %v5036_v28 }
  0x72   :  { %4437 = vmatmul.mubr.bf16.gmra.mrb[40].mxu0 %v5037_v29 }
  0x73   :  { %4440 = vmatprep.mubr.bf16.mxu0 %v5038_v30 }
  0x7a   :  { %4441 = vmatmul.mubr.bf16.gmra.mrb[44].mxu0 %v5039_v31 }
  0x7b   :  { %4444 = vmatprep.mubr.bf16.mxu0 %v5193_v32  ;;  %v1049_v32 = vld [vmem:[#allocation2] sm:$0xff] }
  0x82   :  { %4445 = vmatmul.mubr.bf16.gmra.mrb[48].mxu0 %v5041_v34 }
  0x83   :  { %4448 = vmatprep.mubr.bf16.mxu0 %v5042_v35 }
  0x8a   :  { %4449 = vmatmul.mubr.bf16.gmra.mrb[52].mxu0 %v5043_v36 }
  0x8b   :  { %4452 = vmatprep.mubr.bf16.mxu0 %v5044_v37 }
  0x92   :  { %4453 = vmatmul.mubr.bf16.gmra.mrb[56].mxu0 %v5045_v38 }
  0x93   :  { %4456 = vmatprep.mubr.bf16.mxu0 %v5046_v39 }
  0x9a   :  { %4457 = vmatmul.mubr.bf16.gmra.mrb[60].mxu0 %v5047_v40 }
  0xf5   :  { %v4398_v46 = vpop.f32.mrb[0].mxu0 }
  0xf6   :  { %v397_v48 = vadd.f32 %v4398_v46, %v5520_v44  ;;  %v388_v49 = vpop.f32.mrb[1].mxu0 }
  0xf7   :  { %v389_v50 = vadd.f32 %v5520_v44, %v388_v49  ;;  %v4399_v51 = vpop.f32.mrb[2].mxu0 }
  0xf8   :  { %vm645_vm3 = vcmp.ge.f32.partialorder %v397_v48, 0.0  ;;  %v709_v52 = vmul.f32 0.2, %v397_v48  ;;  %v400_v53 = vadd.f32 %v4399_v51, %v5520_v44  ;;  %v391_v54 = vpop.f32.mrb[3].mxu0 }
  0xf9   :  { %vm643_vm4 = vcmp.ge.f32.partialorder %v389_v50, 0.0  ;;  %v707_v56 = vmul.f32 0.2, %v389_v50  ;;  %v392_v57 = vadd.f32 %v5520_v44, %v391_v54 }
  0xfa   :  { %v773_v58 = vsel %vm645_vm3, %v397_v48, %v709_v52  ;;  %vm646_vm5 = vcmp.ge.f32.partialorder %v400_v53, 0.0  ;;  %v710_v59 = vmul.f32 0.2, %v400_v53 }
  0xfb   :  { %984 = vst.msk [vmem:[#allocation2 + $0x31] sm:$0xff] %vm835_vm0, %v773_v58  ;;  %v771_v60 = vsel %vm643_vm4, %v389_v50, %v707_v56  ;;  %vm644_vm6 = vcmp.ge.f32.partialorder %v392_v57, 0.0  ;;  %v708_v61 = vmul.f32 0.2, %v392_v57 }
  0xfc   :  { %982 = vst.msk [vmem:[#allocation2 + $0x11] sm:$0xff] %vm835_vm0, %v771_v60  ;;  %v774_v62 = vsel %vm646_vm5, %v400_v53, %v710_v59 }
  0xfd   :  { %985 = vst.msk [vmem:[#allocation2 + $0x41] sm:$0xff] %vm835_vm0, %v774_v62  ;;  %v772_v63 = vsel %vm644_vm6, %v392_v57, %v708_v61  ;;  %v4402_v0 = vpop.f32.mrb[4].mxu0 }
  0xfe   :  { %983 = vst.msk [vmem:[#allocation2 + $0x21] sm:$0xff] %vm835_vm0, %v772_v63  ;;  %v413_v1 = vadd.f32 %v4402_v0, %v5520_v44  ;;  %v404_v2 = vpop.f32.mrb[5].mxu0 }
  0xff   :  { %v405_v3 = vadd.f32 %v5520_v44, %v404_v2  ;;  %v4403_v4 = vpop.f32.mrb[6].mxu0 }
 0x100   :  { %vm649_vm7 = vcmp.ge.f32.partialorder %v413_v1, 0.0  ;;  %v713_v5 = vmul.f32 0.2, %v413_v1  ;;  %v416_v6 = vadd.f32 %v4403_v4, %v5520_v44  ;;  %v407_v7 = vpop.f32.mrb[7].mxu0 }
 0x101   :  { %vm647_vm8 = vcmp.ge.f32.partialorder %v405_v3, 0.0  ;;  %v711_v8 = vmul.f32 0.2, %v405_v3  ;;  %v408_v9 = vadd.f32 %v5520_v44, %v407_v7 }
 0x102   :  { %v777_v10 = vsel %vm649_vm7, %v413_v1, %v713_v5  ;;  %vm650_vm9 = vcmp.ge.f32.partialorder %v416_v6, 0.0  ;;  %v714_v11 = vmul.f32 0.2, %v416_v6  ;;  %v5547_v14 = vld [vmem:[#allocation2 + $0x30] sm:$0xff] }
 0x103   :  { %988 = vst.msk [vmem:[#allocation2 + $0x71] sm:$0xff] %vm835_vm0, %v777_v10  ;;  %v775_v12 = vsel %vm647_vm8, %v405_v3, %v711_v8  ;;  %vm648_vm10 = vcmp.ge.f32.partialorder %v408_v9, 0.0  ;;  %v712_v13 = vmul.f32 0.2, %v408_v9  ;;  %6765 = vst [vmem:[#allocation3_spill] sm:$0xff] %v5547_v14  ;;  %v5552_v17 = vld [vmem:[#allocation2 + $0x31] sm:$0xff] }
 0x104   :  { %986 = vst.msk [vmem:[#allocation2 + $0x51] sm:$0xff] %vm835_vm0, %v775_v12  ;;  %v778_v15 = vsel %vm650_vm9, %v416_v6, %v714_v11  ;;  %v5550_v16 = vld [vmem:[#allocation2 + $0x40] sm:$0xff]  ;;  %6767 = vst [vmem:[#allocation5_spill] sm:$0xff] %v5552_v17  ;;  %v5557_v21 = vld [vmem:[#allocation2 + $0x10] sm:$0xff] }
 0x105   :  { %6766 = vst [vmem:[#allocation4_spill] sm:$0xff] %v5550_v16  ;;  %v5554_v18 = vld [vmem:[#allocation2 + $0x41] sm:$0xff]  ;;  %989 = vst.msk [vmem:[#allocation2 + $0x81] sm:$0xff] %vm835_vm0, %v778_v15  ;;  %v776_v19 = vsel %vm648_vm10, %v408_v9, %v712_v13  ;;  %v4406_v20 = vpop.f32.mrb[8].mxu0  ;;  %v5569_v28 = vld [vmem:[#allocation2 + $0x11] sm:$0xff] }
 0x106   :  { %6768 = vst [vmem:[#allocation6_spill] sm:$0xff] %v5554_v18  ;;  %6769 = vst [vmem:[#allocation7_spill] sm:$0xff] %v5557_v21  ;;  %v5559_v22 = vld [vmem:[#allocation2 + $0x20] sm:$0xff]  ;;  %v429_v26 = vadd.f32 %v4406_v20, %v5520_v44  ;;  %v420_v27 = vpop.f32.mrb[9].mxu0 }
 0x107   :  { %6770 = vst [vmem:[#allocation8_spill] sm:$0xff] %v5559_v22  ;;  %v5561_v23 = vld [vmem:[#allocation2 + $0x21] sm:$0xff]  ;;  %987 = vst.msk [vmem:[#allocation2 + $0x61] sm:$0xff] %vm835_vm0, %v776_v19  ;;  %v421_v30 = vadd.f32 %v5520_v44, %v420_v27  ;;  %v4407_v31 = vpop.f32.mrb[10].mxu0 }
 0x108   :  { %6771 = vst [vmem:[#allocation9_spill] sm:$0xff] %v5561_v23  ;;  %6772 = vst [vmem:[#allocation10_spill] sm:$0xff] %v5569_v28  ;;  %vm653_vm11 = vcmp.ge.f32.partialorder %v429_v26, 0.0  ;;  %v717_v33 = vmul.f32 0.2, %v429_v26  ;;  %v432_v34 = vadd.f32 %v4407_v31, %v5520_v44  ;;  %v423_v35 = vpop.f32.mrb[11].mxu0 }
 0x109   :  { %vm651_vm12 = vcmp.ge.f32.partialorder %v421_v30, 0.0  ;;  %v715_v36 = vmul.f32 0.2, %v421_v30  ;;  %v424_v37 = vadd.f32 %v5520_v44, %v423_v35 }
 0x10a   :  { %v781_v38 = vsel %vm653_vm11, %v429_v26, %v717_v33  ;;  %vm654_vm13 = vcmp.ge.f32.partialorder %v432_v34, 0.0  ;;  %v718_v39 = vmul.f32 0.2, %v432_v34 }
 0x10b   :  { %992 = vst.msk [vmem:[#allocation2 + $0xc1] sm:$0xff] %vm835_vm0, %v781_v38  ;;  %v779_v40 = vsel %vm651_vm12, %v421_v30, %v715_v36  ;;  %vm652_vm14 = vcmp.ge.f32.partialorder %v424_v37, 0.0  ;;  %v716_v41 = vmul.f32 0.2, %v424_v37  ;;  %v5581_v48 = vld [vmem:[#allocation2 + $0x50] sm:$0xff] }
 0x10c   :  { %990 = vst.msk [vmem:[#allocation2 + $0xa1] sm:$0xff] %vm835_vm0, %v779_v40  ;;  %v782_v42 = vsel %vm654_vm13, %v432_v34, %v718_v39  ;;  %6773 = vst [vmem:[#allocation11_spill] sm:$0xff] %v5581_v48  ;;  %v5589_v53 = vld [vmem:[#allocation2 + $0x51] sm:$0xff] }
 0x10d   :  { %993 = vst.msk [vmem:[#allocation2 + $0xd1] sm:$0xff] %vm835_vm0, %v782_v42  ;;  %v780_v45 = vsel %vm652_vm14, %v424_v37, %v716_v41  ;;  %v4410_v46 = vpop.f32.mrb[12].mxu0  ;;  %6776 = vst [vmem:[#allocation14_spill] sm:$0xff] %v5589_v53 }
 0x10e   :  { %v5583_v49 = vld [vmem:[#allocation2 + $0x60] sm:$0xff]  ;;  %991 = vst.msk [vmem:[#allocation2 + $0xb1] sm:$0xff] %vm835_vm0, %v780_v45  ;;  %v445_v51 = vadd.f32 %v4410_v46, %v5520_v44  ;;  %v436_v52 = vpop.f32.mrb[13].mxu0 }
 0x10f   :  { %6774 = vst [vmem:[#allocation12_spill] sm:$0xff] %v5583_v49  ;;  %v5585_v50 = vld [vmem:[#allocation2 + $0x61] sm:$0xff]  ;;  %v437_v55 = vadd.f32 %v5520_v44, %v436_v52  ;;  %v4411_v56 = vpop.f32.mrb[14].mxu0 }
 0x110   :  { %6775 = vst [vmem:[#allocation13_spill] sm:$0xff] %v5585_v50  ;;  %vm657_vm15 = vcmp.ge.f32.partialorder %v445_v51, 0.0  ;;  %v721_v58 = vmul.f32 0.2, %v445_v51  ;;  %v448_v59 = vadd.f32 %v4411_v56, %v5520_v44  ;;  %v439_v60 = vpop.f32.mrb[15].mxu0 }
 0x111   :  { %vm655_vm1 = vcmp.ge.f32.partialorder %v437_v55, 0.0  ;;  %v719_v61 = vmul.f32 0.2, %v437_v55  ;;  %v440_v62 = vadd.f32 %v5520_v44, %v439_v60 }
 0x112   :  { %v785_v63 = vsel %vm657_vm15, %v445_v51, %v721_v58  ;;  %vm658_vm3 = vcmp.ge.f32.partialorder %v448_v59, 0.0  ;;  %v722_v0 = vmul.f32 0.2, %v448_v59  ;;  %v5599_v3 = vld [vmem:[#allocation2 + $0xc0] sm:$0xff] }
 0x113   :  { %996 = vst.msk [vmem:[#allocation2 + $0x101] sm:$0xff] %vm835_vm0, %v785_v63  ;;  %v783_v1 = vsel %vm655_vm1, %v437_v55, %v719_v61  ;;  %vm656_vm4 = vcmp.ge.f32.partialorder %v440_v62, 0.0  ;;  %v720_v2 = vmul.f32 0.2, %v440_v62  ;;  %6777 = vst [vmem:[#allocation15_spill] sm:$0xff] %v5599_v3  ;;  %v5604_v6 = vld [vmem:[#allocation2 + $0xc1] sm:$0xff] }
 0x114   :  { %994 = vst.msk [vmem:[#allocation2 + $0xe1] sm:$0xff] %vm835_vm0, %v783_v1  ;;  %v786_v4 = vsel %vm658_vm3, %v448_v59, %v722_v0  ;;  %v5602_v5 = vld [vmem:[#allocation2 + $0xd0] sm:$0xff]  ;;  %6779 = vst [vmem:[#allocation17_spill] sm:$0xff] %v5604_v6  ;;  %v5609_v10 = vld [vmem:[#allocation2 + $0xa0] sm:$0xff] }
 0x115   :  { %6778 = vst [vmem:[#allocation16_spill] sm:$0xff] %v5602_v5  ;;  %v5606_v7 = vld [vmem:[#allocation2 + $0xd1] sm:$0xff]  ;;  %997 = vst.msk [vmem:[#allocation2 + $0x111] sm:$0xff] %vm835_vm0, %v786_v4  ;;  %v784_v8 = vsel %vm656_vm4, %v440_v62, %v720_v2  ;;  %v4414_v9 = vpop.f32.mrb[16].mxu0  ;;  %v5621_v26 = vld [vmem:[#allocation2 + $0xa1] sm:$0xff] }
 0x116   :  { %6780 = vst [vmem:[#allocation18_spill] sm:$0xff] %v5606_v7  ;;  %6781 = vst [vmem:[#allocation19_spill] sm:$0xff] %v5609_v10  ;;  %v5611_v11 = vld [vmem:[#allocation2 + $0xb0] sm:$0xff]  ;;  %v461_v19 = vadd.f32 %v4414_v9, %v5520_v44  ;;  %v452_v20 = vpop.f32.mrb[17].mxu0 }
 0x117   :  { %6782 = vst [vmem:[#allocation20_spill] sm:$0xff] %v5611_v11  ;;  %v5613_v12 = vld [vmem:[#allocation2 + $0xb1] sm:$0xff]  ;;  %995 = vst.msk [vmem:[#allocation2 + $0xf1] sm:$0xff] %vm835_vm0, %v784_v8  ;;  %v453_v30 = vadd.f32 %v5520_v44, %v452_v20  ;;  %v4415_v31 = vpop.f32.mrb[18].mxu0 }
 0x118   :  { %6783 = vst [vmem:[#allocation21_spill] sm:$0xff] %v5621_v26  ;;  %vm661_vm5 = vcmp.ge.f32.partialorder %v461_v19, 0.0  ;;  %v725_v34 = vmul.f32 0.2, %v461_v19  ;;  %v464_v35 = vadd.f32 %v4415_v31, %v5520_v44  ;;  %v455_v36 = vpop.f32.mrb[19].mxu0 }
 0x119   :  { %vm659_vm6 = vcmp.ge.f32.partialorder %v453_v30, 0.0  ;;  %v723_v37 = vmul.f32 0.2, %v453_v30  ;;  %v456_v38 = vadd.f32 %v5520_v44, %v455_v36 }
 0x11a   :  { %v789_v39 = vsel %vm661_vm5, %v461_v19, %v725_v34  ;;  %vm662_vm7 = vcmp.ge.f32.partialorder %v464_v35, 0.0  ;;  %v726_v40 = vmul.f32 0.2, %v464_v35  ;;  %v1075_v19 = vld [vmem:[#allocation2 + $0x120] sm:$0xff] }
 0x11b   :  { %1001 = vst.msk [vmem:[#allocation2 + $0x150] sm:$0xff] %vm835_vm0, %v789_v39  ;;  %v787_v41 = vsel %vm659_vm6, %v453_v30, %v723_v37  ;;  %vm660_vm8 = vcmp.ge.f32.partialorder %v456_v38, 0.0  ;;  %v724_v42 = vmul.f32 0.2, %v456_v38  ;;  %v5633_v52 = vld [vmem:[#allocation2 + $0xe0] sm:$0xff] }
 0x11c   :  { %999 = vst.msk [vmem:[#allocation2 + $0x130] sm:$0xff] %vm835_vm0, %v787_v41  ;;  %v790_v45 = vsel %vm662_vm7, %v464_v35, %v726_v40  ;;  %6784 = vst [vmem:[#allocation22_spill] sm:$0xff] %v5633_v52  ;;  %v5641_v60 = vld [vmem:[#allocation2 + $0xe1] sm:$0xff] }
 0x11d   :  { %1002 = vst.msk [vmem:[#allocation2 + $0x160] sm:$0xff] %vm835_vm0, %v790_v45  ;;  %v788_v46 = vsel %vm660_vm8, %v456_v38, %v724_v42  ;;  %v4418_v51 = vpop.f32.mrb[20].mxu0  ;;  %6786 = vst [vmem:[#allocation24_spill] sm:$0xff] %v5641_v60 }
 0x11e   :  { %v5635_v55 = vld [vmem:[#allocation2 + $0xf0] sm:$0xff]  ;;  %1000 = vst.msk [vmem:[#allocation2 + $0x140] sm:$0xff] %vm835_vm0, %v788_v46  ;;  %v477_v58 = vadd.f32 %v4418_v51, %v5520_v44  ;;  %v468_v59 = vpop.f32.mrb[21].mxu0 }
 0x11f   :  { %6785 = vst [vmem:[#allocation23_spill] sm:$0xff] %v5635_v55  ;;  %v5637_v56 = vld [vmem:[#allocation2 + $0xf1] sm:$0xff]  ;;  %v469_v62 = vadd.f32 %v5520_v44, %v468_v59  ;;  %v4419_v63 = vpop.f32.mrb[22].mxu0 }
 0x120   :  { %vm665_vm9 = vcmp.ge.f32.partialorder %v477_v58, 0.0  ;;  %v729_v1 = vmul.f32 0.2, %v477_v58  ;;  %v480_v2 = vadd.f32 %v4419_v63, %v5520_v44  ;;  %v471_v4 = vpop.f32.mrb[23].mxu0  ;;  %v1251_v63 = vsel %vm1125_vm2, %v5513_v43, 0 }
 0x121   :  { %vm663_vm10 = vcmp.ge.f32.partialorder %v469_v62, 0.0  ;;  %v727_v8 = vmul.f32 0.2, %v469_v62  ;;  %v472_v9 = vadd.f32 %v5520_v44, %v471_v4 }
 0x122   :  { %v793_v20 = vsel %vm665_vm9, %v477_v58, %v729_v1  ;;  %vm666_vm11 = vcmp.ge.f32.partialorder %v480_v2, 0.0  ;;  %v730_v30 = vmul.f32 0.2, %v480_v2  ;;  %v5652_v38 = vld [vmem:[#allocation2 + $0x151] sm:$0xff] }
 0x123   :  { %1005 = vst.msk [vmem:[#allocation2 + $0x190] sm:$0xff] %vm835_vm0, %v793_v20  ;;  %v791_v31 = vsel %vm663_vm10, %v469_v62, %v727_v8  ;;  %vm664_vm12 = vcmp.ge.f32.partialorder %v472_v9, 0.0  ;;  %v728_v34 = vmul.f32 0.2, %v472_v9  ;;  %v1076_v35 = vld [vmem:[#allocation2 + $0x130] sm:$0xff] }
 0x124   :  { %1003 = vst.msk [vmem:[#allocation2 + $0x170] sm:$0xff] %vm835_vm0, %v791_v31  ;;  %v794_v36 = vsel %vm666_vm11, %v480_v2, %v730_v30  ;;  %v1091_v37 = vpack.c.bf16 %v1076_v35, %v1075_v19  ;;  %v5654_v39 = vld [vmem:[#allocation2 + $0x161] sm:$0xff]  ;;  %v1078_v45 = vld [vmem:[#allocation2 + $0x150] sm:$0xff] }
 0x125   :  { %1006 = vst.msk [vmem:[#allocation2 + $0x1a0] sm:$0xff] %vm835_vm0, %v794_v36  ;;  %v792_v40 = vsel %vm664_vm12, %v472_v9, %v728_v34  ;;  %v4422_v41 = vpop.f32.mrb[24].mxu0  ;;  %v1077_v42 = vld [vmem:[#allocation2 + $0x140] sm:$0xff]  ;;  %v5666_v1 = vld [vmem:[#allocation2 + $0x131] sm:$0xff]  ;;  %v5672_v8 = vld [vmem:[%s6686_s3 + $0x8] sm:$0xf] }
 0x126   :  { %v5657_v46 = vld [vmem:[#allocation2 + $0x141] sm:$0xff]  ;;  %1004 = vst.msk [vmem:[#allocation2 + $0x180] sm:$0xff] %vm835_vm0, %v792_v40  ;;  %v493_v58 = vadd.f32 %v4422_v41, %v5520_v44  ;;  %v484_v59 = vpop.f32.mrb[25].mxu0  ;;  %4462 = vmatprep.mubr.msk.bf16.mxu0 %vm835_vm0, %v1091_v37  ;;  %v1092_v62 = vpack.c.bf16 %v1078_v45, %v1077_v42 }
 0x127   :  { %v485_v2 = vadd.f32 %v5520_v44, %v484_v59  ;;  %v4423_v4 = vpop.f32.mrb[26].mxu0  ;;  %v1079_v40 = vld [vmem:[#allocation2 + $0x160] sm:$0xff] }
 0x128   :  { %vm669_vm13 = vcmp.ge.f32.partialorder %v493_v58, 0.0  ;;  %v733_v19 = vmul.f32 0.2, %v493_v58  ;;  %v496_v20 = vadd.f32 %v4423_v4, %v5520_v44  ;;  %v487_v30 = vpop.f32.mrb[27].mxu0  ;;  %4463 = vmatmul.mubr.msk.bf16.vlgmr.msra.gmra.mrb[64].mxu0 %vm835_vm0, %v1092_v62 }
 0x129   :  { %vm667_vm14 = vcmp.ge.f32.partialorder %v485_v2, 0.0  ;;  %v731_v43 = vmul.f32 0.2, %v485_v2  ;;  %v488_v31 = vadd.f32 %v5520_v44, %v487_v30  ;;  %4479 = vmatpush3.bf16.msra.mxu0 %v1251_v63 }
 0x12a   :  { %v797_v34 = vsel %vm669_vm13, %v493_v58, %v733_v19  ;;  %vm670_vm15 = vcmp.ge.f32.partialorder %v496_v20, 0.0  ;;  %v734_v35 = vmul.f32 0.2, %v496_v20  ;;  %4992 = vmatprep.subr.msk.bf16.mxu0 %vm1125_vm2, %v5672_v8  ;;  %v1082_v63 = vld [vmem:[#allocation2 + $0x190] sm:$0xff] }
 0x12b   :  { %1009 = vst.msk [vmem:[#allocation2 + $0x1e0] sm:$0xff] %vm835_vm0, %v797_v34  ;;  %v795_v36 = vsel %vm667_vm14, %v485_v2, %v731_v43  ;;  %vm668_vm1 = vcmp.ge.f32.partialorder %v488_v31, 0.0  ;;  %v732_v37 = vmul.f32 0.2, %v488_v31  ;;  %v1080_v41 = vld [vmem:[#allocation2 + $0x170] sm:$0xff] }
 0x12c   :  { %1007 = vst.msk [vmem:[#allocation2 + $0x1c0] sm:$0xff] %vm835_vm0, %v795_v36  ;;  %v798_v42 = vsel %vm670_vm15, %v496_v20, %v734_v35  ;;  %v1093_v45 = vpack.c.bf16 %v1080_v41, %v1079_v40  ;;  %v5689_v43 = vld [vmem:[#allocation2 + $0x171] sm:$0xff] }
 0x12d   :  { %1010 = vst.msk [vmem:[#allocation2 + $0x1f0] sm:$0xff] %vm835_vm0, %v798_v42  ;;  %v796_v59 = vsel %vm668_vm1, %v488_v31, %v732_v37  ;;  %v4426_v58 = vpop.f32.mrb[28].mxu0  ;;  %v1081_v62 = vld [vmem:[#allocation2 + $0x180] sm:$0xff]  ;;  %v1083_v42 = vld [vmem:[#allocation2 + $0x1b0] sm:$0xff] }
 0x12e   :  { %v5684_v4 = vld [vmem:[#allocation2 + $0x181] sm:$0xff]  ;;  %1008 = vst.msk [vmem:[#allocation2 + $0x1d0] sm:$0xff] %vm835_vm0, %v796_v59  ;;  %v509_v2 = vadd.f32 %v4426_v58, %v5520_v44  ;;  %v500_v19 = vpop.f32.mrb[29].mxu0  ;;  %4466 = vmatprep.mubr.msk.bf16.mxu0 %vm835_vm0, %v1093_v45  ;;  %v1094_v30 = vpack.c.bf16 %v1082_v63, %v1081_v62 }
 0x12f   :  { %v501_v20 = vadd.f32 %v5520_v44, %v500_v19  ;;  %v4427_v34 = vpop.f32.mrb[30].mxu0 }
 0x130   :  { %vm673_vm3 = vcmp.ge.f32.partialorder %v509_v2, 0.0  ;;  %v737_v35 = vmul.f32 0.2, %v509_v2  ;;  %v512_v36 = vadd.f32 %v4427_v34, %v5520_v44  ;;  %v503_v37 = vpop.f32.mrb[31].mxu0  ;;  %4467 = vmatmul.mubr.msk.bf16.gmra.mrb[68].mxu0 %vm835_vm0, %v1094_v30 }
 0x131   :  { %vm671_vm4 = vcmp.ge.f32.partialorder %v501_v20, 0.0  ;;  %v735_v40 = vmul.f32 0.2, %v501_v20  ;;  %v504_v41 = vadd.f32 %v5520_v44, %v503_v37 }
 0x132   :  { %v801_v45 = vsel %vm673_vm3, %v509_v2, %v737_v35  ;;  %vm674_vm5 = vcmp.ge.f32.partialorder %v512_v36, 0.0  ;;  %v738_v59 = vmul.f32 0.2, %v512_v36  ;;  %v5700_v19 = vld [vmem:[#allocation2 + $0x1e0] sm:$0xff] }
 0x133   :  { %1013 = vst.msk [vmem:[#allocation2 + $0x220] sm:$0xff] %vm835_vm0, %v801_v45  ;;  %v799_v58 = vsel %vm671_vm4, %v501_v20, %v735_v40  ;;  %vm672_vm6 = vcmp.ge.f32.partialorder %v504_v41, 0.0  ;;  %v736_v62 = vmul.f32 0.2, %v504_v41  ;;  %v5698_v63 = vld [vmem:[#allocation2 + $0x1c0] sm:$0xff]  ;;  %6788 = vst [vmem:[#allocation26_spill] sm:$0xff] %v5700_v19 }
 0x134   :  { %6787 = vst [vmem:[#allocation25_spill] sm:$0xff] %v5698_v63  ;;  %1011 = vst.msk [vmem:[#allocation2 + $0x200] sm:$0xff] %vm835_vm0, %v799_v58  ;;  %v802_v30 = vsel %vm674_vm5, %v512_v36, %v738_v59  ;;  %v1095_v34 = vpack.c.bf16 %v5698_v63, %v1083_v42  ;;  %v5704_v31 = vld [vmem:[#allocation2 + $0x1f0] sm:$0xff]  ;;  %v5706_v37 = vld [vmem:[#allocation2 + $0x1e1] sm:$0xff] }
 0x135   :  { %6789 = vst [vmem:[#allocation27_spill] sm:$0xff] %v5704_v31  ;;  %v5708_v2 = vld [vmem:[#allocation2 + $0x1f1] sm:$0xff]  ;;  %1014 = vst.msk [vmem:[#allocation2 + $0x230] sm:$0xff] %vm835_vm0, %v802_v30  ;;  %v800_v20 = vsel %vm672_vm6, %v504_v41, %v736_v62  ;;  %v4430_v35 = vpop.f32.mrb[32].mxu0  ;;  %v5724_v62 = vld [vmem:[#allocation2 + $0x1c1] sm:$0xff] }
 0x136   :  { %v5711_v40 = vld [vmem:[#allocation2 + $0x1d0] sm:$0xff]  ;;  %1012 = vst.msk [vmem:[#allocation2 + $0x210] sm:$0xff] %vm835_vm0, %v800_v20  ;;  %v525_v42 = vadd.f32 %v4430_v35, %v5520_v44  ;;  %v516_v59 = vpop.f32.mrb[33].mxu0  ;;  %4470 = vmatprep.mubr.msk.bf16.mxu0 %vm835_vm0, %v1095_v34 }
 0x137   :  { %6790 = vst [vmem:[#allocation28_spill] sm:$0xff] %v5711_v40  ;;  %v5713_v45 = vld [vmem:[#allocation2 + $0x1d1] sm:$0xff]  ;;  %v1096_v41 = vpack.c.bf16 %v5700_v19, %v5711_v40  ;;  %v517_v51 = vadd.f32 %v5520_v44, %v516_v59  ;;  %v4431_v9 = vpop.f32.mrb[34].mxu0 }
 0x138   :  { %vm677_vm7 = vcmp.ge.f32.partialorder %v525_v42, 0.0  ;;  %v741_v20 = vmul.f32 0.2, %v525_v42  ;;  %v528_v35 = vadd.f32 %v4431_v9, %v5520_v44  ;;  %v519_v0 = vpop.f32.mrb[35].mxu0 }
 0x139   :  { %4471 = vmatmul.mubr.msk.bf16.gmra.mrb[72].mxu0 %vm835_vm0, %v1096_v41  ;;  %vm675_vm8 = vcmp.ge.f32.partialorder %v517_v51, 0.0  ;;  %v739_v34 = vmul.f32 0.2, %v517_v51  ;;  %v520_v15 = vadd.f32 %v5520_v44, %v519_v0 }
 0x13a   :  { %v805_v33 = vsel %vm677_vm7, %v525_v42, %v741_v20  ;;  %vm678_vm9 = vcmp.ge.f32.partialorder %v528_v35, 0.0  ;;  %v742_v57 = vmul.f32 0.2, %v528_v35  ;;  %v5743_v58 = vld [vmem:[#allocation2 + $0x220] sm:$0xff] }
 0x13b   :  { %1018 = vst.msk [vmem:[#allocation2 + $0x261] sm:$0xff] %vm835_vm0, %v805_v33  ;;  %v803_v59 = vsel %vm675_vm8, %v517_v51, %v739_v34  ;;  %vm676_vm10 = vcmp.ge.f32.partialorder %v520_v15, 0.0  ;;  %v740_v25 = vmul.f32 0.2, %v520_v15  ;;  %v5735_v36 = vld [vmem:[#allocation2 + $0x200] sm:$0xff]  ;;  %6793 = vst [vmem:[#allocation31_spill] sm:$0xff] %v5743_v58 }
 0x13c   :  { %6791 = vst [vmem:[#allocation29_spill] sm:$0xff] %v5735_v36  ;;  %1016 = vst.msk [vmem:[#allocation2 + $0x241] sm:$0xff] %vm835_vm0, %v803_v59  ;;  %v806_v9 = vsel %vm678_vm9, %v528_v35, %v742_v57  ;;  %v1097_v41 = vpack.c.bf16 %v5735_v36, %v5704_v31  ;;  %v5752_v35 = vld [vmem:[#allocation2 + $0x201] sm:$0xff] }
 0x13d   :  { %1019 = vst.msk [vmem:[#allocation2 + $0x271] sm:$0xff] %vm835_vm0, %v806_v9  ;;  %v804_v0 = vsel %vm676_vm10, %v520_v15, %v740_v25  ;;  %v4434_v42 = vpop.f32.mrb[36].mxu0  ;;  %v5741_v20 = vld [vmem:[#allocation2 + $0x210] sm:$0xff]  ;;  %v1065_v9 = vpack.c.bf16 %v5557_v21, %v1049_v32 }
 0x13e   :  { %6792 = vst [vmem:[#allocation30_spill] sm:$0xff] %v5741_v20  ;;  %v5745_v33 = vld [vmem:[#allocation2 + $0x211] sm:$0xff]  ;;  %1017 = vst.msk [vmem:[#allocation2 + $0x251] sm:$0xff] %vm835_vm0, %v804_v0  ;;  %v541_v51 = vadd.f32 %v4434_v42, %v5520_v44  ;;  %v532_v34 = vpop.f32.mrb[37].mxu0  ;;  %4474 = vmatprep.mubr.msk.bf16.mxu0 %vm835_vm0, %v1097_v41  ;;  %v1098_v57 = vpack.c.bf16 %v5743_v58, %v5741_v20 }
 0x13f   :  { %v533_v15 = vadd.f32 %v5520_v44, %v532_v34  ;;  %v4435_v59 = vpop.f32.mrb[38].mxu0 }
 0x140   :  { %vm681_vm11 = vcmp.ge.f32.partialorder %v541_v51, 0.0  ;;  %v745_v42 = vmul.f32 0.2, %v541_v51  ;;  %v544_v41 = vadd.f32 %v4435_v59, %v5520_v44  ;;  %v535_v30 = vpop.f32.mrb[39].mxu0 }
 0x141   :  { %4475 = vmatmul.mubr.msk.bf16.gmra.mrb[76].mxu0 %vm835_vm0, %v1098_v57  ;;  %vm679_vm12 = vcmp.ge.f32.partialorder %v533_v15, 0.0  ;;  %v743_v61 = vmul.f32 0.2, %v533_v15  ;;  %v536_v13 = vadd.f32 %v5520_v44, %v535_v30 }
 0x142   :  { %4480 = vmatprep.mubr.msk.bf16.mxu0 %vm835_vm0, %v1065_v9  ;;  %v809_v34 = vsel %vm681_vm11, %v541_v51, %v745_v42  ;;  %vm682_vm13 = vcmp.ge.f32.partialorder %v544_v41, 0.0  ;;  %v746_v25 = vmul.f32 0.2, %v544_v41  ;;  %v5771_v9 = vld [vmem:[#allocation2 + $0x260] sm:$0xff] }
 0x143   :  { %1022 = vst.msk [vmem:[#allocation2 + $0x2a1] sm:$0xff] %vm835_vm0, %v809_v34  ;;  %v807_v32 = vsel %vm679_vm12, %v533_v15, %v743_v61  ;;  %vm680_vm14 = vcmp.ge.f32.partialorder %v536_v13, 0.0  ;;  %v744_v0 = vmul.f32 0.2, %v536_v13  ;;  %v1066_v15 = vpack.c.bf16 %v5547_v14, %v5559_v22  ;;  %v5779_v42 = vld [vmem:[#allocation2 + $0x261] sm:$0xff] }
 0x144   :  { %1020 = vst.msk [vmem:[#allocation2 + $0x281] sm:$0xff] %vm835_vm0, %v807_v32  ;;  %v810_v59 = vsel %vm682_vm13, %v544_v41, %v746_v25  ;;  %v1401_v25 = vsel %vm1125_vm2, %v5672_v8, 0  ;;  %v1067_v34 = vpack.c.bf16 %v5581_v48, %v5550_v16  ;;  %v5799_v32 = vld [vmem:[#allocation2 + $0x271] sm:$0xff] }
 0x145   :  { %1023 = vst.msk [vmem:[#allocation2 + $0x2b1] sm:$0xff] %vm835_vm0, %v810_v59  ;;  %v808_v57 = vsel %vm680_vm14, %v536_v13, %v744_v0  ;;  %v4438_v27 = vpop.f32.mrb[40].mxu0  ;;  %v5767_v54 = vld [vmem:[#allocation2 + $0x251] sm:$0xff] }
 0x146   :  { %v5769_v30 = vld [vmem:[#allocation2 + $0x250] sm:$0xff]  ;;  %1021 = vst.msk [vmem:[#allocation2 + $0x291] sm:$0xff] %vm835_vm0, %v808_v57  ;;  %v557_v51 = vadd.f32 %v4438_v27, %v5520_v44  ;;  %v548_v61 = vpop.f32.mrb[41].mxu0  ;;  %v5789_v27 = vld [vmem:[%s6686_s3 + $0xc] sm:$0xf] }
 0x147   :  { %v549_v0 = vadd.f32 %v5520_v44, %v548_v61  ;;  %v4439_v41 = vpop.f32.mrb[42].mxu0  ;;  %v5804_v36 = vld [vmem:[#allocation2 + $0x270] sm:$0xff] }
 0x148   :  { %vm685_vm15 = vcmp.ge.f32.partialorder %v557_v51, 0.0  ;;  %v749_v8 = vmul.f32 0.2, %v557_v51  ;;  %v560_v59 = vadd.f32 %v4439_v41, %v5520_v44  ;;  %v551_v57 = vpop.f32.mrb[43].mxu0 }
 0x149   :  { %4481 = vmatmul.mubr.msk.bf16.vlgmr.msra.gmra.mrb[64].mxu0 %vm835_vm0, %v1066_v15  ;;  %vm683_vm1 = vcmp.ge.f32.partialorder %v549_v0, 0.0  ;;  %v747_v61 = vmul.f32 0.2, %v549_v0  ;;  %v552_v13 = vadd.f32 %v5520_v44, %v551_v57 }
 0x14a   :  { %4484 = vmatprep.mubr.msk.bf16.mxu0 %vm835_vm0, %v1067_v34  ;;  %4497 = vmatpush3.bf16.msra.mxu0 %v1401_v25  ;;  %v813_v24 = vsel %vm685_vm15, %v557_v51, %v749_v8  ;;  %vm686_vm3 = vcmp.ge.f32.partialorder %v560_v59, 0.0  ;;  %v750_v29 = vmul.f32 0.2, %v560_v59  ;;  %v5809_v25 = vld [vmem:[#allocation2 + $0x70] sm:$0xff]  ;;  %v5820_v31 = vld [vmem:[#allocation2 + $0x2a0] sm:$0xff] }
 0x14b   :  { %4993 = vmatprep.subr.msk.bf16.mxu0 %vm1125_vm2, %v5789_v27  ;;  %1026 = vst.msk [vmem:[#allocation2 + $0x2f1] sm:$0xff] %vm835_vm0, %v813_v24  ;;  %v811_v41 = vsel %vm683_vm1, %v549_v0, %v747_v61  ;;  %vm684_vm4 = vcmp.ge.f32.partialorder %v552_v13, 0.0  ;;  %v748_v15 = vmul.f32 0.2, %v552_v13  ;;  %v5802_v58 = vld [vmem:[#allocation2 + $0x281] sm:$0xff]  ;;  %6794 = vst [vmem:[#allocation32_spill] sm:$0xff] %v5809_v25 }
 0x14c   :  { %v5806_v57 = vld [vmem:[#allocation2 + $0x280] sm:$0xff]  ;;  %1024 = vst.msk [vmem:[#allocation2 + $0x2d1] sm:$0xff] %vm835_vm0, %v811_v41  ;;  %v814_v51 = vsel %vm686_vm3, %v560_v59, %v750_v29  ;;  %v1057_v34 = vld [vmem:[#allocation2 + $0x90] sm:$0xff]  ;;  %v1068_v41 = vpack.c.bf16 %v5809_v25, %v5583_v49 }
 0x14d   :  { %1027 = vst.msk [vmem:[#allocation2 + $0x301] sm:$0xff] %vm835_vm0, %v814_v51  ;;  %v812_v0 = vsel %vm684_vm4, %v552_v13, %v748_v15  ;;  %v4442_v61 = vpop.f32.mrb[44].mxu0  ;;  %v5816_v20 = vld [vmem:[#allocation2 + $0x291] sm:$0xff]  ;;  %v5826_v8 = vld [vmem:[#allocation2 + $0x2a1] sm:$0xff]  ;;  %v1069_v24 = vpack.c.bf16 %v5609_v10, %v1057_v34 }
 0x14e   :  { %v5818_v19 = vld [vmem:[#allocation2 + $0x290] sm:$0xff]  ;;  %1025 = vst.msk [vmem:[#allocation2 + $0x2e1] sm:$0xff] %vm835_vm0, %v812_v0  ;;  %v573_v29 = vadd.f32 %v4442_v61, %v5520_v44  ;;  %v564_v59 = vpop.f32.mrb[45].mxu0 }
 0x14f   :  { %v565_v15 = vadd.f32 %v5520_v44, %v564_v59  ;;  %v4443_v51 = vpop.f32.mrb[46].mxu0 }
 0x150   :  { %vm689_vm5 = vcmp.ge.f32.partialorder %v573_v29, 0.0  ;;  %v753_v0 = vmul.f32 0.2, %v573_v29  ;;  %v576_v61 = vadd.f32 %v4443_v51, %v5520_v44  ;;  %v567_v40 = vpop.f32.mrb[47].mxu0 }
 0x151   :  { %4485 = vmatmul.mubr.msk.bf16.gmra.mrb[68].mxu0 %vm835_vm0, %v1068_v41  ;;  %vm687_vm6 = vcmp.ge.f32.partialorder %v565_v15, 0.0  ;;  %v751_v25 = vmul.f32 0.2, %v565_v15  ;;  %v568_v48 = vadd.f32 %v5520_v44, %v567_v40 }
 0x152   :  { %4488 = vmatprep.mubr.msk.bf16.mxu0 %vm835_vm0, %v1069_v24  ;;  %v817_v59 = vsel %vm689_vm5, %v573_v29, %v753_v0  ;;  %vm690_vm7 = vcmp.ge.f32.partialorder %v576_v61, 0.0  ;;  %v754_v13 = vmul.f32 0.2, %v576_v61  ;;  %v5845_v24 = vld [vmem:[#allocation2 + $0x2f0] sm:$0xff] }
 0x153   :  { %1030 = vst.msk [vmem:[#allocation2 + $0x331] sm:$0xff] %vm835_vm0, %v817_v59  ;;  %v815_v34 = vsel %vm687_vm6, %v565_v15, %v751_v25  ;;  %vm688_vm8 = vcmp.ge.f32.partialorder %v568_v48, 0.0  ;;  %v752_v63 = vmul.f32 0.2, %v568_v48  ;;  %v1070_v15 = vpack.c.bf16 %v5599_v3, %v5611_v11  ;;  %v5851_v0 = vld [vmem:[#allocation2 + $0x2f1] sm:$0xff] }
 0x154   :  { %1028 = vst.msk [vmem:[#allocation2 + $0x311] sm:$0xff] %vm835_vm0, %v815_v34  ;;  %v818_v51 = vsel %vm690_vm7, %v576_v61, %v754_v13  ;;  %6796 = vst [vmem:[#allocation34_spill] sm:$0xff] %v5851_v0  ;;  %v1071_v61 = vpack.c.bf16 %v5633_v52, %v5602_v5  ;;  %v5864_v52 = vld [vmem:[#allocation2 + $0x301] sm:$0xff] }
 0x155   :  { %1031 = vst.msk [vmem:[#allocation2 + $0x341] sm:$0xff] %vm835_vm0, %v818_v51  ;;  %v816_v41 = vsel %vm688_vm8, %v568_v48, %v752_v63  ;;  %v4446_v10 = vpop.f32.mrb[48].mxu0  ;;  %v5841_v49 = vld [vmem:[#allocation2 + $0x2e1] sm:$0xff]  ;;  %6797 = vst [vmem:[#allocation35_spill] sm:$0xff] %v5864_v52 }
 0x156   :  { %6795 = vst [vmem:[#allocation33_spill] sm:$0xff] %v5841_v49  ;;  %v5843_v40 = vld [vmem:[#allocation2 + $0x2e0] sm:$0xff]  ;;  %1029 = vst.msk [vmem:[#allocation2 + $0x321] sm:$0xff] %vm835_vm0, %v816_v41  ;;  %v589_v29 = vadd.f32 %v4446_v10, %v5520_v44  ;;  %v580_v25 = vpop.f32.mrb[49].mxu0 }
 0x157   :  { %v581_v63 = vadd.f32 %v5520_v44, %v580_v25  ;;  %v4447_v13 = vpop.f32.mrb[50].mxu0  ;;  %v5869_v11 = vld [vmem:[#allocation2 + $0x300] sm:$0xff] }
 0x158   :  { %vm693_vm9 = vcmp.ge.f32.partialorder %v589_v29, 0.0  ;;  %v757_v10 = vmul.f32 0.2, %v589_v29  ;;  %v592_v34 = vadd.f32 %v4447_v13, %v5520_v44  ;;  %v583_v51 = vpop.f32.mrb[51].mxu0  ;;  %6799 = vst [vmem:[#allocation37_spill] sm:$0xff] %v5869_v11 }
 0x159   :  { %4489 = vmatmul.mubr.msk.bf16.gmra.mrb[72].mxu0 %vm835_vm0, %v1070_v15  ;;  %vm691_vm10 = vcmp.ge.f32.partialorder %v581_v63, 0.0  ;;  %v755_v41 = vmul.f32 0.2, %v581_v63  ;;  %v584_v48 = vadd.f32 %v5520_v44, %v583_v51 }
 0x15a   :  { %4492 = vmatprep.mubr.msk.bf16.mxu0 %vm835_vm0, %v1071_v61  ;;  %v821_v25 = vsel %vm693_vm9, %v589_v29, %v757_v10  ;;  %vm694_vm11 = vcmp.ge.f32.partialorder %v592_v34, 0.0  ;;  %v758_v3 = vmul.f32 0.2, %v592_v34  ;;  %v5874_v61 = vld [vmem:[#allocation2 + $0x100] sm:$0xff]  ;;  %v5885_v21 = vld [vmem:[#allocation2 + $0x330] sm:$0xff] }
 0x15b   :  { %1035 = vst.msk [vmem:[#allocation2 + $0x380] sm:$0xff] %vm835_vm0, %v821_v25  ;;  %v819_v59 = vsel %vm691_vm10, %v581_v63, %v755_v41  ;;  %vm692_vm12 = vcmp.ge.f32.partialorder %v584_v48, 0.0  ;;  %v756_v5 = vmul.f32 0.2, %v584_v48  ;;  %v5867_v13 = vld [vmem:[#allocation2 + $0x311] sm:$0xff]  ;;  %6801 = vst [vmem:[#allocation39_spill] sm:$0xff] %v5874_v61 }
 0x15c   :  { %6798 = vst [vmem:[#allocation36_spill] sm:$0xff] %v5867_v13  ;;  %v5871_v15 = vld [vmem:[#allocation2 + $0x310] sm:$0xff]  ;;  %1033 = vst.msk [vmem:[#allocation2 + $0x360] sm:$0xff] %vm835_vm0, %v819_v59  ;;  %v822_v51 = vsel %vm694_vm11, %v592_v34, %v758_v3  ;;  %v1350_v29 = vld [vmem:[#allocation2 + $0x1] sm:$0xff]  ;;  %v1072_v34 = vpack.c.bf16 %v5874_v61, %v5635_v55 }
 0x15d   :  { %6800 = vst [vmem:[#allocation38_spill] sm:$0xff] %v5871_v15  ;;  %1036 = vst.msk [vmem:[#allocation2 + $0x390] sm:$0xff] %vm835_vm0, %v822_v51  ;;  %v820_v41 = vsel %vm692_vm12, %v584_v48, %v756_v5  ;;  %v4450_v25 = vpop.f32.mrb[52].mxu0  ;;  %v5881_v14 = vld [vmem:[#allocation2 + $0x321] sm:$0xff]  ;;  %v5891_v10 = vld [vmem:[#allocation2 + $0x331] sm:$0xff]  ;;  %v1366_v63 = vpack.c.bf16 %v5569_v28, %v1350_v29 }
 0x15e   :  { %6802 = vst [vmem:[#allocation40_spill] sm:$0xff] %v5881_v14  ;;  %v5883_v16 = vld [vmem:[#allocation2 + $0x320] sm:$0xff]  ;;  %6804 = vst [vmem:[#allocation42_spill] sm:$0xff] %v5885_v21  ;;  %v605_v3 = vadd.f32 %v4450_v25, %v5520_v44  ;;  %v596_v59 = vpop.f32.mrb[53].mxu0 }
 0x15f   :  { %6803 = vst [vmem:[#allocation41_spill] sm:$0xff] %v5883_v16  ;;  %1034 = vst.msk [vmem:[#allocation2 + $0x370] sm:$0xff] %vm835_vm0, %v820_v41  ;;  %v597_v48 = vadd.f32 %v5520_v44, %v596_v59  ;;  %v4451_v51 = vpop.f32.mrb[54].mxu0 }
 0x160   :  { %6805 = vst [vmem:[#allocation43_spill] sm:$0xff] %v5891_v10  ;;  %vm697_vm13 = vcmp.ge.f32.partialorder %v605_v3, 0.0  ;;  %v761_v41 = vmul.f32 0.2, %v605_v3  ;;  %v608_v25 = vadd.f32 %v4451_v51, %v5520_v44  ;;  %v599_v15 = vpop.f32.mrb[55].mxu0 }
 0x161   :  { %4493 = vmatmul.mubr.msk.bf16.gmra.mrb[76].mxu0 %vm835_vm0, %v1072_v34  ;;  %vm695_vm14 = vcmp.ge.f32.partialorder %v597_v48, 0.0  ;;  %v759_v61 = vmul.f32 0.2, %v597_v48  ;;  %v600_v55 = vadd.f32 %v5520_v44, %v599_v15 }
 0x162   :  { %4498 = vmatprep.mubr.msk.bf16.mxu0 %vm835_vm0, %v1366_v63  ;;  %v825_v59 = vsel %vm697_vm13, %v605_v3, %v761_v41  ;;  %vm698_vm15 = vcmp.ge.f32.partialorder %v608_v25, 0.0  ;;  %v762_v5 = vmul.f32 0.2, %v608_v25  ;;  %v5910_v63 = vld [vmem:[#allocation2 + $0x380] sm:$0xff] }
 0x163   :  { %1039 = vst.msk [vmem:[#allocation2 + $0x3c0] sm:$0xff] %vm835_vm0, %v825_v59  ;;  %v823_v29 = vsel %vm695_vm14, %v597_v48, %v759_v61  ;;  %vm696_vm1 = vcmp.ge.f32.partialorder %v600_v55, 0.0  ;;  %v760_v22 = vmul.f32 0.2, %v600_v55  ;;  %6808 = vst [vmem:[#allocation46_spill] sm:$0xff] %v5910_v63  ;;  %v1367_v48 = vpack.c.bf16 %v5552_v17, %v5561_v23  ;;  %v5918_v41 = vld [vmem:[#allocation2 + $0x381] sm:$0xff] }
 0x164   :  { %1037 = vst.msk [vmem:[#allocation2 + $0x3a0] sm:$0xff] %vm835_vm0, %v823_v29  ;;  %v826_v51 = vsel %vm698_vm15, %v608_v25, %v762_v5  ;;  %v1567_v5 = vsel %vm1125_vm2, %v5789_v27, 0  ;;  %6809 = vst [vmem:[#allocation47_spill] sm:$0xff] %v5918_v41  ;;  %v1368_v59 = vpack.c.bf16 %v5589_v53, %v5554_v18  ;;  %v5939_v29 = vld [vmem:[#allocation2 + $0x391] sm:$0xff] }
 0x165   :  { %1040 = vst.msk [vmem:[#allocation2 + $0x3d0] sm:$0xff] %vm835_vm0, %v826_v51  ;;  %v824_v34 = vsel %vm696_vm1, %v600_v55, %v760_v22  ;;  %v4454_v28 = vpop.f32.mrb[56].mxu0  ;;  %v5050_v51 = vld [vmem:[%s6687_s2] ss:$0 sm:$0xff]  ;;  %6810 = vst [vmem:[#allocation48_spill] sm:$0xff] %v5939_v29  ;;  %v5944_v23 = vld [vmem:[#allocation2 + $0x390] sm:$0xff] }
 0x166   :  { %v5906_v21 = vld [vmem:[#allocation2 + $0x371] sm:$0xff]  ;;  %1038 = vst.msk [vmem:[#allocation2 + $0x3b0] sm:$0xff] %vm835_vm0, %v824_v34  ;;  %v621_v3 = vadd.f32 %v4454_v28, %v5520_v44  ;;  %v612_v61 = vpop.f32.mrb[57].mxu0  ;;  %6812 = vst [vmem:[#allocation50_spill] sm:$0xff] %v5944_v23 }
 0x167   :  { %6806 = vst [vmem:[#allocation44_spill] sm:$0xff] %v5906_v21  ;;  %v5908_v15 = vld [vmem:[#allocation2 + $0x370] sm:$0xff]  ;;  %v613_v55 = vadd.f32 %v5520_v44, %v612_v61  ;;  %v4455_v25 = vpop.f32.mrb[58].mxu0 }
 0x168   :  { %6807 = vst [vmem:[#allocation45_spill] sm:$0xff] %v5908_v15  ;;  %v5928_v28 = vld [vmem:[%s6686_s3 + $0x10] sm:$0xf]  ;;  %vm701_vm3 = vcmp.ge.f32.partialorder %v621_v3, 0.0  ;;  %v765_v27 = vmul.f32 0.2, %v621_v3  ;;  %v624_v34 = vadd.f32 %v5050_v51, %v4455_v25 }
 0x169   :  { %v615_v44 = vpop.f32.mrb[59].mxu0  ;;  %4499 = vmatmul.mubr.msk.bf16.vlgmr.msra.gmra.mrb[64].mxu0 %vm835_vm0, %v1367_v48  ;;  %vm699_vm4 = vcmp.ge.f32.partialorder %v613_v55, 0.0  ;;  %v763_v61 = vmul.f32 0.2, %v613_v55 }
 0x16a   :  { %v616_v22 = vadd.f32 %v5050_v51, %v615_v44  ;;  %4502 = vmatprep.mubr.msk.bf16.mxu0 %vm835_vm0, %v1368_v59  ;;  %4515 = vmatpush3.bf16.msra.mxu0 %v1567_v5  ;;  %v829_v53 = vsel %vm701_vm3, %v621_v3, %v765_v27  ;;  %vm702_vm5 = vcmp.ge.f32.partialorder %v624_v34, 0.0  ;;  %v766_v17 = vmul.f32 0.2, %v624_v34  ;;  %v5949_v5 = vld [vmem:[#allocation2 + $0x71] sm:$0xff]  ;;  %v5960_v16 = vld [vmem:[#allocation2 + $0x3c0] sm:$0xff] }
 0x16b   :  { %4994 = vmatprep.subr.msk.bf16.mxu0 %vm1125_vm2, %v5928_v28  ;;  %1043 = vst.msk [vmem:[#allocation2 + $0x410] sm:$0xff] %vm835_vm0, %v829_v53  ;;  %v827_v25 = vsel %vm699_vm4, %v613_v55, %v763_v61  ;;  %v5942_v48 = vld [vmem:[#allocation2 + $0x3a1] sm:$0xff]  ;;  %6814 = vst [vmem:[#allocation52_spill] sm:$0xff] %v5949_v5  ;;  %v1358_v59 = vld [vmem:[#allocation2 + $0x91] sm:$0xff] }
 0x16c   :  { %vm700_vm6 = vcmp.ge.f32.partialorder %v616_v22, 0.0  ;;  %v764_v18 = vmul.f32 0.2, %v616_v22  ;;  %6811 = vst [vmem:[#allocation49_spill] sm:$0xff] %v5942_v48  ;;  %v5946_v44 = vld [vmem:[#allocation2 + $0x3a0] sm:$0xff]  ;;  %1041 = vst.msk [vmem:[#allocation2 + $0x3f0] sm:$0xff] %vm835_vm0, %v827_v25  ;;  %v830_v3 = vsel %vm702_vm5, %v624_v34, %v766_v17  ;;  %v1369_v25 = vpack.c.bf16 %v5949_v5, %v5585_v50 }
 0x16d   :  { %6813 = vst [vmem:[#allocation51_spill] sm:$0xff] %v5946_v44  ;;  %1044 = vst.msk [vmem:[#allocation2 + $0x420] sm:$0xff] %vm835_vm0, %v830_v3  ;;  %v4458_v61 = vpop.f32.mrb[60].mxu0  ;;  %v5956_v63 = vld [vmem:[#allocation2 + $0x3b1] sm:$0xff]  ;;  %v5965_v27 = vld [vmem:[#allocation2 + $0x3c1] sm:$0xff]  ;;  %v1370_v53 = vpack.c.bf16 %v5621_v26, %v1358_v59 }
 0x16e   :  { %v828_v55 = vsel %vm700_vm6, %v616_v22, %v764_v18  ;;  %6815 = vst [vmem:[#allocation53_spill] sm:$0xff] %v5956_v63  ;;  %v5958_v15 = vld [vmem:[#allocation2 + $0x3b0] sm:$0xff]  ;;  %v637_v17 = vadd.f32 %v5050_v51, %v4458_v61  ;;  %v628_v34 = vpop.f32.mrb[61].mxu0  ;;  %6816 = vst [vmem:[#allocation54_spill] sm:$0xff] %v5965_v27 }
 0x16f   :  { %1042 = vst.msk [vmem:[#allocation2 + $0x400] sm:$0xff] %vm835_vm0, %v828_v55  ;;  %v629_v18 = vadd.f32 %v5050_v51, %v628_v34  ;;  %v4459_v22 = vpop.f32.mrb[62].mxu0 }
 0x170   :  { %vm705_vm7 = vcmp.ge.f32.partialorder %v637_v17, 0.0  ;;  %v769_v23 = vmul.f32 0.2, %v637_v17  ;;  %v640_v55 = vadd.f32 %v5050_v51, %v4459_v22  ;;  %v631_v61 = vpop.f32.mrb[63].mxu0 }
 0x171   :  { %4503 = vmatmul.mubr.msk.bf16.gmra.mrb[68].mxu0 %vm835_vm0, %v1369_v25  ;;  %vm703_vm8 = vcmp.ge.f32.partialorder %v629_v18, 0.0  ;;  %v767_v5 = vmul.f32 0.2, %v629_v18  ;;  %v632_v50 = vadd.f32 %v5050_v51, %v631_v61 }
 0x172   :  { %4506 = vmatprep.mubr.msk.bf16.mxu0 %vm835_vm0, %v1370_v53  ;;  %v833_v11 = vsel %vm705_vm7, %v637_v17, %v769_v23  ;;  %vm706_vm9 = vcmp.ge.f32.partialorder %v640_v55, 0.0  ;;  %v770_v34 = vmul.f32 0.2, %v640_v55  ;;  %v5976_v22 = vld [vmem:[#allocation2 + $0x410] sm:$0xff] }
 0x173   :  { %1047 = vst.msk [vmem:[#allocation2 + $0x450] sm:$0xff] %vm835_vm0, %v833_v11  ;;  %v831_v59 = vsel %vm703_vm8, %v629_v18, %v767_v5  ;;  %vm704_vm10 = vcmp.ge.f32.partialorder %v632_v50, 0.0  ;;  %v768_v3 = vmul.f32 0.2, %v632_v50  ;;  %6817 = vst [vmem:[#allocation55_spill] sm:$0xff] %v5976_v22  ;;  %v5980_v25 = vld [vmem:[#allocation2 + $0x411] sm:$0xff]  ;;  %v1371_v11 = vpack.c.bf16 %v5604_v6, %v5613_v12 }
 0x174   :  { %1045 = vst.msk [vmem:[#allocation2 + $0x430] sm:$0xff] %vm835_vm0, %v831_v59  ;;  %v834_v44 = vsel %vm706_vm9, %v640_v55, %v770_v34  ;;  %v5978_v26 = vld [vmem:[#allocation2 + $0x420] sm:$0xff]  ;;  %6819 = vst [vmem:[#allocation57_spill] sm:$0xff] %v5980_v25  ;;  %v1856_v23 = vld [vmem:[#allocation2 + $0x3f0] sm:$0xff]  ;;  %v2031_v6 = vpack.c.bf16 %v5799_v32, %v5779_v42 }
 0x175   :  { %6818 = vst [vmem:[#allocation56_spill] sm:$0xff] %v5978_v26  ;;  %1048 = vst.msk [vmem:[#allocation2 + $0x460] sm:$0xff] %vm835_vm0, %v834_v44  ;;  %v832_v51 = vsel %vm704_vm10, %v632_v50, %v768_v3  ;;  %v1372_v50 = vpack.c.bf16 %v5641_v60, %v5606_v7  ;;  %v1869_v44 = vpack.c.bf16 %v5978_v26, %v5976_v22  ;;  %v5051_v3 = vld [vmem:[%s6686_s3 + $0x18] sm:$0xf]  ;;  %v4082_v34 = vld [vmem:[%s6686_s3 + $0x1c] sm:$0xf] }
 0x176   :  { %v5983_v53 = vld [vmem:[#allocation2 + $0x400] sm:$0xff]  ;;  %1046 = vst.msk [vmem:[#allocation2 + $0x440] sm:$0xff] %vm835_vm0, %v832_v51  ;;  %v2065_v61 = vsel %vm1125_vm2, %v5051_v3, 0 }
 0x177   :  { %6820 = vst [vmem:[#allocation58_spill] sm:$0xff] %v5983_v53  ;;  %v5985_v17 = vld [vmem:[#allocation2 + $0x401] sm:$0xff]  ;;  %v1868_v5 = vpack.c.bf16 %v5983_v53, %v1856_v23 }
 0x178   :  { %6821 = vst [vmem:[#allocation59_spill] sm:$0xff] %v5985_v17  ;;  %v1516_v59 = vld [vmem:[#allocation2 + $0x121] sm:$0xff] }
 0x179   :  { %4507 = vmatmul.mubr.msk.bf16.gmra.mrb[72].mxu0 %vm835_vm0, %v1371_v11  ;;  %4560 = vmatprep.mubr.msk.bf16.mxu1 %vm835_vm0, %v1868_v5  ;;  %v6013_v23 = vld [vmem:[#allocation2 + $0x421] sm:$0xff] }
 0x17a   :  { %4510 = vmatprep.mubr.msk.bf16.mxu0 %vm835_vm0, %v1372_v50  ;;  %4561 = vmatmul.mubr.msk.bf16.vlgmr.msra.gmra.mrb[0].mxu1 %vm835_vm0, %v1869_v44  ;;  %6822 = vst [vmem:[#allocation60_spill] sm:$0xff] %v6013_v23  ;;  %v6017_v11 = vld [vmem:[#allocation2 + $0x101] sm:$0xff]  ;;  %v6019_v5 = vld [vmem:[#allocation2 + $0x450] sm:$0xff]  ;;  %v1532_v44 = vpack.c.bf16 %v5666_v1, %v1516_v59  ;;  %v1533_v50 = vpack.c.bf16 %v5652_v38, %v5657_v46 }
 0x17b   :  { %4569 = vmatpush3.bf16.msra.mxu1 %v2065_v61  ;;  %v6010_v51 = vld [vmem:[#allocation2 + $0x430] sm:$0xff]  ;;  %6824 = vst [vmem:[#allocation62_spill] sm:$0xff] %v6017_v11  ;;  %v1373_v22 = vpack.c.bf16 %v6017_v11, %v5637_v56  ;;  %v2014_v7 = vld [vmem:[#allocation2 + $0x241] sm:$0xff]  ;;  %v1534_v59 = vpack.c.bf16 %v5689_v43, %v5654_v39 }
 0x17c   :  { %4998 = vmatprep.subr.msk.bf16.mxu1 %vm1125_vm2, %v4082_v34  ;;  %v6015_v3 = vld [vmem:[#allocation2 + $0x431] sm:$0xff]  ;;  %v6021_v55 = vld [vmem:[#allocation2 + $0x460] sm:$0xff]  ;;  %v2030_v11 = vpack.c.bf16 %v5767_v54, %v2014_v7  ;;  %v2032_v7 = vpack.c.bf16 %v5816_v20, %v5802_v58 }
 0x17d   :  { %6823 = vst [vmem:[#allocation61_spill] sm:$0xff] %v6015_v3  ;;  %v6027_v61 = vld [vmem:[#allocation2 + $0x440] sm:$0xff]  ;;  %v6031_v53 = vld [vmem:[#allocation2 + $0x451] sm:$0xff]  ;;  %v1871_v26 = vpack.c.bf16 %v6021_v55, %v6019_v5 }
 0x17e   :  { %v6029_v18 = vld [vmem:[#allocation2 + $0x441] sm:$0xff]  ;;  %6826 = vst [vmem:[#allocation64_spill] sm:$0xff] %v6031_v53  ;;  %v1870_v60 = vpack.c.bf16 %v6027_v61, %v6010_v51 }
 0x17f   :  { %6825 = vst [vmem:[#allocation63_spill] sm:$0xff] %v6029_v18 }
 0x180   :  { %4564 = vmatprep.mubr.msk.bf16.mxu1 %vm835_vm0, %v1870_v60  ;;  %v4091_v60 = vld [vmem:[%s6686_s3 + $0x20] sm:$0xf] }
 0x181   :  { %4511 = vmatmul.mubr.msk.bf16.gmra.mrb[76].mxu0 %vm835_vm0, %v1373_v22  ;;  %v2231_v22 = vsel %vm1125_vm2, %v4082_v34, 0  ;;  %v1524_v34 = vld [vmem:[#allocation2 + $0x1b1] sm:$0xff] }
 0x182   :  { %4516 = vmatprep.mubr.msk.bf16.mxu0 %vm835_vm0, %v1532_v44  ;;  %4565 = vmatmul.mubr.msk.bf16.gmra.mrb[4].mxu1 %vm835_vm0, %v1871_v26  ;;  %v1733_v26 = vsel %vm1125_vm2, %v5928_v28, 0  ;;  %v5052_v28 = vld [vmem:[%s6686_s3 + $0x14] sm:$0xf]  ;;  %v1536_v44 = vpack.c.bf16 %v5724_v62, %v1524_v34  ;;  %v1538_v34 = vpack.c.bf16 %v5752_v35, %v5708_v2 }
 0x183   :  { %4570 = vmatprep.mubr.msk.bf16.mxu1 %vm835_vm0, %v2030_v11  ;;  %v6069_v11 = vld [vmem:[#allocation2 + $0x2b1] sm:$0xff] }
 0x189   :  { %4517 = vmatmul.mubr.msk.bf16.vlgmr.msra.gmra.mrb[64].mxu0 %vm835_vm0, %v1533_v50  ;;  %v6075_v50 = vld [vmem:[#allocation2 + $0x191] sm:$0xff] }
 0x18a   :  { %4520 = vmatprep.mubr.msk.bf16.mxu0 %vm835_vm0, %v1534_v59  ;;  %4571 = vmatmul.mubr.msk.bf16.vlgmr.msra.gmra.mrb[8].mxu1 %vm835_vm0, %v2031_v6  ;;  %v1535_v6 = vpack.c.bf16 %v6075_v50, %v5684_v4  ;;  %v2033_v59 = vpack.c.bf16 %v6069_v11, %v5826_v8 }
 0x18b   :  { %4587 = vmatpush3.bf16.msra.mxu1 %v2231_v22  ;;  %4574 = vmatprep.mubr.msk.bf16.mxu1 %vm835_vm0, %v2032_v7  ;;  %v2022_v22 = vld [vmem:[#allocation2 + $0x2d1] sm:$0xff] }
 0x18c   :  { %4533 = vmatpush3.bf16.msra.mxu0 %v1733_v26  ;;  %4999 = vmatprep.subr.msk.bf16.mxu1 %vm1125_vm2, %v4091_v60  ;;  %v2034_v7 = vpack.c.bf16 %v5841_v49, %v2022_v22  ;;  %v1537_v26 = vpack.c.bf16 %v5706_v37, %v5713_v45 }
 0x18d   :  { %4995 = vmatprep.subr.msk.bf16.mxu0 %vm1125_vm2, %v5052_v28  ;;  %v2035_v28 = vpack.c.bf16 %v5864_v52, %v5851_v0 }
 0x191   :  { %4521 = vmatmul.mubr.msk.bf16.gmra.mrb[68].mxu0 %vm835_vm0, %v1535_v6  ;;  %v2036_v6 = vpack.c.bf16 %v5881_v14, %v5867_v13  ;;  %v2180_v14 = vld [vmem:[#allocation2 + $0x361] sm:$0xff] }
 0x192   :  { %4524 = vmatprep.mubr.msk.bf16.mxu0 %vm835_vm0, %v1536_v44  ;;  %4575 = vmatmul.mubr.msk.bf16.gmra.mrb[12].mxu1 %vm835_vm0, %v2033_v59  ;;  %v6099_v44 = vld [vmem:[#allocation2 + $0x341] sm:$0xff] }
 0x193   :  { %4578 = vmatprep.mubr.msk.bf16.mxu1 %vm835_vm0, %v2034_v7  ;;  %6827 = vst [vmem:[#allocation65_spill] sm:$0xff] %v6099_v44  ;;  %v6101_v59 = vld [vmem:[#allocation2 + $0x221] sm:$0xff] }
 0x194   :  { %v1539_v22 = vpack.c.bf16 %v6101_v59, %v5745_v33  ;;  %v1682_v7 = vld [vmem:[#allocation2 + $0x240] sm:$0xff] }
 0x195   :  { %v1698_v52 = vpack.c.bf16 %v5769_v30, %v1682_v7  ;;  %v2197_v7 = vpack.c.bf16 %v5939_v29, %v5918_v41  ;;  %v6831_v29 = vld [vmem:[#allocation41_spill] sm:$0xff] }
 0x199   :  { %4525 = vmatmul.mubr.msk.bf16.gmra.mrb[72].mxu0 %vm835_vm0, %v1537_v26  ;;  %v2037_v26 = vpack.c.bf16 %v6099_v44, %v5891_v10  ;;  %v2397_v44 = vsel %vm1125_vm2, %v4091_v60, 0  ;;  %v6133_v60 = vld [vmem:[#allocation2 + $0x3d1] sm:$0xff] }
 0x19a   :  { %4528 = vmatprep.mubr.msk.bf16.mxu0 %vm835_vm0, %v1538_v34  ;;  %4579 = vmatmul.mubr.msk.bf16.gmra.mrb[0].mxu1 %vm835_vm0, %v2035_v28  ;;  %v2196_v34 = vpack.c.bf16 %v5906_v21, %v2180_v14  ;;  %v1699_v28 = vpack.c.bf16 %v5804_v36, %v5771_v9  ;;  %v2198_v14 = vpack.c.bf16 %v5956_v63, %v5942_v48  ;;  %v6830_v63 = vld [vmem:[#allocation38_spill] sm:$0xff]  ;;  %v6840_v48 = vld [vmem:[#allocation51_spill] sm:$0xff] }
 0x19b   :  { %4582 = vmatprep.mubr.msk.bf16.mxu1 %vm835_vm0, %v2036_v6  ;;  %v1700_v6 = vpack.c.bf16 %v5818_v19, %v5806_v57  ;;  %6828 = vst [vmem:[#allocation66_spill] sm:$0xff] %v6133_v60  ;;  %v6855_v10 = vld [vmem:[#allocation22_spill] sm:$0xff] }
 0x1a1   :  { %4529 = vmatmul.mubr.msk.bf16.gmra.mrb[76].mxu0 %vm835_vm0, %v1539_v22  ;;  %v6129_v22 = vld [vmem:[#allocation2 + $0x2b0] sm:$0xff] }
 0x1a2   :  { %4534 = vmatprep.mubr.msk.bf16.mxu0 %vm835_vm0, %v1698_v52  ;;  %4583 = vmatmul.mubr.msk.bf16.gmra.mrb[4].mxu1 %vm835_vm0, %v2037_v26  ;;  %v4100_v52 = vld [vmem:[%s6686_s3 + $0x24] sm:$0xf]  ;;  %v1701_v26 = vpack.c.bf16 %v6129_v22, %v5820_v31 }
 0x1a3   :  { %4588 = vmatprep.mubr.msk.bf16.mxu1 %vm835_vm0, %v2196_v34  ;;  %v1690_v34 = vld [vmem:[#allocation2 + $0x2d0] sm:$0xff]  ;;  %v2563_v21 = vsel %vm1125_vm2, %v4100_v52, 0 }
 0x1a9   :  { %4535 = vmatmul.mubr.msk.bf16.vlgmr.msra.gmra.mrb[64].mxu0 %vm835_vm0, %v1699_v28  ;;  %v1702_v28 = vpack.c.bf16 %v5843_v40, %v1690_v34  ;;  %v1704_v34 = vpack.c.bf16 %v6831_v29, %v6830_v63 }
 0x1aa   :  { %4538 = vmatprep.mubr.msk.bf16.mxu0 %vm835_vm0, %v1700_v6  ;;  %4589 = vmatmul.mubr.msk.bf16.vlgmr.msra.gmra.mrb[8].mxu1 %vm835_vm0, %v2197_v7  ;;  %v2199_v6 = vpack.c.bf16 %v6133_v60, %v5965_v27  ;;  %v2201_v60 = vpack.c.bf16 %v6013_v23, %v5980_v25  ;;  %v6834_v23 = vld [vmem:[#allocation45_spill] sm:$0xff] }
 0x1ab   :  { %4605 = vmatpush3.bf16.msra.mxu1 %v2397_v44  ;;  %4592 = vmatprep.mubr.msk.bf16.mxu1 %vm835_vm0, %v2198_v14  ;;  %v2188_v44 = vld [vmem:[#allocation2 + $0x3f1] sm:$0xff] }
 0x1ac   :  { %4551 = vmatpush3.bf16.msra.mxu0 %v5527_v47  ;;  %5000 = vmatprep.subr.msk.bf16.mxu1 %vm1125_vm2, %v4100_v52  ;;  %v2200_v7 = vpack.c.bf16 %v5985_v17, %v2188_v44  ;;  %v6829_v47 = vld [vmem:[#allocation37_spill] sm:$0xff]  ;;  %v6833_v44 = vld [vmem:[#allocation42_spill] sm:$0xff]  ;;  %v1848_v17 = vld [vmem:[#allocation2 + $0x360] sm:$0xff] }
 0x1ad   :  { %v1703_v14 = vpack.c.bf16 %v6829_v47, %v5845_v24  ;;  %v1864_v25 = vpack.c.bf16 %v6834_v23, %v1848_v17  ;;  %v1866_v17 = vpack.c.bf16 %v5958_v15, %v6840_v48  ;;  %v6191_v52 = vld [vmem:[#allocation2 + $0x3d0] sm:$0xff] }
 0x1b1   :  { %4539 = vmatmul.mubr.msk.bf16.gmra.mrb[68].mxu0 %vm835_vm0, %v1701_v26  ;;  %v2202_v26 = vpack.c.bf16 %v6029_v18, %v6015_v3  ;;  %v6838_v18 = vld [vmem:[#allocation46_spill] sm:$0xff] }
 0x1b2   :  { %4542 = vmatprep.mubr.msk.bf16.mxu0 %vm835_vm0, %v1702_v28  ;;  %4593 = vmatmul.mubr.msk.bf16.gmra.mrb[12].mxu1 %vm835_vm0, %v2199_v6  ;;  %v6157_v28 = vld [vmem:[#allocation2 + $0x340] sm:$0xff]  ;;  %v6839_v3 = vld [vmem:[#allocation50_spill] sm:$0xff] }
 0x1b3   :  { %4596 = vmatprep.mubr.msk.bf16.mxu1 %vm835_vm0, %v2200_v7  ;;  %v6159_v6 = vld [vmem:[#allocation2 + $0x461] sm:$0xff]  ;;  %v1705_v7 = vpack.c.bf16 %v6157_v28, %v6833_v44  ;;  %v1865_v27 = vpack.c.bf16 %v6839_v3, %v6838_v18 }
 0x1b4   :  { %6832 = vst [vmem:[#allocation37_spill] sm:$0xff] %v6159_v6 }
 0x1b9   :  { %4543 = vmatmul.mubr.msk.bf16.gmra.mrb[72].mxu0 %vm835_vm0, %v1703_v14  ;;  %v2203_v14 = vpack.c.bf16 %v6159_v6, %v6031_v53  ;;  %v1867_v53 = vpack.c.bf16 %v6191_v52, %v5960_v16 }
 0x1ba   :  { %4546 = vmatprep.mubr.msk.bf16.mxu0 %vm835_vm0, %v1704_v34  ;;  %4597 = vmatmul.mubr.msk.bf16.gmra.mrb[0].mxu1 %vm835_vm0, %v2201_v60  ;;  %v6835_v60 = vld [vmem:[#allocation8_spill] sm:$0xff]  ;;  %v6836_v34 = vld [vmem:[#allocation7_spill] sm:$0xff] }
 0x1bb   :  { %4600 = vmatprep.mubr.msk.bf16.mxu1 %vm835_vm0, %v2202_v26  ;;  %v6837_v26 = vpack.c.bf16 %v6835_v60, %v6836_v34  ;;  %v6844_v34 = vld [vmem:[#allocation12_spill] sm:$0xff] }
 0x1c1   :  { %4547 = vmatmul.mubr.msk.bf16.gmra.mrb[76].mxu0 %vm835_vm0, %v1705_v7  ;;  %v6841_v7 = vld [vmem:[#allocation4_spill] sm:$0xff] }
 0x1c2   :  { %4552 = vmatprep.mubr.msk.bf16.mxu0 %vm835_vm0, %v1864_v25  ;;  %4601 = vmatmul.mubr.msk.bf16.gmra.mrb[4].mxu1 %vm835_vm0, %v2203_v14  ;;  %v4109_v25 = vld [vmem:[%s6686_s3 + $0x28] sm:$0xf]  ;;  %v6842_v14 = vld [vmem:[#allocation3_spill] sm:$0xff] }
 0x1c3   :  { %4606 = vmatprep.mubr.msk.bf16.mxu1 %vm835_vm0, %v6837_v26  ;;  %v6843_v60 = vpack.c.bf16 %v6841_v7, %v6842_v14  ;;  %v6845_v26 = vld [vmem:[#allocation11_spill] sm:$0xff] }
 0x1c4   :  { %v6846_v6 = vpack.c.bf16 %v6844_v34, %v6845_v26  ;;  %v6849_v7 = vld [vmem:[#allocation19_spill] sm:$0xff] }
 0x1c5   :  { %v6854_v26 = vld [vmem:[#allocation23_spill] sm:$0xff] }
 0x1c6   :  { %v6856_v13 = vpack.c.bf16 %v6854_v26, %v6855_v10 }
 0x1c9   :  { %4553 = vmatmul.mubr.msk.bf16.vlgmr.msra.gmra.mrb[64].mxu0 %vm835_vm0, %v1865_v27  ;;  %v2353_v27 = vld [vmem:[#allocation2 + $0x80] sm:$0xff] }
 0x1ca   :  { %4556 = vmatprep.mubr.msk.bf16.mxu0 %vm835_vm0, %v1866_v17  ;;  %4607 = vmatmul.mubr.msk.bf16.vlgmr.msra.gmra.mrb[8].mxu1 %vm835_vm0, %v6843_v60  ;;  %v6847_v17 = vld [vmem:[#allocation32_spill] sm:$0xff]  ;;  %v6852_v60 = vld [vmem:[#allocation15_spill] sm:$0xff] }
 0x1cb   :  { %4623 = vmatpush3.bf16.msra.mxu1 %v2563_v21  ;;  %4610 = vmatprep.mubr.msk.bf16.mxu1 %vm835_vm0, %v6846_v6  ;;  %v2365_v41 = vpack.c.bf16 %v2353_v27, %v6847_v17  ;;  %v6848_v21 = vld [vmem:[#allocation20_spill] sm:$0xff]  ;;  %v2361_v27 = vld [vmem:[#allocation2 + $0x110] sm:$0xff]  ;;  %v2513_v17 = vld [vmem:[#allocation2 + $0x140] sm:$0xff] }
 0x1cc   :  { %5001 = vmatprep.subr.msk.bf16.mxu1 %vm1125_vm2, %v4109_v25  ;;  %v6850_v14 = vpack.c.bf16 %v6848_v21, %v6849_v7  ;;  %v6851_v6 = vld [vmem:[#allocation16_spill] sm:$0xff]  ;;  %v2515_v21 = vld [vmem:[#allocation2 + $0x160] sm:$0xff] }
 0x1cd   :  { %v6853_v34 = vpack.c.bf16 %v6851_v6, %v6852_v60  ;;  %v2517_v7 = vld [vmem:[#allocation2 + $0x180] sm:$0xff]  ;;  %v2729_v60 = vsel %vm1125_vm2, %v4109_v25, 0  ;;  %v6859_v25 = vld [vmem:[#allocation25_spill] sm:$0xff] }
 0x1d1   :  { %4557 = vmatmul.mubr.msk.bf16.gmra.mrb[68].mxu0 %vm835_vm0, %v1867_v53  ;;  %v6857_v53 = vld [vmem:[#allocation39_spill] sm:$0xff] }
 0x1d2   :  { %4611 = vmatmul.mubr.msk.bf16.gmra.mrb[12].mxu1 %vm835_vm0, %v2365_v41  ;;  %v2369_v49 = vpack.c.bf16 %v2361_v27, %v6857_v53  ;;  %v2512_v41 = vld [vmem:[#allocation2 + $0x130] sm:$0xff]  ;;  %v6858_v27 = vld [vmem:[#allocation28_spill] sm:$0xff]  ;;  %v6861_v53 = vld [vmem:[#allocation27_spill] sm:$0xff] }
 0x1d3   :  { %4614 = vmatprep.mubr.msk.bf16.mxu1 %vm835_vm0, %v6850_v14  ;;  %v2528_v0 = vpack.c.bf16 %v2513_v17, %v2512_v41  ;;  %v2514_v14 = vld [vmem:[#allocation2 + $0x150] sm:$0xff]  ;;  %v6860_v17 = vpack.c.bf16 %v6858_v27, %v6859_v25  ;;  %v6862_v41 = vld [vmem:[#allocation26_spill] sm:$0xff] }
 0x1d4   :  { %v2529_v6 = vpack.c.bf16 %v2515_v21, %v2514_v14  ;;  %v6863_v21 = vpack.c.bf16 %v6861_v53, %v6862_v41  ;;  %v6865_v14 = vld [vmem:[#allocation29_spill] sm:$0xff] }
 0x1d5   :  { %v4127_v25 = vld [vmem:[%s6686_s3 + $0x30] sm:$0xf] }
 0x1d6   :  { %v6872_v53 = vld [vmem:[#allocation5_spill] sm:$0xff] }
 0x1da   :  { %4615 = vmatmul.mubr.msk.bf16.gmra.mrb[0].mxu1 %vm835_vm0, %v6853_v34  ;;  %v2516_v34 = vld [vmem:[#allocation2 + $0x170] sm:$0xff] }
 0x1db   :  { %4618 = vmatprep.mubr.msk.bf16.mxu1 %vm835_vm0, %v6856_v13  ;;  %v2530_v10 = vpack.c.bf16 %v2517_v7, %v2516_v34  ;;  %v4118_v13 = vld [vmem:[%s6686_s3 + $0x2c] sm:$0xf]  ;;  %v6864_v7 = vld [vmem:[#allocation30_spill] sm:$0xff]  ;;  %v6867_v34 = vld [vmem:[#allocation31_spill] sm:$0xff] }
 0x1dc   :  { %v2895_v27 = vsel %vm1125_vm2, %v4118_v13, 0 }
 0x1e2   :  { %4619 = vmatmul.mubr.msk.bf16.gmra.mrb[4].mxu1 %vm835_vm0, %v2369_v49  ;;  %v2519_v49 = vld [vmem:[#allocation2 + $0x1a0] sm:$0xff] }
 0x1e3   :  { %4624 = vmatprep.mubr.msk.bf16.mxu1 %vm835_vm0, %v2528_v0  ;;  %v2518_v0 = vld [vmem:[#allocation2 + $0x190] sm:$0xff] }
 0x1e4   :  { %v2531_v26 = vpack.c.bf16 %v2519_v49, %v2518_v0  ;;  %v6868_v49 = vld [vmem:[#allocation9_spill] sm:$0xff]  ;;  %v6869_v0 = vld [vmem:[#allocation10_spill] sm:$0xff] }
 0x1ea   :  { %4625 = vmatmul.mubr.msk.bf16.vlgmr.msra.gmra.mrb[8].mxu1 %vm835_vm0, %v2529_v6  ;;  %v6866_v6 = vpack.c.bf16 %v6864_v7, %v6865_v14  ;;  %v6875_v7 = vld [vmem:[#allocation14_spill] sm:$0xff] }
 0x1eb   :  { %4641 = vmatpush3.bf16.msra.mxu1 %v2729_v60  ;;  %4628 = vmatprep.mubr.msk.bf16.mxu1 %vm835_vm0, %v2530_v10  ;;  %v2527_v60 = vld [vmem:[#allocation2 + $0x230] sm:$0xff] }
 0x1ec   :  { %5002 = vmatprep.subr.msk.bf16.mxu1 %vm1125_vm2, %v4118_v13  ;;  %v2535_v10 = vpack.c.bf16 %v2527_v60, %v6867_v34  ;;  %v6877_v60 = vld [vmem:[#allocation52_spill] sm:$0xff]  ;;  %v6878_v34 = vld [vmem:[#allocation21_spill] sm:$0xff] }
 0x1f2   :  { %4629 = vmatmul.mubr.msk.bf16.gmra.mrb[12].mxu1 %vm835_vm0, %v2531_v26  ;;  %v6870_v26 = vpack.c.bf16 %v6868_v49, %v6869_v0  ;;  %v6880_v49 = vld [vmem:[#allocation18_spill] sm:$0xff]  ;;  %v6881_v0 = vld [vmem:[#allocation17_spill] sm:$0xff] }
 0x1f3   :  { %4632 = vmatprep.mubr.msk.bf16.mxu1 %vm835_vm0, %v6860_v17  ;;  %v6871_v17 = vld [vmem:[#allocation6_spill] sm:$0xff] }
 0x1f4   :  { %v6873_v41 = vpack.c.bf16 %v6871_v17, %v6872_v53  ;;  %v2693_v53 = vld [vmem:[#allocation2 + $0x111] sm:$0xff] }
 0x1fa   :  { %4633 = vmatmul.mubr.msk.bf16.gmra.mrb[0].mxu1 %vm835_vm0, %v6863_v21  ;;  %v6874_v21 = vld [vmem:[#allocation13_spill] sm:$0xff] }
 0x1fb   :  { %4636 = vmatprep.mubr.msk.bf16.mxu1 %vm835_vm0, %v6866_v6  ;;  %v6876_v14 = vpack.c.bf16 %v6874_v21, %v6875_v7  ;;  %v2685_v6 = vld [vmem:[#allocation2 + $0x81] sm:$0xff]  ;;  %v3062_v7 = vsel %vm1125_vm2, %v4127_v25, 0 }
 0x1fc   :  { %v2697_v13 = vpack.c.bf16 %v2685_v6, %v6877_v60  ;;  %v6888_v6 = vpack.c.bf16 %v5684_v4, %v5689_v43  ;;  %v2859_v4 = vld [vmem:[#allocation2 + $0x231] sm:$0xff] }
 0x1fd   :  { %v2867_v43 = vpack.c.bf16 %v2859_v4, %v6101_v59  ;;  %v6901_v59 = vld [vmem:[#allocation55_spill] sm:$0xff] }
 0x202   :  { %4637 = vmatmul.mubr.msk.bf16.gmra.mrb[4].mxu1 %vm835_vm0, %v2535_v10  ;;  %v6879_v10 = vpack.c.bf16 %v5613_v12, %v6878_v34  ;;  %v6886_v12 = vpack.c.bf16 %v5657_v46, %v5666_v1  ;;  %v2851_v46 = vld [vmem:[#allocation2 + $0x1a1] sm:$0xff] }
 0x203   :  { %4642 = vmatprep.mubr.msk.bf16.mxu1 %vm835_vm0, %v6870_v26  ;;  %v6882_v26 = vpack.c.bf16 %v6880_v49, %v6881_v0  ;;  %v2863_v1 = vpack.c.bf16 %v2851_v46, %v6075_v50  ;;  %v6900_v50 = vpack.c.bf16 %v5960_v16, %v5958_v15  ;;  %v6906_v16 = vpack.c.bf16 %v6019_v5, %v6027_v61  ;;  %v3193_v15 = vld [vmem:[#allocation2 + $0x470] sm:$0xff]  ;;  %v6913_v0 = vld [vmem:[#allocation36_spill] sm:$0xff]  ;;  %v6920_v46 = vld [vmem:[#allocation47_spill] sm:$0xff] }
 0x204   :  { %v6909_v5 = vpack.c.bf16 %v5826_v8, %v5816_v20 }
 0x20a   :  { %4643 = vmatmul.mubr.msk.bf16.vlgmr.msra.gmra.mrb[8].mxu1 %vm835_vm0, %v6873_v41  ;;  %v6885_v41 = vld [vmem:[#allocation62_spill] sm:$0xff] }
 0x20b   :  { %4659 = vmatpush3.bf16.msra.mxu1 %v2895_v27  ;;  %4646 = vmatprep.mubr.msk.bf16.mxu1 %vm835_vm0, %v6876_v14  ;;  %v6883_v27 = vld [vmem:[#allocation24_spill] sm:$0xff]  ;;  %v2701_v21 = vpack.c.bf16 %v2693_v53, %v6885_v41  ;;  %v4136_v14 = vld [vmem:[%s6686_s3 + $0x34] sm:$0xf] }
 0x20c   :  { %5003 = vmatprep.subr.msk.bf16.mxu1 %vm1125_vm2, %v4127_v25  ;;  %v6884_v17 = vpack.c.bf16 %v5637_v56, %v6883_v27  ;;  %v6887_v56 = vpack.c.bf16 %v5654_v39, %v5652_v38  ;;  %v6889_v25 = vpack.c.bf16 %v5713_v45, %v5724_v62  ;;  %v6890_v38 = vpack.c.bf16 %v5708_v2, %v5706_v37  ;;  %v4145_v37 = vld [vmem:[%s6686_s3 + $0x38] sm:$0xf] }
 0x20d   :  { %v6891_v39 = vpack.c.bf16 %v5745_v33, %v5752_v35  ;;  %v6892_v45 = vpack.c.bf16 %v5771_v9, %v5769_v30  ;;  %v3229_v62 = vsel %vm1125_vm2, %v4136_v14, 0  ;;  %v6893_v2 = vpack.c.bf16 %v5806_v57, %v5804_v36  ;;  %v3018_v35 = vld [vmem:[#allocation2 + $0x2c0] sm:$0xff] }
 0x20e   :  { %v6894_v33 = vpack.c.bf16 %v5820_v31, %v5818_v19  ;;  %v3030_v30 = vpack.c.bf16 %v3018_v35, %v6129_v22  ;;  %v6895_v9 = vpack.c.bf16 %v5845_v24, %v5843_v40  ;;  %v6896_v36 = vpack.c.bf16 %v6830_v63, %v6829_v47  ;;  %v3026_v19 = vld [vmem:[#allocation2 + $0x350] sm:$0xff]  ;;  %v4154_v63 = vld [vmem:[%s6686_s3 + $0x3c] sm:$0xf] }
 0x20f   :  { %v6897_v31 = vpack.c.bf16 %v6833_v44, %v6831_v29  ;;  %v3034_v57 = vpack.c.bf16 %v3026_v19, %v6157_v28  ;;  %v6898_v40 = vpack.c.bf16 %v6838_v18, %v6834_v23  ;;  %v3395_v24 = vsel %vm1125_vm2, %v4145_v37, 0  ;;  %v3185_v18 = vld [vmem:[#allocation2 + $0x3e0] sm:$0xff]  ;;  %v6902_v22 = vld [vmem:[#allocation58_spill] sm:$0xff] }
 0x210   :  { %v6899_v29 = vpack.c.bf16 %v6840_v48, %v6839_v3  ;;  %v3197_v23 = vpack.c.bf16 %v3185_v18, %v6191_v52  ;;  %v6903_v47 = vpack.c.bf16 %v6901_v59, %v6902_v22  ;;  %v6904_v48 = vld [vmem:[#allocation56_spill] sm:$0xff]  ;;  %v3201_v28 = vpack.c.bf16 %v3193_v15, %v6021_v55  ;;  %v6931_v19 = vld [vmem:[#allocation59_spill] sm:$0xff]  ;;  %v6939_v59 = vld [vmem:[#allocation37_spill] sm:$0xff] }
 0x211   :  { %v6905_v3 = vpack.c.bf16 %v6010_v51, %v6904_v48  ;;  %v6907_v44 = vpack.c.bf16 %v5779_v42, %v5767_v54  ;;  %v3561_v52 = vsel %vm1125_vm2, %v4154_v63, 0  ;;  %v6908_v51 = vpack.c.bf16 %v5802_v58, %v5799_v32  ;;  %v3351_v54 = vld [vmem:[#allocation2 + $0x2c1] sm:$0xff]  ;;  %v6910_v58 = vld [vmem:[#allocation34_spill] sm:$0xff]  ;;  %v6911_v32 = vld [vmem:[#allocation33_spill] sm:$0xff] }
 0x212   :  { %4647 = vmatmul.mubr.msk.bf16.gmra.mrb[12].mxu1 %vm835_vm0, %v2697_v13  ;;  %v3363_v13 = vpack.c.bf16 %v3351_v54, %v6069_v11  ;;  %v6912_v34 = vpack.c.bf16 %v6910_v58, %v6911_v32  ;;  %v6916_v11 = vld [vmem:[#allocation43_spill] sm:$0xff] }
 0x213   :  { %4650 = vmatprep.mubr.msk.bf16.mxu1 %vm835_vm0, %v6879_v10  ;;  %v6444_v48 = vld [vmem:[%s6688_s4] ss:$0 sm:$0xff] }
 0x21a   :  { %4651 = vmatmul.mubr.msk.bf16.gmra.mrb[0].mxu1 %vm835_vm0, %v6882_v26  ;;  %v6914_v26 = vld [vmem:[#allocation35_spill] sm:$0xff] }
 0x21b   :  { %4654 = vmatprep.mubr.msk.bf16.mxu1 %vm835_vm0, %v6884_v17  ;;  %v6915_v27 = vpack.c.bf16 %v6913_v0, %v6914_v26  ;;  %v6917_v17 = vld [vmem:[#allocation40_spill] sm:$0xff] }
 0x21c   :  { %v6918_v53 = vpack.c.bf16 %v6916_v11, %v6917_v17 }
 0x222   :  { %4655 = vmatmul.mubr.msk.bf16.gmra.mrb[4].mxu1 %vm835_vm0, %v2701_v21 }
 0x223   :  { %4660 = vmatprep.mubr.msk.bf16.mxu1 %vm835_vm0, %v6886_v12  ;;  %v3359_v12 = vld [vmem:[#allocation2 + $0x351] sm:$0xff] }
 0x22a   :  { %4661 = vmatmul.mubr.msk.bf16.vlgmr.msra.gmra.mrb[8].mxu1 %vm835_vm0, %v6887_v56  ;;  %v6919_v56 = vld [vmem:[#allocation65_spill] sm:$0xff] }
 0x22b   :  { %4677 = vmatpush3.bf16.msra.mxu1 %v3062_v7  ;;  %4664 = vmatprep.mubr.msk.bf16.mxu1 %vm835_vm0, %v6888_v6  ;;  %v3367_v6 = vpack.c.bf16 %v3359_v12, %v6919_v56 }
 0x22c   :  { %5004 = vmatprep.subr.msk.bf16.mxu1 %vm1125_vm2, %v4136_v14 }
 0x232   :  { %4665 = vmatmul.mubr.msk.bf16.gmra.mrb[12].mxu1 %vm835_vm0, %v2863_v1  ;;  %v6921_v1 = vld [vmem:[#allocation44_spill] sm:$0xff] }
 0x233   :  { %4668 = vmatprep.mubr.msk.bf16.mxu1 %vm835_vm0, %v6889_v25  ;;  %v6922_v25 = vpack.c.bf16 %v6920_v46, %v6921_v1 }
 0x23a   :  { %4669 = vmatmul.mubr.msk.bf16.gmra.mrb[0].mxu1 %vm835_vm0, %v6890_v38 }
 0x23b   :  { %4672 = vmatprep.mubr.msk.bf16.mxu1 %vm835_vm0, %v6891_v39 }
 0x242   :  { %4673 = vmatmul.mubr.msk.bf16.gmra.mrb[4].mxu1 %vm835_vm0, %v2867_v43 }
 0x243   :  { %4678 = vmatprep.mubr.msk.bf16.mxu1 %vm835_vm0, %v6892_v45  ;;  %v6923_v45 = vld [vmem:[#allocation49_spill] sm:$0xff] }
 0x24a   :  { %4679 = vmatmul.mubr.msk.bf16.vlgmr.msra.gmra.mrb[8].mxu1 %vm835_vm0, %v6893_v2  ;;  %v6926_v2 = vld [vmem:[#allocation54_spill] sm:$0xff] }
 0x24b   :  { %4695 = vmatpush3.bf16.msra.mxu1 %v3229_v62  ;;  %4682 = vmatprep.mubr.msk.bf16.mxu1 %vm835_vm0, %v6894_v33  ;;  %v6924_v62 = vld [vmem:[#allocation48_spill] sm:$0xff]  ;;  %v6927_v33 = vld [vmem:[#allocation53_spill] sm:$0xff] }
 0x24c   :  { %5005 = vmatprep.subr.msk.bf16.mxu1 %vm1125_vm2, %v4145_v37  ;;  %v6925_v37 = vpack.c.bf16 %v6923_v45, %v6924_v62  ;;  %v6928_v35 = vpack.c.bf16 %v6926_v2, %v6927_v33 }
 0x252   :  { %4683 = vmatmul.mubr.msk.bf16.gmra.mrb[12].mxu1 %vm835_vm0, %v3030_v30  ;;  %v3517_v30 = vld [vmem:[#allocation2 + $0x3e1] sm:$0xff] }
 0x253   :  { %4686 = vmatprep.mubr.msk.bf16.mxu1 %vm835_vm0, %v6895_v9  ;;  %v6929_v9 = vld [vmem:[#allocation66_spill] sm:$0xff] }
 0x25a   :  { %4687 = vmatmul.mubr.msk.bf16.gmra.mrb[0].mxu1 %vm835_vm0, %v6896_v36  ;;  %v3529_v36 = vpack.c.bf16 %v3517_v30, %v6929_v9 }
 0x25b   :  { %4690 = vmatprep.mubr.msk.bf16.mxu1 %vm835_vm0, %v6897_v31  ;;  %v6930_v31 = vld [vmem:[#allocation57_spill] sm:$0xff] }
 0x262   :  { %4691 = vmatmul.mubr.msk.bf16.gmra.mrb[4].mxu1 %vm835_vm0, %v3034_v57  ;;  %v6932_v57 = vpack.c.bf16 %v6930_v31, %v6931_v19 }
 0x263   :  { %4696 = vmatprep.mubr.msk.bf16.mxu1 %vm835_vm0, %v6898_v40  ;;  %v6933_v40 = vld [vmem:[#allocation61_spill] sm:$0xff] }
 0x26a   :  { %4697 = vmatmul.mubr.msk.bf16.vlgmr.msra.gmra.mrb[8].mxu1 %vm835_vm0, %v6899_v29  ;;  %v6936_v29 = vld [vmem:[#allocation64_spill] sm:$0xff] }
 0x26b   :  { %4713 = vmatpush3.bf16.msra.mxu1 %v3395_v24  ;;  %4700 = vmatprep.mubr.msk.bf16.mxu1 %vm835_vm0, %v6900_v50  ;;  %v6934_v24 = vld [vmem:[#allocation60_spill] sm:$0xff]  ;;  %v6937_v50 = vld [vmem:[#allocation63_spill] sm:$0xff] }
 0x26c   :  { %5006 = vmatprep.subr.msk.bf16.mxu1 %vm1125_vm2, %v4154_v63  ;;  %v6935_v63 = vpack.c.bf16 %v6933_v40, %v6934_v24  ;;  %v6938_v18 = vpack.c.bf16 %v6936_v29, %v6937_v50 }
 0x272   :  { %4701 = vmatmul.mubr.msk.bf16.gmra.mrb[12].mxu1 %vm835_vm0, %v3197_v23  ;;  %v3525_v23 = vld [vmem:[#allocation2 + $0x471] sm:$0xff] }
 0x273   :  { %4704 = vmatprep.mubr.msk.bf16.mxu1 %vm835_vm0, %v6903_v47  ;;  %v3533_v22 = vpack.c.bf16 %v3525_v23, %v6939_v59 }
 0x27a   :  { %4705 = vmatmul.mubr.msk.bf16.gmra.mrb[0].mxu1 %vm835_vm0, %v6905_v3 }
 0x27b   :  { %4708 = vmatprep.mubr.msk.bf16.mxu1 %vm835_vm0, %v6906_v16 }
 0x282   :  { %4709 = vmatmul.mubr.msk.bf16.gmra.mrb[4].mxu1 %vm835_vm0, %v3201_v28 }
 0x283   :  { %4714 = vmatprep.mubr.msk.bf16.mxu1 %vm835_vm0, %v6907_v44 }
 0x28a   :  { %4715 = vmatmul.mubr.msk.bf16.vlgmr.msra.gmra.mrb[8].mxu1 %vm835_vm0, %v6908_v51 }
 0x28b   :  { %4731 = vmatpush3.bf16.msra.mxu1 %v3561_v52  ;;  %4718 = vmatprep.mubr.msk.bf16.mxu1 %vm835_vm0, %v6909_v5 }
 0x28c   :  { %v6381_v55 = vpop.f32.mrb[72].mxu0 }
 0x28d   :  { %v6383_v61 = vpop.f32.mrb[73].mxu0 }
 0x28e   :  { %v6385_v42 = vpop.f32.mrb[74].mxu0 }
 0x28f   :  { %v6387_v60 = vpop.f32.mrb[75].mxu0 }
 0x292   :  { %4719 = vmatmul.mubr.msk.bf16.gmra.mrb[12].mxu1 %vm835_vm0, %v3363_v13 }
 0x293   :  { %4722 = vmatprep.mubr.msk.bf16.mxu1 %vm835_vm0, %v6912_v34 }
 0x294   :  { %v6395_v20 = vpop.f32.mrb[76].mxu0 }
 0x295   :  { %v6397_v8 = vpop.f32.mrb[77].mxu0 }
 0x296   :  { %v6399_v10 = vpop.f32.mrb[78].mxu0 }
 0x297   :  { %v6401_v49 = vpop.f32.mrb[79].mxu0 }
 0x29a   :  { %4723 = vmatmul.mubr.msk.bf16.gmra.mrb[0].mxu1 %vm835_vm0, %v6915_v27 }
 0x29b   :  { %4726 = vmatprep.mubr.msk.bf16.mxu1 %vm835_vm0, %v6918_v53 }
 0x29c   :  { %v4554_v41 = vpop.f32.mrb[64].mxu0 }
 0x29d   :  { %v1935_v21 = vpop.f32.mrb[65].mxu0 }
 0x29e   :  { %v4555_v7 = vpop.f32.mrb[66].mxu0 }
 0x29f   :  { %v1938_v14 = vpop.f32.mrb[67].mxu0 }
 0x2a2   :  { %4727 = vmatmul.mubr.msk.bf16.gmra.mrb[4].mxu1 %vm835_vm0, %v3367_v6 }
 0x2a3   :  { %4732 = vmatprep.mubr.msk.bf16.mxu1 %vm835_vm0, %v6922_v25 }
 0x2a4   :  { %v4558_v38 = vpop.f32.mrb[68].mxu0 }
 0x2a5   :  { %v1951_v39 = vpop.f32.mrb[69].mxu0 }
 0x2a6   :  { %v4559_v4 = vpop.f32.mrb[70].mxu0 }
 0x2a7   :  { %v1954_v43 = vpop.f32.mrb[71].mxu0 }
 0x2aa   :  { %4733 = vmatmul.mubr.msk.bf16.vlgmr.msra.gmra.mrb[8].mxu1 %vm835_vm0, %v6925_v37 }
 0x2ab   :  { %4736 = vmatprep.mubr.msk.bf16.mxu1 %vm835_vm0, %v6928_v35 }
 0x2b2   :  { %4737 = vmatmul.mubr.msk.bf16.gmra.mrb[12].mxu1 %vm835_vm0, %v3529_v36 }
 0x2b3   :  { %4740 = vmatprep.mubr.msk.bf16.mxu1 %vm835_vm0, %v6932_v57 }
 0x2ba   :  { %4741 = vmatmul.mubr.msk.bf16.gmra.mrb[0].mxu1 %vm835_vm0, %v6935_v63 }
 0x2bb   :  { %4744 = vmatprep.mubr.msk.bf16.mxu1 %vm835_vm0, %v6938_v18 }
 0x2c2   :  { %4745 = vmatmul.mubr.msk.bf16.gmra.mrb[4].mxu1 %vm835_vm0, %v3533_v22  ;;  %vm3701_vm0 = vcmask 130048  }
 0x37d   :  { %v4734_v47 = vpop.f32.mrb[8].mxu1 }
 0x37e   :  { %v4750_v3 = vadd.f32 %v4734_v47, %v4554_v41  ;;  %v3597_v16 = vpop.f32.mrb[9].mxu1 }
 0x37f   :  { %v4751_v15 = vadd.f32 %v3597_v16, %v1935_v21  ;;  %v4735_v28 = vpop.f32.mrb[10].mxu1 }
 0x380   :  { %v6447_v44 = vadd.f32 %v4750_v3, %v6444_v48  ;;  %v4752_v52 = vadd.f32 %v4735_v28, %v4555_v7  ;;  %v3600_v51 = vpop.f32.mrb[11].mxu1 }
 0x381   :  { %v6450_v5 = vadd.f32 %v4751_v15, %v6444_v48  ;;  %v4753_v54 = vadd.f32 %v3600_v51, %v1938_v14 }
 0x382   :  { %v6455_v58 = vadd.f32 %v4752_v52, %v6444_v48  ;;  %v3741_v34 = vmul.f32 %v6447_v44, %v6447_v44  ;;  %v3705_v17 = vsel %vm3701_vm0, %v6447_v44, 0.0 }
 0x383   :  { %v3739_v13 = vmul.f32 %v6450_v5, %v6450_v5  ;;  %v6458_v32 = vadd.f32 %v4753_v54, %v6444_v48  ;;  %v3702_v0 = vsel %vm3701_vm0, %v6450_v5, 0.0 }
 0x384   :  { %v3742_v7 = vmul.f32 %v6455_v58, %v6455_v58  ;;  %v3758_v46 = vsel %vm3701_vm0, %v3741_v34, 0.0  ;;  %v3707_v37 = vsel %vm3701_vm0, %v6455_v58, 0.0 }
 0x385   :  { %v3703_v26 = vsel %vm3701_vm0, %v6458_v32, 0.0  ;;  %v3740_v27 = vmul.f32 %v6458_v32, %v6458_v32  ;;  %v4738_v11 = vpop.f32.mrb[12].mxu1  ;;  %v3755_v12 = vsel %vm3701_vm0, %v3739_v13, 0.0 }
 0x386   :  { %v3704_v53 = vadd.f32 %v3703_v26, %v3702_v0  ;;  %v4754_v41 = vadd.f32 %v4738_v11, %v4558_v38  ;;  %v3613_v21 = vpop.f32.mrb[13].mxu1 }
 0x387   :  { %v3756_v14 = vsel %vm3701_vm0, %v3740_v27, 0.0  ;;  %v4755_v56 = vadd.f32 %v3613_v21, %v1951_v39  ;;  %v4739_v6 = vpop.f32.mrb[14].mxu1  ;;  %v3760_v39 = vsel %vm3701_vm0, %v3742_v7, 0.0 }
 0x388   :  { %v3706_v1 = vadd.f32 %v3705_v17, %v3704_v53  ;;  %v3757_v25 = vadd.f32 %v3756_v14, %v3755_v12  ;;  %v4756_v45 = vadd.f32 %v4739_v6, %v4559_v4  ;;  %v3616_v62 = vpop.f32.mrb[15].mxu1  ;;  %v6478_v38 = vadd.f32 %v4754_v41, %v6444_v48 }
 0x389   :  { %v6481_v2 = vadd.f32 %v4755_v56, %v6444_v48  ;;  %v4757_v33 = vadd.f32 %v3616_v62, %v1954_v43 }
 0x38a   :  { %v3759_v35 = vadd.f32 %v3758_v46, %v3757_v25  ;;  %v3708_v30 = vadd.f32 %v3707_v37, %v3706_v1  ;;  %v6492_v57 = vadd.f32 %v4756_v45, %v6444_v48  ;;  %v3745_v43 = vmul.f32 %v6478_v38, %v6478_v38 }
 0x38b   :  { %v3709_v9 = vsel %vm3701_vm0, %v6481_v2, 0.0  ;;  %v3743_v4 = vmul.f32 %v6481_v2, %v6481_v2  ;;  %v6489_v36 = vadd.f32 %v4757_v33, %v6444_v48  ;;  %v3713_v22 = vsel %vm3701_vm0, %v6478_v38, 0.0 }
 0x38c   :  { %v3710_v31 = vadd.f32 %v3709_v9, %v3708_v30  ;;  %v3761_v19 = vadd.f32 %v3760_v39, %v3759_v35  ;;  %v3746_v16 = vmul.f32 %v6492_v57, %v6492_v57  ;;  %v3715_v54 = vsel %vm3701_vm0, %v6492_v57, 0.0 }
 0x38d   :  { %v3762_v40 = vsel %vm3701_vm0, %v3743_v4, 0.0  ;;  %v3711_v24 = vsel %vm3701_vm0, %v6489_v36, 0.0  ;;  %v4742_v63 = vpop.f32.mrb[0].mxu1  ;;  %v3744_v18 = vmul.f32 %v6489_v36, %v6489_v36 }
 0x38e   :  { %v3763_v29 = vadd.f32 %v3762_v40, %v3761_v19  ;;  %v3712_v50 = vadd.f32 %v3711_v24, %v3710_v31  ;;  %v4758_v23 = vadd.f32 %v4742_v63, %v6381_v55  ;;  %v3629_v59 = vpop.f32.mrb[1].mxu1  ;;  %v3768_v53 = vsel %vm3701_vm0, %v3746_v16, 0.0 }
 0x38f   :  { %v4759_v47 = vadd.f32 %v3629_v59, %v6383_v61  ;;  %v4743_v3 = vpop.f32.mrb[2].mxu1  ;;  %v3764_v28 = vsel %vm3701_vm0, %v3744_v18, 0.0  ;;  %v3766_v61 = vsel %vm3701_vm0, %v3745_v43, 0.0 }
 0x390   :  { %v3714_v15 = vadd.f32 %v3713_v22, %v3712_v50  ;;  %v4760_v52 = vadd.f32 %v4743_v3, %v6385_v42  ;;  %v3632_v51 = vpop.f32.mrb[3].mxu1  ;;  %v3765_v55 = vadd.f32 %v3764_v28, %v3763_v29  ;;  %v6517_v0 = vadd.f32 %v4758_v23, %v6444_v48 }
 0x391   :  { %v6512_v13 = vadd.f32 %v4759_v47, %v6444_v48  ;;  %v4761_v34 = vadd.f32 %v3632_v51, %v6387_v60 }
 0x392   :  { %v3716_v26 = vadd.f32 %v3715_v54, %v3714_v15  ;;  %v3767_v27 = vadd.f32 %v3766_v61, %v3765_v55  ;;  %v6528_v60 = vadd.f32 %v4760_v52, %v6444_v48  ;;  %v3749_v6 = vmul.f32 %v6517_v0, %v6517_v0 }
 0x393   :  { %v3717_v42 = vsel %vm3701_vm0, %v6512_v13, 0.0  ;;  %v3747_v11 = vmul.f32 %v6512_v13, %v6512_v13  ;;  %v6524_v17 = vadd.f32 %v4761_v34, %v6444_v48  ;;  %v3721_v45 = vsel %vm3701_vm0, %v6517_v0, 0.0 }
 0x394   :  { %v3718_v41 = vadd.f32 %v3717_v42, %v3716_v26  ;;  %v3769_v21 = vadd.f32 %v3768_v53, %v3767_v27  ;;  %v3750_v30 = vmul.f32 %v6528_v60, %v6528_v60  ;;  %v3774_v40 = vsel %vm3701_vm0, %v3749_v6, 0.0 }
 0x395   :  { %v3770_v12 = vsel %vm3701_vm0, %v3747_v11, 0.0  ;;  %v3719_v7 = vsel %vm3701_vm0, %v6524_v17, 0.0  ;;  %v3748_v14 = vmul.f32 %v6524_v17, %v6524_v17  ;;  %v4746_v56 = vpop.f32.mrb[4].mxu1 }
 0x396   :  { %v3720_v46 = vadd.f32 %v3719_v7, %v3718_v41  ;;  %v4762_v1 = vadd.f32 %v4746_v56, %v6395_v20  ;;  %v3645_v25 = vpop.f32.mrb[5].mxu1  ;;  %v3771_v62 = vadd.f32 %v3770_v12, %v3769_v21  ;;  %v3723_v20 = vsel %vm3701_vm0, %v6528_v60, 0.0 }
 0x397   :  { %v3772_v37 = vsel %vm3701_vm0, %v3748_v14, 0.0  ;;  %v4763_v33 = vadd.f32 %v3645_v25, %v6397_v8  ;;  %v4747_v35 = vpop.f32.mrb[6].mxu1  ;;  %v3776_v18 = vsel %vm3701_vm0, %v3750_v30, 0.0 }
 0x398   :  { %v3722_v39 = vadd.f32 %v3721_v45, %v3720_v46  ;;  %v4764_v9 = vadd.f32 %v4747_v35, %v6399_v10  ;;  %v3648_v4 = vpop.f32.mrb[7].mxu1  ;;  %v3773_v31 = vadd.f32 %v3772_v37, %v3771_v62  ;;  %v6553_v8 = vadd.f32 %v4762_v1, %v6444_v48 }
 0x399   :  { %v6548_v19 = vadd.f32 %v4763_v33, %v6444_v48  ;;  %v4765_v43 = vadd.f32 %v3648_v4, %v6401_v49  ;;  %v3699_v4 = vld [vmem:[%s6689_s5] sm:$0x1] }
 0x39a   :  { %v3724_v24 = vadd.f32 %v3723_v20, %v3722_v39  ;;  %v3775_v63 = vadd.f32 %v3774_v40, %v3773_v31  ;;  %v6564_v49 = vadd.f32 %v4764_v9, %v6444_v48  ;;  %v3753_v16 = vmul.f32 %v6553_v8, %v6553_v8  ;;  %v3700_v40 = vld [vmem:[%s6690_s6] sm:$0x1] }
 0x39b   :  { %v3725_v10 = vsel %vm3701_vm0, %v6548_v19, 0.0  ;;  %v3751_v29 = vmul.f32 %v6548_v19, %v6548_v19  ;;  %v6560_v50 = vadd.f32 %v4765_v43, %v6444_v48  ;;  %v3729_v28 = vsel %vm3701_vm0, %v6553_v8, 0.0 }
 0x39c   :  { %v3726_v23 = vadd.f32 %v3725_v10, %v3724_v24  ;;  %v3777_v59 = vadd.f32 %v3776_v18, %v3775_v63  ;;  %v3754_v51 = vmul.f32 %v6564_v49, %v6564_v49  ;;  %v3731_v55 = vsel %vm3701_vm0, %v6564_v49, 0.0 }
 0x39d   :  { %v3778_v22 = vsel %vm3701_vm0, %v3751_v29, 0.0  ;;  %v3727_v47 = vsel %vm3701_vm0, %v6560_v50, 0.0  ;;  %v3752_v3 = vmul.f32 %v6560_v50, %v6560_v50  ;;  %v3782_v61 = vsel %vm3701_vm0, %v3753_v16, 0.0 }
 0x39e   :  { %v3728_v15 = vadd.f32 %v3727_v47, %v3726_v23  ;;  %v3779_v52 = vadd.f32 %v3778_v22, %v3777_v59  ;;  %v3784_v42 = vsel %vm3701_vm0, %v3754_v51, 0.0  ;;  %v3803_v39 = vlaneseq }
 0x39f   :  { %v3780_v48 = vsel %vm3701_vm0, %v3752_v3, 0.0 }
 0x3a0   :  { %v3730_v54 = vadd.f32 %v3729_v28, %v3728_v15  ;;  %v3781_v34 = vadd.f32 %v3780_v48, %v3779_v52  ;;  %v3804_v9 = vshrl.u32 %v3803_v39, 7 }
 0x3a2   :  { %v3732_v26 = vadd.f32 %v3731_v55, %v3730_v54  ;;  %v3783_v27 = vadd.f32 %v3782_v61, %v3781_v34  ;;  %v3805_v20 = vsub.s32 0, %v3804_v9 }
 0x3a4   :  { %v3733_v11 = vrot.slane %v3732_v26, 4  ;;  %v3785_v53 = vadd.f32 %v3784_v42, %v3783_v27 }
 0x3a6   :  { %v3734_v41 = vadd.f32 %v3733_v11, %v3732_v26  ;;  %v3786_v21 = vrot.slane %v3785_v53, 4 }
 0x3a8   :  { %v3735_v12 = vrot.slane %v3734_v41, 2  ;;  %v3787_v7 = vadd.f32 %v3786_v21, %v3785_v53 }
 0x3aa   :  { %v3736_v14 = vadd.f32 %v3735_v12, %v3734_v41  ;;  %v3788_v56 = vrot.slane %v3787_v7, 2 }
 0x3ac   :  { %v3737_v6 = vrot.slane %v3736_v14, 1  ;;  %v3789_v46 = vadd.f32 %v3788_v56, %v3787_v7 }
 0x3ae   :  { %v3738_v1 = vadd.f32 %v3737_v6, %v3736_v14  ;;  %v3790_v25 = vrot.slane %v3789_v46, 1 }
 0x3b0   :  { %v3793_v45 = vmul.f32 0.0078125, %v3738_v1  ;;  %v3791_v62 = vadd.f32 %v3790_v25, %v3789_v46 }
 0x3b2   :  { %v3795_v37 = vmul.f32 %v3793_v45, %v3793_v45  ;;  %v3794_v33 = vmul.f32 0.0078125, %v3791_v62 }
 0x3b4   :  { %v3796_v35 = vsub.f32 %v3794_v33, %v3795_v37 }
 0x3b6   :  { %v3797_v30 = vadd.f32 1e-05, %v3796_v35 }
 0x3b8   :  { %5048 = vrsqrt.f32 %v3797_v30 }
 0x3c2   :  { %v5049_v31 = vpop.eup %5048 }
 0x3c3   :  { %v3799_v43 = vmul.f32 %v5049_v31, %v3699_v4 }
 0x3c5   :  { %v3800_v24 = vmul.f32 %v3799_v43, %v3793_v45  ;;  %v3806_v63 = vrot.slane %v3799_v43, %v3805_v20 }
 0x3c7   :  { %v3801_v10 = vsub.f32 %v3700_v40, %v3800_v24  ;;  %v3808_v29 = vmul.f32 %v3806_v63, %v6450_v5  ;;  %v3809_v18 = vmul.f32 %v3806_v63, %v6458_v32  ;;  %v3812_v23 = vmul.f32 %v3806_v63, %v6481_v2 }
 0x3c8   :  { %v3813_v59 = vmul.f32 %v3806_v63, %v6489_v36  ;;  %v3814_v22 = vmul.f32 %v3806_v63, %v6478_v38  ;;  %v3815_v47 = vmul.f32 %v3806_v63, %v6492_v57  ;;  %v3816_v3 = vmul.f32 %v3806_v63, %v6512_v13 }
 0x3c9   :  { %v3817_v16 = vmul.f32 %v3806_v63, %v6524_v17  ;;  %v3818_v15 = vmul.f32 %v3806_v63, %v6517_v0  ;;  %v3819_v28 = vmul.f32 %v3806_v63, %v6528_v60  ;;  %v3820_v5 = vmul.f32 %v3806_v63, %v6548_v19 }
 0x3ca   :  { %v3821_v32 = vmul.f32 %v3806_v63, %v6560_v50  ;;  %v3822_v2 = vmul.f32 %v3806_v63, %v6553_v8  ;;  %v3810_v36 = vmul.f32 %v3806_v63, %v6447_v44  ;;  %v3811_v38 = vmul.f32 %v3806_v63, %v6455_v58 }
 0x3cb   :  { %v3823_v57 = vmul.f32 %v3806_v63, %v6564_v49  ;;  %v3828_v52 = vrot.slane %v3801_v10, %v3805_v20 }
 0x3cd   :  { %v3830_v13 = vadd.f32 %v3828_v52, %v3808_v29  ;;  %v3831_v48 = vadd.f32 %v3828_v52, %v3809_v18  ;;  %v3832_v17 = vadd.f32 %v3828_v52, %v3810_v36  ;;  %v3833_v51 = vadd.f32 %v3828_v52, %v3811_v38 }
 0x3ce   :  { %v3834_v0 = vadd.f32 %v3828_v52, %v3812_v23  ;;  %v3835_v54 = vadd.f32 %v3828_v52, %v3813_v59  ;;  %v3836_v60 = vadd.f32 %v3828_v52, %v3814_v22  ;;  %v3837_v55 = vadd.f32 %v3828_v52, %v3815_v47 }
 0x3cf   :  { %v3838_v19 = vadd.f32 %v3828_v52, %v3816_v3  ;;  %v3839_v34 = vadd.f32 %v3828_v52, %v3817_v16  ;;  %v3840_v50 = vadd.f32 %v3828_v52, %v3818_v15  ;;  %v3841_v61 = vadd.f32 %v3828_v52, %v3819_v28 }
 0x3d0   :  { %v3842_v8 = vadd.f32 %v3828_v52, %v3820_v5  ;;  %v3843_v26 = vadd.f32 %v3828_v52, %v3821_v32  ;;  %v3844_v44 = vadd.f32 %v3828_v52, %v3822_v2  ;;  %v3845_v27 = vadd.f32 %v3828_v52, %v3823_v57 }
 0x3d1   :  { %vm3847_vm11 = vcmp.ge.f32.partialorder %v3831_v48, 0.0  ;;  %vm3848_vm12 = vcmp.ge.f32.partialorder %v3832_v17, 0.0  ;;  %vm3849_vm13 = vcmp.ge.f32.partialorder %v3833_v51, 0.0  ;;  %vm3850_vm14 = vcmp.ge.f32.partialorder %v3834_v0, 0.0 }
 0x3d2   :  { %vm3851_vm15 = vcmp.ge.f32.partialorder %v3835_v54, 0.0  ;;  %vm3853_vm3 = vcmp.ge.f32.partialorder %v3837_v55, 0.0  ;;  %vm3854_vm4 = vcmp.ge.f32.partialorder %v3838_v19, 0.0  ;;  %vm3855_vm5 = vcmp.ge.f32.partialorder %v3839_v34, 0.0 }
 0x3d3   :  { %vm3856_vm6 = vcmp.ge.f32.partialorder %v3840_v50, 0.0  ;;  %vm3857_vm7 = vcmp.ge.f32.partialorder %v3841_v61, 0.0  ;;  %vm3858_vm8 = vcmp.ge.f32.partialorder %v3842_v8, 0.0  ;;  %vm3859_vm9 = vcmp.ge.f32.partialorder %v3843_v26, 0.0 }
 0x3d4   :  { %vm3860_vm10 = vcmp.ge.f32.partialorder %v3844_v44, 0.0  ;;  %vm3861_vm0 = vcmp.ge.f32.partialorder %v3845_v27, 0.0  ;;  %v3862_v58 = vmul.f32 0.2, %v3830_v13  ;;  %v3863_v49 = vmul.f32 0.2, %v3831_v48 }
 0x3d5   :  { %v3864_v42 = vmul.f32 0.2, %v3832_v17  ;;  %v3865_v11 = vmul.f32 0.2, %v3833_v51  ;;  %v3866_v53 = vmul.f32 0.2, %v3834_v0 }
 0x3d6   :  { %v3867_v41 = vmul.f32 0.2, %v3835_v54  ;;  %v3868_v21 = vmul.f32 0.2, %v3836_v60  ;;  %v3869_v12 = vmul.f32 0.2, %v3837_v55  ;;  %v3879_v1 = vsel %vm3847_vm11, %v3831_v48, %v3863_v49 }
 0x3d7   :  { %v3870_v7 = vmul.f32 0.2, %v3838_v19  ;;  %vm6940_vm1 = vcmp.ge.f32.partialorder %v3830_v13, 0.0  ;;  %v3871_v56 = vmul.f32 0.2, %v3839_v34  ;;  %v3880_v37 = vsel %vm3848_vm12, %v3832_v17, %v3864_v42 }
 0x3d8   :  { %v3878_v14 = vsel %vm6940_vm1, %v3830_v13, %v3862_v58  ;;  %v3872_v6 = vmul.f32 0.2, %v3840_v50  ;;  %v3873_v46 = vmul.f32 0.2, %v3841_v61  ;;  %v3874_v25 = vmul.f32 0.2, %v3842_v8 }
 0x3d9   :  { %v3875_v45 = vmul.f32 0.2, %v3843_v26  ;;  %v3876_v62 = vmul.f32 0.2, %v3844_v44  ;;  %v3877_v33 = vmul.f32 0.2, %v3845_v27  ;;  %v3881_v35 = vsel %vm3849_vm13, %v3833_v51, %v3865_v11 }
 0x3da   :  { %v3882_v30 = vsel %vm3850_vm14, %v3834_v0, %v3866_v53  ;;  %v3883_v39 = vsel %vm3851_vm15, %v3835_v54, %v3867_v41  ;;  %vm6941_vm2 = vcmp.ge.f32.partialorder %v3836_v60, 0.0  ;;  %v3885_v4 = vsel %vm3853_vm3, %v3837_v55, %v3869_v12 }
 0x3db   :  { %v3884_v9 = vsel %vm6941_vm2, %v3836_v60, %v3868_v21  ;;  %v3886_v20 = vsel %vm3854_vm4, %v3838_v19, %v3870_v7  ;;  %v3887_v31 = vsel %vm3855_vm5, %v3839_v34, %v3871_v56  ;;  %v3888_v43 = vsel %vm3856_vm6, %v3840_v50, %v3872_v6 }
 0x3dc   :  { %v3889_v40 = vsel %vm3857_vm7, %v3841_v61, %v3873_v46  ;;  %v3890_v24 = vsel %vm3858_vm8, %v3842_v8, %v3874_v25  ;;  %v3891_v63 = vsel %vm3859_vm9, %v3843_v26, %v3875_v45  ;;  %v3892_v10 = vsel %vm3860_vm10, %v3844_v44, %v3876_v62 }
 0x3dd   :  { %v3893_v29 = vsel %vm3861_vm0, %v3845_v27, %v3877_v33  ;;  %v4180_v18 = vpack.c.bf16 %v3878_v14, %v3878_v14  ;;  %v4181_v23 = vpack.c.bf16 %v3879_v1, %v3879_v1  ;;  %v4182_v59 = vpack.c.bf16 %v3880_v37, %v3880_v37 }
 0x3de   :  { %v4183_v22 = vpack.c.bf16 %v3881_v35, %v3881_v35  ;;  %v4184_v47 = vpack.c.bf16 %v3882_v30, %v3882_v30  ;;  %v4185_v3 = vpack.c.bf16 %v3883_v39, %v3883_v39  ;;  %v4186_v16 = vpack.c.bf16 %v3884_v9, %v3884_v9 }
 0x3df   :  { %v4187_v15 = vpack.c.bf16 %v3885_v4, %v3885_v4  ;;  %v4188_v28 = vpack.c.bf16 %v3886_v20, %v3886_v20  ;;  %v4189_v5 = vpack.c.bf16 %v3887_v31, %v3887_v31  ;;  %vm6942_vm2 = vcmask 125952  }
 0x3e0   :  { %3959 = vst.msk [vmem:[%s6691_s7] sm:$0xf] %vm6942_vm2, %v4180_v18  ;;  %vm6943_vm11 = vmmov %vm6942_vm2  ;;  %v4190_v32 = vpack.c.bf16 %v3888_v43, %v3888_v43  ;;  %v4191_v2 = vpack.c.bf16 %v3889_v40, %v3889_v40  ;;  %v4192_v36 = vpack.c.bf16 %v3890_v24, %v3890_v24  ;;  %v4193_v38 = vpack.c.bf16 %v3891_v63, %v3891_v63 }
 0x3e1   :  { %3960 = vst.msk [vmem:[%s6691_s7 + $0x4] sm:$0xf] %vm6943_vm11, %v4181_v23  ;;  %vm6944_vm12 = vmmov %vm6942_vm2  ;;  %v4194_v57 = vpack.c.bf16 %v3892_v10, %v3892_v10  ;;  %v4195_v52 = vpack.c.bf16 %v3893_v29, %v3893_v29 }
 0x3e2   :  { %3961 = vst.msk [vmem:[%s6691_s7 + $0x8] sm:$0xf] %vm6944_vm12, %v4182_v59  ;;  %vm6945_vm13 = vmmov %vm6942_vm2 }
 0x3e3   :  { %3962 = vst.msk [vmem:[%s6691_s7 + $0xc] sm:$0xf] %vm6945_vm13, %v4183_v22  ;;  %vm6946_vm14 = vmmov %vm6942_vm2 }
 0x3e4   :  { %3963 = vst.msk [vmem:[%s6691_s7 + $0x10] sm:$0xf] %vm6946_vm14, %v4184_v47  ;;  %vm6947_vm15 = vmmov %vm6942_vm2 }
 0x3e5   :  { %3964 = vst.msk [vmem:[%s6691_s7 + $0x14] sm:$0xf] %vm6947_vm15, %v4185_v3  ;;  %vm6948_vm1 = vmmov %vm6942_vm2 }
 0x3e6   :  { %3965 = vst.msk [vmem:[%s6691_s7 + $0x18] sm:$0xf] %vm6948_vm1, %v4186_v16  ;;  %vm6949_vm3 = vmmov %vm6948_vm1 }
 0x3e7   :  { %3966 = vst.msk [vmem:[%s6691_s7 + $0x1c] sm:$0xf] %vm6949_vm3, %v4187_v15  ;;  %vm6950_vm4 = vmmov %vm6948_vm1 }
 0x3e8   :  { %3967 = vst.msk [vmem:[%s6691_s7 + $0x20] sm:$0xf] %vm6950_vm4, %v4188_v28  ;;  %vm6951_vm5 = vmmov %vm6948_vm1 }
 0x3e9   :  { %3968 = vst.msk [vmem:[%s6691_s7 + $0x24] sm:$0xf] %vm6951_vm5, %v4189_v5  ;;  %vm6952_vm6 = vmmov %vm6948_vm1 }
 0x3ea   :  { %3969 = vst.msk [vmem:[%s6691_s7 + $0x28] sm:$0xf] %vm6952_vm6, %v4190_v32  ;;  %vm6953_vm7 = vmmov %vm6948_vm1 }
 0x3eb   :  { %3970 = vst.msk [vmem:[%s6691_s7 + $0x2c] sm:$0xf] %vm6953_vm7, %v4191_v2  ;;  %vm6954_vm8 = vmmov %vm6948_vm1 }
 0x3ec   :  { %3971 = vst.msk [vmem:[%s6691_s7 + $0x30] sm:$0xf] %vm6954_vm8, %v4192_v36  ;;  %vm6955_vm9 = vmmov %vm6948_vm1 }
 0x3ed   :  { %3972 = vst.msk [vmem:[%s6691_s7 + $0x34] sm:$0xf] %vm6955_vm9, %v4193_v38  ;;  %vm6956_vm10 = vmmov %vm6948_vm1 }
 0x3ee   :  { %3973 = vst.msk [vmem:[%s6691_s7 + $0x38] sm:$0xf] %vm6956_vm10, %v4194_v57  ;;  %vm6957_vm0 = vmmov %vm6948_vm1 }
 0x3ef   :  { %3974 = vst.msk [vmem:[%s6691_s7 + $0x3c] sm:$0xf] %vm6957_vm0, %v4195_v52 }

// kernel: discriminator_forward.3
= control target key start
LH: loop header
LB: loop body
LE: loop exit
PB: predicated region body
PF: predicated region fallthrough
CT: control target
= control target key end

     0   :  { %vm322_vm0 = vcmask 256000   ;;  %v5864_v20 = vmov 0   ;;  %vm439_vm1 = vcmask 254976   ;;  %vm440_vm2 = vsmask.f32 1280  ;;  %s7041_s1 = inlined_call_operand.vmem [shape: bf16[256,32], index: 1, kind: input, shape index: {}]   ;;  %s7042_s0 = inlined_call_operand.vmem [shape: bf16[32,256], index: 0, kind: input, shape index: {}]   ;;  %s7043_s2 = inlined_call_operand.vmem [shape: f32[1,32], index: 2, kind: input, shape index: {}]   ;;  %s7044_s3 = inlined_call_operand.vmem [shape: f32[1,32], index: 3, kind: input, shape index: {}]   ;;  %s7045_s4 = inlined_call_operand.vmem [shape: f32[1,32], index: 4, kind: input, shape index: {}]   ;;  %s7046_s5 = inlined_call_operand.vmem [shape: bf16[16,32,64], index: 5, kind: input, shape index: {}]   ;;  %s7047_s6 = inlined_call_operand.vmem [shape: f32[1,64], index: 6, kind: input, shape index: {}]   ;;  %s7048_s9 = inlined_call_operand.vmem [shape: bf16[16,64,128], index: 9, kind: input, shape index: {}]   ;;  %s7049_s7 = inlined_call_operand.vmem [shape: f32[1,64], index: 7, kind: input, shape index: {}]   ;;  %s7050_s8 = inlined_call_operand.vmem [shape: f32[1,64], index: 8, kind: input, shape index: {}]   ;;  %s7051_s10 = inlined_call_operand.vmem [shape: f32[1,128], index: 10, kind: input, shape index: {}]   ;;  %s7052_s11 = inlined_call_operand.vmem [shape: f32[8,128], index: 11, kind: output, shape index: {}]  }
   0x1   :  { %v5711_v0 = vld [vmem:[%s7041_s1 + $0x40] sm:$0xff]   ;;  %v5713_v2 = vld [vmem:[%s7041_s1 + $0x48] sm:$0xff]   ;;  %v5715_v4 = vld [vmem:[%s7041_s1 + $0x50] sm:$0xff]   ;;  %323 = vst.msk [vmem:[#allocation2] sm:$0x7] %vm322_vm0, %v5864_v20  ;;  %vm249_vm4 = vcmask 261120  }
   0x2   :  { %v5712_v1 = vld [vmem:[%s7041_s1] sm:$0xff]   ;;  %5216 = vmatprep.subr.bf16.mxu0 %v5711_v0  ;;  %v5714_v3 = vld [vmem:[%s7041_s1 + $0x8] sm:$0xff]   ;;  %v5716_v5 = vld [vmem:[%s7041_s1 + $0x10] sm:$0xff]   ;;  %324 = vst.msk [vmem:[#allocation2 + $0x4] sm:$0x7] %vm322_vm0, %v5864_v20  ;;  %vm494_vm12 = vcmask 257026  }
   0x3   :  { %5217 = vmatpush3.bf16.msra.mxu0 %v5712_v1  ;;  %v5717_v6 = vld [vmem:[%s7041_s1 + $0x58] sm:$0xff]   ;;  %v5719_v8 = vld [vmem:[%s7041_s1 + $0x60] sm:$0xff]   ;;  %v5721_v10 = vld [vmem:[%s7041_s1 + $0x68] sm:$0xff]   ;;  %325 = vst.msk [vmem:[#allocation2 + $0x8] sm:$0x7] %vm322_vm0, %v5864_v20  ;;  %vm455_vm14 = vcmask 256001  }
   0x4   :  { %5218 = vmatprep.subr.bf16.mxu0 %v5713_v2  ;;  %v5718_v7 = vld [vmem:[%s7041_s1 + $0x18] sm:$0xff]   ;;  %v5720_v9 = vld [vmem:[%s7041_s1 + $0x20] sm:$0xff]   ;;  %v5722_v12 = vld [vmem:[%s7041_s1 + $0x28] sm:$0xff]   ;;  %326 = vst.msk [vmem:[#allocation2 + $0xc] sm:$0x7] %vm322_vm0, %v5864_v20  ;;  %vm469_vm15 = vcmask 253952  }
   0x5   :  { %v5729_v11 = vld [vmem:[%s7042_s0 + $0x4] ss:$8 sps:$4 sm:$0xff]   ;;  %v5723_v13 = vld [vmem:[%s7041_s1 + $0x70] sm:$0xff]   ;;  %v5725_v15 = vld [vmem:[%s7041_s1 + $0x78] sm:$0xff]   ;;  %327 = vst.msk [vmem:[#allocation2 + $0x10] sm:$0x7] %vm322_vm0, %v5864_v20 }
   0x6   :  { %230 = vmatprep.mubr.bf16.mxu0 %v5729_v11  ;;  %v5724_v14 = vld [vmem:[%s7041_s1 + $0x30] sm:$0xff]   ;;  %v5726_v16 = vld [vmem:[%s7041_s1 + $0x38] sm:$0xff]   ;;  %v5727_v17 = vld [vmem:[%s7042_s0] ss:$8 sps:$4 sm:$0xff]   ;;  %328 = vst.msk [vmem:[#allocation2 + $0x14] sm:$0x7] %vm322_vm0, %v5864_v20 }
   0x7   :  { %5219 = vmatpush3.bf16.msra.mxu0 %v5714_v3  ;;  %v5730_v18 = vld [vmem:[%s7042_s0 + $0x14] ss:$8 sps:$4 sm:$0xff]   ;;  %v5732_v19 = vld [vmem:[%s7042_s0 + $0x10] ss:$8 sps:$4 sm:$0xff]   ;;  %329 = vst.msk [vmem:[#allocation2 + $0x18] sm:$0x7] %vm322_vm0, %v5864_v20  ;;  %vm6001_vm3 = vmand %vm439_vm1, %vm440_vm2 }
   0x8   :  { %5220 = vmatprep.subr.bf16.mxu0 %v5715_v4  ;;  %330 = vst.msk [vmem:[#allocation2 + $0x1c] sm:$0x7] %vm322_vm0, %v5864_v20  ;;  %331 = vst.msk [vmem:[#allocation2 + $0x20] sm:$0x7] %vm322_vm0, %v5864_v20  ;;  %v438_v21 = vld [vmem:[#allocation2] sm:$0x3] }
   0x9   :  { %332 = vst.msk [vmem:[#allocation2 + $0x24] sm:$0x7] %vm322_vm0, %v5864_v20  ;;  %333 = vst.msk [vmem:[#allocation2 + $0x28] sm:$0x7] %vm322_vm0, %v5864_v20  ;;  %v442_v23 = vld [vmem:[#allocation4] sm:$0x3] }
   0xa   :  { %334 = vst.msk [vmem:[#allocation2 + $0x2c] sm:$0x7] %vm322_vm0, %v5864_v20  ;;  %v443_v24 = vsel %vm6001_vm3, %v438_v21, %v442_v23  ;;  %v4803_v26 = vld [vmem:[%s7043_s2] ss:$0 sm:$0xff]  ;;  %vm349_vm5 = vsmask.f32 2306 }
   0xb   :  { %5221 = vmatpush3.bf16.msra.mxu0 %v5716_v5  ;;  %444 = vst [vmem:[#allocation4] sm:$0x3] %v443_v24  ;;  %vm6041_vm10 = vmand %vm322_vm0, %vm349_vm5  ;;  %vm456_vm11 = vsmask.f32 7942  ;;  %vm495_vm13 = vsmask.f32 3328 }
   0xc   :  { %5222 = vmatprep.subr.bf16.mxu0 %v5717_v6  ;;  %vm470_vm0 = vsmask.f32 256  ;;  %vm6062_vm5 = vmand %vm494_vm12, %vm495_vm13  ;;  %vm3043_vm13 = vcmask 516096  }
   0xf   :  { %5223 = vmatpush3.bf16.msra.mxu0 %v5718_v7 }
  0x10   :  { %5224 = vmatprep.subr.bf16.mxu0 %v5719_v8 }
  0x13   :  { %5225 = vmatpush3.bf16.msra.mxu0 %v5720_v9 }
  0x14   :  { %5226 = vmatprep.subr.bf16.mxu0 %v5721_v10 }
  0x17   :  { %5227 = vmatpush3.bf16.msra.mxu0 %v5722_v12 }
  0x18   :  { %5228 = vmatprep.subr.bf16.mxu0 %v5723_v13  ;;  %v291_v13 = vlaneseq }
  0x1b   :  { %5229 = vmatpush3.bf16.msra.mxu0 %v5724_v14  ;;  %v292_v14 = vshrl.u32 %v291_v13, 7  ;;  %v410_v13 = vld [vmem:[#allocation2 + $0x20] sm:$0x7] }
  0x1c   :  { %5230 = vmatprep.subr.bf16.mxu0 %v5725_v15  ;;  %v247_v15 = vld [vmem:[%s7044_s3] sm:$0x1] }
  0x1f   :  { %5231 = vmatpush3.bf16.msra.mxu0 %v5726_v16  ;;  %v6021_v16 = vsub.s32 0, %v292_v14 }
  0x22   :  { %231 = vmatmul.mubr.bf16.vlgmr.msra.gmra.mrb[0].mxu0 %v5727_v17 }
  0x23   :  { %238 = vmatprep.mubr.bf16.mxu0 %v5730_v18 }
  0x2a   :  { %239 = vmatmul.mubr.bf16.gmra.mrb[4].mxu0 %v5732_v19  ;;  %v248_v19 = vld [vmem:[%s7045_s4] sm:$0x1] }
  0xf5   :  { %v5232_v25 = vpop.f32.mrb[0].mxu0 }
  0xf6   :  { %v5233_v27 = vpop.f32.mrb[1].mxu0 }
  0xf7   :  { %v5234_v28 = vadd.f32 %v5233_v27, %v5232_v25  ;;  %v5235_v29 = vpop.f32.mrb[2].mxu0 }
  0xf8   :  { %v5236_v30 = vpop.f32.mrb[3].mxu0 }
  0xf9   :  { %v233_v31 = vadd.f32 %v5234_v28, %v4803_v26  ;;  %v5237_v32 = vadd.f32 %v5236_v30, %v5235_v29 }
  0xfb   :  { %v263_v33 = vmul.f32 %v233_v31, %v233_v31  ;;  %v236_v34 = vadd.f32 %v5237_v32, %v4803_v26  ;;  %v250_v35 = vsel %vm249_vm4, %v233_v31, 0.0 }
  0xfd   :  { %v251_v36 = vsel %vm249_vm4, %v236_v34, 0.0  ;;  %v264_v37 = vmul.f32 %v236_v34, %v236_v34  ;;  %v5238_v38 = vpop.f32.mrb[4].mxu0  ;;  %v267_v41 = vsel %vm249_vm4, %v263_v33, 0.0 }
  0xfe   :  { %v252_v39 = vadd.f32 %v251_v36, %v250_v35  ;;  %v5239_v40 = vpop.f32.mrb[5].mxu0 }
  0xff   :  { %v268_v42 = vsel %vm249_vm4, %v264_v37, 0.0  ;;  %v5240_v43 = vadd.f32 %v5239_v40, %v5238_v38  ;;  %v5241_v44 = vpop.f32.mrb[6].mxu0 }
 0x100   :  { %v269_v45 = vadd.f32 %v268_v42, %v267_v41  ;;  %v5242_v46 = vpop.f32.mrb[7].mxu0 }
 0x101   :  { %v241_v47 = vadd.f32 %v5240_v43, %v4803_v26  ;;  %v5243_v48 = vadd.f32 %v5242_v46, %v5241_v44 }
 0x103   :  { %v253_v49 = vsel %vm249_vm4, %v241_v47, 0.0  ;;  %v265_v50 = vmul.f32 %v241_v47, %v241_v47  ;;  %v244_v51 = vadd.f32 %v5243_v48, %v4803_v26 }
 0x104   :  { %v254_v52 = vadd.f32 %v253_v49, %v252_v39 }
 0x105   :  { %v270_v53 = vsel %vm249_vm4, %v265_v50, 0.0  ;;  %v255_v54 = vsel %vm249_vm4, %v244_v51, 0.0  ;;  %v266_v55 = vmul.f32 %v244_v51, %v244_v51 }
 0x106   :  { %v271_v56 = vadd.f32 %v270_v53, %v269_v45  ;;  %v256_v57 = vadd.f32 %v255_v54, %v254_v52  ;;  %v5734_v45 = vld [vmem:[%s7046_s5 + $0x18] sm:$0xff]   ;;  %v376_v52 = vld [vmem:[#allocation2 + $0xc] sm:$0x7] }
 0x107   :  { %v272_v58 = vsel %vm249_vm4, %v266_v55, 0.0 }
 0x108   :  { %v257_v59 = vrot.slane %v256_v57, 4  ;;  %v273_v60 = vadd.f32 %v272_v58, %v271_v56 }
 0x10a   :  { %v258_v61 = vadd.f32 %v257_v59, %v256_v57  ;;  %v274_v62 = vrot.slane %v273_v60, 4 }
 0x10c   :  { %v259_v63 = vrot.slane %v258_v61, 2  ;;  %v275_v0 = vadd.f32 %v274_v62, %v273_v60  ;;  %v6037_v62 = vld [vmem:[%s7046_s5] sm:$0xff]  }
 0x10e   :  { %v260_v1 = vadd.f32 %v259_v63, %v258_v61  ;;  %v276_v2 = vrot.slane %v275_v0, 2  ;;  %v401_v61 = vld [vmem:[#allocation2 + $0x1c] sm:$0x7] }
 0x110   :  { %v261_v3 = vrot.slane %v260_v1, 1  ;;  %v277_v4 = vadd.f32 %v276_v2, %v275_v0  ;;  %v360_v0 = vld [vmem:[#allocation2 + $0x8] sm:$0x7] }
 0x112   :  { %v262_v5 = vadd.f32 %v261_v3, %v260_v1  ;;  %v278_v6 = vrot.slane %v277_v4, 1 }
 0x114   :  { %v279_v7 = vadd.f32 %v278_v6, %v277_v4  ;;  %v281_v8 = vmul.f32 0.03125, %v262_v5 }
 0x116   :  { %v282_v9 = vmul.f32 0.03125, %v279_v7  ;;  %v283_v10 = vmul.f32 %v281_v8, %v281_v8 }
 0x118   :  { %v284_v11 = vsub.f32 %v282_v9, %v283_v10  ;;  %v426_v10 = vld [vmem:[#allocation2 + $0x24] sm:$0x7] }
 0x11a   :  { %v285_v12 = vadd.f32 1e-05, %v284_v11 }
 0x11c   :  { %5860 = vrsqrt.f32 %v285_v12 }
 0x126   :  { %v5861_v17 = vpop.eup %5860 }
 0x127   :  { %v287_v18 = vmul.f32 %v5861_v17, %v247_v15 }
 0x129   :  { %v288_v20 = vmul.f32 %v287_v18, %v281_v8  ;;  %v294_v21 = vrot.slane %v287_v18, %v6021_v16  ;;  %v385_v8 = vld [vmem:[#allocation2 + $0x10] sm:$0x7] }
 0x12b   :  { %v289_v23 = vsub.f32 %v248_v19, %v288_v20  ;;  %v296_v24 = vmul.f32 %v294_v21, %v233_v31  ;;  %v297_v25 = vmul.f32 %v294_v21, %v236_v34  ;;  %v298_v26 = vmul.f32 %v294_v21, %v241_v47  ;;  %v5733_v31 = vld [vmem:[%s7046_s5 + $0x10] sm:$0xff]  }
 0x12c   :  { %v299_v27 = vmul.f32 %v294_v21, %v244_v51  ;;  %5388 = vmatprep.subr.bf16.mxu1 %v5733_v31  ;;  %v351_v51 = vld [vmem:[#allocation2 + $0x4] sm:$0x7] }
 0x12d   :  { %v304_v28 = vrot.slane %v289_v23, %v6021_v16  ;;  %5389 = vmatpush3.bf16.msra.mxu1 %v5733_v31 }
 0x12e   :  { %5390 = vmatprep.subr.bf16.mxu1 %v5734_v45 }
 0x12f   :  { %v306_v29 = vadd.f32 %v304_v28, %v296_v24  ;;  %v307_v30 = vadd.f32 %v304_v28, %v297_v25  ;;  %v308_v32 = vadd.f32 %v304_v28, %v298_v26  ;;  %v309_v33 = vadd.f32 %v304_v28, %v299_v27  ;;  %v435_v28 = vld [vmem:[#allocation2 + $0x28] sm:$0x7] }
 0x131   :  { %vm310_vm6 = vcmp.ge.f32.partialorder %v306_v29, 0.0  ;;  %vm311_vm7 = vcmp.ge.f32.partialorder %v307_v30, 0.0  ;;  %vm312_vm8 = vcmp.ge.f32.partialorder %v308_v32, 0.0  ;;  %vm313_vm9 = vcmp.ge.f32.partialorder %v309_v33, 0.0  ;;  %5391 = vmatpush3.bf16.msra.mxu1 %v5734_v45 }
 0x132   :  { %v314_v35 = vmul.f32 0.2, %v306_v29  ;;  %v315_v36 = vmul.f32 0.2, %v307_v30  ;;  %v316_v37 = vmul.f32 0.2, %v308_v32  ;;  %5396 = vmatprep.subr.bf16.mxu1 %v6037_v62 }
 0x133   :  { %v317_v38 = vmul.f32 0.2, %v309_v33 }
 0x134   :  { %v318_v34 = vsel %vm310_vm6, %v306_v29, %v314_v35  ;;  %v319_v39 = vsel %vm311_vm7, %v307_v30, %v315_v36  ;;  %v320_v40 = vsel %vm312_vm8, %v308_v32, %v316_v37  ;;  %v497_v37 = vld [vmem:[#allocation4 + $0x4] sm:$0xc]  ;;  %vm467_vm6 = vcmask 257027   ;;  %vm6067_vm7 = vmand %vm455_vm14, %vm456_vm11 }
 0x135   :  { %v321_v41 = vsel %vm313_vm9, %v309_v33, %v317_v38  ;;  %v5206_v42 = vpack.c.bf16 %v318_v34, %v318_v34  ;;  %v5207_v43 = vpack.c.bf16 %v319_v39, %v319_v39  ;;  %v5208_v44 = vpack.c.bf16 %v320_v40, %v320_v40  ;;  %v476_v39 = vld [vmem:[#allocation2 + $0x18] sm:$0x3]  ;;  %vm6073_vm8 = vmand %vm469_vm15, %vm470_vm0 }
 0x136   :  { %v5209_v46 = vpack.c.bf16 %v321_v41, %v321_v41  ;;  %vm513_vm9 = vsmask.f32 7950  ;;  %vm3056_vm14 = vcmask 518146   ;;  %vm2857_vm0 = vcmask 517120  }
 0x137   :  { %v340_v47 = vshrl.u32 %v5206_v42, 16  ;;  %v343_v48 = vshll.u32 %v5206_v42, 16  ;;  %v368_v49 = vshrl.u32 %v5207_v43, 16  ;;  %v371_v50 = vshll.u32 %v5207_v43, 16  ;;  %v472_v43 = vld [vmem:[#allocation4 + $0x4] sm:$0x1]  ;;  %vm6085_vm11 = vmand %vm467_vm6, %vm513_vm9 }
 0x138   :  { %v393_v53 = vshrl.u32 %v5208_v44, 16  ;;  %v396_v54 = vshll.u32 %v5208_v44, 16  ;;  %v418_v55 = vshrl.u32 %v5209_v46, 16  ;;  %v421_v56 = vshll.u32 %v5209_v46, 16 }
 0x139   :  { %v342_v57 = vrot.slane %v340_v47, 7  ;;  %v354_v58 = vrot.slane %v340_v47, 5  ;;  %v355_v59 = vrot.slane %v343_v48, 6  ;;  %v370_v60 = vrot.slane %v368_v49, 7 }
 0x13a   :  { %v379_v1 = vrot.slane %v368_v49, 5  ;;  %v380_v2 = vrot.slane %v371_v50, 6  ;;  %v395_v3 = vrot.slane %v393_v53, 7  ;;  %v404_v4 = vrot.slane %v393_v53, 5  ;;  %v527_v49 = vld [vmem:[#allocation2] sm:$0x3] }
 0x13b   :  { %v345_v5 = vor.u32 %v343_v48, %v342_v57  ;;  %v356_v6 = vor.u32 %v355_v59, %v354_v58  ;;  %v373_v7 = vor.u32 %v371_v50, %v370_v60  ;;  %v405_v9 = vrot.slane %v396_v54, 6  ;;  %v458_v50 = vld [vmem:[#allocation4] sm:$0x6] }
 0x13c   :  { %v381_v11 = vor.u32 %v380_v2, %v379_v1  ;;  %v398_v12 = vor.u32 %v396_v54, %v395_v3  ;;  %v420_v14 = vrot.slane %v418_v55, 7  ;;  %v429_v15 = vrot.slane %v418_v55, 5 }
 0x13d   :  { %v352_v17 = vsel %vm6041_vm10, %v345_v5, %v351_v51  ;;  %v357_v18 = vrot.slane %v356_v6, 4  ;;  %v377_v19 = vsel %vm6041_vm10, %v373_v7, %v376_v52  ;;  %v406_v20 = vor.u32 %v405_v9, %v404_v4 }
 0x13e   :  { %353 = vst [vmem:[#allocation2 + $0x4] sm:$0x7] %v352_v17  ;;  %378 = vst [vmem:[#allocation2 + $0xc] sm:$0x7] %v377_v19  ;;  %v382_v21 = vrot.slane %v381_v11, 4  ;;  %v402_v23 = vsel %vm6041_vm10, %v398_v12, %v401_v61  ;;  %v423_v24 = vor.u32 %v421_v56, %v420_v14  ;;  %v430_v25 = vrot.slane %v421_v56, 6 }
 0x13f   :  { %v361_v26 = vsel %vm6041_vm10, %v357_v18, %v360_v0  ;;  %403 = vst [vmem:[#allocation2 + $0x1c] sm:$0x7] %v402_v23  ;;  %v407_v27 = vrot.slane %v406_v20, 4  ;;  %v478_v52 = vshrl.u32 %v476_v39, 16  ;;  %v529_v59 = vshrl.u32 %v527_v49, 16 }
 0x140   :  { %362 = vst [vmem:[#allocation2 + $0x8] sm:$0x7] %v361_v26  ;;  %v386_v29 = vsel %vm6041_vm10, %v382_v21, %v385_v8  ;;  %v427_v30 = vsel %vm6041_vm10, %v423_v24, %v426_v10  ;;  %v431_v32 = vor.u32 %v430_v25, %v429_v15  ;;  %v532_v60 = vshll.u32 %v527_v49, 16 }
 0x141   :  { %387 = vst [vmem:[#allocation2 + $0x10] sm:$0x7] %v386_v29  ;;  %v411_v33 = vsel %vm6041_vm10, %v407_v27, %v410_v13  ;;  %428 = vst [vmem:[#allocation2 + $0x24] sm:$0x7] %v427_v30  ;;  %v480_v2 = vrot.slane %v478_v52, 7  ;;  %v481_v3 = vshll.u32 %v476_v39, 16 }
 0x142   :  { %412 = vst [vmem:[#allocation2 + $0x20] sm:$0x7] %v411_v33  ;;  %v432_v35 = vrot.slane %v431_v32, 4  ;;  %v531_v7 = vrot.slane %v529_v59, 4  ;;  %v534_v8 = vrot.slane %v532_v60, 5 }
 0x143   :  { %v483_v10 = vor.u32 %v481_v3, %v480_v2 }
 0x144   :  { %v436_v36 = vsel %vm6041_vm10, %v432_v35, %v435_v28  ;;  %vm485_vm10 = vsmask.f32 7938  ;;  %v535_v25 = vor.u32 %v534_v8, %v531_v7 }
 0x145   :  { %437 = vst [vmem:[#allocation2 + $0x28] sm:$0x7] %v436_v36  ;;  %v445_v38 = vld [vmem:[#allocation2 + $0x4] sm:$0x3]  ;;  %vm6091_vm12 = vmand %vm439_vm1, %vm485_vm10  ;;  %vm2917_vm1 = vcmask 518144  }
 0x146   :  { %v447_v31 = vshrl.u32 %v445_v38, 16  ;;  %v450_v34 = vshll.u32 %v445_v38, 16  ;;  %v490_v40 = vld [vmem:[#allocation2 + $0x1c] sm:$0x3]  ;;  %v536_v33 = vrot.slane %v535_v25, 4 }
 0x147   :  { %v461_v42 = vld [vmem:[#allocation2 + $0x8] sm:$0x3]  ;;  %v492_v44 = vrot.slane %v490_v40, 6  ;;  %v568_v9 = vld [vmem:[#allocation2 + $0x1c] sm:$0x3] }
 0x148   :  { %v449_v45 = vrot.slane %v447_v31, 6  ;;  %v452_v46 = vrot.slane %v450_v34, 7  ;;  %v463_v48 = vrot.slane %v461_v42, 5  ;;  %v548_v12 = vld [vmem:[#allocation2 + $0x8] sm:$0x3]  ;;  %v570_v17 = vshrl.u32 %v568_v9, 16 }
 0x149   :  { %v498_v53 = vsel %vm6062_vm5, %v492_v44, %v497_v37  ;;  %v500_v54 = vld [vmem:[#allocation2 + $0x20] sm:$0x3]  ;;  %v573_v18 = vshll.u32 %v568_v9, 16  ;;  %v550_v20 = vshrl.u32 %v548_v12, 16  ;;  %v553_v21 = vshll.u32 %v548_v12, 16 }
 0x14a   :  { %v453_v55 = vor.u32 %v452_v46, %v449_v45  ;;  %v464_v56 = vrot.slane %v463_v48, 4  ;;  %468 = vst.msk [vmem:[#allocation4] sm:$0x8] %vm467_vm6, %v463_v48  ;;  %499 = vst [vmem:[#allocation4 + $0x4] sm:$0xc] %v498_v53  ;;  %v502_v57 = vshll.u32 %v500_v54, 16 }
 0x14b   :  { %v505_v58 = vshrl.u32 %v500_v54, 16  ;;  %v581_v13 = vld [vmem:[#allocation2 + $0x20] sm:$0x3]  ;;  %v572_v26 = vrot.slane %v570_v17, 6  ;;  %v575_v27 = vrot.slane %v573_v18, 7  ;;  %v552_v28 = vrot.slane %v550_v20, 5 }
 0x14c   :  { %v459_v61 = vsel %vm6067_vm7, %v453_v55, %v458_v50  ;;  %v473_v63 = vsel %vm6073_vm8, %v464_v56, %v472_v43  ;;  %v504_v0 = vrot.slane %v502_v57, 5  ;;  %v583_v23 = vrot.slane %v581_v13, 5  ;;  %v541_v44 = vld [vmem:[#allocation2 + $0x4] sm:$0x3]  ;;  %v564_v46 = vld [vmem:[#allocation2 + $0x18] sm:$0x3] }
 0x14d   :  { %v507_v1 = vrot.slane %v505_v58, 4  ;;  %460 = vst [vmem:[#allocation4] sm:$0x6] %v459_v61  ;;  %474 = vst [vmem:[#allocation4 + $0x4] sm:$0x1] %v473_v63  ;;  %v555_v29 = vrot.slane %v553_v21, 6  ;;  %v576_v37 = vor.u32 %v575_v27, %v572_v26 }
 0x14e   :  { %v584_v30 = vrot.slane %v583_v23, 4  ;;  %v557_v31 = vrot.slane %v552_v28, 4  ;;  %v543_v45 = vrot.slane %v541_v44, 7  ;;  %v777_v54 = vld [vmem:[#allocation2 + $0x18] sm:$0x6] }
 0x14f   :  { %v508_v4 = vor.u32 %v507_v1, %v504_v0  ;;  %v556_v38 = vor.u32 %v555_v29, %v552_v28  ;;  %v767_v56 = vld [vmem:[#allocation2 + $0x8] sm:$0x6]  ;;  %v747_v57 = vld [vmem:[#allocation2] sm:$0x6]  ;;  %v779_v58 = vshrl.u32 %v777_v54, 16  ;;  %v782_v59 = vshll.u32 %v777_v54, 16 }
 0x150   :  { %v769_v60 = vrot.slane %v767_v56, 6  ;;  %v791_v61 = vld [vmem:[#allocation2 + $0x1c] sm:$0x6]  ;;  %v4844_v63 = vrot.slane %v747_v57, 9  ;;  %v917_v29 = vld [vmem:[#allocation2 + $0x8] sm:$0x6] }
 0x151   :  { %v509_v6 = vrot.slane %v508_v4, 4  ;;  %v515_v11 = vld [vmem:[#allocation4 + $0x4] sm:$0x8]  ;;  %v781_v1 = vrot.slane %v779_v58, 4  ;;  %v784_v2 = vrot.slane %v782_v59, 5  ;;  %v793_v3 = vrot.slane %v791_v61, 7 }
 0x152   :  { %v516_v15 = vsel %vm6085_vm11, %v504_v0, %v515_v11  ;;  %v755_v0 = vld [vmem:[#allocation2 + $0x4] sm:$0x6]  ;;  %v899_v4 = vld [vmem:[#allocation2] sm:$0x6]  ;;  %v770_v8 = vrot.slane %v769_v60, 4 }
 0x153   :  { %519 = vst.msk [vmem:[#allocation4 + $0x8] sm:$0x1] %vm469_vm15, %v509_v6  ;;  %517 = vst [vmem:[#allocation4 + $0x4] sm:$0x8] %v516_v15  ;;  %v757_v7 = vshrl.u32 %v755_v0, 16  ;;  %v785_v18 = vor.u32 %v784_v2, %v781_v1  ;;  %v904_v20 = vshll.u32 %v899_v4, 16 }
 0x154   :  { %v487_v19 = vld [vmem:[#allocation4 + $0x4] sm:$0x3]  ;;  %v538_v35 = vld [vmem:[#allocation4] sm:$0x3]  ;;  %v798_v15 = vld [vmem:[#allocation2 + $0x20] sm:$0x6] }
 0x155   :  { %v488_v24 = vsel %vm6091_vm12, %v483_v10, %v487_v19  ;;  %v539_v39 = vsel %vm6001_vm3, %v536_v33, %v538_v35  ;;  %v901_v19 = vshrl.u32 %v899_v4, 16  ;;  %v759_v21 = vrot.slane %v757_v7, 7  ;;  %v941_v25 = vld [vmem:[#allocation2 + $0x1c] sm:$0x6]  ;;  %v953_v4 = vld [vmem:[#allocation2 + $0x20] sm:$0x6] }
 0x156   :  { %489 = vst [vmem:[#allocation4 + $0x4] sm:$0x3] %v488_v24  ;;  %v760_v24 = vshll.u32 %v755_v0, 16  ;;  %v786_v26 = vrot.slane %v785_v18, 4  ;;  %v906_v28 = vrot.slane %v904_v20, 6 }
 0x157   :  { %v903_v27 = vrot.slane %v901_v19, 5  ;;  %v1065_v7 = vld [vmem:[#allocation2 + $0xc] sm:$0x3]  ;;  %v2706_v22 = vld [vmem:[#allocation2 + $0x10] sm:$0x6] }
 0x159   :  { %v907_v44 = vor.u32 %v906_v28, %v903_v27  ;;  %v1087_v27 = vld [vmem:[#allocation2 + $0x20] sm:$0x3] }
 0x15a   :  { %v6100_v32 = vld [vmem:[#allocation4 + $0x8] sm:$0x1]  ;;  %v578_v36 = vld [vmem:[#allocation4 + $0x4] sm:$0xc] }
 0x15b   :  { %590 = vst.msk [vmem:[#allocation4 + $0x8] sm:$0x1] %vm469_vm15, %v584_v30  ;;  %v579_v42 = vsel %vm6062_vm5, %v576_v37, %v578_v36  ;;  %v762_v30 = vor.u32 %v760_v24, %v759_v21  ;;  %v943_v37 = vshrl.u32 %v941_v25, 16  ;;  %v1067_v21 = vrot.slane %v1065_v7, 5  ;;  %v5741_v7 = vld [vmem:[%s7046_s5 + $0x30] sm:$0xff]  }
 0x15d   :  { %v6103_v34 = vld [vmem:[#allocation4] sm:$0xff]  }
 0x15e   :  { %v561_v40 = vld [vmem:[#allocation4 + $0x4] sm:$0x1]  ;;  %540 = vst [vmem:[#allocation4] sm:$0x3] %v539_v39  ;;  %560 = vst.msk [vmem:[#allocation4] sm:$0x8] %vm467_vm6, %v556_v38 }
 0x15f   :  { %v562_v43 = vsel %vm6073_vm8, %v557_v31, %v561_v40  ;;  %580 = vst [vmem:[#allocation4 + $0x4] sm:$0xc] %v579_v42  ;;  %v919_v40 = vshrl.u32 %v917_v29, 16  ;;  %v922_v42 = vshll.u32 %v917_v29, 16 }
 0x160   :  { %563 = vst [vmem:[#allocation4 + $0x4] sm:$0x1] %v562_v43 }
 0x165   :  { %v545_v48 = vld [vmem:[#allocation4] sm:$0x6] }
 0x166   :  { %v587_v49 = vld [vmem:[#allocation4 + $0x4] sm:$0x8]  ;;  %v546_v50 = vsel %vm6067_vm7, %v543_v45, %v545_v48  ;;  %v5747_v45 = vld [vmem:[%s7046_s5 + $0x50] sm:$0xff]   ;;  %v921_v48 = vrot.slane %v919_v40, 6 }
 0x167   :  { %v565_v52 = vld [vmem:[#allocation4 + $0x4] sm:$0x3]  ;;  %v588_v53 = vsel %vm6085_vm11, %v583_v23, %v587_v49  ;;  %547 = vst [vmem:[#allocation4] sm:$0x6] %v546_v50  ;;  %v800_v23 = vshll.u32 %v798_v15, 16  ;;  %5428 = vmatprep.subr.bf16.mxu0 %v5747_v45  ;;  %v924_v49 = vrot.slane %v922_v42, 7 }
 0x168   :  { %v566_v55 = vsel %vm6091_vm12, %v564_v46, %v565_v52  ;;  %589 = vst [vmem:[#allocation4 + $0x4] sm:$0x8] %v588_v53  ;;  %v945_v46 = vrot.slane %v943_v37, 7  ;;  %5429 = vmatpush3.bf16.msra.mxu0 %v5747_v45  ;;  %v908_v50 = vrot.slane %v907_v44, 4  ;;  %v946_v52 = vshll.u32 %v941_v25, 16  ;;  %v5748_v53 = vld [vmem:[%s7046_s5 + $0x58] sm:$0xff]  }
 0x169   :  { %567 = vst [vmem:[#allocation4 + $0x4] sm:$0x3] %v566_v55  ;;  %v6126_v33 = vrot.slane %v800_v23, 6  ;;  %5430 = vmatprep.subr.bf16.mxu0 %v5748_v53  ;;  %v803_v55 = vshrl.u32 %v798_v15, 16  ;;  %v925_v57 = vor.u32 %v924_v49, %v921_v48  ;;  %v926_v58 = vrot.slane %v921_v48, 4 }
 0x16a   :  { %v948_v54 = vor.u32 %v946_v52, %v945_v46  ;;  %v1089_v42 = vrot.slane %v1087_v27, 6  ;;  %v6164_v46 = vld [vmem:[#allocation2 + $0xc] sm:$0x3]  ;;  %v5735_v52 = vld [vmem:[#allocation4 + $0x8] ss:$0 sps:$4 sm:$0x11]  }
 0x16b   :  { %v805_v2 = vrot.slane %v803_v55, 5  ;;  %v1218_v55 = vshrl.u32 %v6164_v46, 16 }
 0x16c   :  { %5431 = vmatpush3.bf16.msra.mxu0 %v5748_v53  ;;  %v1048_v53 = vld [vmem:[#allocation2 + $0x4] sm:$0x3] }
 0x16d   :  { %v1220_v27 = vrot.slane %v1218_v55, 5 }
 0x16e   :  { %v752_v6 = vld [vmem:[#allocation4] sm:$0x3] }
 0x16f   :  { %v795_v9 = vld [vmem:[#allocation4 + $0x4] sm:$0xc]  ;;  %v753_v11 = vsel %vm6001_vm3, %v4844_v63, %v752_v6  ;;  %v1052_v6 = vld [vmem:[#allocation2 + $0x8] sm:$0x3] }
 0x170   :  { %v591_v10 = vld [vmem:[#allocation4] sm:$0xff]   ;;  %v796_v13 = vsel %vm6062_vm5, %v793_v3, %v795_v9  ;;  %v1054_v15 = vshrl.u32 %v1052_v6, 16  ;;  %v1057_v20 = vshll.u32 %v1052_v6, 16 }
 0x171   :  { %v774_v12 = vld [vmem:[#allocation4 + $0x4] sm:$0x1]  ;;  %754 = vst [vmem:[#allocation4] sm:$0x3] %v753_v11  ;;  %773 = vst.msk [vmem:[#allocation4] sm:$0x8] %vm467_vm6, %v769_v60  ;;  %5392 = vmatprep.mubr.msk.bf16.mxu1 %vm249_vm4, %v591_v10  ;;  %v806_v11 = vor.u32 %v805_v2, %v6126_v33 }
 0x172   :  { %v775_v17 = vsel %vm6073_vm8, %v770_v8, %v774_v12  ;;  %797 = vst [vmem:[#allocation4 + $0x4] sm:$0xc] %v796_v13  ;;  %v933_v3 = vld [vmem:[#allocation2 + $0x18] sm:$0x6]  ;;  %v6150_v9 = vld [vmem:[#allocation2 + $0x1c] sm:$0x3]  ;;  %5393 = vmatmul.mubr.msk.bf16.vlgmr.msra.gmra.mrb[0].mxu1 %vm249_vm4, %v5735_v52 }
 0x173   :  { %776 = vst [vmem:[#allocation4 + $0x4] sm:$0x1] %v775_v17  ;;  %v4855_v8 = vrot.slane %v933_v3, 9  ;;  %v1094_v10 = vld [vmem:[#allocation2 + $0x24] sm:$0x3]  ;;  %v955_v13 = vrot.slane %v953_v4, 6  ;;  %5397 = vmatpush3.bf16.msra.mxu1 %v6037_v62  ;;  %5400 = vmatprep.mubr.msk.bf16.mxu1 %vm249_vm4, %v6103_v34  ;;  %v4839_v4 = vcombine.low %v6100_v32, %v6100_v32 }
 0x174   :  { %v913_v12 = vld [vmem:[#allocation2 + $0x4] sm:$0x6]  ;;  %v1096_v28 = vshll.u32 %v1094_v10, 16  ;;  %v1080_v40 = vshll.u32 %v6150_v9, 16  ;;  %v5739_v62 = vld [vmem:[%s7046_s5 + $0x28] sm:$0xff]  }
 0x175   :  { %v1195_v17 = vld [vmem:[#allocation2 + $0x4] sm:$0x3]  ;;  %v956_v37 = vrot.slane %v955_v13, 4  ;;  %v5745_v52 = vld [vmem:[%s7046_s5 + $0x48] sm:$0xff]  }
 0x176   :  { %v1098_v45 = vrot.slane %v1096_v28, 5 }
 0x178   :  { %v764_v35 = vld [vmem:[#allocation4] sm:$0x6] }
 0x179   :  { %v810_v36 = vld [vmem:[#allocation4 + $0x4] sm:$0x8]  ;;  %v765_v38 = vsel %vm6067_vm7, %v762_v30, %v764_v35  ;;  %v1099_v30 = vshrl.u32 %v1094_v10, 16  ;;  %v1200_v35 = vshll.u32 %v1195_v17, 16 }
 0x17a   :  { %v788_v31 = vld [vmem:[#allocation4 + $0x4] sm:$0x3]  ;;  %v811_v39 = vsel %vm6085_vm11, %v6126_v33, %v810_v36  ;;  %766 = vst [vmem:[#allocation4] sm:$0x6] %v765_v38  ;;  %v1197_v33 = vshrl.u32 %v1195_v17, 16  ;;  %v807_v36 = vrot.slane %v806_v11, 4 }
 0x17b   :  { %v789_v43 = vsel %vm6091_vm12, %v786_v26, %v788_v31  ;;  %812 = vst [vmem:[#allocation4 + $0x4] sm:$0x8] %v811_v39  ;;  %v1077_v26 = vshrl.u32 %v6150_v9, 16  ;;  %v1056_v38 = vrot.slane %v1054_v15, 6  ;;  %v1059_v31 = vrot.slane %v1057_v20, 7 }
 0x17c   :  { %790 = vst [vmem:[#allocation4 + $0x4] sm:$0x3] %v789_v43  ;;  %v1068_v39 = vrot.slane %v1067_v21, 4  ;;  %v5737_v43 = vld [vmem:[%s7046_s5 + $0x8] sm:$0xff]   ;;  %v1101_v48 = vrot.slane %v1099_v30, 4  ;;  %v6166_v49 = vrot.slane %v1197_v33, 4 }
 0x17d   :  { %v1079_v44 = vrot.slane %v1077_v26, 7  ;;  %813 = vst.msk [vmem:[#allocation4 + $0x8] sm:$0x1] %vm469_vm15, %v807_v36  ;;  %5398 = vmatprep.subr.bf16.mxu1 %v5737_v43 }
 0x17e   :  { %5399 = vmatpush3.bf16.msra.mxu1 %v5737_v43  ;;  %v1102_v9 = vor.u32 %v1101_v48, %v1098_v45 }
 0x17f   :  { %v1082_v11 = vor.u32 %v1080_v40, %v1079_v44 }
 0x181   :  { %v910_v56 = vld [vmem:[#allocation4] sm:$0x3]  ;;  %5401 = vmatmul.mubr.msk.bf16.vlgmr.msra.gmra.mrb[4].mxu1 %vm249_vm4, %v4839_v4  ;;  %v6247_v4 = vld [vmem:[#allocation2 + $0x24] sm:$0x6] }
 0x182   :  { %v950_v59 = vld [vmem:[#allocation4 + $0x4] sm:$0xc]  ;;  %v911_v61 = vsel %vm6001_vm3, %v908_v50, %v910_v56  ;;  %v6168_v50 = vrot.slane %v1200_v35, 5  ;;  %v1221_v56 = vshll.u32 %v6164_v46, 16 }
 0x183   :  { %v6141_v60 = vld [vmem:[#allocation4] sm:$0xff]   ;;  %v951_v0 = vsel %vm6062_vm5, %v948_v54, %v950_v59  ;;  %v1236_v54 = vld [vmem:[#allocation2 + $0x20] sm:$0x3] }
 0x184   :  { %v930_v63 = vld [vmem:[#allocation4 + $0x4] sm:$0x1]  ;;  %912 = vst [vmem:[#allocation4] sm:$0x3] %v911_v61  ;;  %929 = vst.msk [vmem:[#allocation4] sm:$0x8] %vm467_vm6, %v925_v57  ;;  %5408 = vmatprep.mubr.msk.bf16.mxu1 %vm249_vm4, %v6141_v60 }
 0x185   :  { %v931_v1 = vsel %vm6073_vm8, %v926_v58, %v930_v63  ;;  %952 = vst [vmem:[#allocation4 + $0x4] sm:$0xc] %v951_v0  ;;  %v5738_v57 = vld [vmem:[%s7046_s5 + $0x20] sm:$0xff]   ;;  %v1238_v2 = vshrl.u32 %v1236_v54, 16  ;;  %v1241_v34 = vshll.u32 %v1236_v54, 16  ;;  %v5742_v60 = vld [vmem:[%s7046_s5 + $0x38] sm:$0xff]  }
 0x186   :  { %932 = vst [vmem:[#allocation4 + $0x4] sm:$0x1] %v931_v1  ;;  %5404 = vmatprep.subr.bf16.mxu1 %v5738_v57  ;;  %v5740_v6 = vld [vmem:[#allocation4 + $0x8] ss:$0 sps:$4 sm:$0x11]   ;;  %v1223_v28 = vrot.slane %v1221_v56, 6 }
 0x187   :  { %962 = vst.msk [vmem:[#allocation4 + $0x8] sm:$0x1] %vm469_vm15, %v956_v37  ;;  %5405 = vmatpush3.bf16.msra.mxu1 %v5738_v57  ;;  %v1240_v20 = vrot.slane %v1238_v2, 6  ;;  %v5744_v37 = vld [vmem:[%s7046_s5 + $0x40] sm:$0xff]   ;;  %v1209_v54 = vld [vmem:[#allocation2 + $0x8] sm:$0x3] }
 0x188   :  { %5406 = vmatprep.subr.bf16.mxu1 %v5739_v62  ;;  %v5750_v56 = vld [vmem:[%s7046_s5 + $0x60] sm:$0xff]   ;;  %v1211_v57 = vrot.slane %v1209_v54, 7  ;;  %v1364_v2 = vld [vmem:[#allocation2 + $0xc] sm:$0x6] }
 0x18b   :  { %v914_v18 = vld [vmem:[#allocation4] sm:$0x6]  ;;  %5407 = vmatpush3.bf16.msra.mxu1 %v5739_v62 }
 0x18c   :  { %v959_v19 = vld [vmem:[#allocation4 + $0x4] sm:$0x8]  ;;  %v915_v23 = vsel %vm6067_vm7, %v913_v12, %v914_v18  ;;  %v6211_v18 = vld [vmem:[%s7046_s5 + $0x70] sm:$0xff]   ;;  %5412 = vmatprep.subr.bf16.mxu1 %v5741_v7 }
 0x18d   :  { %v938_v24 = vld [vmem:[#allocation4 + $0x4] sm:$0x3]  ;;  %v960_v25 = vsel %vm6085_vm11, %v955_v13, %v959_v19  ;;  %916 = vst [vmem:[#allocation4] sm:$0x6] %v915_v23  ;;  %v1103_v19 = vrot.slane %v1102_v9, 4  ;;  %5444 = vmatprep.subr.bf16.mxu0 %v6211_v18 }
 0x18e   :  { %v939_v29 = vsel %vm6091_vm12, %v4855_v8, %v938_v24  ;;  %961 = vst [vmem:[#allocation4 + $0x4] sm:$0x8] %v960_v25  ;;  %v1060_v8 = vor.u32 %v1059_v31, %v1056_v38  ;;  %v1395_v23 = vld [vmem:[#allocation2 + $0x24] sm:$0x6]  ;;  %v1203_v24 = vor.u32 %v6168_v50, %v6166_v49  ;;  %v1243_v25 = vrot.slane %v1241_v34, 7  ;;  %5409 = vmatmul.mubr.msk.bf16.vlgmr.msra.gmra.mrb[8].mxu1 %vm249_vm4, %v5740_v6  ;;  %v5751_v6 = vld [vmem:[%s7046_s5 + $0x68] sm:$0xff]  }
 0x18f   :  { %940 = vst [vmem:[#allocation4 + $0x4] sm:$0x3] %v939_v29  ;;  %v5743_v26 = vld [vmem:[#allocation4 + $0x8] ss:$0 sps:$4 sm:$0x11]   ;;  %v1397_v30 = vshll.u32 %v1395_v23, 16  ;;  %5413 = vmatpush3.bf16.msra.mxu1 %v5741_v7  ;;  %v1224_v31 = vor.u32 %v1223_v28, %v1220_v27 }
 0x190   :  { %1109 = vst.msk [vmem:[#allocation4 + $0x8] sm:$0x1] %vm469_vm15, %v1103_v19  ;;  %v1400_v33 = vshrl.u32 %v1395_v23, 16  ;;  %v1204_v35 = vrot.slane %v1203_v24, 4  ;;  %v1244_v36 = vor.u32 %v1243_v25, %v1240_v20  ;;  %5414 = vmatprep.subr.bf16.mxu1 %v5742_v60  ;;  %v1691_v7 = vld [vmem:[#allocation2 + $0x28] sm:$0x3] }
 0x191   :  { %v6229_v49 = vrot.slane %v1397_v30, 6  ;;  %v1344_v9 = vld [vmem:[#allocation2 + $0x4] sm:$0x6]  ;;  %v1696_v19 = vshrl.u32 %v1691_v7, 16 }
 0x192   :  { %v1402_v50 = vrot.slane %v1400_v33, 5  ;;  %v4886_v20 = vrot.slane %v1344_v9, 9  ;;  %v1496_v25 = vld [vmem:[#allocation2 + $0x4] sm:$0x6] }
 0x193   :  { %5415 = vmatpush3.bf16.msra.mxu1 %v5742_v60  ;;  %v6258_v60 = vld [vmem:[%s7046_s5 + $0x80] sm:$0xff]  }
 0x194   :  { %v1049_v58 = vld [vmem:[#allocation4] sm:$0x3]  ;;  %5420 = vmatprep.subr.bf16.mxu1 %v5744_v37  ;;  %v1403_v55 = vor.u32 %v1402_v50, %v6229_v49 }
 0x195   :  { %v1091_v59 = vld [vmem:[#allocation4 + $0x4] sm:$0xc]  ;;  %v1050_v63 = vsel %vm6001_vm3, %v1048_v53, %v1049_v58 }
 0x196   :  { %v963_v61 = vld [vmem:[#allocation4] sm:$0xff]   ;;  %v1092_v1 = vsel %vm6062_vm5, %v1089_v42, %v1091_v59  ;;  %v1404_v34 = vrot.slane %v1403_v55, 4 }
 0x197   :  { %v1072_v0 = vld [vmem:[#allocation4 + $0x4] sm:$0x1]  ;;  %1051 = vst [vmem:[#allocation4] sm:$0x3] %v1050_v63  ;;  %1071 = vst.msk [vmem:[#allocation4] sm:$0x8] %vm467_vm6, %v1067_v21  ;;  %5416 = vmatprep.mubr.msk.bf16.mxu1 %vm249_vm4, %v963_v61 }
 0x198   :  { %v1073_v3 = vsel %vm6073_vm8, %v1068_v39, %v1072_v0  ;;  %1093 = vst [vmem:[#allocation4 + $0x4] sm:$0xc] %v1092_v1  ;;  %v1249_v21 = vld [vmem:[#allocation2 + $0x24] sm:$0x3]  ;;  %v1225_v39 = vrot.slane %v1220_v27, 4  ;;  %5417 = vmatmul.mubr.msk.bf16.vlgmr.msra.gmra.mrb[12].mxu1 %vm249_vm4, %v5743_v26 }
 0x199   :  { %1074 = vst [vmem:[#allocation4 + $0x4] sm:$0x1] %v1073_v3  ;;  %v1251_v29 = vrot.slane %v1249_v21, 5  ;;  %v5746_v53 = vld [vmem:[#allocation4 + $0x8] ss:$0 sps:$4 sm:$0x11]   ;;  %5421 = vmatpush3.bf16.msra.mxu1 %v5744_v37 }
 0x19a   :  { %5422 = vmatprep.subr.bf16.mxu1 %v5745_v52  ;;  %v1232_v59 = vld [vmem:[#allocation2 + $0x1c] sm:$0x3] }
 0x19b   :  { %v1252_v46 = vrot.slane %v1251_v29, 4  ;;  %v1374_v3 = vld [vmem:[#allocation2 + $0x1c] sm:$0x6] }
 0x19d   :  { %1258 = vst.msk [vmem:[#allocation4 + $0x8] sm:$0x1] %vm469_vm15, %v1252_v46  ;;  %5423 = vmatpush3.bf16.msra.mxu1 %v5745_v52  ;;  %v1501_v46 = vshll.u32 %v1496_v25, 16  ;;  %v1538_v52 = vld [vmem:[#allocation2 + $0x20] sm:$0x6] }
 0x19e   :  { %v1062_v10 = vld [vmem:[#allocation4] sm:$0x6]  ;;  %5436 = vmatprep.subr.bf16.mxu1 %v5750_v56 }
 0x19f   :  { %v1106_v12 = vld [vmem:[#allocation4 + $0x4] sm:$0x8]  ;;  %v1063_v32 = vsel %vm6067_vm7, %v1060_v8, %v1062_v10  ;;  %v1366_v10 = vrot.slane %v1364_v2, 6 }
 0x1a0   :  { %v1084_v13 = vld [vmem:[#allocation4 + $0x4] sm:$0x3]  ;;  %v1107_v15 = vsel %vm6085_vm11, %v1098_v45, %v1106_v12  ;;  %1064 = vst [vmem:[#allocation4] sm:$0x6] %v1063_v32  ;;  %v1376_v12 = vshrl.u32 %v1374_v3, 16  ;;  %v1379_v32 = vshll.u32 %v1374_v3, 16 }
 0x1a1   :  { %v1085_v17 = vsel %vm6091_vm12, %v1082_v11, %v1084_v13  ;;  %1108 = vst [vmem:[#allocation4 + $0x4] sm:$0x8] %v1107_v15  ;;  %v1352_v11 = vld [vmem:[#allocation2 + $0x8] sm:$0x6]  ;;  %v1388_v13 = vld [vmem:[#allocation2 + $0x20] sm:$0x6] }
 0x1a2   :  { %1086 = vst [vmem:[#allocation4 + $0x4] sm:$0x3] %v1085_v17  ;;  %v1552_v15 = vrot.slane %v6247_v4, 6  ;;  %v1693_v17 = vshll.u32 %v1691_v7, 16  ;;  %v1354_v21 = vshrl.u32 %v1352_v11, 16  ;;  %v1367_v23 = vrot.slane %v1366_v10, 4 }
 0x1a3   :  { %v1390_v24 = vrot.slane %v1388_v13, 7  ;;  %v1378_v27 = vrot.slane %v1376_v12, 4  ;;  %v1381_v28 = vrot.slane %v1379_v32, 5  ;;  %v1357_v50 = vshll.u32 %v1352_v11, 16  ;;  %v6297_v7 = vld [vmem:[%s7046_s5 + $0x90] sm:$0xff]  }
 0x1a4   :  { %v5749_v8 = vld [vmem:[#allocation4 + $0x8] ss:$0 sps:$4 sm:$0x11]   ;;  %v1553_v37 = vrot.slane %v1552_v15, 4  ;;  %v1992_v11 = vld [vmem:[#allocation2 + $0x28] sm:$0x6] }
 0x1a5   :  { %1410 = vst.msk [vmem:[#allocation4 + $0x8] sm:$0x1] %vm469_vm15, %v1404_v34  ;;  %v1543_v12 = vshll.u32 %v1538_v52, 16  ;;  %v2290_v4 = vld [vmem:[#allocation2 + $0x2c] sm:$0x3] }
 0x1a7   :  { %v1206_v38 = vld [vmem:[#allocation4] sm:$0x3] }
 0x1a8   :  { %v1246_v40 = vld [vmem:[#allocation4 + $0x4] sm:$0xc]  ;;  %v1207_v43 = vsel %vm6001_vm3, %v1204_v35, %v1206_v38  ;;  %v6266_v38 = vrot.slane %v1693_v17, 5 }
 0x1a9   :  { %v1110_v42 = vld [vmem:[#allocation4] sm:$0xff]   ;;  %v1247_v45 = vsel %vm6062_vm5, %v1244_v36, %v1246_v40 }
 0x1aa   :  { %v1229_v44 = vld [vmem:[#allocation4 + $0x4] sm:$0x1]  ;;  %1208 = vst [vmem:[#allocation4] sm:$0x3] %v1207_v43  ;;  %1228 = vst.msk [vmem:[#allocation4] sm:$0x8] %vm467_vm6, %v1224_v31  ;;  %5424 = vmatprep.mubr.msk.bf16.mxu1 %vm249_vm4, %v1110_v42 }
 0x1ab   :  { %v1230_v48 = vsel %vm6073_vm8, %v1225_v39, %v1229_v44  ;;  %1248 = vst [vmem:[#allocation4 + $0x4] sm:$0xc] %v1247_v45  ;;  %5425 = vmatmul.mubr.msk.bf16.vlgmr.msra.gmra.mrb[16].mxu1 %vm249_vm4, %v5746_v53  ;;  %v1698_v39 = vrot.slane %v1696_v19, 4  ;;  %v5754_v42 = vld [vmem:[%s7046_s5 + $0x78] sm:$0xff]   ;;  %v1356_v43 = vrot.slane %v1354_v21, 7  ;;  %v1382_v44 = vor.u32 %v1381_v28, %v1378_v27 }
 0x1ac   :  { %1231 = vst [vmem:[#allocation4 + $0x4] sm:$0x1] %v1230_v48  ;;  %5437 = vmatpush3.bf16.msra.mxu1 %v5750_v56  ;;  %v6272_v40 = vld [vmem:[#allocation4 + $0x8] ss:$0 sps:$4 sm:$0x11]   ;;  %v1498_v45 = vshrl.u32 %v1496_v25, 16 }
 0x1ad   :  { %5438 = vmatprep.subr.bf16.mxu1 %v5751_v6  ;;  %1559 = vst.msk [vmem:[#allocation4 + $0x8] sm:$0x1] %vm469_vm15, %v1553_v37  ;;  %v1514_v48 = vld [vmem:[#allocation2 + $0xc] sm:$0x6]  ;;  %v1699_v53 = vor.u32 %v1698_v39, %v6266_v38  ;;  %v1359_v54 = vor.u32 %v1357_v50, %v1356_v43  ;;  %v1383_v55 = vrot.slane %v1382_v44, 4  ;;  %v1994_v19 = vshll.u32 %v1992_v11, 16 }
 0x1ae   :  { %v1500_v56 = vrot.slane %v1498_v45, 5  ;;  %v1519_v3 = vshll.u32 %v1514_v48, 16  ;;  %v1530_v39 = vld [vmem:[#allocation2 + $0x1c] sm:$0x6]  ;;  %v1510_v43 = vld [vmem:[#allocation2 + $0x8] sm:$0x6] }
 0x1af   :  { %v4897_v45 = vrot.slane %v1530_v39, 9 }
 0x1b0   :  { %5439 = vmatpush3.bf16.msra.mxu1 %v5751_v6  ;;  %v6291_v6 = vld [vmem:[#allocation2 + $0x28] sm:$0x3] }
 0x1b1   :  { %v1213_v58 = vld [vmem:[#allocation4] sm:$0x6]  ;;  %5452 = vmatprep.subr.bf16.mxu1 %v6258_v60  ;;  %v1848_v32 = vrot.slane %v6291_v6, 5  ;;  %v1941_v6 = vld [vmem:[#allocation2 + $0x8] sm:$0x6] }
 0x1b2   :  { %v1255_v61 = vld [vmem:[#allocation4 + $0x4] sm:$0x8]  ;;  %v1214_v63 = vsel %vm6067_vm7, %v1211_v57, %v1213_v58  ;;  %v1516_v57 = vshrl.u32 %v1514_v48, 16 }
 0x1b3   :  { %v1233_v0 = vld [vmem:[#allocation4 + $0x4] sm:$0x3]  ;;  %v1256_v1 = vsel %vm6085_vm11, %v1251_v29, %v1255_v61  ;;  %1215 = vst [vmem:[#allocation4] sm:$0x6] %v1214_v63  ;;  %v1503_v61 = vrot.slane %v1501_v46, 6  ;;  %v1540_v63 = vshrl.u32 %v1538_v52, 16 }
 0x1b4   :  { %v1234_v62 = vsel %vm6091_vm12, %v1232_v59, %v1233_v0  ;;  %1257 = vst [vmem:[#allocation4 + $0x4] sm:$0x8] %v1256_v1  ;;  %v6289_v34 = vld [vmem:[#allocation4 + $0x8] ss:$0 sps:$4 sm:$0x11]   ;;  %v1518_v9 = vrot.slane %v1516_v57, 6 }
 0x1b5   :  { %1235 = vst [vmem:[#allocation4 + $0x4] sm:$0x3] %v1234_v62  ;;  %v1700_v62 = vrot.slane %v1699_v53, 4 }
 0x1b7   :  { %1706 = vst.msk [vmem:[#allocation4 + $0x8] sm:$0x1] %vm469_vm15, %v1700_v62 }
 0x1ba   :  { %v1349_v26 = vld [vmem:[#allocation4] sm:$0x3] }
 0x1bb   :  { %v1392_v29 = vld [vmem:[#allocation4 + $0x4] sm:$0xc]  ;;  %v1350_v33 = vsel %vm6001_vm3, %v4886_v20, %v1349_v26  ;;  %v1997_v20 = vshrl.u32 %v1992_v11, 16 }
 0x1bc   :  { %v1259_v30 = vld [vmem:[#allocation4] sm:$0xff]   ;;  %v1393_v36 = vsel %vm6062_vm5, %v1390_v24, %v1392_v29  ;;  %v1523_v24 = vrot.slane %v1518_v9, 4 }
 0x1bd   :  { %v1371_v35 = vld [vmem:[#allocation4 + $0x4] sm:$0x1]  ;;  %1351 = vst [vmem:[#allocation4] sm:$0x3] %v1350_v33  ;;  %1370 = vst.msk [vmem:[#allocation4] sm:$0x8] %vm467_vm6, %v1366_v10  ;;  %5432 = vmatprep.mubr.msk.bf16.mxu0 %vm249_vm4, %v1259_v30 }
 0x1be   :  { %v1372_v31 = vsel %vm6073_vm8, %v1367_v23, %v1371_v35  ;;  %1394 = vst [vmem:[#allocation4 + $0x4] sm:$0xc] %v1393_v36  ;;  %5433 = vmatmul.mubr.msk.bf16.vlgmr.msra.gmra.mrb[8].mxu0 %vm249_vm4, %v5749_v8  ;;  %v1542_v8 = vrot.slane %v1540_v63, 7  ;;  %v1521_v10 = vrot.slane %v1519_v3, 7  ;;  %v1849_v30 = vrot.slane %v1848_v32, 4 }
 0x1bf   :  { %1373 = vst [vmem:[#allocation4 + $0x4] sm:$0x1] %v1372_v31  ;;  %5445 = vmatpush3.bf16.msra.mxu0 %v6211_v18  ;;  %v6310_v35 = vld [vmem:[#allocation4 + $0x8] ss:$0 sps:$4 sm:$0x11]   ;;  %v6312_v36 = vrot.slane %v1994_v19, 6 }
 0x1c0   :  { %5446 = vmatprep.subr.bf16.mxu0 %v5754_v42  ;;  %v1545_v17 = vor.u32 %v1543_v12, %v1542_v8  ;;  %v1522_v23 = vor.u32 %v1521_v10, %v1518_v9  ;;  %v1999_v37 = vrot.slane %v1997_v20, 5  ;;  %v5757_v31 = vld [vmem:[%s7046_s5 + $0x88] sm:$0xff]   ;;  %1855 = vst.msk [vmem:[#allocation4 + $0x8] sm:$0x1] %vm469_vm15, %v1849_v30  ;;  %v2292_v63 = vshll.u32 %v2290_v4, 16 }
 0x1c2   :  { %v6349_v20 = vrot.slane %v2292_v63, 5 }
 0x1c3   :  { %5447 = vmatpush3.bf16.msra.mxu0 %v5754_v42  ;;  %v2000_v42 = vor.u32 %v1999_v37, %v6312_v36  ;;  %v1833_v37 = vld [vmem:[#allocation2 + $0x24] sm:$0x3] }
 0x1c4   :  { %v1361_v58 = vld [vmem:[#allocation4] sm:$0x6]  ;;  %5460 = vmatprep.subr.bf16.mxu0 %v6297_v7 }
 0x1c5   :  { %v1407_v59 = vld [vmem:[#allocation4 + $0x4] sm:$0x8]  ;;  %v1362_v0 = vsel %vm6067_vm7, %v1359_v54, %v1361_v58  ;;  %v2001_v53 = vrot.slane %v2000_v42, 4  ;;  %v6331_v54 = vld [vmem:[#allocation2 + $0x28] sm:$0x6] }
 0x1c6   :  { %v1385_v1 = vld [vmem:[#allocation4 + $0x4] sm:$0x3]  ;;  %v1408_v2 = vsel %vm6085_vm11, %v6229_v49, %v1407_v59  ;;  %1363 = vst [vmem:[#allocation4] sm:$0x6] %v1362_v0  ;;  %v1504_v49 = vor.u32 %v1503_v61, %v1500_v56  ;;  %v1672_v58 = vld [vmem:[#allocation2 + $0x20] sm:$0x3] }
 0x1c7   :  { %v1386_v18 = vsel %vm6091_vm12, %v1383_v55, %v1385_v1  ;;  %1409 = vst [vmem:[#allocation4 + $0x4] sm:$0x8] %v1408_v2  ;;  %v6336_v55 = vld [vmem:[%s7046_s5 + $0xa0] sm:$0xff]   ;;  %v2149_v61 = vrot.slane %v6331_v54, 6  ;;  %v2295_v0 = vshrl.u32 %v2290_v4, 16  ;;  %v1674_v62 = vshrl.u32 %v1672_v58, 16 }
 0x1c8   :  { %1387 = vst [vmem:[#allocation4 + $0x4] sm:$0x3] %v1386_v18  ;;  %v1505_v13 = vrot.slane %v1504_v49, 4  ;;  %v6338_v56 = vld [vmem:[#allocation4 + $0x8] ss:$0 sps:$4 sm:$0x11]  }
 0x1c9   :  { %2007 = vst.msk [vmem:[#allocation4 + $0x8] sm:$0x1] %vm469_vm15, %v2001_v53  ;;  %v1684_v59 = vld [vmem:[#allocation2 + $0x24] sm:$0x3]  ;;  %v1645_v1 = vld [vmem:[#allocation2 + $0x8] sm:$0x3] }
 0x1ca   :  { %v1686_v18 = vrot.slane %v1684_v59, 6  ;;  %v1792_v49 = vld [vmem:[#allocation2 + $0x8] sm:$0x3]  ;;  %v2150_v11 = vrot.slane %v2149_v61, 4  ;;  %v1676_v30 = vrot.slane %v1674_v62, 7  ;;  %v1677_v42 = vshll.u32 %v1672_v58, 16 }
 0x1cb   :  { %v2591_v58 = vld [vmem:[#allocation2 + $0x2c] sm:$0x6] }
 0x1cc   :  { %v6377_v59 = vld [vmem:[#allocation2 + $0x2c] sm:$0x3]  ;;  %v2593_v62 = vshll.u32 %v2591_v58, 16 }
 0x1cd   :  { %v1507_v21 = vld [vmem:[#allocation4] sm:$0x3] }
 0x1ce   :  { %v1547_v25 = vld [vmem:[#allocation4 + $0x4] sm:$0xc]  ;;  %v1508_v27 = vsel %vm6001_vm3, %v1505_v13, %v1507_v21  ;;  %v2297_v21 = vrot.slane %v2295_v0, 4 }
 0x1cf   :  { %v1411_v26 = vld [vmem:[#allocation4] sm:$0xff]   ;;  %v1548_v29 = vsel %vm6062_vm5, %v1545_v17, %v1547_v25 }
 0x1d0   :  { %v1527_v28 = vld [vmem:[#allocation4 + $0x4] sm:$0x1]  ;;  %1509 = vst [vmem:[#allocation4] sm:$0x3] %v1508_v27  ;;  %1526 = vst.msk [vmem:[#allocation4] sm:$0x8] %vm467_vm6, %v1522_v23  ;;  %5440 = vmatprep.mubr.msk.bf16.mxu1 %vm249_vm4, %v1411_v26 }
 0x1d1   :  { %v1528_v33 = vsel %vm6073_vm8, %v1523_v24, %v1527_v28  ;;  %1549 = vst [vmem:[#allocation4 + $0x4] sm:$0xc] %v1548_v29  ;;  %5441 = vmatmul.mubr.msk.bf16.vlgmr.msra.gmra.mrb[20].mxu1 %vm249_vm4, %v6272_v40  ;;  %v1662_v40 = vld [vmem:[#allocation2 + $0x10] sm:$0x3]  ;;  %v5760_v27 = vld [vmem:[%s7046_s5 + $0x98] sm:$0xff]   ;;  %v1794_v28 = vshrl.u32 %v1792_v49, 16 }
 0x1d2   :  { %1529 = vst [vmem:[#allocation4 + $0x4] sm:$0x1] %v1528_v33  ;;  %5453 = vmatpush3.bf16.msra.mxu1 %v6258_v60  ;;  %v1664_v57 = vrot.slane %v1662_v40, 5  ;;  %v6354_v24 = vld [vmem:[#allocation4 + $0x8] ss:$0 sps:$4 sm:$0x11]  }
 0x1d3   :  { %5454 = vmatprep.subr.bf16.mxu1 %v5757_v31  ;;  %2156 = vst.msk [vmem:[#allocation4 + $0x8] sm:$0x1] %vm469_vm15, %v2150_v11  ;;  %v1797_v29 = vshll.u32 %v1792_v49, 16  ;;  %v1813_v33 = vld [vmem:[#allocation2 + $0x10] sm:$0x3]  ;;  %v1838_v40 = vshll.u32 %v1833_v37, 16 }
 0x1d4   :  { %v1665_v9 = vrot.slane %v1664_v57, 4  ;;  %v2447_v49 = vrot.slane %v6377_v59, 5 }
 0x1d6   :  { %5455 = vmatpush3.bf16.msra.mxu1 %v5757_v31  ;;  %v2298_v31 = vor.u32 %v2297_v21, %v6349_v20  ;;  %v2448_v11 = vrot.slane %v2447_v49, 4 }
 0x1d7   :  { %v1511_v44 = vld [vmem:[#allocation4] sm:$0x6]  ;;  %5468 = vmatprep.subr.bf16.mxu1 %v6336_v55 }
 0x1d8   :  { %v1556_v46 = vld [vmem:[#allocation4 + $0x4] sm:$0x8]  ;;  %v1512_v48 = vsel %vm6067_vm7, %v1510_v43, %v1511_v44  ;;  %v1796_v43 = vrot.slane %v1794_v28, 4  ;;  %v1799_v44 = vrot.slane %v1797_v29, 5 }
 0x1d9   :  { %v1535_v50 = vld [vmem:[#allocation4 + $0x4] sm:$0x3]  ;;  %v1557_v52 = vsel %vm6085_vm11, %v1552_v15, %v1556_v46  ;;  %1513 = vst [vmem:[#allocation4] sm:$0x6] %v1512_v48  ;;  %v1649_v15 = vld [vmem:[#allocation2 + $0xc] sm:$0x3] }
 0x1da   :  { %v1536_v60 = vsel %vm6091_vm12, %v4897_v45, %v1535_v50  ;;  %1558 = vst [vmem:[#allocation4 + $0x4] sm:$0x8] %v1557_v52  ;;  %v1651_v2 = vshrl.u32 %v1649_v15, 16  ;;  %v1654_v3 = vshll.u32 %v1649_v15, 16  ;;  %v1815_v45 = vshrl.u32 %v1813_v33, 16  ;;  %v6373_v15 = vld [vmem:[%s7046_s5 + $0xb0] sm:$0xff]  }
 0x1db   :  { %1537 = vst [vmem:[#allocation4 + $0x4] sm:$0x3] %v1536_v60  ;;  %v1835_v46 = vshrl.u32 %v1833_v37, 16  ;;  %v1679_v50 = vor.u32 %v1677_v42, %v1676_v30  ;;  %v2299_v60 = vrot.slane %v2298_v31, 4  ;;  %v5763_v30 = vld [vmem:[%s7046_s5 + $0xa8] sm:$0xff]   ;;  %v6409_v31 = vld [vmem:[%s7046_s5 + $0xc0] sm:$0xff]  }
 0x1dc   :  { %v1653_v25 = vrot.slane %v1651_v2, 6  ;;  %v1656_v26 = vrot.slane %v1654_v3, 7  ;;  %v6380_v63 = vld [vmem:[#allocation4 + $0x8] ss:$0 sps:$4 sm:$0x11]   ;;  %v1817_v0 = vrot.slane %v1815_v45, 5 }
 0x1dd   :  { %v1840_v2 = vrot.slane %v1838_v40, 7  ;;  %2305 = vst.msk [vmem:[#allocation4 + $0x8] sm:$0x1] %vm469_vm15, %v2299_v60  ;;  %v1806_v37 = vld [vmem:[#allocation2 + $0xc] sm:$0x3] }
 0x1de   :  { %v1657_v39 = vor.u32 %v1656_v26, %v1653_v25  ;;  %v1829_v42 = vld [vmem:[#allocation2 + $0x20] sm:$0x3] }
 0x1df   :  { %v1971_v40 = vld [vmem:[#allocation2 + $0x20] sm:$0x6] }
 0x1e0   :  { %v1646_v8 = vld [vmem:[#allocation4] sm:$0x3] }
 0x1e1   :  { %v1688_v10 = vld [vmem:[#allocation4 + $0x4] sm:$0xc]  ;;  %v1647_v13 = vsel %vm6001_vm3, %v1645_v1, %v1646_v8  ;;  %v1837_v1 = vrot.slane %v1835_v46, 6  ;;  %v1961_v46 = vld [vmem:[#allocation2 + $0x10] sm:$0x6] }
 0x1e2   :  { %v1560_v12 = vld [vmem:[#allocation4] sm:$0xff]   ;;  %v1689_v19 = vsel %vm6062_vm5, %v1686_v18, %v1688_v10  ;;  %v2596_v18 = vshrl.u32 %v2591_v58, 16  ;;  %v4928_v58 = vrot.slane %v1941_v6, 9 }
 0x1e3   :  { %v1669_v17 = vld [vmem:[#allocation4 + $0x4] sm:$0x1]  ;;  %1648 = vst [vmem:[#allocation4] sm:$0x3] %v1647_v13  ;;  %1668 = vst.msk [vmem:[#allocation4] sm:$0x8] %vm467_vm6, %v1664_v57  ;;  %5448 = vmatprep.mubr.msk.bf16.mxu0 %vm249_vm4, %v1560_v12  ;;  %v1841_v10 = vor.u32 %v1840_v2, %v1837_v1 }
 0x1e4   :  { %v1670_v23 = vsel %vm6073_vm8, %v1665_v9, %v1669_v17  ;;  %1690 = vst [vmem:[#allocation4 + $0x4] sm:$0xc] %v1689_v19  ;;  %5449 = vmatmul.mubr.msk.bf16.vlgmr.msra.gmra.mrb[12].mxu0 %vm249_vm4, %v6289_v34  ;;  %v1822_v9 = vrot.slane %v1817_v0, 4  ;;  %v6386_v19 = vrot.slane %v2593_v62, 6  ;;  %v2598_v21 = vrot.slane %v2596_v18, 5 }
 0x1e5   :  { %1671 = vst [vmem:[#allocation4 + $0x4] sm:$0x1] %v1670_v23  ;;  %5461 = vmatpush3.bf16.msra.mxu0 %v6297_v7  ;;  %v1818_v7 = vshll.u32 %v1813_v33, 16  ;;  %v6395_v29 = vld [vmem:[#allocation4 + $0x8] ss:$0 sps:$4 sm:$0x11]  }
 0x1e6   :  { %5462 = vmatprep.subr.bf16.mxu0 %v5760_v27  ;;  %2454 = vst.msk [vmem:[#allocation4 + $0x8] sm:$0x1] %vm469_vm15, %v2448_v11  ;;  %v2599_v33 = vor.u32 %v2598_v21, %v6386_v19  ;;  %v2093_v1 = vld [vmem:[#allocation2 + $0x8] sm:$0x6] }
 0x1e7   :  { %v1820_v3 = vrot.slane %v1818_v7, 6  ;;  %v1985_v7 = vld [vmem:[#allocation2 + $0x24] sm:$0x6] }
 0x1e9   :  { %5463 = vmatpush3.bf16.msra.mxu0 %v5760_v27  ;;  %v1821_v13 = vor.u32 %v1820_v3, %v1817_v0  ;;  %v1987_v0 = vrot.slane %v1985_v7, 7 }
 0x1ea   :  { %v1659_v48 = vld [vmem:[#allocation4] sm:$0x6]  ;;  %5476 = vmatprep.subr.bf16.mxu0 %v6373_v15 }
 0x1eb   :  { %v1703_v52 = vld [vmem:[#allocation4 + $0x4] sm:$0x8]  ;;  %v1660_v53 = vsel %vm6067_vm7, %v1657_v39, %v1659_v48  ;;  %v1808_v39 = vrot.slane %v1806_v37, 7  ;;  %v2111_v37 = vld [vmem:[#allocation2 + $0x10] sm:$0x6] }
 0x1ec   :  { %v1681_v4 = vld [vmem:[#allocation4 + $0x4] sm:$0x3]  ;;  %v1704_v34 = vsel %vm6085_vm11, %v6266_v38, %v1703_v52  ;;  %1661 = vst [vmem:[#allocation4] sm:$0x6] %v1660_v53  ;;  %v1800_v38 = vor.u32 %v1799_v44, %v1796_v43  ;;  %v2600_v43 = vrot.slane %v2599_v33, 4 }
 0x1ed   :  { %v1682_v57 = vsel %vm6091_vm12, %v1679_v50, %v1681_v4  ;;  %1705 = vst [vmem:[#allocation4 + $0x4] sm:$0x8] %v1704_v34  ;;  %v6422_v60 = vld [vmem:[#allocation4 + $0x8] ss:$0 sps:$4 sm:$0x11]   ;;  %v1963_v4 = vrot.slane %v1961_v46, 6 }
 0x1ee   :  { %1683 = vst [vmem:[#allocation4 + $0x4] sm:$0x3] %v1682_v57  ;;  %v1801_v8 = vrot.slane %v1800_v38, 4  ;;  %2606 = vst.msk [vmem:[#allocation4 + $0x8] sm:$0x1] %vm469_vm15, %v2600_v43  ;;  %v1973_v34 = vshrl.u32 %v1971_v40, 16 }
 0x1ef   :  { %v1976_v57 = vshll.u32 %v1971_v40, 16  ;;  %v1964_v62 = vrot.slane %v1963_v4, 4  ;;  %v2135_v33 = vld [vmem:[#allocation2 + $0x24] sm:$0x6]  ;;  %v2116_v40 = vshll.u32 %v2111_v37, 16 }
 0x1f0   :  { %v1975_v18 = vrot.slane %v1973_v34, 4 }
 0x1f1   :  { %v2118_v7 = vrot.slane %v2116_v40, 7  ;;  %v2391_v40 = vld [vmem:[#allocation2 + $0xc] sm:$0x3] }
 0x1f3   :  { %v1803_v12 = vld [vmem:[#allocation4] sm:$0x3] }
 0x1f4   :  { %v1843_v17 = vld [vmem:[#allocation4 + $0x4] sm:$0xc]  ;;  %v1804_v25 = vsel %vm6001_vm3, %v1801_v8, %v1803_v12  ;;  %v1978_v12 = vrot.slane %v1976_v57, 5  ;;  %v2140_v57 = vshll.u32 %v2135_v33, 16 }
 0x1f5   :  { %v1707_v23 = vld [vmem:[#allocation4] sm:$0xff]   ;;  %v1844_v27 = vsel %vm6062_vm5, %v1841_v10, %v1843_v17  ;;  %v6435_v21 = vld [vmem:[#allocation4 + $0x8] ss:$0 sps:$4 sm:$0x11]  }
 0x1f6   :  { %v1826_v26 = vld [vmem:[#allocation4 + $0x4] sm:$0x1]  ;;  %1805 = vst [vmem:[#allocation4] sm:$0x3] %v1804_v25  ;;  %1825 = vst.msk [vmem:[#allocation4] sm:$0x8] %vm467_vm6, %v1821_v13  ;;  %5456 = vmatprep.mubr.msk.bf16.mxu1 %vm249_vm4, %v1707_v23 }
 0x1f7   :  { %v1827_v28 = vsel %vm6073_vm8, %v1822_v9, %v1826_v26  ;;  %1845 = vst [vmem:[#allocation4 + $0x4] sm:$0xc] %v1844_v27  ;;  %5457 = vmatmul.mubr.msk.bf16.vlgmr.msra.gmra.mrb[24].mxu1 %vm249_vm4, %v6310_v35  ;;  %v5766_v23 = vld [vmem:[%s7046_s5 + $0xb8] sm:$0xff]   ;;  %v2095_v26 = vshrl.u32 %v2093_v1, 16  ;;  %v2098_v27 = vshll.u32 %v2093_v1, 16 }
 0x1f8   :  { %1828 = vst [vmem:[#allocation4 + $0x4] sm:$0x1] %v1827_v28  ;;  %5469 = vmatpush3.bf16.msra.mxu1 %v6336_v55  ;;  %v6417_v55 = vld [vmem:[#allocation2 + $0x2c] sm:$0x6]  ;;  %v1979_v28 = vor.u32 %v1978_v12, %v1975_v18  ;;  %v6475_v12 = vld [vmem:[%s7046_s5 + $0xe0] sm:$0xff]  }
 0x1f9   :  { %5470 = vmatprep.subr.bf16.mxu1 %v5763_v30  ;;  %v2748_v53 = vrot.slane %v6417_v55, 6  ;;  %v2097_v43 = vrot.slane %v2095_v26, 5  ;;  %v2260_v26 = vld [vmem:[#allocation2 + $0x14] sm:$0x3] }
 0x1fa   :  { %v1980_v46 = vrot.slane %v1979_v28, 4 }
 0x1fb   :  { %v2749_v2 = vrot.slane %v2748_v53, 4 }
 0x1fc   :  { %5471 = vmatpush3.bf16.msra.mxu1 %v5763_v30 }
 0x1fd   :  { %v1810_v44 = vld [vmem:[#allocation4] sm:$0x6]  ;;  %5484 = vmatprep.subr.bf16.mxu1 %v6409_v31  ;;  %2755 = vst.msk [vmem:[#allocation4 + $0x8] sm:$0x1] %vm469_vm15, %v2749_v2  ;;  %vm2853_vm15 = vcmask 523264  }
 0x1fe   :  { %v1852_v45 = vld [vmem:[#allocation4 + $0x4] sm:$0x8]  ;;  %v1811_v48 = vsel %vm6067_vm7, %v1808_v39, %v1810_v44  ;;  %v6448_v39 = vld [vmem:[%s7046_s5 + $0xd0] sm:$0xff]   ;;  %v2100_v44 = vrot.slane %v2098_v27, 6 }
 0x1ff   :  { %v1830_v50 = vld [vmem:[#allocation4 + $0x4] sm:$0x3]  ;;  %v1853_v35 = vsel %vm6085_vm11, %v1848_v32, %v1852_v45  ;;  %1812 = vst [vmem:[#allocation4] sm:$0x6] %v1811_v48  ;;  %v1949_v32 = vld [vmem:[#allocation2 + $0xc] sm:$0x6] }
 0x200   :  { %v1831_v52 = vsel %vm6091_vm12, %v1829_v42, %v1830_v50  ;;  %1854 = vst [vmem:[#allocation4 + $0x4] sm:$0x8] %v1853_v35  ;;  %v1951_v38 = vshrl.u32 %v1949_v32, 16  ;;  %v1954_v30 = vshll.u32 %v1949_v32, 16  ;;  %v2137_v50 = vshrl.u32 %v2135_v33, 16 }
 0x201   :  { %1832 = vst [vmem:[#allocation4 + $0x4] sm:$0x3] %v1831_v52  ;;  %v2113_v52 = vshrl.u32 %v2111_v37, 16  ;;  %v2101_v32 = vor.u32 %v2100_v44, %v2097_v43  ;;  %v2246_v33 = vld [vmem:[#allocation2 + $0x10] sm:$0x3] }
 0x202   :  { %v1953_v25 = vrot.slane %v1951_v38, 7  ;;  %v2282_v37 = vld [vmem:[#allocation2 + $0x28] sm:$0x3]  ;;  %v2270_v43 = vld [vmem:[#allocation2 + $0x24] sm:$0x3]  ;;  %v2248_v44 = vshrl.u32 %v2246_v33, 16 }
 0x203   :  { %v2115_v34 = vrot.slane %v2113_v52, 6  ;;  %v2284_v54 = vrot.slane %v2282_v37, 6 }
 0x204   :  { %v1956_v42 = vor.u32 %v1954_v30, %v1953_v25  ;;  %v2262_v30 = vrot.slane %v2260_v26, 5 }
 0x205   :  { %v2120_v1 = vrot.slane %v2115_v34, 4 }
 0x206   :  { %v1946_v3 = vld [vmem:[#allocation4] sm:$0x3] }
 0x207   :  { %v1989_v8 = vld [vmem:[#allocation4 + $0x4] sm:$0xc]  ;;  %v1947_v10 = vsel %vm6001_vm3, %v4928_v58, %v1946_v3  ;;  %v2102_v58 = vrot.slane %v2101_v32, 4  ;;  %v2250_v32 = vrot.slane %v2248_v44, 6 }
 0x208   :  { %v1856_v9 = vld [vmem:[#allocation4] sm:$0xff]   ;;  %v1990_v13 = vsel %vm6062_vm5, %v1987_v0, %v1989_v8 }
 0x209   :  { %v1968_v11 = vld [vmem:[#allocation4 + $0x4] sm:$0x1]  ;;  %1948 = vst [vmem:[#allocation4] sm:$0x3] %v1947_v10  ;;  %1967 = vst.msk [vmem:[#allocation4] sm:$0x8] %vm467_vm6, %v1963_v4  ;;  %5464 = vmatprep.mubr.msk.bf16.mxu0 %vm249_vm4, %v1856_v9 }
 0x20a   :  { %v1969_v17 = vsel %vm6073_vm8, %v1964_v62, %v1968_v11  ;;  %1991 = vst [vmem:[#allocation4 + $0x4] sm:$0xc] %v1990_v13  ;;  %5465 = vmatmul.mubr.msk.bf16.vlgmr.msra.gmra.mrb[16].mxu0 %vm249_vm4, %v6338_v56  ;;  %v2139_v4 = vrot.slane %v2137_v50, 7  ;;  %v5769_v10 = vld [vmem:[%s7046_s5 + $0xc8] sm:$0xff]   ;;  %v2127_v11 = vld [vmem:[#allocation2 + $0x20] sm:$0x6] }
 0x20b   :  { %1970 = vst [vmem:[#allocation4 + $0x4] sm:$0x1] %v1969_v17  ;;  %5477 = vmatpush3.bf16.msra.mxu0 %v6373_v15  ;;  %v2107_v13 = vld [vmem:[#allocation2 + $0xc] sm:$0x6]  ;;  %v4939_v17 = vrot.slane %v2127_v11, 9 }
 0x20c   :  { %5478 = vmatprep.subr.bf16.mxu0 %v5766_v23  ;;  %v2142_v38 = vor.u32 %v2140_v57, %v2139_v4 }
 0x20f   :  { %5479 = vmatpush3.bf16.msra.mxu0 %v5766_v23 }
 0x210   :  { %v1958_v45 = vld [vmem:[#allocation4] sm:$0x6]  ;;  %5492 = vmatprep.subr.bf16.mxu0 %v6448_v39 }
 0x211   :  { %v2004_v48 = vld [vmem:[#allocation4 + $0x4] sm:$0x8]  ;;  %v1959_v56 = vsel %vm6067_vm7, %v1956_v42, %v1958_v45  ;;  %v2263_v42 = vrot.slane %v2262_v30, 4  ;;  %v2251_v45 = vshll.u32 %v2246_v33, 16 }
 0x212   :  { %v1982_v35 = vld [vmem:[#allocation4 + $0x4] sm:$0x3]  ;;  %v2005_v15 = vsel %vm6085_vm11, %v6312_v36, %v2004_v48  ;;  %1960 = vst [vmem:[#allocation4] sm:$0x6] %v1959_v56  ;;  %v2119_v36 = vor.u32 %v2118_v7, %v2115_v34  ;;  %v2393_v7 = vshrl.u32 %v2391_v40, 16 }
 0x213   :  { %v1983_v6 = vsel %vm6091_vm12, %v1980_v46, %v1982_v35  ;;  %2006 = vst [vmem:[#allocation4 + $0x4] sm:$0x8] %v2005_v15  ;;  %v2242_v46 = vld [vmem:[#allocation2 + $0xc] sm:$0x3]  ;;  %v2272_v15 = vshrl.u32 %v2270_v43, 16  ;;  %v2253_v4 = vrot.slane %v2251_v45, 7 }
 0x214   :  { %1984 = vst [vmem:[#allocation4 + $0x4] sm:$0x3] %v1983_v6  ;;  %v5772_v34 = vld [vmem:[%s7046_s5 + $0xd8] sm:$0xff]  }
 0x215   :  { %v2274_v57 = vrot.slane %v2272_v15, 7 }
 0x219   :  { %v2104_v0 = vld [vmem:[#allocation4] sm:$0x3] }
 0x21a   :  { %v2144_v2 = vld [vmem:[#allocation4 + $0x4] sm:$0xc]  ;;  %v2105_v62 = vsel %vm6001_vm3, %v2102_v58, %v2104_v0  ;;  %v2396_v58 = vshll.u32 %v2391_v40, 16  ;;  %v2432_v0 = vld [vmem:[#allocation2 + $0x28] sm:$0x3] }
 0x21b   :  { %v2008_v3 = vld [vmem:[#allocation4] sm:$0xff]   ;;  %v2145_v8 = vsel %vm6062_vm5, %v2142_v38, %v2144_v2  ;;  %v2412_v38 = vld [vmem:[#allocation2 + $0x14] sm:$0x3] }
 0x21c   :  { %v2124_v18 = vld [vmem:[#allocation4 + $0x4] sm:$0x1]  ;;  %2106 = vst [vmem:[#allocation4] sm:$0x3] %v2105_v62  ;;  %2123 = vst.msk [vmem:[#allocation4] sm:$0x8] %vm467_vm6, %v2119_v36  ;;  %5472 = vmatprep.mubr.msk.bf16.mxu1 %vm249_vm4, %v2008_v3  ;;  %v2254_v36 = vor.u32 %v2253_v4, %v2250_v32 }
 0x21d   :  { %v2125_v9 = vsel %vm6073_vm8, %v2120_v1, %v2124_v18  ;;  %2146 = vst [vmem:[#allocation4 + $0x4] sm:$0xc] %v2145_v8  ;;  %5473 = vmatmul.mubr.msk.bf16.vlgmr.msra.gmra.mrb[28].mxu1 %vm249_vm4, %v6354_v24  ;;  %v2275_v1 = vshll.u32 %v2270_v43, 16  ;;  %v6503_v2 = vld [vmem:[%s7046_s5 + $0xf0] sm:$0xff]   ;;  %v2395_v3 = vrot.slane %v2393_v7, 4  ;;  %v2414_v62 = vshrl.u32 %v2412_v38, 16 }
 0x21e   :  { %2126 = vst [vmem:[#allocation4 + $0x4] sm:$0x1] %v2125_v9  ;;  %5485 = vmatpush3.bf16.msra.mxu1 %v6409_v31  ;;  %v2417_v18 = vshll.u32 %v2412_v38, 16  ;;  %v2434_v8 = vshrl.u32 %v2432_v0, 16  ;;  %v2540_v7 = vld [vmem:[#allocation2 + $0xc] sm:$0x6] }
 0x21f   :  { %5486 = vmatprep.subr.bf16.mxu1 %v5769_v10  ;;  %v2416_v26 = vrot.slane %v2414_v62, 5 }
 0x221   :  { %v2421_v33 = vrot.slane %v2416_v26, 4 }
 0x222   :  { %5487 = vmatpush3.bf16.msra.mxu1 %v5769_v10  ;;  %v2277_v10 = vor.u32 %v2275_v1, %v2274_v57  ;;  %v2548_v57 = vld [vmem:[#allocation2 + $0x10] sm:$0x6]  ;;  %v4970_v1 = vrot.slane %v2540_v7, 9 }
 0x223   :  { %v2108_v23 = vld [vmem:[#allocation4] sm:$0x6]  ;;  %5500 = vmatprep.subr.bf16.mxu1 %v6475_v12  ;;  %v2550_v59 = vshrl.u32 %v2548_v57, 16 }
 0x224   :  { %v2153_v25 = vld [vmem:[#allocation4 + $0x4] sm:$0x8]  ;;  %v2109_v27 = vsel %vm6067_vm7, %v2107_v13, %v2108_v23  ;;  %v2398_v13 = vrot.slane %v2396_v58, 5  ;;  %v2584_v58 = vld [vmem:[#allocation2 + $0x28] sm:$0x6] }
 0x225   :  { %v2132_v28 = vld [vmem:[#allocation4 + $0x4] sm:$0x3]  ;;  %v2154_v24 = vsel %vm6085_vm11, %v2149_v61, %v2153_v25  ;;  %2110 = vst [vmem:[#allocation4] sm:$0x6] %v2109_v27  ;;  %v2419_v27 = vrot.slane %v2417_v18, 6 }
 0x226   :  { %v2133_v31 = vsel %vm6091_vm12, %v4939_v17, %v2132_v28  ;;  %2155 = vst [vmem:[#allocation4 + $0x4] sm:$0x8] %v2154_v24  ;;  %v2437_v17 = vshll.u32 %v2432_v0, 16  ;;  %v2399_v28 = vor.u32 %v2398_v13, %v2395_v3  ;;  %v2436_v24 = vrot.slane %v2434_v8, 6  ;;  %v2692_v18 = vld [vmem:[#allocation2 + $0xc] sm:$0x6] }
 0x227   :  { %2134 = vst [vmem:[#allocation4 + $0x4] sm:$0x3] %v2133_v31  ;;  %v2586_v3 = vrot.slane %v2584_v58, 7  ;;  %v2726_v58 = vld [vmem:[#allocation2 + $0x24] sm:$0x6] }
 0x228   :  { %v2439_v31 = vrot.slane %v2437_v17, 7  ;;  %v2400_v37 = vrot.slane %v2399_v28, 4  ;;  %v2697_v28 = vshll.u32 %v2692_v18, 16 }
 0x22c   :  { %v2243_v48 = vld [vmem:[#allocation4] sm:$0x3] }
 0x22d   :  { %v2286_v61 = vld [vmem:[#allocation4 + $0x4] sm:$0xc]  ;;  %v2244_v56 = vsel %vm6001_vm3, %v2242_v46, %v2243_v48 }
 0x22e   :  { %v2157_v50 = vld [vmem:[#allocation4] sm:$0xff]   ;;  %v2287_v52 = vsel %vm6062_vm5, %v2284_v54, %v2286_v61  ;;  %v5775_v61 = vld [vmem:[%s7046_s5 + $0xe8] sm:$0xff]  }
 0x22f   :  { %v2267_v35 = vld [vmem:[#allocation4 + $0x4] sm:$0x1]  ;;  %2245 = vst [vmem:[#allocation4] sm:$0x3] %v2244_v56  ;;  %2266 = vst.msk [vmem:[#allocation4] sm:$0x8] %vm467_vm6, %v2262_v30  ;;  %5480 = vmatprep.mubr.msk.bf16.mxu0 %vm249_vm4, %v2157_v50  ;;  %v2420_v30 = vor.u32 %v2419_v27, %v2416_v26 }
 0x230   :  { %v2268_v6 = vsel %vm6073_vm8, %v2263_v42, %v2267_v35  ;;  %2288 = vst [vmem:[#allocation4 + $0x4] sm:$0xc] %v2287_v52  ;;  %5481 = vmatmul.mubr.msk.bf16.vlgmr.msra.gmra.mrb[20].mxu0 %vm249_vm4, %v6380_v63  ;;  %v2440_v42 = vor.u32 %v2439_v31, %v2436_v24  ;;  %v2405_v50 = vld [vmem:[#allocation2 + $0x10] sm:$0x3]  ;;  %v2560_v52 = vld [vmem:[#allocation2 + $0x14] sm:$0x6] }
 0x231   :  { %2269 = vst [vmem:[#allocation4 + $0x4] sm:$0x1] %v2268_v6  ;;  %5493 = vmatpush3.bf16.msra.mxu0 %v6448_v39  ;;  %v2407_v56 = vrot.slane %v2405_v50, 7  ;;  %v2428_v6 = vld [vmem:[#allocation2 + $0x24] sm:$0x3]  ;;  %v2553_v26 = vshll.u32 %v2548_v57, 16 }
 0x232   :  { %5494 = vmatprep.subr.bf16.mxu0 %v5772_v34  ;;  %v2710_v24 = vld [vmem:[#allocation2 + $0x14] sm:$0x6]  ;;  %v2734_v31 = vld [vmem:[#allocation2 + $0x28] sm:$0x6] }
 0x235   :  { %5495 = vmatpush3.bf16.msra.mxu0 %v5772_v34  ;;  %v2570_v34 = vld [vmem:[#allocation2 + $0x24] sm:$0x6] }
 0x236   :  { %v2256_v9 = vld [vmem:[#allocation4] sm:$0x6]  ;;  %5508 = vmatprep.subr.bf16.mxu0 %v6503_v2  ;;  %v2572_v38 = vshrl.u32 %v2570_v34, 16  ;;  %v2575_v0 = vshll.u32 %v2570_v34, 16 }
 0x237   :  { %v2302_v11 = vld [vmem:[#allocation4 + $0x4] sm:$0x8]  ;;  %v2257_v63 = vsel %vm6067_vm7, %v2254_v36, %v2256_v9 }
 0x238   :  { %v2279_v39 = vld [vmem:[#allocation4 + $0x4] sm:$0x3]  ;;  %v2303_v23 = vsel %vm6085_vm11, %v6349_v20, %v2302_v11  ;;  %2258 = vst [vmem:[#allocation4] sm:$0x6] %v2257_v63  ;;  %v2574_v11 = vrot.slane %v2572_v38, 4  ;;  %v2577_v13 = vrot.slane %v2575_v0, 5 }
 0x239   :  { %v2280_v25 = vsel %vm6091_vm12, %v2277_v10, %v2279_v39  ;;  %2304 = vst [vmem:[#allocation4 + $0x4] sm:$0x8] %v2303_v23  ;;  %v2552_v39 = vrot.slane %v2550_v59, 7  ;;  %v5778_v23 = vld [vmem:[%s7046_s5 + $0xf8] sm:$0xff]   ;;  %v4981_v0 = vrot.slane %v2726_v58, 9 }
 0x23a   :  { %2281 = vst [vmem:[#allocation4 + $0x4] sm:$0x3] %v2280_v25  ;;  %v2694_v25 = vshrl.u32 %v2692_v18, 16  ;;  %v2578_v27 = vor.u32 %v2577_v13, %v2574_v11  ;;  %v5780_v18 = vld [vmem:[#allocation4 + $0x8] ss:$0 sps:$4 sm:$0x11]  }
 0x23f   :  { %v2402_v43 = vld [vmem:[#allocation4] sm:$0x3] }
 0x240   :  { %v2442_v20 = vld [vmem:[#allocation4 + $0x4] sm:$0xc]  ;;  %v2403_v45 = vsel %vm6001_vm3, %v2400_v37, %v2402_v43  ;;  %v2712_v37 = vshrl.u32 %v2710_v24, 16  ;;  %v2736_v43 = vshrl.u32 %v2734_v31, 16 }
 0x241   :  { %v2306_v44 = vld [vmem:[#allocation4] sm:$0xff]   ;;  %v2443_v46 = vsel %vm6062_vm5, %v2440_v42, %v2442_v20  ;;  %v2715_v42 = vshll.u32 %v2710_v24, 16 }
 0x242   :  { %v2425_v54 = vld [vmem:[#allocation4 + $0x4] sm:$0x1]  ;;  %2404 = vst [vmem:[#allocation4] sm:$0x3] %v2403_v45  ;;  %2424 = vst.msk [vmem:[#allocation4] sm:$0x8] %vm467_vm6, %v2420_v30  ;;  %5488 = vmatprep.mubr.msk.bf16.mxu1 %vm249_vm4, %v2306_v44  ;;  %v2555_v30 = vor.u32 %v2553_v26, %v2552_v39 }
 0x243   :  { %v2426_v48 = vsel %vm6073_vm8, %v2421_v33, %v2425_v54  ;;  %2444 = vst [vmem:[#allocation4 + $0x4] sm:$0xc] %v2443_v46  ;;  %5489 = vmatmul.mubr.msk.bf16.vlgmr.msra.gmra.mrb[32].mxu1 %vm249_vm4, %v6395_v29  ;;  %v2696_v33 = vrot.slane %v2694_v25, 5  ;;  %v2579_v44 = vrot.slane %v2578_v27, 4  ;;  %v2699_v54 = vrot.slane %v2697_v28, 6 }
 0x244   :  { %2427 = vst [vmem:[#allocation4 + $0x4] sm:$0x1] %v2426_v48  ;;  %5501 = vmatpush3.bf16.msra.mxu1 %v6475_v12  ;;  %v2562_v12 = vrot.slane %v2560_v52, 6  ;;  %v2717_v50 = vrot.slane %v2715_v42, 7 }
 0x245   :  { %5502 = vmatprep.subr.bf16.mxu1 %v5775_v61 }
 0x246   :  { %v2563_v36 = vrot.slane %v2562_v12, 4 }
 0x248   :  { %5503 = vmatpush3.bf16.msra.mxu1 %v5775_v61  ;;  %v2714_v61 = vrot.slane %v2712_v37, 6 }
 0x249   :  { %v2409_v35 = vld [vmem:[#allocation4] sm:$0x6] }
 0x24a   :  { %v2451_v15 = vld [vmem:[#allocation4 + $0x4] sm:$0x8]  ;;  %v2410_v40 = vsel %vm6067_vm7, %v2407_v56, %v2409_v35  ;;  %v2700_v56 = vor.u32 %v2699_v54, %v2696_v33  ;;  %v2738_v35 = vrot.slane %v2736_v43, 7  ;;  %v2718_v52 = vor.u32 %v2717_v50, %v2714_v61 }
 0x24b   :  { %v2429_v32 = vld [vmem:[#allocation4 + $0x4] sm:$0x3]  ;;  %v2452_v4 = vsel %vm6085_vm11, %v2447_v49, %v2451_v15  ;;  %2411 = vst [vmem:[#allocation4] sm:$0x6] %v2410_v40  ;;  %v2739_v15 = vshll.u32 %v2734_v31, 16  ;;  %v2719_v40 = vrot.slane %v2714_v61, 4 }
 0x24c   :  { %v2430_v29 = vsel %vm6091_vm12, %v2428_v6, %v2429_v32  ;;  %2453 = vst [vmem:[#allocation4 + $0x4] sm:$0x8] %v2452_v4  ;;  %v2701_v6 = vrot.slane %v2700_v56, 4 }
 0x24d   :  { %2431 = vst [vmem:[#allocation4 + $0x4] sm:$0x3] %v2430_v29  ;;  %v2741_v32 = vor.u32 %v2739_v15, %v2738_v35 }
 0x252   :  { %v2545_v62 = vld [vmem:[#allocation4] sm:$0x3] }
 0x253   :  { %v2588_v49 = vld [vmem:[#allocation4 + $0x4] sm:$0xc]  ;;  %v2546_v9 = vsel %vm6001_vm3, %v4970_v1, %v2545_v62 }
 0x254   :  { %v2455_v8 = vld [vmem:[#allocation4] sm:$0xff]   ;;  %v2589_v17 = vsel %vm6062_vm5, %v2586_v3, %v2588_v49 }
 0x255   :  { %v2567_v10 = vld [vmem:[#allocation4 + $0x4] sm:$0x1]  ;;  %2547 = vst [vmem:[#allocation4] sm:$0x3] %v2546_v9  ;;  %2566 = vst.msk [vmem:[#allocation4] sm:$0x8] %vm467_vm6, %v2562_v12  ;;  %5496 = vmatprep.mubr.msk.bf16.mxu0 %vm249_vm4, %v2455_v8 }
 0x256   :  { %v2568_v63 = vsel %vm6073_vm8, %v2563_v36, %v2567_v10  ;;  %2590 = vst [vmem:[#allocation4 + $0x4] sm:$0xc] %v2589_v17  ;;  %5497 = vmatmul.mubr.msk.bf16.vlgmr.msra.gmra.mrb[24].mxu0 %vm249_vm4, %v6422_v60 }
 0x257   :  { %2569 = vst [vmem:[#allocation4 + $0x4] sm:$0x1] %v2568_v63  ;;  %5509 = vmatpush3.bf16.msra.mxu0 %v6503_v2 }
 0x258   :  { %5510 = vmatprep.subr.bf16.mxu0 %v5778_v23 }
 0x25b   :  { %5511 = vmatpush3.bf16.msra.mxu0 %v5778_v23 }
 0x25c   :  { %v2557_v20 = vld [vmem:[#allocation4] sm:$0x6] }
 0x25d   :  { %v2603_v45 = vld [vmem:[#allocation4 + $0x4] sm:$0x8]  ;;  %v2558_v46 = vsel %vm6067_vm7, %v2555_v30, %v2557_v20 }
 0x25e   :  { %v2581_v48 = vld [vmem:[#allocation4 + $0x4] sm:$0x3]  ;;  %v2604_v60 = vsel %vm6085_vm11, %v6386_v19, %v2603_v45  ;;  %2559 = vst [vmem:[#allocation4] sm:$0x6] %v2558_v46 }
 0x25f   :  { %v2582_v2 = vsel %vm6091_vm12, %v2579_v44, %v2581_v48  ;;  %2605 = vst [vmem:[#allocation4 + $0x4] sm:$0x8] %v2604_v60 }
 0x260   :  { %2583 = vst [vmem:[#allocation4 + $0x4] sm:$0x3] %v2582_v2 }
 0x265   :  { %v2703_v4 = vld [vmem:[#allocation4] sm:$0x3] }
 0x266   :  { %v2743_v29 = vld [vmem:[#allocation4 + $0x4] sm:$0xc]  ;;  %v2704_v19 = vsel %vm6001_vm3, %v2701_v6, %v2703_v4  ;;  %vm2918_vm3 = vsmask.f32 2304 }
 0x267   :  { %v2607_v12 = vld [vmem:[#allocation4] sm:$0xff]   ;;  %v2744_v7 = vsel %vm6062_vm5, %v2741_v32, %v2743_v29  ;;  %vm5866_vm5 = vmmov 0  }
 0x268   :  { %v2723_v34 = vld [vmem:[#allocation4 + $0x4] sm:$0x1]  ;;  %2705 = vst [vmem:[#allocation4] sm:$0x3] %v2704_v19  ;;  %2745 = vst [vmem:[#allocation4 + $0x4] sm:$0xc] %v2744_v7  ;;  %5504 = vmatprep.mubr.msk.bf16.mxu1 %vm249_vm4, %v2607_v12 }
 0x269   :  { %v2724_v57 = vsel %vm6073_vm8, %v2719_v40, %v2723_v34  ;;  %2722 = vst.msk [vmem:[#allocation4] sm:$0x8] %vm467_vm6, %v2718_v52  ;;  %5505 = vmatmul.mubr.msk.bf16.vlgmr.msra.gmra.mrb[36].mxu1 %vm249_vm4, %v6435_v21  ;;  %v5394_v21 = vpop.f32.mrb[0].mxu1  ;;  %vm2981_vm6 = vsmask.f32 5392 }
 0x26a   :  { %2725 = vst [vmem:[#allocation4 + $0x4] sm:$0x1] %v2724_v57  ;;  %v659_v3 = vpop.f32.mrb[1].mxu1 }
 0x26b   :  { %v5395_v62 = vpop.f32.mrb[2].mxu1 }
 0x26c   :  { %v662_v49 = vpop.f32.mrb[3].mxu1 }
 0x26d   :  { %v5402_v47 = vpop.f32.mrb[4].mxu1 }
 0x26e   :  { %v742_v9 = vadd.f32 %v5402_v47, %v5394_v21  ;;  %v733_v10 = vpop.f32.mrb[5].mxu1 }
 0x26f   :  { %v2707_v38 = vld [vmem:[#allocation4] sm:$0x6]  ;;  %v2752_v36 = vld [vmem:[#allocation4 + $0x4] sm:$0x8]  ;;  %v734_v55 = vadd.f32 %v733_v10, %v659_v3  ;;  %v5403_v5 = vpop.f32.mrb[6].mxu1 }
 0x270   :  { %v2708_v41 = vsel %vm6067_vm7, %v2706_v22, %v2707_v38  ;;  %v2753_v51 = vsel %vm6085_vm11, %v2748_v53, %v2752_v36  ;;  %v736_v14 = vpop.f32.mrb[7].mxu1  ;;  %vm6677_vm11 = vmand %vm2857_vm0, %vm485_vm10 }
 0x271   :  { %v2731_v1 = vld [vmem:[#allocation4 + $0x4] sm:$0x3]  ;;  %2709 = vst [vmem:[#allocation4] sm:$0x6] %v2708_v41  ;;  %2754 = vst [vmem:[#allocation4 + $0x4] sm:$0x8] %v2753_v51  ;;  %v737_v53 = vadd.f32 %v736_v14, %v662_v49 }
 0x272   :  { %v2732_v59 = vsel %vm6091_vm12, %v4981_v0, %v2731_v1  ;;  %v5410_v11 = vpop.f32.mrb[8].mxu1  ;;  %vm3030_vm12 = vcmask 1040384  }
 0x273   :  { %2733 = vst [vmem:[#allocation4 + $0x4] sm:$0x3] %v2732_v59  ;;  %v898_v13 = vadd.f32 %v5410_v11, %v742_v9  ;;  %v882_v17 = vpop.f32.mrb[9].mxu1 }
 0x274   :  { %v896_v63 = vadd.f32 %v882_v17, %v734_v55  ;;  %v5411_v39 = vpop.f32.mrb[10].mxu1 }
 0x275   :  { %v885_v23 = vpop.f32.mrb[11].mxu1 }
 0x276   :  { %v897_v25 = vadd.f32 %v885_v23, %v737_v53  ;;  %v5418_v26 = vpop.f32.mrb[12].mxu1  ;;  %v2923_v23 = vld [vmem:[#allocation3 + $0x4] sm:$0x7] }
 0x277   :  { %v1047_v27 = vadd.f32 %v5418_v26, %v898_v13  ;;  %v1031_v28 = vpop.f32.mrb[13].mxu1  ;;  %v2920_v13 = vld [vmem:[#allocation3] sm:$0x7] }
 0x278   :  { %v1045_v24 = vadd.f32 %v1031_v28, %v896_v63  ;;  %v5419_v31 = vpop.f32.mrb[14].mxu1 }
 0x279   :  { %v1034_v30 = vpop.f32.mrb[15].mxu1 }
 0x27a   :  { %v5779_v8 = vld [vmem:[#allocation4] sm:$0xff]   ;;  %v1046_v33 = vadd.f32 %v1034_v30, %v897_v25 }
 0x27b   :  { %5512 = vmatprep.mubr.msk.bf16.mxu0 %vm249_vm4, %v5779_v8  ;;  %v2926_v25 = vld [vmem:[#allocation3 + $0x8] sm:$0x7]  ;;  %v2929_v30 = vld [vmem:[#allocation3 + $0xc] sm:$0x7] }
 0x27c   :  { %5513 = vmatmul.mubr.msk.bf16.vlgmr.msra.gmra.mrb[28].mxu0 %vm249_vm4, %v5780_v18  ;;  %vm6576_vm4 = vmand %vm2917_vm1, %vm2918_vm3  ;;  %vm3031_vm1 = vcmask 1044484  }
 0x27d   :  { %v2921_v28 = vsel %vm6576_vm4, 0, %v2920_v13  ;;  %v2927_v31 = vsel %vm6576_vm4, 0, %v2926_v25  ;;  %vm3032_vm10 = vmor %vm3030_vm12, %vm3031_vm1 }
 0x27e   :  { %v5426_v37 = vpop.f32.mrb[16].mxu1  ;;  %2922 = vst [vmem:[#allocation3] sm:$0x7] %v2921_v28  ;;  %2928 = vst [vmem:[#allocation3 + $0x8] sm:$0x7] %v2927_v31 }
 0x27f   :  { %v1194_v42 = vadd.f32 %v5426_v37, %v1047_v27  ;;  %v1178_v43 = vpop.f32.mrb[17].mxu1  ;;  %v2930_v37 = vsel %vm6576_vm4, 0, %v2929_v30  ;;  %v5781_v30 = vld [vmem:[%s7048_s9] sm:$0xff]   ;;  %vm6689_vm3 = vmor %vm440_vm2, %vm2981_vm6  ;;  %vm3062_vm2 = vcmask 519171  }
 0x280   :  { %v1192_v20 = vadd.f32 %v1178_v43, %v1045_v24  ;;  %v5427_v44 = vpop.f32.mrb[18].mxu1  ;;  %v2924_v24 = vsel %vm6576_vm4, 0, %v2923_v23  ;;  %v2935_v43 = vld [vmem:[#allocation3 + $0x14] sm:$0x7]  ;;  %2931 = vst [vmem:[#allocation3 + $0xc] sm:$0x7] %v2930_v37 }
 0x281   :  { %v1181_v45 = vpop.f32.mrb[19].mxu1  ;;  %2925 = vst [vmem:[#allocation3 + $0x4] sm:$0x7] %v2924_v24 }
 0x282   :  { %v1193_v54 = vadd.f32 %v1181_v45, %v1046_v33  ;;  %v2936_v45 = vsel %vm6576_vm4, 0, %v2935_v43 }
 0x283   :  { %2937 = vst [vmem:[#allocation3 + $0x14] sm:$0x7] %v2936_v45 }
 0x291   :  { %v5434_v46 = vpop.f32.mrb[8].mxu0 }
 0x292   :  { %v1343_v48 = vadd.f32 %v5434_v46, %v1194_v42  ;;  %v1327_v60 = vpop.f32.mrb[9].mxu0  ;;  %v2932_v42 = vld [vmem:[#allocation3 + $0x10] sm:$0x7]  ;;  %v2941_v46 = vld [vmem:[#allocation3 + $0x1c] sm:$0x7] }
 0x293   :  { %v1341_v2 = vadd.f32 %v1327_v60, %v1192_v20  ;;  %v5435_v61 = vpop.f32.mrb[10].mxu0  ;;  %v2933_v44 = vsel %vm6576_vm4, 0, %v2932_v42  ;;  %v2942_v60 = vsel %vm6576_vm4, 0, %v2941_v46  ;;  %v5783_v46 = vld [vmem:[%s7048_s9 + $0x20] sm:$0xff]  }
 0x294   :  { %v1330_v50 = vpop.f32.mrb[11].mxu0  ;;  %2934 = vst [vmem:[#allocation3 + $0x10] sm:$0x7] %v2933_v44  ;;  %v2947_v61 = vld [vmem:[#allocation3 + $0x24] sm:$0x7]  ;;  %v5782_v44 = vld [vmem:[%s7048_s9 + $0x8] sm:$0xff]  }
 0x295   :  { %v1342_v56 = vadd.f32 %v1330_v50, %v1193_v54  ;;  %v2938_v54 = vld [vmem:[#allocation3 + $0x18] sm:$0x7]  ;;  %2943 = vst [vmem:[#allocation3 + $0x1c] sm:$0x7] %v2942_v60 }
 0x2a4   :  { %v5442_v35 = vpop.f32.mrb[20].mxu1 }
 0x2a5   :  { %v1495_v15 = vadd.f32 %v5442_v35, %v1343_v48  ;;  %v1479_v52 = vpop.f32.mrb[21].mxu1  ;;  %v2939_v48 = vsel %vm6576_vm4, 0, %v2938_v54  ;;  %v3042_v35 = vld [vmem:[#allocation3] sm:$0x1] }
 0x2a6   :  { %v1493_v40 = vadd.f32 %v1479_v52, %v1341_v2  ;;  %v5443_v6 = vpop.f32.mrb[22].mxu1  ;;  %v2944_v2 = vld [vmem:[#allocation3 + $0x20] sm:$0x7]  ;;  %2940 = vst [vmem:[#allocation3 + $0x18] sm:$0x7] %v2939_v48 }
 0x2a7   :  { %v1482_v32 = vpop.f32.mrb[23].mxu1  ;;  %v2945_v50 = vsel %vm6576_vm4, 0, %v2944_v2  ;;  %3044 = vst.msk [vmem:[#allocation5] sm:$0x1] %vm3043_vm13, %v3042_v35  ;;  %v3052_v6 = vld [vmem:[#allocation3 + $0x14] sm:$0x1] }
 0x2a8   :  { %v1494_v4 = vadd.f32 %v1482_v32, %v1342_v56  ;;  %v2948_v56 = vsel %vm6576_vm4, 0, %v2947_v61  ;;  %2946 = vst [vmem:[#allocation3 + $0x20] sm:$0x7] %v2945_v50  ;;  %v5784_v2 = vld [vmem:[%s7048_s9 + $0x10] sm:$0xff]   ;;  %vm3049_vm4 = vcmask 517121  }
 0x2a9   :  { %2949 = vst [vmem:[#allocation3 + $0x24] sm:$0x7] %v2948_v56  ;;  %v5785_v56 = vld [vmem:[%s7048_s9 + $0x28] sm:$0xff]  }
 0x2b7   :  { %v5450_v29 = vpop.f32.mrb[12].mxu0 }
 0x2b8   :  { %v1644_v12 = vadd.f32 %v5450_v29, %v1495_v15  ;;  %v1628_v19 = vpop.f32.mrb[13].mxu0  ;;  %v3054_v29 = vrot.slane %v3052_v6, 6 }
 0x2b9   :  { %v1642_v34 = vadd.f32 %v1628_v19, %v1493_v40  ;;  %v5451_v7 = vpop.f32.mrb[14].mxu0 }
 0x2ba   :  { %v1631_v57 = vpop.f32.mrb[15].mxu0  ;;  %3057 = vst.msk [vmem:[#allocation5] sm:$0x4] %vm3056_vm14, %v3054_v29 }
 0x2bb   :  { %v1643_v58 = vadd.f32 %v1631_v57, %v1494_v4 }
 0x2ca   :  { %v5458_v22 = vpop.f32.mrb[24].mxu1 }
 0x2cb   :  { %v1791_v38 = vadd.f32 %v5458_v22, %v1644_v12  ;;  %v1775_v0 = vpop.f32.mrb[25].mxu1 }
 0x2cc   :  { %v1789_v36 = vadd.f32 %v1775_v0, %v1642_v34  ;;  %v5459_v41 = vpop.f32.mrb[26].mxu1 }
 0x2cd   :  { %v1778_v1 = vpop.f32.mrb[27].mxu1 }
 0x2ce   :  { %v1790_v51 = vadd.f32 %v1778_v1, %v1643_v58 }
 0x2dd   :  { %v5466_v59 = vpop.f32.mrb[16].mxu0 }
 0x2de   :  { %v1940_v21 = vadd.f32 %v5466_v59, %v1791_v38  ;;  %v1924_v3 = vpop.f32.mrb[17].mxu0 }
 0x2df   :  { %v1938_v62 = vadd.f32 %v1924_v3, %v1789_v36  ;;  %v5467_v49 = vpop.f32.mrb[18].mxu0 }
 0x2e0   :  { %v1927_v18 = vpop.f32.mrb[19].mxu0  ;;  %v4992_v49 = vld [vmem:[%s7047_s6] ss:$0 sm:$0xff] }
 0x2e1   :  { %v1939_v8 = vadd.f32 %v1927_v18, %v1790_v51 }
 0x2f0   :  { %v5474_v47 = vpop.f32.mrb[28].mxu1 }
 0x2f1   :  { %v2092_v9 = vadd.f32 %v5474_v47, %v1940_v21  ;;  %v2076_v10 = vpop.f32.mrb[29].mxu1 }
 0x2f2   :  { %v2090_v55 = vadd.f32 %v2076_v10, %v1938_v62  ;;  %v5475_v5 = vpop.f32.mrb[30].mxu1 }
 0x2f3   :  { %v2079_v14 = vpop.f32.mrb[31].mxu1 }
 0x2f4   :  { %v2091_v53 = vadd.f32 %v2079_v14, %v1939_v8 }
 0x303   :  { %v5482_v11 = vpop.f32.mrb[20].mxu0 }
 0x304   :  { %v2241_v17 = vadd.f32 %v5482_v11, %v2092_v9  ;;  %v2225_v63 = vpop.f32.mrb[21].mxu0 }
 0x305   :  { %v2239_v26 = vadd.f32 %v2225_v63, %v2090_v55  ;;  %v5483_v27 = vpop.f32.mrb[22].mxu0 }
 0x306   :  { %v2228_v33 = vpop.f32.mrb[23].mxu0 }
 0x307   :  { %v2240_v20 = vadd.f32 %v2228_v33, %v2091_v53  ;;  %v5865_v33 = vmov 0.0  }
 0x308   :  { %5528 = vmatprep.subr.bf16.mxu0 %v5865_v33  ;;  %5516 = vmatprep.subr.bf16.mxu1 %v5865_v33 }
 0x309   :  { %5529 = vmatpush3.bf16.msra.mxu0 %v5781_v30  ;;  %5517 = vmatpush3.bf16.msra.mxu1 %v5783_v46  ;;  %v2999_v46 = vld [vmem:[#allocation3 + $0xc] sm:$0x3] }
 0x30a   :  { %5530 = vmatprep.subr.bf16.mxu0 %v5865_v33  ;;  %5518 = vmatprep.subr.bf16.mxu1 %v5865_v33 }
 0x30b   :  { %5536 = vmatprep.mubr.msk.bf16.mxu0 %vm5866_vm5, %v5865_v33  ;;  %5524 = vmatprep.mubr.msk.bf16.mxu1 %vm5866_vm5, %v5865_v33 }
 0x30d   :  { %5531 = vmatpush3.bf16.msra.mxu0 %v5782_v44  ;;  %5519 = vmatpush3.bf16.msra.mxu1 %v5785_v56 }
 0x30e   :  { %5532 = vmatprep.subr.bf16.mxu0 %v5865_v33  ;;  %5520 = vmatprep.subr.bf16.mxu1 %v5865_v33 }
 0x311   :  { %5533 = vmatpush3.bf16.msra.mxu0 %v5784_v2 }
 0x312   :  { %5534 = vmatprep.subr.bf16.mxu0 %v5865_v33 }
 0x316   :  { %v5490_v15 = vpop.f32.mrb[32].mxu1 }
 0x317   :  { %v2390_v52 = vadd.f32 %v5490_v15, %v2241_v17  ;;  %v2374_v40 = vpop.f32.mrb[33].mxu1 }
 0x318   :  { %v2388_v32 = vadd.f32 %v2374_v40, %v2239_v26  ;;  %v5491_v4 = vpop.f32.mrb[34].mxu1 }
 0x319   :  { %v2377_v12 = vpop.f32.mrb[35].mxu1 }
 0x31a   :  { %v2389_v19 = vadd.f32 %v2377_v12, %v2240_v20 }
 0x329   :  { %v5498_v34 = vpop.f32.mrb[24].mxu0 }
 0x32a   :  { %v2539_v7 = vadd.f32 %v5498_v34, %v2390_v52  ;;  %v2523_v57 = vpop.f32.mrb[25].mxu0  ;;  %v5786_v52 = vld [vmem:[%s7048_s9 + $0x18] sm:$0xff]  }
 0x32b   :  { %v2537_v58 = vadd.f32 %v2523_v57, %v2388_v32  ;;  %v5499_v22 = vpop.f32.mrb[26].mxu0  ;;  %5535 = vmatpush3.bf16.msra.mxu0 %v5786_v52  ;;  %v5787_v32 = vld [vmem:[%s7048_s9 + $0x30] sm:$0xff]  }
 0x32c   :  { %v2526_v38 = vpop.f32.mrb[27].mxu0  ;;  %5552 = vmatprep.subr.bf16.mxu0 %v5865_v33  ;;  %5521 = vmatpush3.bf16.msra.mxu1 %v5787_v32  ;;  %v2852_v22 = vld [vmem:[%s7050_s8] sm:$0x1] }
 0x32d   :  { %v2538_v0 = vadd.f32 %v2526_v38, %v2389_v19  ;;  %5522 = vmatprep.subr.bf16.mxu1 %v5865_v33  ;;  %v5788_v19 = vld [vmem:[%s7048_s9 + $0x38] sm:$0xff]  }
 0x330   :  { %5523 = vmatpush3.bf16.msra.mxu1 %v5788_v19 }
 0x331   :  { %5540 = vmatprep.subr.bf16.mxu1 %v5865_v33 }
 0x33c   :  { %v5506_v36 = vpop.f32.mrb[36].mxu1 }
 0x33d   :  { %v2691_v41 = vadd.f32 %v5506_v36, %v2539_v7  ;;  %v2675_v1 = vpop.f32.mrb[37].mxu1  ;;  %v2851_v7 = vld [vmem:[%s7049_s7] sm:$0x1] }
 0x33e   :  { %v2689_v51 = vadd.f32 %v2675_v1, %v2537_v58  ;;  %v5507_v59 = vpop.f32.mrb[38].mxu1 }
 0x33f   :  { %v2678_v21 = vpop.f32.mrb[39].mxu1 }
 0x340   :  { %v2690_v3 = vadd.f32 %v2678_v21, %v2538_v0 }
 0x34f   :  { %v5514_v62 = vpop.f32.mrb[28].mxu0 }
 0x350   :  { %v2840_v18 = vadd.f32 %v5514_v62, %v2691_v41  ;;  %v2824_v8 = vpop.f32.mrb[29].mxu0 }
 0x351   :  { %v2838_v47 = vadd.f32 %v2824_v8, %v2689_v51  ;;  %v5515_v9 = vpop.f32.mrb[30].mxu0 }
 0x352   :  { %v6605_v10 = vadd.f32 %v4992_v49, %v2840_v18  ;;  %v2827_v55 = vpop.f32.mrb[31].mxu0 }
 0x353   :  { %v6607_v5 = vadd.f32 %v4992_v49, %v2838_v47  ;;  %v2839_v14 = vadd.f32 %v2827_v55, %v2690_v3 }
 0x354   :  { %v2868_v53 = vmul.f32 %v6605_v10, %v6605_v10  ;;  %v2858_v25 = vsel %vm2857_vm0, %v6605_v10, 0.0 }
 0x355   :  { %v2866_v11 = vmul.f32 %v6607_v5, %v6607_v5  ;;  %v6613_v13 = vadd.f32 %v4992_v49, %v2839_v14  ;;  %v2854_v17 = vsel %vm2853_vm15, %v6607_v5, 0.0  ;;  %v3004_v14 = vld [vmem:[#allocation3 + $0x18] sm:$0x3] }
 0x356   :  { %v2872_v26 = vsel %vm2857_vm0, %v2868_v53, 0.0 }
 0x357   :  { %v2855_v63 = vsel %vm2853_vm15, %v6613_v13, 0.0  ;;  %v2867_v39 = vmul.f32 %v6613_v13, %v6613_v13  ;;  %v2869_v27 = vsel %vm2853_vm15, %v2866_v11, 0.0 }
 0x358   :  { %v2856_v23 = vadd.f32 %v2855_v63, %v2854_v17 }
 0x359   :  { %v2870_v28 = vsel %vm2853_vm15, %v2867_v39, 0.0  ;;  %v2965_v39 = vld [vmem:[#allocation3 + $0x4] sm:$0x3] }
 0x35a   :  { %v2859_v24 = vadd.f32 %v2858_v25, %v2856_v23  ;;  %v2871_v31 = vadd.f32 %v2870_v28, %v2869_v27  ;;  %v3039_v28 = vld [vmem:[#allocation3 + $0x20] sm:$0x3] }
 0x35c   :  { %v2860_v37 = vrot.slane %v2859_v24, 4  ;;  %v2873_v42 = vadd.f32 %v2872_v26, %v2871_v31 }
 0x35e   :  { %v2861_v43 = vadd.f32 %v2860_v37, %v2859_v24  ;;  %v2874_v20 = vrot.slane %v2873_v42, 4 }
 0x360   :  { %v2862_v45 = vrot.slane %v2861_v43, 2  ;;  %v2875_v54 = vadd.f32 %v2874_v20, %v2873_v42 }
 0x362   :  { %v2863_v48 = vadd.f32 %v2862_v45, %v2861_v43  ;;  %v2876_v60 = vrot.slane %v2875_v54, 2 }
 0x364   :  { %v2864_v61 = vrot.slane %v2863_v48, 1  ;;  %v2877_v50 = vadd.f32 %v2876_v60, %v2875_v54 }
 0x366   :  { %v2865_v35 = vadd.f32 %v2864_v61, %v2863_v48  ;;  %v2878_v15 = vrot.slane %v2877_v50, 1  ;;  %v3021_v48 = vld [vmem:[#allocation3 + $0x1c] sm:$0x3]  ;;  %v3073_v61 = vld [vmem:[#allocation3] sm:$0x3] }
 0x368   :  { %v2879_v40 = vadd.f32 %v2878_v15, %v2877_v50  ;;  %v2881_v6 = vmul.f32 0.055555556, %v2865_v35 }
 0x36a   :  { %v2882_v4 = vmul.f32 0.055555556, %v2879_v40  ;;  %v2883_v29 = vmul.f32 %v2881_v6, %v2881_v6 }
 0x36c   :  { %v2884_v12 = vsub.f32 %v2882_v4, %v2883_v29  ;;  %v3075_v29 = vshrl.u32 %v3073_v61, 16 }
 0x36e   :  { %v2885_v34 = vadd.f32 1e-05, %v2884_v12  ;;  %v3078_v12 = vshll.u32 %v3073_v61, 16 }
 0x370   :  { %5862 = vrsqrt.f32 %v2885_v34  ;;  %v3095_v34 = vld [vmem:[#allocation3 + $0x14] sm:$0x3] }
 0x37a   :  { %v5863_v57 = vpop.eup %5862 }
 0x37b   :  { %v2887_v58 = vmul.f32 %v5863_v57, %v2851_v7  ;;  %v3077_v57 = vrot.slane %v3075_v29, 4 }
 0x37d   :  { %v2888_v38 = vmul.f32 %v2887_v58, %v2881_v6  ;;  %v2894_v0 = vrot.slane %v2887_v58, %v6021_v16  ;;  %v3080_v58 = vrot.slane %v3078_v12, 5 }
 0x37f   :  { %v2889_v36 = vsub.f32 %v2852_v22, %v2888_v38  ;;  %v2896_v41 = vmul.f32 %v2894_v0, %v6607_v5  ;;  %v2897_v1 = vmul.f32 %v2894_v0, %v6613_v13  ;;  %v2898_v51 = vmul.f32 %v2894_v0, %v6605_v10  ;;  %v2972_v10 = vld [vmem:[#allocation3 + $0x8] sm:$0x3] }
 0x380   :  { %v3097_v22 = vshrl.u32 %v3095_v34, 16  ;;  %v3100_v38 = vshll.u32 %v3095_v34, 16 }
 0x381   :  { %v2903_v59 = vrot.slane %v2889_v36, %v6021_v16 }
 0x383   :  { %v2905_v21 = vadd.f32 %v2903_v59, %v2896_v41  ;;  %v2906_v3 = vadd.f32 %v2903_v59, %v2897_v1  ;;  %v2907_v62 = vadd.f32 %v2903_v59, %v2898_v51 }
 0x385   :  { %vm2908_vm7 = vcmp.ge.f32.partialorder %v2905_v21, 0.0  ;;  %vm2909_vm8 = vcmp.ge.f32.partialorder %v2906_v3, 0.0  ;;  %vm2910_vm9 = vcmp.ge.f32.partialorder %v2907_v62, 0.0  ;;  %v2911_v49 = vmul.f32 0.2, %v2905_v21 }
 0x386   :  { %v2912_v8 = vmul.f32 0.2, %v2906_v3  ;;  %v2913_v47 = vmul.f32 0.2, %v2907_v62 }
 0x387   :  { %v2914_v9 = vsel %vm2908_vm7, %v2905_v21, %v2911_v49  ;;  %v3081_v21 = vor.u32 %v3080_v58, %v3077_v57 }
 0x388   :  { %v2915_v55 = vsel %vm2909_vm8, %v2906_v3, %v2912_v8  ;;  %v2916_v16 = vsel %vm2910_vm9, %v2907_v62, %v2913_v47  ;;  %v5210_v5 = vpack.c.bf16 %v2914_v9, %v2914_v9  ;;  %v3099_v3 = vrot.slane %v3097_v22, 6 }
 0x389   :  { %v5212_v53 = vpack.c.bf16 %v2915_v55, %v2915_v55  ;;  %v5215_v11 = vpack.c.bf16 %v2916_v16, %v2916_v16  ;;  %v3102_v62 = vrot.slane %v3100_v38, 7  ;;  %v3082_v47 = vrot.slane %v3081_v21, 4  ;;  %v3357_v55 = vld [vmem:[#allocation3] sm:$0x6]  ;;  %v5790_v16 = vld [vmem:[%s7048_s9 + $0x60] sm:$0xff]  }
 0x38a   :  { %v2955_v13 = vshrl.u32 %v5210_v5, 16  ;;  %v2958_v17 = vshll.u32 %v5210_v5, 16  ;;  %v4994_v63 = vrot.slane %v5210_v5, 9 }
 0x38b   :  { %v2993_v23 = vshll.u32 %v5212_v53, 16  ;;  %v3005_v25 = vsel %vm6677_vm11, %v5212_v53, %v3004_v14  ;;  %v3011_v26 = vshrl.u32 %v5212_v53, 16  ;;  %v5000_v27 = vrot.slane %v5212_v53, 11 }
 0x38c   :  { %v2957_v24 = vrot.slane %v2955_v13, 7  ;;  %v2973_v31 = vsel %vm6677_vm11, %v4994_v63, %v2972_v10  ;;  %v2986_v30 = vrot.slane %v2955_v13, 6  ;;  %v2989_v37 = vrot.slane %v2958_v17, 7  ;;  %3006 = vst [vmem:[#allocation3 + $0x18] sm:$0x3] %v3005_v25  ;;  %v5792_v25 = vld [vmem:[%s7048_s9 + $0x68] sm:$0xff]  }
 0x38d   :  { %2974 = vst [vmem:[#allocation3 + $0x8] sm:$0x3] %v2973_v31  ;;  %v3013_v43 = vrot.slane %v3011_v26, 5  ;;  %v3016_v20 = vrot.slane %v2993_v23, 6  ;;  %v3035_v44 = vrot.slane %v5215_v11, 7  ;;  %v2995_v35 = vrot.slane %v2993_v23, 7 }
 0x38e   :  { %v2960_v45 = vor.u32 %v2958_v17, %v2957_v24  ;;  %v2990_v54 = vor.u32 %v2989_v37, %v2986_v30  ;;  %v3103_v10 = vor.u32 %v3102_v62, %v3099_v3  ;;  %v3261_v13 = vld [vmem:[#allocation3] sm:$0x2]  ;;  %v3359_v17 = vshrl.u32 %v3357_v55, 16  ;;  %v3381_v23 = vld [vmem:[#allocation3 + $0x14] sm:$0x6] }
 0x38f   :  { %v3017_v60 = vor.u32 %v3016_v20, %v3013_v43  ;;  %v3036_v2 = vsel %vm3032_vm10, %v5000_v27, %v3035_v44  ;;  %v3362_v63 = vshll.u32 %v3357_v55, 16  ;;  %v5019_v24 = vrot.slane %v3261_v13, 9  ;;  %v5789_v44 = vld [vmem:[%s7048_s9 + $0x40] sm:$0xff]  }
 0x390   :  { %v2966_v50 = vsel %vm6677_vm11, %v2960_v45, %v2965_v39  ;;  %v2991_v56 = vrot.slane %v2990_v54, 4  ;;  %v3040_v15 = vsel %vm6677_vm11, %v3036_v2, %v3039_v28  ;;  %v3269_v39 = vld [vmem:[#allocation3 + $0x14] sm:$0x2]  ;;  %v3361_v37 = vrot.slane %v3359_v17, 5  ;;  %v5794_v45 = vld [vmem:[%s7048_s9 + $0x70] sm:$0xff]  }
 0x391   :  { %2967 = vst [vmem:[#allocation3 + $0x4] sm:$0x3] %v2966_v50  ;;  %v3018_v52 = vrot.slane %v3017_v60, 4  ;;  %3041 = vst [vmem:[#allocation3 + $0x20] sm:$0x3] %v3040_v15  ;;  %v3271_v30 = vrot.slane %v3269_v39, 7 }
 0x392   :  { %v2996_v40 = vsel %vm6689_vm3, %v2991_v56, %v2995_v35  ;;  %v3364_v42 = vrot.slane %v3362_v63, 6  ;;  %v3383_v43 = vshrl.u32 %v3381_v23, 16  ;;  %v3386_v35 = vshll.u32 %v3381_v23, 16 }
 0x393   :  { %v3000_v6 = vsel %vm6677_vm11, %v2996_v40, %v2999_v46  ;;  %v3022_v32 = vsel %vm6677_vm11, %v3018_v52, %v3021_v48  ;;  %v3058_v4 = vld [vmem:[#allocation3 + $0x18] sm:$0x1]  ;;  %v3274_v26 = vld [vmem:[#allocation3 + $0x18] sm:$0x2]  ;;  %v5796_v40 = vld [vmem:[%s7048_s9 + $0x78] sm:$0xff]  }
 0x394   :  { %3001 = vst [vmem:[#allocation3 + $0xc] sm:$0x3] %v3000_v6  ;;  %3023 = vst [vmem:[#allocation3 + $0x1c] sm:$0x3] %v3022_v32  ;;  %v3060_v19 = vrot.slane %v3058_v4, 5  ;;  %v3276_v20 = vrot.slane %v3274_v26, 6  ;;  %v3365_v50 = vor.u32 %v3364_v42, %v3361_v37 }
 0x395   :  { %v3106_v7 = vld [vmem:[#allocation3 + $0x18] sm:$0x3]  ;;  %v3385_v56 = vrot.slane %v3383_v43, 7  ;;  %v6744_v22 = vld [vmem:[#allocation3 + $0x8] sm:$0x3]  ;;  %v5801_v37 = vld [vmem:[%s7048_s9 + $0x90] sm:$0xff]  }
 0x396   :  { %3063 = vst.msk [vmem:[#allocation5] sm:$0x8] %vm3062_vm2, %v3060_v19  ;;  %v3108_v51 = vshrl.u32 %v3106_v7, 16  ;;  %v3111_v59 = vshll.u32 %v3106_v7, 16  ;;  %v3391_v31 = vld [vmem:[#allocation3 + $0x18] sm:$0x6] }
 0x397   :  { %v3393_v48 = vshrl.u32 %v3391_v31, 16  ;;  %v3396_v60 = vshll.u32 %v3391_v31, 16  ;;  %v5791_v52 = vld [vmem:[%s7048_s9 + $0x48] sm:$0xff]   ;;  %v3366_v29 = vrot.slane %v3365_v50, 4  ;;  %v3388_v12 = vor.u32 %v3386_v35, %v3385_v56  ;;  %v5793_v7 = vld [vmem:[%s7048_s9 + $0x50] sm:$0xff]  }
 0x398   :  { %v3045_v0 = vld [vmem:[#allocation3 + $0x4] sm:$0x1]  ;;  %v3110_v18 = vrot.slane %v3108_v51, 5  ;;  %v3113_v8 = vrot.slane %v3111_v59, 6  ;;  %v3369_v11 = vld [vmem:[#allocation3 + $0x4] sm:$0x6] }
 0x399   :  { %v3085_v36 = vld [vmem:[#allocation3 + $0x4] sm:$0x3]  ;;  %v3047_v41 = vrot.slane %v3045_v0, 7  ;;  %v3371_v27 = vshrl.u32 %v3369_v11, 16  ;;  %v3374_v28 = vshll.u32 %v3369_v11, 16  ;;  %v3395_v32 = vrot.slane %v3393_v48, 6 }
 0x39a   :  { %v3087_v1 = vshrl.u32 %v3085_v36, 16  ;;  %v3090_v9 = vshll.u32 %v3085_v36, 16  ;;  %v3114_v14 = vor.u32 %v3113_v8, %v3110_v18  ;;  %v3267_v61 = vld [vmem:[#allocation3 + $0x4] sm:$0x2]  ;;  %v3398_v4 = vrot.slane %v3396_v60, 7  ;;  %v5795_v51 = vld [vmem:[%s7048_s9 + $0x58] sm:$0xff]  }
 0x39b   :  { %3050 = vst.msk [vmem:[#allocation5] sm:$0x2] %vm3049_vm4, %v3047_v41  ;;  %v3373_v54 = vrot.slane %v3371_v27, 4  ;;  %v3376_v46 = vrot.slane %v3374_v28, 5  ;;  %v3575_v15 = vld [vmem:[#allocation3 + $0x4] sm:$0x3] }
 0x39c   :  { %v3089_v49 = vrot.slane %v3087_v1, 7  ;;  %v3577_v19 = vshrl.u32 %v3575_v15, 16  ;;  %v3580_v34 = vshll.u32 %v3575_v15, 16  ;;  %v3399_v58 = vor.u32 %v3398_v4, %v3395_v32  ;;  %v3597_v38 = vld [vmem:[#allocation3 + $0x18] sm:$0x3]  ;;  %v5802_v42 = vld [vmem:[%s7048_s9 + $0xb0] sm:$0xff]  }
 0x39d   :  { %v3377_v6 = vor.u32 %v3376_v46, %v3373_v54  ;;  %v3608_v36 = vld [vmem:[#allocation3 + $0x1c] sm:$0x3]  ;;  %v3482_v59 = vld [vmem:[#allocation3 + $0x8] sm:$0x1]  ;;  %v3487_v21 = vld [vmem:[#allocation3 + $0x18] sm:$0x1] }
 0x39e   :  { %v3092_v5 = vor.u32 %v3090_v9, %v3089_v49  ;;  %v3579_v41 = vrot.slane %v3577_v19, 4  ;;  %v3582_v1 = vrot.slane %v3580_v34, 5  ;;  %v3589_v3 = vshrl.u32 %v6744_v22, 16  ;;  %v3492_v49 = vld [vmem:[#allocation3 + $0x1c] sm:$0x1]  ;;  %v5803_v60 = vld [vmem:[%s7048_s9 + $0x98] sm:$0xff]  }
 0x39f   :  { %v3378_v57 = vrot.slane %v3377_v6, 4  ;;  %v3599_v62 = vshrl.u32 %v3597_v38, 16  ;;  %v3602_v18 = vshll.u32 %v3597_v38, 16  ;;  %v3610_v8 = vshrl.u32 %v3608_v36, 16  ;;  %v5799_v26 = vld [vmem:[%s7048_s9 + $0x88] sm:$0xff]   ;;  %v5806_v19 = vld [vmem:[%s7048_s9 + $0xe0] sm:$0xff]  }
 0x3a0   :  { %v3489_v9 = vrot.slane %v3487_v21, 6  ;;  %v3613_v55 = vshll.u32 %v3608_v36, 16  ;;  %v3591_v11 = vrot.slane %v3589_v3, 7  ;;  %v3592_v13 = vshll.u32 %v6744_v22, 16  ;;  %v5800_v27 = vld [vmem:[%s7048_s9 + $0xa8] sm:$0xff]  }
 0x3a1   :  { %v3601_v17 = vrot.slane %v3599_v62, 6  ;;  %v3604_v63 = vrot.slane %v3602_v18, 7  ;;  %v3612_v39 = vrot.slane %v3610_v8, 5  ;;  %v3805_v43 = vld [vmem:[#allocation3 + $0x8] sm:$0x6]  ;;  %v5807_v36 = vld [vmem:[%s7048_s9 + $0xc8] sm:$0xff]  }
 0x3a2   :  { %v3064_v53 = vld [vmem:[#allocation5] sm:$0xf]  ;;  %v3697_v46 = vld [vmem:[#allocation3 + $0x4] sm:$0x2]  ;;  %v3705_v48 = vld [vmem:[#allocation3 + $0x18] sm:$0x2] }
 0x3a3   :  { %3084 = vst.msk [vmem:[#allocation5] sm:$0x1] %vm3043_vm13, %v3082_v47  ;;  %5537 = vmatmul.mubr.msk.bf16.vlgmr.msra.gmra.mrb[32].mxu0 %vm2853_vm15, %v3064_v53  ;;  %v3484_v47 = vrot.slane %v3482_v59, 7  ;;  %v3494_v53 = vrot.slane %v3492_v49, 5  ;;  %v3807_v50 = vshrl.u32 %v3805_v43, 16  ;;  %v3810_v56 = vshll.u32 %v3805_v43, 16 }
 0x3a4   :  { %3094 = vst.msk [vmem:[#allocation5] sm:$0x2] %vm3049_vm4, %v3092_v5  ;;  %5553 = vmatpush3.bf16.msra.mxu0 %v5790_v16  ;;  %5560 = vmatprep.mubr.msk.bf16.mxu0 %vm5866_vm5, %v5865_v33  ;;  %v5797_v16 = vld [vmem:[%s7048_s9 + $0x80] sm:$0xff]   ;;  %v3817_v35 = vld [vmem:[#allocation3 + $0x18] sm:$0x6]  ;;  %v5809_v62 = vld [vmem:[%s7048_s9 + $0xd0] sm:$0xff]  }
 0x3a5   :  { %3105 = vst.msk [vmem:[#allocation5] sm:$0x4] %vm3056_vm14, %v3103_v10  ;;  %5554 = vmatprep.subr.bf16.mxu0 %v5865_v33  ;;  %v3583_v10 = vor.u32 %v3582_v1, %v3579_v41  ;;  %v5798_v5 = vld [vmem:[%s7048_s9 + $0xa0] sm:$0xff]   ;;  %v3827_v15 = vld [vmem:[#allocation3 + $0x1c] sm:$0x6]  ;;  %v3809_v34 = vrot.slane %v3807_v50, 4 }
 0x3a6   :  { %3116 = vst.msk [vmem:[#allocation5] sm:$0x8] %vm3062_vm2, %v3114_v14  ;;  %v3480_v14 = vld [vmem:[#allocation3 + $0x4] sm:$0x1]  ;;  %v3703_v38 = vld [vmem:[#allocation3 + $0x8] sm:$0x2] }
 0x3a7   :  { %v3584_v28 = vrot.slane %v3583_v10, 4  ;;  %v5808_v41 = vld [vmem:[%s7048_s9 + $0xe8] sm:$0xff]   ;;  %v3822_v3 = vshll.u32 %v3817_v35, 16  ;;  %v5810_v49 = vld [vmem:[%s7048_s9 + $0xf0] sm:$0xff]   ;;  %v4011_v10 = vld [vmem:[#allocation3 + $0x8] sm:$0x3] }
 0x3a8   :  { %5555 = vmatpush3.bf16.msra.mxu0 %v5792_v25  ;;  %v3793_v25 = vld [vmem:[#allocation3 + $0x4] sm:$0x6] }
 0x3a9   :  { %5556 = vmatprep.subr.bf16.mxu0 %v5865_v33  ;;  %v3795_v31 = vshrl.u32 %v3793_v25, 16 }
 0x3ab   :  { %v3797_v32 = vrot.slane %v3795_v31, 5 }
 0x3ac   :  { %5557 = vmatpush3.bf16.msra.mxu0 %v5794_v45 }
 0x3ad   :  { %v3117_v2 = vld [vmem:[#allocation5] sm:$0xf]  ;;  %5558 = vmatprep.subr.bf16.mxu0 %v5865_v33 }
 0x3ae   :  { %3266 = vst.msk [vmem:[#allocation5] sm:$0x1] %vm3043_vm13, %v5019_v24  ;;  %5525 = vmatmul.mubr.msk.bf16.vlgmr.msra.gmra.mrb[40].mxu1 %vm2853_vm15, %v3117_v2  ;;  %v3615_v24 = vrot.slane %v3613_v55, 6  ;;  %v5804_v2 = vld [vmem:[%s7048_s9 + $0xb8] sm:$0xff]  }
 0x3af   :  { %3268 = vst.msk [vmem:[#allocation5] sm:$0x2] %vm3049_vm4, %v3267_v61  ;;  %5541 = vmatpush3.bf16.msra.mxu1 %v5789_v44  ;;  %5548 = vmatprep.mubr.msk.bf16.mxu1 %vm5866_vm5, %v5865_v33  ;;  %v3605_v44 = vor.u32 %v3604_v63, %v3601_v17  ;;  %v3710_v61 = vld [vmem:[#allocation3 + $0x1c] sm:$0x2]  ;;  %v3928_v17 = vld [vmem:[#allocation3 + $0x20] sm:$0x1] }
 0x3b0   :  { %3273 = vst.msk [vmem:[#allocation5] sm:$0x4] %vm3056_vm14, %v3271_v30  ;;  %5542 = vmatprep.subr.bf16.mxu1 %v5865_v33  ;;  %5559 = vmatpush3.bf16.msra.mxu0 %v5796_v40  ;;  %v3798_v30 = vshll.u32 %v3793_v25, 16  ;;  %v3616_v45 = vor.u32 %v3615_v24, %v3612_v39  ;;  %v3707_v40 = vrot.slane %v3705_v48, 7  ;;  %v3712_v6 = vrot.slane %v3710_v61, 6 }
 0x3b1   :  { %3278 = vst.msk [vmem:[#allocation5] sm:$0x8] %vm3062_vm2, %v3276_v20  ;;  %5576 = vmatprep.subr.bf16.mxu0 %v5865_v33  ;;  %v3594_v20 = vor.u32 %v3592_v13, %v3591_v11  ;;  %v4013_v11 = vshrl.u32 %v4011_v10, 16  ;;  %v4016_v13 = vshll.u32 %v4011_v10, 16  ;;  %v4023_v63 = vld [vmem:[#allocation3 + $0xc] sm:$0x3] }
 0x3b2   :  { %v3800_v4 = vrot.slane %v3798_v30, 6  ;;  %v4033_v39 = vld [vmem:[#allocation3 + $0x1c] sm:$0x3]  ;;  %v4025_v31 = vshrl.u32 %v4023_v63, 16  ;;  %v5813_v30 = vld [vmem:[%s7048_s9 + $0x100] sm:$0xff]  }
 0x3b3   :  { %5543 = vmatpush3.bf16.msra.mxu1 %v5791_v52  ;;  %v5072_v52 = vrot.slane %v3697_v46, 9  ;;  %v4018_v24 = vrot.slane %v4016_v13, 5  ;;  %v4038_v43 = vshll.u32 %v4033_v39, 16  ;;  %v5823_v13 = vld [vmem:[%s7048_s9 + $0x148] sm:$0xff]  }
 0x3b4   :  { %5544 = vmatprep.subr.bf16.mxu1 %v5865_v33  ;;  %v4027_v48 = vrot.slane %v4025_v31, 7 }
 0x3b5   :  { %v4040_v50 = vrot.slane %v4038_v43, 7 }
 0x3b7   :  { %5545 = vmatpush3.bf16.msra.mxu1 %v5793_v7  ;;  %v3812_v7 = vrot.slane %v3810_v56, 5 }
 0x3b8   :  { %v3279_v0 = vld [vmem:[#allocation5] sm:$0xf]  ;;  %5546 = vmatprep.subr.bf16.mxu1 %v5865_v33 }
 0x3b9   :  { %3368 = vst.msk [vmem:[#allocation5] sm:$0x1] %vm3043_vm13, %v3366_v29  ;;  %v3819_v29 = vshrl.u32 %v3817_v35, 16  ;;  %v3813_v1 = vor.u32 %v3812_v7, %v3809_v34  ;;  %v4241_v34 = vld [vmem:[#allocation3 + $0xc] sm:$0x6] }
 0x3ba   :  { %3380 = vst.msk [vmem:[#allocation5] sm:$0x2] %vm3049_vm4, %v3378_v57  ;;  %v3829_v57 = vshrl.u32 %v3827_v15, 16  ;;  %v5819_v7 = vld [vmem:[%s7048_s9 + $0x118] sm:$0xff]  }
 0x3bb   :  { %3390 = vst.msk [vmem:[#allocation5] sm:$0x4] %vm3056_vm14, %v3388_v12  ;;  %5547 = vmatpush3.bf16.msra.mxu1 %v5795_v51  ;;  %v5805_v12 = vld [vmem:[%s7048_s9 + $0xc0] sm:$0xff]   ;;  %v3821_v51 = vrot.slane %v3819_v29, 7  ;;  %v3814_v8 = vrot.slane %v3813_v1, 4  ;;  %v4246_v1 = vshll.u32 %v4241_v34, 16 }
 0x3bc   :  { %3401 = vst.msk [vmem:[#allocation5] sm:$0x8] %vm3062_vm2, %v3399_v58  ;;  %5564 = vmatprep.subr.bf16.mxu1 %v5865_v33  ;;  %v3832_v58 = vshll.u32 %v3827_v15, 16  ;;  %v3831_v59 = vrot.slane %v3829_v57, 6  ;;  %v4028_v15 = vshll.u32 %v4023_v63, 16  ;;  %v5820_v57 = vld [vmem:[%s7048_s9 + $0x138] sm:$0xff]  }
 0x3be   :  { %5549 = vmatmul.mubr.msk.bf16.vlgmr.msra.gmra.mrb[44].mxu1 %vm2853_vm15, %v3279_v0  ;;  %v3801_v0 = vor.u32 %v3800_v4, %v3797_v32  ;;  %v3834_v21 = vrot.slane %v3832_v58, 7  ;;  %v4030_v32 = vor.u32 %v4028_v15, %v4027_v48  ;;  %v4133_v58 = vld [vmem:[#allocation3 + $0x8] sm:$0x2] }
 0x3bf   :  { %5565 = vmatpush3.bf16.msra.mxu1 %v5797_v16  ;;  %5572 = vmatprep.mubr.msk.bf16.mxu1 %vm5866_vm5, %v5865_v33  ;;  %v5811_v16 = vld [vmem:[%s7048_s9 + $0xd8] sm:$0xff]  }
 0x3c0   :  { %5566 = vmatprep.subr.bf16.mxu1 %v5865_v33  ;;  %v3802_v18 = vrot.slane %v3801_v0, 4  ;;  %v5828_v48 = vld [vmem:[%s7048_s9 + $0x178] sm:$0xff]  }
 0x3c3   :  { %v3402_v23 = vld [vmem:[#allocation5] sm:$0xf]  ;;  %5567 = vmatpush3.bf16.msra.mxu1 %v5799_v26 }
 0x3c4   :  { %3481 = vst.msk [vmem:[#allocation5] sm:$0x1] %vm3043_vm13, %v3480_v14  ;;  %5561 = vmatmul.mubr.msk.bf16.vlgmr.msra.gmra.mrb[36].mxu0 %vm2853_vm15, %v3402_v23  ;;  %5568 = vmatprep.subr.bf16.mxu1 %v5865_v33  ;;  %v3918_v14 = vld [vmem:[#allocation3 + $0xc] sm:$0x1]  ;;  %v4044_v23 = vld [vmem:[#allocation3 + $0x20] sm:$0x3] }
 0x3c5   :  { %3486 = vst.msk [vmem:[#allocation5] sm:$0x2] %vm3049_vm4, %v3484_v47  ;;  %5577 = vmatpush3.bf16.msra.mxu0 %v5798_v5  ;;  %5584 = vmatprep.mubr.msk.bf16.mxu0 %vm5866_vm5, %v5865_v33  ;;  %v3824_v47 = vor.u32 %v3822_v3, %v3821_v51  ;;  %v5812_v5 = vld [vmem:[%s7048_s9 + $0xf8] sm:$0xff]   ;;  %v3920_v25 = vrot.slane %v3918_v14, 7  ;;  %v4253_v51 = vld [vmem:[#allocation3 + $0x1c] sm:$0x6] }
 0x3c6   :  { %3491 = vst.msk [vmem:[#allocation5] sm:$0x4] %vm3056_vm14, %v3489_v9  ;;  %5578 = vmatprep.subr.bf16.mxu0 %v5865_v33  ;;  %v3835_v9 = vor.u32 %v3834_v21, %v3831_v59  ;;  %v4263_v59 = vld [vmem:[#allocation3 + $0x20] sm:$0x6]  ;;  %v5125_v21 = vrot.slane %v4133_v58, 9 }
 0x3c7   :  { %3496 = vst.msk [vmem:[#allocation5] sm:$0x8] %vm3062_vm2, %v3494_v53  ;;  %5569 = vmatpush3.bf16.msra.mxu1 %v5801_v37  ;;  %v3923_v53 = vld [vmem:[#allocation3 + $0x1c] sm:$0x1]  ;;  %v5814_v37 = vld [vmem:[%s7048_s9 + $0x120] sm:$0xff]  }
 0x3c8   :  { %5570 = vmatprep.subr.bf16.mxu1 %v5865_v33  ;;  %v3925_v26 = vrot.slane %v3923_v53, 6  ;;  %v4139_v53 = vld [vmem:[#allocation3 + $0xc] sm:$0x2] }
 0x3c9   :  { %5579 = vmatpush3.bf16.msra.mxu0 %v5800_v27  ;;  %v3930_v27 = vrot.slane %v3928_v17, 5  ;;  %v5824_v17 = vld [vmem:[%s7048_s9 + $0x168] sm:$0xff]  }
 0x3ca   :  { %5580 = vmatprep.subr.bf16.mxu0 %v5865_v33 }
 0x3cb   :  { %5571 = vmatpush3.bf16.msra.mxu1 %v5803_v60  ;;  %v5815_v60 = vld [vmem:[%s7048_s9 + $0x108] sm:$0xff]  }
 0x3cc   :  { %5588 = vmatprep.subr.bf16.mxu1 %v5865_v33 }
 0x3cd   :  { %5581 = vmatpush3.bf16.msra.mxu0 %v5802_v42  ;;  %v4035_v42 = vshrl.u32 %v4033_v39, 16 }
 0x3ce   :  { %v3497_v54 = vld [vmem:[#allocation5] sm:$0xf]  ;;  %5582 = vmatprep.subr.bf16.mxu0 %v5865_v33 }
 0x3cf   :  { %3586 = vst.msk [vmem:[#allocation5] sm:$0x1] %vm3043_vm13, %v3584_v28  ;;  %5573 = vmatmul.mubr.msk.bf16.vlgmr.msra.gmra.mrb[48].mxu1 %vm2853_vm15, %v3497_v54  ;;  %v4015_v28 = vrot.slane %v4013_v11, 4  ;;  %v3916_v54 = vld [vmem:[#allocation3 + $0x8] sm:$0x1]  ;;  %v4037_v61 = vrot.slane %v4035_v42, 6 }
 0x3d0   :  { %3596 = vst.msk [vmem:[#allocation5] sm:$0x2] %vm3049_vm4, %v3594_v20  ;;  %5589 = vmatpush3.bf16.msra.mxu1 %v5805_v12  ;;  %5596 = vmatprep.mubr.msk.bf16.mxu1 %vm5866_vm5, %v5865_v33  ;;  %v4046_v20 = vshrl.u32 %v4044_v23, 16  ;;  %v4229_v12 = vld [vmem:[#allocation3 + $0x8] sm:$0x6] }
 0x3d1   :  { %3607 = vst.msk [vmem:[#allocation5] sm:$0x4] %vm3056_vm14, %v3605_v44  ;;  %5583 = vmatpush3.bf16.msra.mxu0 %v5804_v2  ;;  %5590 = vmatprep.subr.bf16.mxu1 %v5865_v33  ;;  %v4049_v44 = vshll.u32 %v4044_v23, 16  ;;  %v4019_v46 = vor.u32 %v4018_v24, %v4015_v28  ;;  %v5816_v2 = vld [vmem:[%s7048_s9 + $0x128] sm:$0xff]   ;;  %v4041_v4 = vor.u32 %v4040_v50, %v4037_v61  ;;  %v4234_v0 = vshll.u32 %v4229_v12, 16  ;;  %v5826_v28 = vld [vmem:[%s7048_s9 + $0x170] sm:$0xff]  }
 0x3d2   :  { %3618 = vst.msk [vmem:[#allocation5] sm:$0x8] %vm3062_vm2, %v3616_v45  ;;  %5600 = vmatprep.subr.bf16.mxu0 %v5865_v33  ;;  %v4048_v56 = vrot.slane %v4046_v20, 5  ;;  %v4449_v42 = vld [vmem:[#allocation3 + $0xc] sm:$0x3] }
 0x3d3   :  { %v4051_v35 = vrot.slane %v4049_v44, 6  ;;  %v4355_v20 = vld [vmem:[#allocation3 + $0x10] sm:$0x1]  ;;  %v4366_v44 = vld [vmem:[#allocation3 + $0x24] sm:$0x1]  ;;  %v4454_v61 = vshll.u32 %v4449_v42, 16 }
 0x3d4   :  { %5591 = vmatpush3.bf16.msra.mxu1 %v5807_v36  ;;  %v4146_v36 = vld [vmem:[#allocation3 + $0x20] sm:$0x2]  ;;  %v4357_v50 = vrot.slane %v4355_v20, 7 }
 0x3d5   :  { %5592 = vmatprep.subr.bf16.mxu1 %v5865_v33  ;;  %v4052_v29 = vor.u32 %v4051_v35, %v4048_v56  ;;  %v4471_v56 = vld [vmem:[#allocation3 + $0x20] sm:$0x3]  ;;  %v4368_v35 = vrot.slane %v4366_v44, 5 }
 0x3d8   :  { %5593 = vmatpush3.bf16.msra.mxu1 %v5809_v62  ;;  %v4148_v62 = vrot.slane %v4146_v36, 6  ;;  %v5831_v36 = vld [vmem:[%s7048_s9 + $0x188] sm:$0xff]  }
 0x3d9   :  { %v3619_v22 = vld [vmem:[#allocation5] sm:$0xf]  ;;  %5594 = vmatprep.subr.bf16.mxu1 %v5865_v33 }
 0x3da   :  { %3702 = vst.msk [vmem:[#allocation5] sm:$0x1] %vm3043_vm13, %v5072_v52  ;;  %5585 = vmatmul.mubr.msk.bf16.vlgmr.msra.gmra.mrb[40].mxu0 %vm2853_vm15, %v3619_v22  ;;  %v5817_v52 = vld [vmem:[%s7048_s9 + $0x110] sm:$0xff]   ;;  %v4141_v22 = vld [vmem:[#allocation3 + $0x1c] sm:$0x2] }
 0x3db   :  { %3704 = vst.msk [vmem:[#allocation5] sm:$0x2] %vm3049_vm4, %v3703_v38  ;;  %5601 = vmatpush3.bf16.msra.mxu0 %v5806_v19  ;;  %5608 = vmatprep.mubr.msk.bf16.mxu0 %vm5866_vm5, %v5865_v33  ;;  %v4231_v38 = vshrl.u32 %v4229_v12, 16  ;;  %v4143_v3 = vrot.slane %v4141_v22, 7  ;;  %v4456_v12 = vrot.slane %v4454_v61, 5  ;;  %v5840_v61 = vld [vmem:[%s7048_s9 + $0x1e8] sm:$0xff]  }
 0x3dc   :  { %3709 = vst.msk [vmem:[#allocation5] sm:$0x4] %vm3056_vm14, %v3707_v40  ;;  %5602 = vmatprep.subr.bf16.mxu0 %v5865_v33  ;;  %5595 = vmatpush3.bf16.msra.mxu1 %v5811_v16  ;;  %v5818_v40 = vld [vmem:[%s7048_s9 + $0x130] sm:$0xff]   ;;  %v4265_v16 = vshrl.u32 %v4263_v59, 16 }
 0x3dd   :  { %3714 = vst.msk [vmem:[#allocation5] sm:$0x8] %vm3062_vm2, %v3712_v6  ;;  %5612 = vmatprep.subr.bf16.mxu1 %v5865_v33  ;;  %v4020_v6 = vrot.slane %v4019_v46, 4  ;;  %v5827_v46 = vld [vmem:[%s7048_s9 + $0x158] sm:$0xff]  }
 0x3de   :  { %v4267_v23 = vrot.slane %v4265_v16, 6 }
 0x3df   :  { %5603 = vmatpush3.bf16.msra.mxu0 %v5808_v41  ;;  %v4243_v41 = vshrl.u32 %v4241_v34, 16  ;;  %v4476_v34 = vshll.u32 %v4471_v56, 16 }
 0x3e0   :  { %5604 = vmatprep.subr.bf16.mxu0 %v5865_v33 }
 0x3e1   :  { %v4245_v10 = vrot.slane %v4243_v41, 4  ;;  %v5832_v41 = vld [vmem:[%s7048_s9 + $0x1a8] sm:$0xff]  }
 0x3e3   :  { %5605 = vmatpush3.bf16.msra.mxu0 %v5810_v49  ;;  %v4233_v49 = vrot.slane %v4231_v38, 5 }
 0x3e4   :  { %v3715_v55 = vld [vmem:[#allocation5] sm:$0xf]  ;;  %5606 = vmatprep.subr.bf16.mxu0 %v5865_v33 }
 0x3e5   :  { %3804 = vst.msk [vmem:[#allocation5] sm:$0x1] %vm3043_vm13, %v3802_v18  ;;  %5597 = vmatmul.mubr.msk.bf16.vlgmr.msra.gmra.mrb[52].mxu1 %vm2853_vm15, %v3715_v55  ;;  %v4236_v18 = vrot.slane %v4234_v0, 6  ;;  %v4248_v55 = vrot.slane %v4246_v1, 5 }
 0x3e6   :  { %3816 = vst.msk [vmem:[#allocation5] sm:$0x2] %vm3049_vm4, %v3814_v8  ;;  %5613 = vmatpush3.bf16.msra.mxu1 %v5813_v30  ;;  %5620 = vmatprep.mubr.msk.bf16.mxu1 %vm5866_vm5, %v5865_v33  ;;  %v4255_v8 = vshrl.u32 %v4253_v51, 16 }
 0x3e7   :  { %3826 = vst.msk [vmem:[#allocation5] sm:$0x4] %vm3056_vm14, %v3824_v47  ;;  %5607 = vmatpush3.bf16.msra.mxu0 %v5812_v5  ;;  %5614 = vmatprep.subr.bf16.mxu1 %v5865_v33  ;;  %v5821_v47 = vld [vmem:[%s7048_s9 + $0x140] sm:$0xff]   ;;  %v4268_v5 = vshll.u32 %v4263_v59, 16  ;;  %v4237_v63 = vor.u32 %v4236_v18, %v4233_v49  ;;  %v4249_v39 = vor.u32 %v4248_v55, %v4245_v10  ;;  %v4478_v59 = vrot.slane %v4476_v34, 7  ;;  %v5833_v49 = vld [vmem:[%s7048_s9 + $0x190] sm:$0xff]  }
 0x3e8   :  { %3837 = vst.msk [vmem:[#allocation5] sm:$0x8] %vm3062_vm2, %v3835_v9  ;;  %5624 = vmatprep.subr.bf16.mxu0 %v5865_v33  ;;  %v5822_v9 = vld [vmem:[%s7048_s9 + $0x160] sm:$0xff]   ;;  %v4257_v11 = vrot.slane %v4255_v8, 7  ;;  %v5834_v18 = vld [vmem:[%s7048_s9 + $0x1b0] sm:$0xff]  }
 0x3e9   :  { %v4238_v24 = vrot.slane %v4237_v63, 4  ;;  %v4250_v31 = vrot.slane %v4249_v39, 4  ;;  %v4584_v55 = vld [vmem:[#allocation3 + $0x24] sm:$0x2]  ;;  %v4579_v39 = vld [vmem:[#allocation3 + $0x20] sm:$0x2] }
 0x3ea   :  { %5615 = vmatpush3.bf16.msra.mxu1 %v5815_v60  ;;  %v4360_v60 = vld [vmem:[#allocation3 + $0x20] sm:$0x1] }
 0x3eb   :  { %5616 = vmatprep.subr.bf16.mxu1 %v5865_v33 }
 0x3ee   :  { %5617 = vmatpush3.bf16.msra.mxu1 %v5817_v52 }
 0x3ef   :  { %v3838_v45 = vld [vmem:[#allocation5] sm:$0xf]  ;;  %5618 = vmatprep.subr.bf16.mxu1 %v5865_v33 }
 0x3f0   :  { %3917 = vst.msk [vmem:[#allocation5] sm:$0x1] %vm3043_vm13, %v3916_v54  ;;  %5609 = vmatmul.mubr.msk.bf16.vlgmr.msra.gmra.mrb[44].mxu0 %vm2853_vm15, %v3838_v45  ;;  %v4461_v45 = vld [vmem:[#allocation3 + $0x10] sm:$0x3]  ;;  %v4482_v54 = vld [vmem:[#allocation3 + $0x24] sm:$0x3] }
 0x3f1   :  { %3922 = vst.msk [vmem:[#allocation5] sm:$0x2] %vm3049_vm4, %v3920_v25  ;;  %5625 = vmatpush3.bf16.msra.mxu0 %v5814_v37  ;;  %5632 = vmatprep.mubr.msk.bf16.mxu0 %vm5866_vm5, %v5865_v33  ;;  %v4270_v25 = vrot.slane %v4268_v5, 7  ;;  %v4463_v15 = vshrl.u32 %v4461_v45, 16  ;;  %v4484_v52 = vshrl.u32 %v4482_v54, 16  ;;  %v4466_v22 = vshll.u32 %v4461_v45, 16 }
 0x3f2   :  { %3927 = vst.msk [vmem:[#allocation5] sm:$0x4] %vm3056_vm14, %v3925_v26  ;;  %5626 = vmatprep.subr.bf16.mxu0 %v5865_v33  ;;  %5619 = vmatpush3.bf16.msra.mxu1 %v5819_v7  ;;  %v4258_v26 = vshll.u32 %v4253_v51, 16  ;;  %v4352_v7 = vld [vmem:[#allocation3 + $0xc] sm:$0x1] }
 0x3f3   :  { %3932 = vst.msk [vmem:[#allocation5] sm:$0x8] %vm3062_vm2, %v3930_v27  ;;  %5636 = vmatprep.subr.bf16.mxu1 %v5865_v33  ;;  %v5825_v27 = vld [vmem:[%s7048_s9 + $0x150] sm:$0xff]   ;;  %v4271_v37 = vor.u32 %v4270_v25, %v4267_v23  ;;  %v4465_v58 = vrot.slane %v4463_v15, 7  ;;  %v4486_v38 = vrot.slane %v4484_v52, 5  ;;  %v4586_v23 = vrot.slane %v4584_v55, 6 }
 0x3f4   :  { %v4260_v30 = vor.u32 %v4258_v26, %v4257_v11  ;;  %v5836_v11 = vld [vmem:[%s7048_s9 + $0x1b8] sm:$0xff]   ;;  %v4691_v25 = vld [vmem:[#allocation3 + $0x20] sm:$0x6] }
 0x3f5   :  { %5627 = vmatpush3.bf16.msra.mxu0 %v5816_v2  ;;  %v4451_v2 = vshrl.u32 %v4449_v42, 16  ;;  %v4577_v42 = vld [vmem:[#allocation3 + $0x10] sm:$0x2]  ;;  %v4693_v45 = vshrl.u32 %v4691_v25, 16  ;;  %v4696_v15 = vshll.u32 %v4691_v25, 16 }
 0x3f6   :  { %5628 = vmatprep.subr.bf16.mxu0 %v5865_v33 }
 0x3f9   :  { %5629 = vmatpush3.bf16.msra.mxu0 %v5818_v40  ;;  %v4487_v40 = vshll.u32 %v4482_v54, 16 }
 0x3fa   :  { %v3933_v19 = vld [vmem:[#allocation5] sm:$0xf]  ;;  %5630 = vmatprep.subr.bf16.mxu0 %v5865_v33 }
 0x3fb   :  { %4022 = vst.msk [vmem:[#allocation5] sm:$0x1] %vm3043_vm13, %v4020_v6  ;;  %5621 = vmatmul.mubr.msk.bf16.vlgmr.msra.gmra.mrb[56].mxu1 %vm2853_vm15, %v3933_v19  ;;  %v4362_v6 = vrot.slane %v4360_v60, 6  ;;  %v4473_v19 = vshrl.u32 %v4471_v56, 16  ;;  %v4489_v0 = vrot.slane %v4487_v40, 6  ;;  %v4695_v56 = vrot.slane %v4693_v45, 7 }
 0x3fc   :  { %4032 = vst.msk [vmem:[#allocation5] sm:$0x2] %vm3049_vm4, %v4030_v32  ;;  %5637 = vmatpush3.bf16.msra.mxu1 %v5821_v47  ;;  %5644 = vmatprep.mubr.msk.bf16.mxu1 %vm5866_vm5, %v5865_v33  ;;  %v5829_v32 = vld [vmem:[%s7048_s9 + $0x180] sm:$0xff]   ;;  %v5841_v40 = vld [vmem:[%s7048_s9 + $0x1d0] sm:$0xff]  }
 0x3fd   :  { %4043 = vst.msk [vmem:[#allocation5] sm:$0x4] %vm3056_vm14, %v4041_v4  ;;  %5631 = vmatpush3.bf16.msra.mxu0 %v5820_v57  ;;  %5638 = vmatprep.subr.bf16.mxu1 %v5865_v33  ;;  %v5830_v4 = vld [vmem:[%s7048_s9 + $0x1a0] sm:$0xff]   ;;  %v4475_v51 = vrot.slane %v4473_v19, 6  ;;  %v5844_v19 = vld [vmem:[%s7048_s9 + $0x1f8] sm:$0xff]  }
 0x3fe   :  { %4054 = vst.msk [vmem:[#allocation5] sm:$0x8] %vm3062_vm2, %v4052_v29  ;;  %5648 = vmatprep.subr.bf16.mxu0 %v5865_v33  ;;  %v4453_v29 = vrot.slane %v4451_v2, 4  ;;  %v5839_v2 = vld [vmem:[%s7048_s9 + $0x1c8] sm:$0xff]  }
 0x3ff   :  { %v4479_v47 = vor.u32 %v4478_v59, %v4475_v51 }
 0x400   :  { %5639 = vmatpush3.bf16.msra.mxu1 %v5823_v13  ;;  %v4457_v1 = vor.u32 %v4456_v12, %v4453_v29  ;;  %v4571_v13 = vld [vmem:[#allocation3 + $0xc] sm:$0x2] }
 0x401   :  { %5640 = vmatprep.subr.bf16.mxu1 %v5865_v33  ;;  %v5843_v12 = vld [vmem:[%s7048_s9 + $0x1d8] sm:$0xff]  }
 0x402   :  { %v4458_v8 = vrot.slane %v4457_v1, 4 }
 0x404   :  { %5641 = vmatpush3.bf16.msra.mxu1 %v5825_v27 }
 0x405   :  { %v4055_v14 = vld [vmem:[#allocation5] sm:$0xf]  ;;  %5642 = vmatprep.subr.bf16.mxu1 %v5865_v33 }
 0x406   :  { %4140 = vst.msk [vmem:[#allocation5] sm:$0x2] %vm3049_vm4, %v4139_v53  ;;  %5633 = vmatmul.mubr.msk.bf16.vlgmr.msra.gmra.mrb[48].mxu0 %vm2853_vm15, %v4055_v14  ;;  %v4701_v14 = vld [vmem:[#allocation3 + $0x24] sm:$0x6]  ;;  %v5835_v53 = vld [vmem:[%s7048_s9 + $0x198] sm:$0xff]  }
 0x407   :  { %4138 = vst.msk [vmem:[#allocation5] sm:$0x1] %vm3043_vm13, %v5125_v21  ;;  %5649 = vmatpush3.bf16.msra.mxu0 %v5822_v9  ;;  %5656 = vmatprep.mubr.msk.bf16.mxu0 %vm5866_vm5, %v5865_v33  ;;  %v4468_v21 = vor.u32 %v4466_v22, %v4465_v58  ;;  %v4667_v9 = vld [vmem:[#allocation3 + $0xc] sm:$0x6] }
 0x408   :  { %4145 = vst.msk [vmem:[#allocation5] sm:$0x4] %vm3056_vm14, %v4143_v3  ;;  %5650 = vmatprep.subr.bf16.mxu0 %v5865_v33  ;;  %5643 = vmatpush3.bf16.msra.mxu1 %v5827_v46  ;;  %v4490_v3 = vor.u32 %v4489_v0, %v4486_v38  ;;  %v4672_v63 = vshll.u32 %v4667_v9, 16 }
 0x409   :  { %4150 = vst.msk [vmem:[#allocation5] sm:$0x8] %vm3062_vm2, %v4148_v62  ;;  %5660 = vmatprep.subr.bf16.mxu1 %v5865_v33  ;;  %v4679_v62 = vld [vmem:[#allocation3 + $0x10] sm:$0x6] }
 0x40a   :  { %v4681_v16 = vshrl.u32 %v4679_v62, 16  ;;  %v4684_v5 = vshll.u32 %v4679_v62, 16  ;;  %v4674_v44 = vrot.slane %v4672_v63, 6 }
 0x40b   :  { %5651 = vmatpush3.bf16.msra.mxu0 %v5824_v17  ;;  %v4669_v17 = vshrl.u32 %v4667_v9, 16 }
 0x40c   :  { %5652 = vmatprep.subr.bf16.mxu0 %v5865_v33  ;;  %v4683_v26 = vrot.slane %v4681_v16, 4  ;;  %v4686_v27 = vrot.slane %v4684_v5, 5 }
 0x40d   :  { %v4671_v20 = vrot.slane %v4669_v17, 5 }
 0x40e   :  { %v4687_v46 = vor.u32 %v4686_v27, %v4683_v26 }
 0x40f   :  { %5653 = vmatpush3.bf16.msra.mxu0 %v5826_v28  ;;  %v4703_v28 = vshrl.u32 %v4701_v14, 16 }
 0x410   :  { %v4151_v43 = vld [vmem:[#allocation5] sm:$0xf]  ;;  %5654 = vmatprep.subr.bf16.mxu0 %v5865_v33 }
 0x411   :  { %4240 = vst.msk [vmem:[#allocation5] sm:$0x1] %vm3043_vm13, %v4238_v24  ;;  %5645 = vmatmul.mubr.msk.bf16.vlgmr.msra.gmra.mrb[60].mxu1 %vm2853_vm15, %v4151_v43  ;;  %v4706_v24 = vshll.u32 %v4701_v14, 16  ;;  %v4581_v43 = vrot.slane %v4579_v39, 7 }
 0x412   :  { %4252 = vst.msk [vmem:[#allocation5] sm:$0x2] %vm3049_vm4, %v4250_v31  ;;  %5661 = vmatpush3.bf16.msra.mxu1 %v5829_v32  ;;  %5668 = vmatprep.mubr.msk.bf16.mxu1 %vm5866_vm5, %v5865_v33  ;;  %v5178_v31 = vrot.slane %v4571_v13, 9 }
 0x413   :  { %4262 = vst.msk [vmem:[#allocation5] sm:$0x4] %vm3056_vm14, %v4260_v30  ;;  %5655 = vmatpush3.bf16.msra.mxu0 %v5828_v48  ;;  %5662 = vmatprep.subr.bf16.mxu1 %v5865_v33  ;;  %v5837_v30 = vld [vmem:[%s7048_s9 + $0x1c0] sm:$0xff]   ;;  %v4705_v48 = vrot.slane %v4703_v28, 6  ;;  %v4708_v60 = vrot.slane %v4706_v24, 7 }
 0x414   :  { %4273 = vst.msk [vmem:[#allocation5] sm:$0x8] %vm3062_vm2, %v4271_v37  ;;  %5672 = vmatprep.subr.bf16.mxu0 %v5865_v33  ;;  %v5838_v37 = vld [vmem:[%s7048_s9 + $0x1e0] sm:$0xff]  }
 0x415   :  { %v4709_v52 = vor.u32 %v4708_v60, %v4705_v48 }
 0x416   :  { %5663 = vmatpush3.bf16.msra.mxu1 %v5831_v36 }
 0x417   :  { %5664 = vmatprep.subr.bf16.mxu1 %v5865_v33 }
 0x41a   :  { %5665 = vmatpush3.bf16.msra.mxu1 %v5833_v49 }
 0x41b   :  { %v4274_v57 = vld [vmem:[#allocation5] sm:$0xf]  ;;  %5666 = vmatprep.subr.bf16.mxu1 %v5865_v33 }
 0x41c   :  { %5657 = vmatmul.mubr.msk.bf16.vlgmr.msra.gmra.mrb[52].mxu0 %vm2853_vm15, %v4274_v57  ;;  %4353 = vst.msk [vmem:[#allocation5] sm:$0x1] %vm3043_vm13, %v4352_v7 }
 0x41d   :  { %4359 = vst.msk [vmem:[#allocation5] sm:$0x2] %vm3049_vm4, %v4357_v50  ;;  %5673 = vmatpush3.bf16.msra.mxu0 %v5830_v4  ;;  %5680 = vmatprep.mubr.msk.bf16.mxu0 %vm5866_vm5, %v5865_v33  ;;  %v4675_v50 = vor.u32 %v4674_v44, %v4671_v20  ;;  %v4698_v4 = vor.u32 %v4696_v15, %v4695_v56 }
 0x41e   :  { %4364 = vst.msk [vmem:[#allocation5] sm:$0x4] %vm3056_vm14, %v4362_v6  ;;  %5674 = vmatprep.subr.bf16.mxu0 %v5865_v33  ;;  %5667 = vmatpush3.bf16.msra.mxu1 %v5835_v53  ;;  %v5842_v6 = vld [vmem:[%s7048_s9 + $0x1f0] sm:$0xff]  }
 0x41f   :  { %4370 = vst.msk [vmem:[#allocation5] sm:$0x8] %vm3062_vm2, %v4368_v35  ;;  %5684 = vmatprep.subr.bf16.mxu1 %v5865_v33  ;;  %v4688_v35 = vrot.slane %v4687_v46, 4  ;;  %v4676_v32 = vrot.slane %v4675_v50, 4 }
 0x421   :  { %5675 = vmatpush3.bf16.msra.mxu0 %v5832_v41 }
 0x422   :  { %5676 = vmatprep.subr.bf16.mxu0 %v5865_v33 }
 0x425   :  { %5677 = vmatpush3.bf16.msra.mxu0 %v5834_v18 }
 0x426   :  { %v4371_v10 = vld [vmem:[#allocation5] sm:$0xf]  ;;  %5678 = vmatprep.subr.bf16.mxu0 %v5865_v33 }
 0x427   :  { %4460 = vst.msk [vmem:[#allocation5] sm:$0x1] %vm3043_vm13, %v4458_v8  ;;  %5669 = vmatmul.mubr.msk.bf16.vlgmr.msra.gmra.mrb[64].mxu1 %vm2853_vm15, %v4371_v10 }
 0x428   :  { %4470 = vst.msk [vmem:[#allocation5] sm:$0x2] %vm3049_vm4, %v4468_v21  ;;  %5685 = vmatpush3.bf16.msra.mxu1 %v5837_v30  ;;  %5692 = vmatprep.mubr.msk.bf16.mxu1 %vm5866_vm5, %v5865_v33 }
 0x429   :  { %4481 = vst.msk [vmem:[#allocation5] sm:$0x4] %vm3056_vm14, %v4479_v47  ;;  %5679 = vmatpush3.bf16.msra.mxu0 %v5836_v11  ;;  %5686 = vmatprep.subr.bf16.mxu1 %v5865_v33 }
 0x42a   :  { %4492 = vst.msk [vmem:[#allocation5] sm:$0x8] %vm3062_vm2, %v4490_v3  ;;  %5696 = vmatprep.subr.bf16.mxu0 %v5865_v33 }
 0x42c   :  { %5687 = vmatpush3.bf16.msra.mxu1 %v5839_v2 }
 0x42d   :  { %5688 = vmatprep.subr.bf16.mxu1 %v5865_v33 }
 0x430   :  { %5689 = vmatpush3.bf16.msra.mxu1 %v5841_v40 }
 0x431   :  { %v4493_v54 = vld [vmem:[#allocation5] sm:$0xf]  ;;  %5690 = vmatprep.subr.bf16.mxu1 %v5865_v33 }
 0x432   :  { %5681 = vmatmul.mubr.msk.bf16.vlgmr.msra.gmra.mrb[56].mxu0 %vm2853_vm15, %v4493_v54  ;;  %4576 = vst.msk [vmem:[#allocation5] sm:$0x1] %vm3043_vm13, %v5178_v31 }
 0x433   :  { %4583 = vst.msk [vmem:[#allocation5] sm:$0x4] %vm3056_vm14, %v4581_v43  ;;  %5697 = vmatpush3.bf16.msra.mxu0 %v5838_v37  ;;  %5704 = vmatprep.mubr.msk.bf16.mxu0 %vm5866_vm5, %v5865_v33 }
 0x434   :  { %4588 = vst.msk [vmem:[#allocation5] sm:$0x8] %vm3062_vm2, %v4586_v23  ;;  %5698 = vmatprep.subr.bf16.mxu0 %v5865_v33  ;;  %5691 = vmatpush3.bf16.msra.mxu1 %v5843_v12 }
 0x435   :  { %4578 = vst.msk [vmem:[#allocation5] sm:$0x2] %vm3049_vm4, %v4577_v42 }
 0x437   :  { %5699 = vmatpush3.bf16.msra.mxu0 %v5840_v61 }
 0x438   :  { %5700 = vmatprep.subr.bf16.mxu0 %v5865_v33 }
 0x43b   :  { %5701 = vmatpush3.bf16.msra.mxu0 %v5842_v6 }
 0x43c   :  { %v4589_v29 = vld [vmem:[#allocation5] sm:$0xf]  ;;  %5702 = vmatprep.subr.bf16.mxu0 %v5865_v33 }
 0x43d   :  { %4678 = vst.msk [vmem:[#allocation5] sm:$0x1] %vm3043_vm13, %v4676_v32  ;;  %5693 = vmatmul.mubr.msk.bf16.vlgmr.msra.gmra.mrb[68].mxu1 %vm2853_vm15, %v4589_v29 }
 0x43e   :  { %4690 = vst.msk [vmem:[#allocation5] sm:$0x2] %vm3049_vm4, %v4688_v35 }
 0x43f   :  { %4700 = vst.msk [vmem:[#allocation5] sm:$0x4] %vm3056_vm14, %v4698_v4  ;;  %5703 = vmatpush3.bf16.msra.mxu0 %v5844_v19 }
 0x440   :  { %4711 = vst.msk [vmem:[#allocation5] sm:$0x8] %vm3062_vm2, %v4709_v52 }
 0x447   :  { %v4712_v34 = vld [vmem:[#allocation5] sm:$0xf] }
 0x448   :  { %5705 = vmatmul.mubr.msk.bf16.vlgmr.msra.gmra.mrb[60].mxu0 %vm2853_vm15, %v4712_v34 }
 0x476   :  { %v3255_v7 = vpop.f32.mrb[32].mxu0 }
 0x477   :  { %v5538_v57 = vpop.f32.mrb[33].mxu0 }
 0x478   :  { %v3258_v58 = vpop.f32.mrb[34].mxu0 }
 0x479   :  { %v5539_v22 = vpop.f32.mrb[35].mxu0 }
 0x481   :  { %v3188_v38 = vpop.f32.mrb[40].mxu1 }
 0x482   :  { %v3256_v0 = vadd.f32 %v3255_v7, %v3188_v38  ;;  %v5526_v36 = vpop.f32.mrb[41].mxu1 }
 0x483   :  { %v3191_v41 = vpop.f32.mrb[42].mxu1 }
 0x484   :  { %v5527_v1 = vpop.f32.mrb[43].mxu1 }
 0x491   :  { %v3350_v51 = vpop.f32.mrb[44].mxu1 }
 0x492   :  { %v3356_v21 = vadd.f32 %v3350_v51, %v3256_v0  ;;  %v5550_v33 = vpop.f32.mrb[45].mxu1 }
 0x493   :  { %v3353_v62 = vpop.f32.mrb[46].mxu1 }
 0x494   :  { %v5551_v8 = vpop.f32.mrb[47].mxu1 }
 0x497   :  { %v3473_v59 = vpop.f32.mrb[36].mxu0 }
 0x498   :  { %v5562_v3 = vpop.f32.mrb[37].mxu0  ;;  %v3479_v18 = vadd.f32 %v3473_v59, %v3356_v21  ;;  %v5205_v59 = vld [vmem:[%s7051_s10] ss:$0 sm:$0xff] }
 0x499   :  { %v3476_v49 = vpop.f32.mrb[38].mxu0 }
 0x49a   :  { %v5563_v47 = vpop.f32.mrb[39].mxu0 }
 0x4a2   :  { %v3568_v9 = vpop.f32.mrb[48].mxu1 }
 0x4a3   :  { %v3574_v55 = vadd.f32 %v3568_v9, %v3479_v18  ;;  %v5574_v16 = vpop.f32.mrb[49].mxu1 }
 0x4a4   :  { %v3571_v14 = vpop.f32.mrb[50].mxu1 }
 0x4a5   :  { %v5575_v13 = vpop.f32.mrb[51].mxu1 }
 0x4ad   :  { %v3690_v10 = vpop.f32.mrb[40].mxu0 }
 0x4ae   :  { %v5586_v5 = vpop.f32.mrb[41].mxu0  ;;  %v3696_v11 = vadd.f32 %v3690_v10, %v3574_v55 }
 0x4af   :  { %v3693_v53 = vpop.f32.mrb[42].mxu0 }
 0x4b0   :  { %v5587_v17 = vpop.f32.mrb[43].mxu0 }
 0x4b8   :  { %v3786_v63 = vpop.f32.mrb[52].mxu1 }
 0x4b9   :  { %v3792_v23 = vadd.f32 %v3786_v63, %v3696_v11  ;;  %v5598_v25 = vpop.f32.mrb[53].mxu1 }
 0x4ba   :  { %v3789_v27 = vpop.f32.mrb[54].mxu1 }
 0x4bb   :  { %v5599_v31 = vpop.f32.mrb[55].mxu1 }
 0x4c3   :  { %v3909_v39 = vpop.f32.mrb[44].mxu0 }
 0x4c4   :  { %v5610_v26 = vpop.f32.mrb[45].mxu0  ;;  %v3915_v24 = vadd.f32 %v3909_v39, %v3792_v23 }
 0x4c5   :  { %v3912_v28 = vpop.f32.mrb[46].mxu0 }
 0x4c6   :  { %v5611_v30 = vpop.f32.mrb[47].mxu0 }
 0x4ce   :  { %v4004_v37 = vpop.f32.mrb[56].mxu1 }
 0x4cf   :  { %v4010_v43 = vadd.f32 %v4004_v37, %v3915_v24  ;;  %v5622_v20 = vpop.f32.mrb[57].mxu1 }
 0x4d0   :  { %v4007_v45 = vpop.f32.mrb[58].mxu1 }
 0x4d1   :  { %v5623_v48 = vpop.f32.mrb[59].mxu1 }
 0x4d9   :  { %v4126_v42 = vpop.f32.mrb[48].mxu0 }
 0x4da   :  { %v5634_v44 = vpop.f32.mrb[49].mxu0  ;;  %v4132_v46 = vadd.f32 %v4126_v42, %v4010_v43 }
 0x4db   :  { %v4129_v54 = vpop.f32.mrb[50].mxu0 }
 0x4dc   :  { %v5635_v60 = vpop.f32.mrb[51].mxu0 }
 0x4e4   :  { %v4222_v2 = vpop.f32.mrb[60].mxu1 }
 0x4e5   :  { %v4228_v50 = vadd.f32 %v4222_v2, %v4132_v46  ;;  %v5646_v56 = vpop.f32.mrb[61].mxu1 }
 0x4e6   :  { %v4225_v15 = vpop.f32.mrb[62].mxu1 }
 0x4e7   :  { %v5647_v6 = vpop.f32.mrb[63].mxu1 }
 0x4ef   :  { %v4345_v61 = vpop.f32.mrb[52].mxu0 }
 0x4f0   :  { %v5658_v35 = vpop.f32.mrb[53].mxu0  ;;  %v4351_v40 = vadd.f32 %v4345_v61, %v4228_v50 }
 0x4f1   :  { %v4348_v52 = vpop.f32.mrb[54].mxu0 }
 0x4f2   :  { %v5659_v32 = vpop.f32.mrb[55].mxu0 }
 0x4fa   :  { %v4442_v4 = vpop.f32.mrb[64].mxu1 }
 0x4fb   :  { %v4448_v12 = vadd.f32 %v4442_v4, %v4351_v40  ;;  %v5670_v19 = vpop.f32.mrb[65].mxu1 }
 0x4fc   :  { %v4445_v7 = vpop.f32.mrb[66].mxu1 }
 0x4fd   :  { %v5671_v22 = vpop.f32.mrb[67].mxu1 }
 0x505   :  { %v4564_v29 = vpop.f32.mrb[56].mxu0 }
 0x506   :  { %v5682_v34 = vpop.f32.mrb[57].mxu0  ;;  %v4570_v58 = vadd.f32 %v4564_v29, %v4448_v12 }
 0x507   :  { %v4567_v57 = vpop.f32.mrb[58].mxu0 }
 0x508   :  { %v5683_v38 = vpop.f32.mrb[59].mxu0 }
 0x510   :  { %v4660_v0 = vpop.f32.mrb[68].mxu1 }
 0x511   :  { %v4666_v41 = vadd.f32 %v4660_v0, %v4570_v58  ;;  %v5694_v1 = vpop.f32.mrb[69].mxu1 }
 0x512   :  { %v4663_v21 = vpop.f32.mrb[70].mxu1 }
 0x513   :  { %v5695_v62 = vpop.f32.mrb[71].mxu1 }
 0x51b   :  { %v4783_v36 = vpop.f32.mrb[60].mxu0 }
 0x51c   :  { %v5706_v51 = vpop.f32.mrb[61].mxu0  ;;  %v4789_v3 = vadd.f32 %v4783_v36, %v4666_v41 }
 0x51d   :  { %v4786_v33 = vpop.f32.mrb[62].mxu0 }
 0x51e   :  { %v5707_v49 = vpop.f32.mrb[63].mxu0  ;;  %v4797_v18 = vadd.f32 %v5205_v59, %v4789_v3 }
 0x520   :  { %4798 = vst [vmem:[%s7052_s11] sm:$0xff] %v4797_v18 }

</bundles_post_ra>
